<compile_context>
chip_gen: v5e
topology: v5e:2x2
jax: 0.10.0
libtpu: 0.0.40
codegen_flags: <defaults>
</compile_context>

<pallas_src>
import functools

import jax
import jax.numpy as jnp
from jax.experimental import pallas as pl
from jax.experimental.pallas import tpu as pltpu


def _moe_kernel(x_ref, wmh_ref, bmh_ref, emb_ref, w1s_ref, b1s_ref, w2s_ref, b2s_ref,
                wm_ref, bm_ref, expand_ref, o_ref, *, num_heads, num_experts, topk):
    f32 = jnp.float32
    x = x_ref[...]                                                     # (tm, hidden)
    tm = x.shape[0]
    hidden = o_ref.shape[-1]

    # Block-diagonal (E, E*I) gate-expansion matrix (built once in the wrapper; resident).
    expand = expand_ref[...]

    out_acc = jnp.zeros((tm, hidden), f32) + bm_ref[...]               # fold merge bias in

    # Expert-column iota for top-k first-occurrence tie-breaking (hoisted out of head loop).
    ecol = jax.lax.broadcasted_iota(jnp.int32, (tm, num_experts), 1)

    for hd in range(num_heads):
        # per-head projection: (tm, hidden) @ (hidden, D) + b   (head indexed on leading dim)
        s = jnp.dot(x, wmh_ref[hd], preferred_element_type=f32) + bmh_ref[hd]

        # router: logits -> softmax -> keep softmax weight for top-k experts, 0 elsewhere
        logits = jnp.dot(s, emb_ref[...], preferred_element_type=f32)  # (tm, E)
        rw = jax.nn.softmax(logits, axis=-1)

        remaining = rw
        keep = jnp.zeros_like(rw)
        for _ in range(topk):
            mx = jnp.max(remaining, axis=-1, keepdims=True)
            is_max = remaining >= mx
            # first occurrence of the max (matches torch.topk tie-breaking)
            masked_col = jnp.where(is_max, ecol, num_experts)
            amin = jnp.min(masked_col, axis=-1, keepdims=True)
            sel = ecol == amin
            keep = keep + jnp.where(sel, rw, 0.0)
            remaining = jnp.where(sel, -jnp.inf, remaining)

        # stacked dense expert MLP (all experts in one matmul pair)
        he = jnp.dot(s, w1s_ref[...], preferred_element_type=f32) + b1s_ref[...]   # (tm, E*I)
        he = jax.nn.gelu(he, approximate=True)
        gate_wide = jnp.dot(keep, expand, preferred_element_type=f32)              # (tm, E*I)
        he = he * gate_wide
        acc = jnp.dot(he, w2s_ref[...], preferred_element_type=f32)                # (tm, D)
        acc = acc + jnp.dot(keep, b2s_ref[...], preferred_element_type=f32)        # gated bias

        # merge layer folded into the accumulator: out += acc_h @ wm[h]
        out_acc = out_acc + jnp.dot(acc, wm_ref[hd], preferred_element_type=f32)

    o_ref[...] = out_acc.astype(o_ref.dtype)


def multi_head_moe_forward(x, params, *, num_heads, topk, tm=128):
    bs, L, hidden = x.shape
    head_dim = hidden // num_heads
    num_experts = params["emb"].shape[-1]
    inter_head = params["w1"].shape[-1]
    EI = num_experts * inter_head

    n_tok = bs * L
    n_pad = ((n_tok + tm - 1) // tm) * tm
    xt = x.reshape(n_tok, hidden)
    if n_pad != n_tok:
        xt = jnp.pad(xt, ((0, n_pad - n_tok), (0, 0)))

    # Restructure weights: head-major projections, expert-stacked MLP weights (done once in XLA).
    wmh_h = params["wmh"].reshape(hidden, num_heads, head_dim).transpose(1, 0, 2)  # (H, hidden, D)
    bmh_h = params["bmh"].reshape(num_heads, 1, head_dim)                          # (H, 1, D)
    wm_h = params["wm"].reshape(num_heads, head_dim, hidden)                       # (H, D, hidden)
    w1s = params["w1"].transpose(1, 0, 2).reshape(head_dim, EI)                    # (D, E*I)
    b1s = params["b1"].reshape(1, EI)                                              # (1, E*I)
    w2s = params["w2"].reshape(EI, head_dim)                                       # (E*I, D)
    b2s = params["b2"].reshape(num_experts, head_dim)                              # (E, D)

    # Block-diagonal (E, E*I) gate-expansion matrix (built once, resident in VMEM).
    row = jnp.arange(num_experts)[:, None]
    col = jnp.arange(EI)[None, :] // inter_head
    expand = (row == col).astype(jnp.float32)                                      # (E, E*I)

    kernel = functools.partial(
        _moe_kernel,
        num_heads=num_heads, num_experts=num_experts, topk=topk,
    )

    out = pl.pallas_call(
        kernel,
        out_shape=jax.ShapeDtypeStruct((n_pad, hidden), x.dtype),
        grid=(n_pad // tm,),
        in_specs=[
            pl.BlockSpec((tm, hidden), lambda i: (i, 0)),                        # x tile
            pl.BlockSpec((num_heads, hidden, head_dim), lambda i: (0, 0, 0)),    # multi_head W (per head)
            pl.BlockSpec((num_heads, 1, head_dim), lambda i: (0, 0, 0)),         # multi_head b (per head)
            pl.BlockSpec((head_dim, num_experts), lambda i: (0, 0)),             # expert_embedding
            pl.BlockSpec((head_dim, EI), lambda i: (0, 0)),                      # stacked expert fc1 W
            pl.BlockSpec((1, EI), lambda i: (0, 0)),                             # stacked expert fc1 b
            pl.BlockSpec((EI, head_dim), lambda i: (0, 0)),                      # stacked expert fc2 W
            pl.BlockSpec((num_experts, head_dim), lambda i: (0, 0)),             # expert fc2 b (per expert)
            pl.BlockSpec((num_heads, head_dim, hidden), lambda i: (0, 0, 0)),    # merge W (per head)
            pl.BlockSpec((1, hidden), lambda i: (0, 0)),                         # merge b
            pl.BlockSpec((num_experts, EI), lambda i: (0, 0)),                   # gate-expansion matrix
        ],
        out_specs=pl.BlockSpec((tm, hidden), lambda i: (i, 0)),
        compiler_params=pltpu.CompilerParams(dimension_semantics=("parallel",)),
    )(xt, wmh_h, bmh_h, params["emb"], w1s, b1s, w2s, b2s, wm_h, params["bm"], expand)

    return out[:n_tok].reshape(bs, L, hidden)


def reference_forward(x, params, *, num_heads, topk):
    """Pure-JAX mirror of the PyTorch forward (for correctness checking)."""
    bs, L, hidden = x.shape
    head_dim = hidden // num_heads
    rounded = head_dim * num_heads
    num_experts = params["emb"].shape[-1]

    h = x.reshape(bs * L, hidden) @ params["wmh"] + params["bmh"]
    s = h.reshape(bs * L * num_heads, head_dim)
    logits = s @ params["emb"]
    rw = jax.nn.softmax(logits, axis=-1)
    vals, idx = jax.lax.top_k(rw, topk)
    expert_outs = jnp.stack(
        [jax.nn.gelu(s @ params["w1"][e] + params["b1"][e, 0], approximate=True)
         @ params["w2"][e] + params["b2"][e, 0]
         for e in range(num_experts)], axis=1)                                   # (N, E, head_dim)
    sel = jnp.take_along_axis(expert_outs, idx[:, :, None], axis=1)
    out = (sel * vals[:, :, None]).sum(axis=1)
    out = out.reshape(bs * L, rounded) @ params["wm"] + params["bm"]
    return out.reshape(bs, L, hidden)


def init_params(key, *, hidden, num_heads, num_experts, intermediate):
    head_dim = hidden // num_heads
    rounded = head_dim * num_heads
    inter_head = intermediate // num_heads
    ks = jax.random.split(key, 10)
    n = jax.random.normal
    return {
        "wmh": n(ks[0], (hidden, rounded), jnp.float32) * 0.1,
        "bmh": n(ks[1], (1, rounded), jnp.float32) * 0.1,
        "emb": n(ks[2], (head_dim, num_experts), jnp.float32),
        "w1": n(ks[3], (num_experts, head_dim, inter_head), jnp.float32) * 0.2,
        "b1": n(ks[4], (num_experts, 1, inter_head), jnp.float32) * 0.1,
        "w2": n(ks[5], (num_experts, inter_head, head_dim), jnp.float32) * 0.2,
        "b2": n(ks[6], (num_experts, 1, head_dim), jnp.float32) * 0.1,
        "wm": n(ks[7], (rounded, hidden), jnp.float32) * 0.1,
        "bm": n(ks[8], (1, hidden), jnp.float32) * 0.1,
    }


if __name__ == "__main__":
    # small config consistent with the module: hidden=32, heads=4 (head_dim=8),
    # experts=4, topk=2, intermediate=64 (per-head intermediate=16), batch=2, seq=8
    bs, L, hidden = 2, 8, 32
    num_heads, num_experts, topk, intermediate = 4, 4, 2, 64

    key = jax.random.PRNGKey(0)
    kx, kp = jax.random.split(key)
    x = jax.random.normal(kx, (bs, L, hidden), jnp.float32)
    params = init_params(kp, hidden=hidden, num_heads=num_heads,
                         num_experts=num_experts, intermediate=intermediate)

    out = multi_head_moe_forward(x, params, num_heads=num_heads, topk=topk, tm=128)
    out = jax.block_until_ready(out)

    ref = reference_forward(x, params, num_heads=num_heads, topk=topk)
    assert out.shape == (bs, L, hidden)
    assert jnp.allclose(out, ref, atol=5e-4, rtol=5e-4), "mismatch vs pure-JAX reference"

    print("KERNEL_OK")
</pallas_src>

<mosaic_0001>
module attributes {stable_mosaic.version = 11 : i64} {
  func.func @_moe_kernel(%arg0: i32, %arg1: memref<128x32xf32, #tpu.memory_space<vmem>>, %arg2: memref<4x32x8xf32, #tpu.memory_space<vmem>>, %arg3: memref<4x1x8xf32, #tpu.memory_space<vmem>>, %arg4: memref<8x4xf32, #tpu.memory_space<vmem>>, %arg5: memref<8x64xf32, #tpu.memory_space<vmem>>, %arg6: memref<1x64xf32, #tpu.memory_space<vmem>>, %arg7: memref<64x8xf32, #tpu.memory_space<vmem>>, %arg8: memref<4x8xf32, #tpu.memory_space<vmem>>, %arg9: memref<4x8x32xf32, #tpu.memory_space<vmem>>, %arg10: memref<1x32xf32, #tpu.memory_space<vmem>>, %arg11: memref<4x64xf32, #tpu.memory_space<vmem>>, %arg12: memref<128x32xf32, #tpu.memory_space<vmem>>) attributes {dimension_semantics = [#tpu.dimension_semantics<parallel>], iteration_bounds = array<i64: 1>, scalar_prefetch = 0 : i64, scratch_operands = 0 : i64, tpu.core_type = #tpu.core_type<tc>, window_params = [{transform_indices = @transform_0, window_bounds = array<i64: 128, 32>}, {pipeline_mode = #tpu.pipeline_mode<synchronous>, transform_indices = @transform_1, window_bounds = array<i64: 4, 32, 8>}, {pipeline_mode = #tpu.pipeline_mode<synchronous>, transform_indices = @transform_2, window_bounds = array<i64: 4, 1, 8>}, {pipeline_mode = #tpu.pipeline_mode<synchronous>, transform_indices = @transform_3, window_bounds = array<i64: 8, 4>}, {pipeline_mode = #tpu.pipeline_mode<synchronous>, transform_indices = @transform_4, window_bounds = array<i64: 8, 64>}, {pipeline_mode = #tpu.pipeline_mode<synchronous>, transform_indices = @transform_5, window_bounds = array<i64: 1, 64>}, {pipeline_mode = #tpu.pipeline_mode<synchronous>, transform_indices = @transform_6, window_bounds = array<i64: 64, 8>}, {pipeline_mode = #tpu.pipeline_mode<synchronous>, transform_indices = @transform_7, window_bounds = array<i64: 4, 8>}, {pipeline_mode = #tpu.pipeline_mode<synchronous>, transform_indices = @transform_8, window_bounds = array<i64: 4, 8, 32>}, {pipeline_mode = #tpu.pipeline_mode<synchronous>, transform_indices = @transform_9, window_bounds = array<i64: 1, 32>}, {pipeline_mode = #tpu.pipeline_mode<synchronous>, transform_indices = @transform_10, window_bounds = array<i64: 4, 64>}, {transform_indices = @transform_11, window_bounds = array<i64: 128, 32>}]} {
    %c0 = arith.constant 0 : index
    %c0_0 = arith.constant 0 : index
    %0 = vector.load %arg1[%c0, %c0_0] : memref<128x32xf32, #tpu.memory_space<vmem>>, vector<128x32xf32>
    %c0_1 = arith.constant 0 : index
    %c0_2 = arith.constant 0 : index
    %1 = vector.load %arg11[%c0_1, %c0_2] : memref<4x64xf32, #tpu.memory_space<vmem>>, vector<4x64xf32>
    %cst = arith.constant 0.000000e+00 : f32
    %2 = vector.broadcast %cst : f32 to vector<128x32xf32>
    %c0_3 = arith.constant 0 : index
    %c0_4 = arith.constant 0 : index
    %3 = vector.load %arg10[%c0_3, %c0_4] : memref<1x32xf32, #tpu.memory_space<vmem>>, vector<1x32xf32>
    %4 = vector.broadcast %3 : vector<1x32xf32> to vector<128x32xf32>
    %5 = arith.addf %2, %4 : vector<128x32xf32>
    %6 = tpu.iota {dimensions = array<i32: 1>} : vector<128x4xi32>
    %c0_5 = arith.constant 0 : index
    %c0_6 = arith.constant 0 : index
    %c0_7 = arith.constant 0 : index
    %7 = vector.load %arg2[%c0_5, %c0_6, %c0_7] : memref<4x32x8xf32, #tpu.memory_space<vmem>>, vector<1x32x8xf32>
    %8 = vector.shape_cast %7 : vector<1x32x8xf32> to vector<32x8xf32>
    %cst_8 = arith.constant dense<0.000000e+00> : vector<128x8xf32>
    %9 = tpu.matmul %0, %8, %cst_8 {dimension_numbers = #tpu.dot_dimension_numbers<[1], [0], [0], [1], [0, 0, 1, 1], [], []>} : vector<128x32xf32>, vector<32x8xf32>, vector<128x8xf32> -> vector<128x8xf32>
    %c0_9 = arith.constant 0 : index
    %c0_10 = arith.constant 0 : index
    %c0_11 = arith.constant 0 : index
    %10 = vector.load %arg3[%c0_9, %c0_10, %c0_11] : memref<4x1x8xf32, #tpu.memory_space<vmem>>, vector<1x1x8xf32>
    %11 = vector.shape_cast %10 : vector<1x1x8xf32> to vector<1x8xf32>
    %12 = vector.broadcast %11 : vector<1x8xf32> to vector<128x8xf32>
    %13 = arith.addf %9, %12 : vector<128x8xf32>
    %c0_12 = arith.constant 0 : index
    %c0_13 = arith.constant 0 : index
    %14 = vector.load %arg4[%c0_12, %c0_13] : memref<8x4xf32, #tpu.memory_space<vmem>>, vector<8x4xf32>
    %cst_14 = arith.constant dense<0.000000e+00> : vector<128x4xf32>
    %15 = tpu.matmul %13, %14, %cst_14 {dimension_numbers = #tpu.dot_dimension_numbers<[1], [0], [0], [1], [0, 0, 1, 1], [], []>} : vector<128x8xf32>, vector<8x4xf32>, vector<128x4xf32> -> vector<128x4xf32>
    %cst_15 = arith.constant dense<0xFF800000> : vector<128xf32>
    %16 = vector.multi_reduction <maximumf>, %15, %cst_15 [1] : vector<128x4xf32> to vector<128xf32>
    %cst_16 = arith.constant 0xFF800000 : f32
    %17 = vector.broadcast %cst_16 : f32 to vector<128xf32>
    %18 = arith.maximumf %17, %16 : vector<128xf32>
    %19 = vector.shape_cast %18 : vector<128xf32> to vector<128x1xf32>
    %20 = vector.broadcast %19 : vector<128x1xf32> to vector<128x4xf32>
    %21 = arith.subf %15, %20 : vector<128x4xf32>
    %22 = math.exp %21 : vector<128x4xf32>
    %cst_17 = arith.constant dense<0.000000e+00> : vector<128xf32>
    %23 = vector.multi_reduction <add>, %22, %cst_17 [1] : vector<128x4xf32> to vector<128xf32>
    %24 = vector.shape_cast %23 : vector<128xf32> to vector<128x1xf32>
    %25 = vector.broadcast %24 : vector<128x1xf32> to vector<128x4xf32>
    %26 = arith.divf %22, %25 : vector<128x4xf32>
    %cst_18 = arith.constant 0.000000e+00 : f32
    %27 = vector.broadcast %cst_18 : f32 to vector<128x4xf32>
    %cst_19 = arith.constant dense<0xFF800000> : vector<128xf32>
    %28 = vector.multi_reduction <maximumf>, %26, %cst_19 [1] : vector<128x4xf32> to vector<128xf32>
    %29 = vector.shape_cast %28 : vector<128xf32> to vector<128x1xf32>
    %30 = vector.broadcast %29 : vector<128x1xf32> to vector<128x4xf32>
    %31 = arith.cmpf oge, %26, %30 : vector<128x4xf32>
    %c4_i32 = arith.constant 4 : i32
    %32 = vector.broadcast %c4_i32 : i32 to vector<128x4xi32>
    %33 = arith.select %31, %6, %32 : vector<128x4xi1>, vector<128x4xi32>
    %cst_20 = arith.constant dense<2147483647> : vector<128xi32>
    %34 = vector.multi_reduction <minsi>, %33, %cst_20 [1] : vector<128x4xi32> to vector<128xi32>
    %35 = vector.shape_cast %34 : vector<128xi32> to vector<128x1xi32>
    %36 = vector.broadcast %35 : vector<128x1xi32> to vector<128x4xi32>
    %37 = arith.cmpi eq, %6, %36 : vector<128x4xi32>
    %cst_21 = arith.constant 0.000000e+00 : f32
    %38 = vector.broadcast %cst_21 : f32 to vector<128x4xf32>
    %39 = arith.select %37, %26, %38 : vector<128x4xi1>, vector<128x4xf32>
    %40 = arith.addf %27, %39 : vector<128x4xf32>
    %cst_22 = arith.constant 0xFF800000 : f32
    %41 = vector.broadcast %cst_22 : f32 to vector<128x4xf32>
    %42 = arith.select %37, %41, %26 : vector<128x4xi1>, vector<128x4xf32>
    %cst_23 = arith.constant dense<0xFF800000> : vector<128xf32>
    %43 = vector.multi_reduction <maximumf>, %42, %cst_23 [1] : vector<128x4xf32> to vector<128xf32>
    %44 = vector.shape_cast %43 : vector<128xf32> to vector<128x1xf32>
    %45 = vector.broadcast %44 : vector<128x1xf32> to vector<128x4xf32>
    %46 = arith.cmpf oge, %42, %45 : vector<128x4xf32>
    %c4_i32_24 = arith.constant 4 : i32
    %47 = vector.broadcast %c4_i32_24 : i32 to vector<128x4xi32>
    %48 = arith.select %46, %6, %47 : vector<128x4xi1>, vector<128x4xi32>
    %cst_25 = arith.constant dense<2147483647> : vector<128xi32>
    %49 = vector.multi_reduction <minsi>, %48, %cst_25 [1] : vector<128x4xi32> to vector<128xi32>
    %50 = vector.shape_cast %49 : vector<128xi32> to vector<128x1xi32>
    %51 = vector.broadcast %50 : vector<128x1xi32> to vector<128x4xi32>
    %52 = arith.cmpi eq, %6, %51 : vector<128x4xi32>
    %cst_26 = arith.constant 0.000000e+00 : f32
    %53 = vector.broadcast %cst_26 : f32 to vector<128x4xf32>
    %54 = arith.select %52, %26, %53 : vector<128x4xi1>, vector<128x4xf32>
    %55 = arith.addf %40, %54 : vector<128x4xf32>
    %c0_27 = arith.constant 0 : index
    %c0_28 = arith.constant 0 : index
    %56 = vector.load %arg5[%c0_27, %c0_28] : memref<8x64xf32, #tpu.memory_space<vmem>>, vector<8x64xf32>
    %cst_29 = arith.constant dense<0.000000e+00> : vector<128x64xf32>
    %57 = tpu.matmul %13, %56, %cst_29 {dimension_numbers = #tpu.dot_dimension_numbers<[1], [0], [0], [1], [0, 0, 1, 1], [], []>} : vector<128x8xf32>, vector<8x64xf32>, vector<128x64xf32> -> vector<128x64xf32>
    %c0_30 = arith.constant 0 : index
    %c0_31 = arith.constant 0 : index
    %58 = vector.load %arg6[%c0_30, %c0_31] : memref<1x64xf32, #tpu.memory_space<vmem>>, vector<1x64xf32>
    %59 = vector.broadcast %58 : vector<1x64xf32> to vector<128x64xf32>
    %60 = arith.addf %57, %59 : vector<128x64xf32>
    %61 = arith.mulf %60, %60 : vector<128x64xf32>
    %62 = arith.mulf %60, %61 : vector<128x64xf32>
    %cst_32 = arith.constant 4.471500e-02 : f32
    %63 = vector.broadcast %cst_32 : f32 to vector<128x64xf32>
    %64 = arith.mulf %63, %62 : vector<128x64xf32>
    %65 = arith.addf %60, %64 : vector<128x64xf32>
    %cst_33 = arith.constant 0.797884583 : f32
    %66 = vector.broadcast %cst_33 : f32 to vector<128x64xf32>
    %67 = arith.mulf %66, %65 : vector<128x64xf32>
    %68 = math.tanh %67 : vector<128x64xf32>
    %cst_34 = arith.constant 1.000000e+00 : f32
    %69 = vector.broadcast %cst_34 : f32 to vector<128x64xf32>
    %70 = arith.addf %69, %68 : vector<128x64xf32>
    %cst_35 = arith.constant 5.000000e-01 : f32
    %71 = vector.broadcast %cst_35 : f32 to vector<128x64xf32>
    %72 = arith.mulf %71, %70 : vector<128x64xf32>
    %73 = arith.mulf %60, %72 : vector<128x64xf32>
    %cst_36 = arith.constant dense<0.000000e+00> : vector<128x64xf32>
    %74 = tpu.matmul %55, %1, %cst_36 {dimension_numbers = #tpu.dot_dimension_numbers<[1], [0], [0], [1], [0, 0, 1, 1], [], []>} : vector<128x4xf32>, vector<4x64xf32>, vector<128x64xf32> -> vector<128x64xf32>
    %75 = arith.mulf %73, %74 : vector<128x64xf32>
    %c0_37 = arith.constant 0 : index
    %c0_38 = arith.constant 0 : index
    %76 = vector.load %arg7[%c0_37, %c0_38] : memref<64x8xf32, #tpu.memory_space<vmem>>, vector<64x8xf32>
    %cst_39 = arith.constant dense<0.000000e+00> : vector<128x8xf32>
    %77 = tpu.matmul %75, %76, %cst_39 {dimension_numbers = #tpu.dot_dimension_numbers<[1], [0], [0], [1], [0, 0, 1, 1], [], []>} : vector<128x64xf32>, vector<64x8xf32>, vector<128x8xf32> -> vector<128x8xf32>
    %c0_40 = arith.constant 0 : index
    %c0_41 = arith.constant 0 : index
    %78 = vector.load %arg8[%c0_40, %c0_41] : memref<4x8xf32, #tpu.memory_space<vmem>>, vector<4x8xf32>
    %cst_42 = arith.constant dense<0.000000e+00> : vector<128x8xf32>
    %79 = tpu.matmul %55, %78, %cst_42 {dimension_numbers = #tpu.dot_dimension_numbers<[1], [0], [0], [1], [0, 0, 1, 1], [], []>} : vector<128x4xf32>, vector<4x8xf32>, vector<128x8xf32> -> vector<128x8xf32>
    %80 = arith.addf %77, %79 : vector<128x8xf32>
    %c0_43 = arith.constant 0 : index
    %c0_44 = arith.constant 0 : index
    %c0_45 = arith.constant 0 : index
    %81 = vector.load %arg9[%c0_43, %c0_44, %c0_45] : memref<4x8x32xf32, #tpu.memory_space<vmem>>, vector<1x8x32xf32>
    %82 = vector.shape_cast %81 : vector<1x8x32xf32> to vector<8x32xf32>
    %cst_46 = arith.constant dense<0.000000e+00> : vector<128x32xf32>
    %83 = tpu.matmul %80, %82, %cst_46 {dimension_numbers = #tpu.dot_dimension_numbers<[1], [0], [0], [1], [0, 0, 1, 1], [], []>} : vector<128x8xf32>, vector<8x32xf32>, vector<128x32xf32> -> vector<128x32xf32>
    %84 = arith.addf %5, %83 : vector<128x32xf32>
    %c1 = arith.constant 1 : index
    %c0_47 = arith.constant 0 : index
    %c0_48 = arith.constant 0 : index
    %85 = vector.load %arg2[%c1, %c0_47, %c0_48] : memref<4x32x8xf32, #tpu.memory_space<vmem>>, vector<1x32x8xf32>
    %86 = vector.shape_cast %85 : vector<1x32x8xf32> to vector<32x8xf32>
    %cst_49 = arith.constant dense<0.000000e+00> : vector<128x8xf32>
    %87 = tpu.matmul %0, %86, %cst_49 {dimension_numbers = #tpu.dot_dimension_numbers<[1], [0], [0], [1], [0, 0, 1, 1], [], []>} : vector<128x32xf32>, vector<32x8xf32>, vector<128x8xf32> -> vector<128x8xf32>
    %c1_50 = arith.constant 1 : index
    %c0_51 = arith.constant 0 : index
    %c0_52 = arith.constant 0 : index
    %88 = vector.load %arg3[%c1_50, %c0_51, %c0_52] : memref<4x1x8xf32, #tpu.memory_space<vmem>>, vector<1x1x8xf32>
    %89 = vector.shape_cast %88 : vector<1x1x8xf32> to vector<1x8xf32>
    %90 = vector.broadcast %89 : vector<1x8xf32> to vector<128x8xf32>
    %91 = arith.addf %87, %90 : vector<128x8xf32>
    %c0_53 = arith.constant 0 : index
    %c0_54 = arith.constant 0 : index
    %92 = vector.load %arg4[%c0_53, %c0_54] : memref<8x4xf32, #tpu.memory_space<vmem>>, vector<8x4xf32>
    %cst_55 = arith.constant dense<0.000000e+00> : vector<128x4xf32>
    %93 = tpu.matmul %91, %92, %cst_55 {dimension_numbers = #tpu.dot_dimension_numbers<[1], [0], [0], [1], [0, 0, 1, 1], [], []>} : vector<128x8xf32>, vector<8x4xf32>, vector<128x4xf32> -> vector<128x4xf32>
    %cst_56 = arith.constant dense<0xFF800000> : vector<128xf32>
    %94 = vector.multi_reduction <maximumf>, %93, %cst_56 [1] : vector<128x4xf32> to vector<128xf32>
    %cst_57 = arith.constant 0xFF800000 : f32
    %95 = vector.broadcast %cst_57 : f32 to vector<128xf32>
    %96 = arith.maximumf %95, %94 : vector<128xf32>
    %97 = vector.shape_cast %96 : vector<128xf32> to vector<128x1xf32>
    %98 = vector.broadcast %97 : vector<128x1xf32> to vector<128x4xf32>
    %99 = arith.subf %93, %98 : vector<128x4xf32>
    %100 = math.exp %99 : vector<128x4xf32>
    %cst_58 = arith.constant dense<0.000000e+00> : vector<128xf32>
    %101 = vector.multi_reduction <add>, %100, %cst_58 [1] : vector<128x4xf32> to vector<128xf32>
    %102 = vector.shape_cast %101 : vector<128xf32> to vector<128x1xf32>
    %103 = vector.broadcast %102 : vector<128x1xf32> to vector<128x4xf32>
    %104 = arith.divf %100, %103 : vector<128x4xf32>
    %cst_59 = arith.constant 0.000000e+00 : f32
    %105 = vector.broadcast %cst_59 : f32 to vector<128x4xf32>
    %cst_60 = arith.constant dense<0xFF800000> : vector<128xf32>
    %106 = vector.multi_reduction <maximumf>, %104, %cst_60 [1] : vector<128x4xf32> to vector<128xf32>
    %107 = vector.shape_cast %106 : vector<128xf32> to vector<128x1xf32>
    %108 = vector.broadcast %107 : vector<128x1xf32> to vector<128x4xf32>
    %109 = arith.cmpf oge, %104, %108 : vector<128x4xf32>
    %c4_i32_61 = arith.constant 4 : i32
    %110 = vector.broadcast %c4_i32_61 : i32 to vector<128x4xi32>
    %111 = arith.select %109, %6, %110 : vector<128x4xi1>, vector<128x4xi32>
    %cst_62 = arith.constant dense<2147483647> : vector<128xi32>
    %112 = vector.multi_reduction <minsi>, %111, %cst_62 [1] : vector<128x4xi32> to vector<128xi32>
    %113 = vector.shape_cast %112 : vector<128xi32> to vector<128x1xi32>
    %114 = vector.broadcast %113 : vector<128x1xi32> to vector<128x4xi32>
    %115 = arith.cmpi eq, %6, %114 : vector<128x4xi32>
    %cst_63 = arith.constant 0.000000e+00 : f32
    %116 = vector.broadcast %cst_63 : f32 to vector<128x4xf32>
    %117 = arith.select %115, %104, %116 : vector<128x4xi1>, vector<128x4xf32>
    %118 = arith.addf %105, %117 : vector<128x4xf32>
    %cst_64 = arith.constant 0xFF800000 : f32
    %119 = vector.broadcast %cst_64 : f32 to vector<128x4xf32>
    %120 = arith.select %115, %119, %104 : vector<128x4xi1>, vector<128x4xf32>
    %cst_65 = arith.constant dense<0xFF800000> : vector<128xf32>
    %121 = vector.multi_reduction <maximumf>, %120, %cst_65 [1] : vector<128x4xf32> to vector<128xf32>
    %122 = vector.shape_cast %121 : vector<128xf32> to vector<128x1xf32>
    %123 = vector.broadcast %122 : vector<128x1xf32> to vector<128x4xf32>
    %124 = arith.cmpf oge, %120, %123 : vector<128x4xf32>
    %c4_i32_66 = arith.constant 4 : i32
    %125 = vector.broadcast %c4_i32_66 : i32 to vector<128x4xi32>
    %126 = arith.select %124, %6, %125 : vector<128x4xi1>, vector<128x4xi32>
    %cst_67 = arith.constant dense<2147483647> : vector<128xi32>
    %127 = vector.multi_reduction <minsi>, %126, %cst_67 [1] : vector<128x4xi32> to vector<128xi32>
    %128 = vector.shape_cast %127 : vector<128xi32> to vector<128x1xi32>
    %129 = vector.broadcast %128 : vector<128x1xi32> to vector<128x4xi32>
    %130 = arith.cmpi eq, %6, %129 : vector<128x4xi32>
    %cst_68 = arith.constant 0.000000e+00 : f32
    %131 = vector.broadcast %cst_68 : f32 to vector<128x4xf32>
    %132 = arith.select %130, %104, %131 : vector<128x4xi1>, vector<128x4xf32>
    %133 = arith.addf %118, %132 : vector<128x4xf32>
    %c0_69 = arith.constant 0 : index
    %c0_70 = arith.constant 0 : index
    %134 = vector.load %arg5[%c0_69, %c0_70] : memref<8x64xf32, #tpu.memory_space<vmem>>, vector<8x64xf32>
    %cst_71 = arith.constant dense<0.000000e+00> : vector<128x64xf32>
    %135 = tpu.matmul %91, %134, %cst_71 {dimension_numbers = #tpu.dot_dimension_numbers<[1], [0], [0], [1], [0, 0, 1, 1], [], []>} : vector<128x8xf32>, vector<8x64xf32>, vector<128x64xf32> -> vector<128x64xf32>
    %c0_72 = arith.constant 0 : index
    %c0_73 = arith.constant 0 : index
    %136 = vector.load %arg6[%c0_72, %c0_73] : memref<1x64xf32, #tpu.memory_space<vmem>>, vector<1x64xf32>
    %137 = vector.broadcast %136 : vector<1x64xf32> to vector<128x64xf32>
    %138 = arith.addf %135, %137 : vector<128x64xf32>
    %139 = arith.mulf %138, %138 : vector<128x64xf32>
    %140 = arith.mulf %138, %139 : vector<128x64xf32>
    %cst_74 = arith.constant 4.471500e-02 : f32
    %141 = vector.broadcast %cst_74 : f32 to vector<128x64xf32>
    %142 = arith.mulf %141, %140 : vector<128x64xf32>
    %143 = arith.addf %138, %142 : vector<128x64xf32>
    %cst_75 = arith.constant 0.797884583 : f32
    %144 = vector.broadcast %cst_75 : f32 to vector<128x64xf32>
    %145 = arith.mulf %144, %143 : vector<128x64xf32>
    %146 = math.tanh %145 : vector<128x64xf32>
    %cst_76 = arith.constant 1.000000e+00 : f32
    %147 = vector.broadcast %cst_76 : f32 to vector<128x64xf32>
    %148 = arith.addf %147, %146 : vector<128x64xf32>
    %cst_77 = arith.constant 5.000000e-01 : f32
    %149 = vector.broadcast %cst_77 : f32 to vector<128x64xf32>
    %150 = arith.mulf %149, %148 : vector<128x64xf32>
    %151 = arith.mulf %138, %150 : vector<128x64xf32>
    %cst_78 = arith.constant dense<0.000000e+00> : vector<128x64xf32>
    %152 = tpu.matmul %133, %1, %cst_78 {dimension_numbers = #tpu.dot_dimension_numbers<[1], [0], [0], [1], [0, 0, 1, 1], [], []>} : vector<128x4xf32>, vector<4x64xf32>, vector<128x64xf32> -> vector<128x64xf32>
    %153 = arith.mulf %151, %152 : vector<128x64xf32>
    %c0_79 = arith.constant 0 : index
    %c0_80 = arith.constant 0 : index
    %154 = vector.load %arg7[%c0_79, %c0_80] : memref<64x8xf32, #tpu.memory_space<vmem>>, vector<64x8xf32>
    %cst_81 = arith.constant dense<0.000000e+00> : vector<128x8xf32>
    %155 = tpu.matmul %153, %154, %cst_81 {dimension_numbers = #tpu.dot_dimension_numbers<[1], [0], [0], [1], [0, 0, 1, 1], [], []>} : vector<128x64xf32>, vector<64x8xf32>, vector<128x8xf32> -> vector<128x8xf32>
    %c0_82 = arith.constant 0 : index
    %c0_83 = arith.constant 0 : index
    %156 = vector.load %arg8[%c0_82, %c0_83] : memref<4x8xf32, #tpu.memory_space<vmem>>, vector<4x8xf32>
    %cst_84 = arith.constant dense<0.000000e+00> : vector<128x8xf32>
    %157 = tpu.matmul %133, %156, %cst_84 {dimension_numbers = #tpu.dot_dimension_numbers<[1], [0], [0], [1], [0, 0, 1, 1], [], []>} : vector<128x4xf32>, vector<4x8xf32>, vector<128x8xf32> -> vector<128x8xf32>
    %158 = arith.addf %155, %157 : vector<128x8xf32>
    %c1_85 = arith.constant 1 : index
    %c0_86 = arith.constant 0 : index
    %c0_87 = arith.constant 0 : index
    %159 = vector.load %arg9[%c1_85, %c0_86, %c0_87] : memref<4x8x32xf32, #tpu.memory_space<vmem>>, vector<1x8x32xf32>
    %160 = vector.shape_cast %159 : vector<1x8x32xf32> to vector<8x32xf32>
    %cst_88 = arith.constant dense<0.000000e+00> : vector<128x32xf32>
    %161 = tpu.matmul %158, %160, %cst_88 {dimension_numbers = #tpu.dot_dimension_numbers<[1], [0], [0], [1], [0, 0, 1, 1], [], []>} : vector<128x8xf32>, vector<8x32xf32>, vector<128x32xf32> -> vector<128x32xf32>
    %162 = arith.addf %84, %161 : vector<128x32xf32>
    %c2 = arith.constant 2 : index
    %c0_89 = arith.constant 0 : index
    %c0_90 = arith.constant 0 : index
    %163 = vector.load %arg2[%c2, %c0_89, %c0_90] : memref<4x32x8xf32, #tpu.memory_space<vmem>>, vector<1x32x8xf32>
    %164 = vector.shape_cast %163 : vector<1x32x8xf32> to vector<32x8xf32>
    %cst_91 = arith.constant dense<0.000000e+00> : vector<128x8xf32>
    %165 = tpu.matmul %0, %164, %cst_91 {dimension_numbers = #tpu.dot_dimension_numbers<[1], [0], [0], [1], [0, 0, 1, 1], [], []>} : vector<128x32xf32>, vector<32x8xf32>, vector<128x8xf32> -> vector<128x8xf32>
    %c2_92 = arith.constant 2 : index
    %c0_93 = arith.constant 0 : index
    %c0_94 = arith.constant 0 : index
    %166 = vector.load %arg3[%c2_92, %c0_93, %c0_94] : memref<4x1x8xf32, #tpu.memory_space<vmem>>, vector<1x1x8xf32>
    %167 = vector.shape_cast %166 : vector<1x1x8xf32> to vector<1x8xf32>
    %168 = vector.broadcast %167 : vector<1x8xf32> to vector<128x8xf32>
    %169 = arith.addf %165, %168 : vector<128x8xf32>
    %c0_95 = arith.constant 0 : index
    %c0_96 = arith.constant 0 : index
    %170 = vector.load %arg4[%c0_95, %c0_96] : memref<8x4xf32, #tpu.memory_space<vmem>>, vector<8x4xf32>
    %cst_97 = arith.constant dense<0.000000e+00> : vector<128x4xf32>
    %171 = tpu.matmul %169, %170, %cst_97 {dimension_numbers = #tpu.dot_dimension_numbers<[1], [0], [0], [1], [0, 0, 1, 1], [], []>} : vector<128x8xf32>, vector<8x4xf32>, vector<128x4xf32> -> vector<128x4xf32>
    %cst_98 = arith.constant dense<0xFF800000> : vector<128xf32>
    %172 = vector.multi_reduction <maximumf>, %171, %cst_98 [1] : vector<128x4xf32> to vector<128xf32>
    %cst_99 = arith.constant 0xFF800000 : f32
    %173 = vector.broadcast %cst_99 : f32 to vector<128xf32>
    %174 = arith.maximumf %173, %172 : vector<128xf32>
    %175 = vector.shape_cast %174 : vector<128xf32> to vector<128x1xf32>
    %176 = vector.broadcast %175 : vector<128x1xf32> to vector<128x4xf32>
    %177 = arith.subf %171, %176 : vector<128x4xf32>
    %178 = math.exp %177 : vector<128x4xf32>
    %cst_100 = arith.constant dense<0.000000e+00> : vector<128xf32>
    %179 = vector.multi_reduction <add>, %178, %cst_100 [1] : vector<128x4xf32> to vector<128xf32>
    %180 = vector.shape_cast %179 : vector<128xf32> to vector<128x1xf32>
    %181 = vector.broadcast %180 : vector<128x1xf32> to vector<128x4xf32>
    %182 = arith.divf %178, %181 : vector<128x4xf32>
    %cst_101 = arith.constant 0.000000e+00 : f32
    %183 = vector.broadcast %cst_101 : f32 to vector<128x4xf32>
    %cst_102 = arith.constant dense<0xFF800000> : vector<128xf32>
    %184 = vector.multi_reduction <maximumf>, %182, %cst_102 [1] : vector<128x4xf32> to vector<128xf32>
    %185 = vector.shape_cast %184 : vector<128xf32> to vector<128x1xf32>
    %186 = vector.broadcast %185 : vector<128x1xf32> to vector<128x4xf32>
    %187 = arith.cmpf oge, %182, %186 : vector<128x4xf32>
    %c4_i32_103 = arith.constant 4 : i32
    %188 = vector.broadcast %c4_i32_103 : i32 to vector<128x4xi32>
    %189 = arith.select %187, %6, %188 : vector<128x4xi1>, vector<128x4xi32>
    %cst_104 = arith.constant dense<2147483647> : vector<128xi32>
    %190 = vector.multi_reduction <minsi>, %189, %cst_104 [1] : vector<128x4xi32> to vector<128xi32>
    %191 = vector.shape_cast %190 : vector<128xi32> to vector<128x1xi32>
    %192 = vector.broadcast %191 : vector<128x1xi32> to vector<128x4xi32>
    %193 = arith.cmpi eq, %6, %192 : vector<128x4xi32>
    %cst_105 = arith.constant 0.000000e+00 : f32
    %194 = vector.broadcast %cst_105 : f32 to vector<128x4xf32>
    %195 = arith.select %193, %182, %194 : vector<128x4xi1>, vector<128x4xf32>
    %196 = arith.addf %183, %195 : vector<128x4xf32>
    %cst_106 = arith.constant 0xFF800000 : f32
    %197 = vector.broadcast %cst_106 : f32 to vector<128x4xf32>
    %198 = arith.select %193, %197, %182 : vector<128x4xi1>, vector<128x4xf32>
    %cst_107 = arith.constant dense<0xFF800000> : vector<128xf32>
    %199 = vector.multi_reduction <maximumf>, %198, %cst_107 [1] : vector<128x4xf32> to vector<128xf32>
    %200 = vector.shape_cast %199 : vector<128xf32> to vector<128x1xf32>
    %201 = vector.broadcast %200 : vector<128x1xf32> to vector<128x4xf32>
    %202 = arith.cmpf oge, %198, %201 : vector<128x4xf32>
    %c4_i32_108 = arith.constant 4 : i32
    %203 = vector.broadcast %c4_i32_108 : i32 to vector<128x4xi32>
    %204 = arith.select %202, %6, %203 : vector<128x4xi1>, vector<128x4xi32>
    %cst_109 = arith.constant dense<2147483647> : vector<128xi32>
    %205 = vector.multi_reduction <minsi>, %204, %cst_109 [1] : vector<128x4xi32> to vector<128xi32>
    %206 = vector.shape_cast %205 : vector<128xi32> to vector<128x1xi32>
    %207 = vector.broadcast %206 : vector<128x1xi32> to vector<128x4xi32>
    %208 = arith.cmpi eq, %6, %207 : vector<128x4xi32>
    %cst_110 = arith.constant 0.000000e+00 : f32
    %209 = vector.broadcast %cst_110 : f32 to vector<128x4xf32>
    %210 = arith.select %208, %182, %209 : vector<128x4xi1>, vector<128x4xf32>
    %211 = arith.addf %196, %210 : vector<128x4xf32>
    %c0_111 = arith.constant 0 : index
    %c0_112 = arith.constant 0 : index
    %212 = vector.load %arg5[%c0_111, %c0_112] : memref<8x64xf32, #tpu.memory_space<vmem>>, vector<8x64xf32>
    %cst_113 = arith.constant dense<0.000000e+00> : vector<128x64xf32>
    %213 = tpu.matmul %169, %212, %cst_113 {dimension_numbers = #tpu.dot_dimension_numbers<[1], [0], [0], [1], [0, 0, 1, 1], [], []>} : vector<128x8xf32>, vector<8x64xf32>, vector<128x64xf32> -> vector<128x64xf32>
    %c0_114 = arith.constant 0 : index
    %c0_115 = arith.constant 0 : index
    %214 = vector.load %arg6[%c0_114, %c0_115] : memref<1x64xf32, #tpu.memory_space<vmem>>, vector<1x64xf32>
    %215 = vector.broadcast %214 : vector<1x64xf32> to vector<128x64xf32>
    %216 = arith.addf %213, %215 : vector<128x64xf32>
    %217 = arith.mulf %216, %216 : vector<128x64xf32>
    %218 = arith.mulf %216, %217 : vector<128x64xf32>
    %cst_116 = arith.constant 4.471500e-02 : f32
    %219 = vector.broadcast %cst_116 : f32 to vector<128x64xf32>
    %220 = arith.mulf %219, %218 : vector<128x64xf32>
    %221 = arith.addf %216, %220 : vector<128x64xf32>
    %cst_117 = arith.constant 0.797884583 : f32
    %222 = vector.broadcast %cst_117 : f32 to vector<128x64xf32>
    %223 = arith.mulf %222, %221 : vector<128x64xf32>
    %224 = math.tanh %223 : vector<128x64xf32>
    %cst_118 = arith.constant 1.000000e+00 : f32
    %225 = vector.broadcast %cst_118 : f32 to vector<128x64xf32>
    %226 = arith.addf %225, %224 : vector<128x64xf32>
    %cst_119 = arith.constant 5.000000e-01 : f32
    %227 = vector.broadcast %cst_119 : f32 to vector<128x64xf32>
    %228 = arith.mulf %227, %226 : vector<128x64xf32>
    %229 = arith.mulf %216, %228 : vector<128x64xf32>
    %cst_120 = arith.constant dense<0.000000e+00> : vector<128x64xf32>
    %230 = tpu.matmul %211, %1, %cst_120 {dimension_numbers = #tpu.dot_dimension_numbers<[1], [0], [0], [1], [0, 0, 1, 1], [], []>} : vector<128x4xf32>, vector<4x64xf32>, vector<128x64xf32> -> vector<128x64xf32>
    %231 = arith.mulf %229, %230 : vector<128x64xf32>
    %c0_121 = arith.constant 0 : index
    %c0_122 = arith.constant 0 : index
    %232 = vector.load %arg7[%c0_121, %c0_122] : memref<64x8xf32, #tpu.memory_space<vmem>>, vector<64x8xf32>
    %cst_123 = arith.constant dense<0.000000e+00> : vector<128x8xf32>
    %233 = tpu.matmul %231, %232, %cst_123 {dimension_numbers = #tpu.dot_dimension_numbers<[1], [0], [0], [1], [0, 0, 1, 1], [], []>} : vector<128x64xf32>, vector<64x8xf32>, vector<128x8xf32> -> vector<128x8xf32>
    %c0_124 = arith.constant 0 : index
    %c0_125 = arith.constant 0 : index
    %234 = vector.load %arg8[%c0_124, %c0_125] : memref<4x8xf32, #tpu.memory_space<vmem>>, vector<4x8xf32>
    %cst_126 = arith.constant dense<0.000000e+00> : vector<128x8xf32>
    %235 = tpu.matmul %211, %234, %cst_126 {dimension_numbers = #tpu.dot_dimension_numbers<[1], [0], [0], [1], [0, 0, 1, 1], [], []>} : vector<128x4xf32>, vector<4x8xf32>, vector<128x8xf32> -> vector<128x8xf32>
    %236 = arith.addf %233, %235 : vector<128x8xf32>
    %c2_127 = arith.constant 2 : index
    %c0_128 = arith.constant 0 : index
    %c0_129 = arith.constant 0 : index
    %237 = vector.load %arg9[%c2_127, %c0_128, %c0_129] : memref<4x8x32xf32, #tpu.memory_space<vmem>>, vector<1x8x32xf32>
    %238 = vector.shape_cast %237 : vector<1x8x32xf32> to vector<8x32xf32>
    %cst_130 = arith.constant dense<0.000000e+00> : vector<128x32xf32>
    %239 = tpu.matmul %236, %238, %cst_130 {dimension_numbers = #tpu.dot_dimension_numbers<[1], [0], [0], [1], [0, 0, 1, 1], [], []>} : vector<128x8xf32>, vector<8x32xf32>, vector<128x32xf32> -> vector<128x32xf32>
    %240 = arith.addf %162, %239 : vector<128x32xf32>
    %c3 = arith.constant 3 : index
    %c0_131 = arith.constant 0 : index
    %c0_132 = arith.constant 0 : index
    %241 = vector.load %arg2[%c3, %c0_131, %c0_132] : memref<4x32x8xf32, #tpu.memory_space<vmem>>, vector<1x32x8xf32>
    %242 = vector.shape_cast %241 : vector<1x32x8xf32> to vector<32x8xf32>
    %cst_133 = arith.constant dense<0.000000e+00> : vector<128x8xf32>
    %243 = tpu.matmul %0, %242, %cst_133 {dimension_numbers = #tpu.dot_dimension_numbers<[1], [0], [0], [1], [0, 0, 1, 1], [], []>} : vector<128x32xf32>, vector<32x8xf32>, vector<128x8xf32> -> vector<128x8xf32>
    %c3_134 = arith.constant 3 : index
    %c0_135 = arith.constant 0 : index
    %c0_136 = arith.constant 0 : index
    %244 = vector.load %arg3[%c3_134, %c0_135, %c0_136] : memref<4x1x8xf32, #tpu.memory_space<vmem>>, vector<1x1x8xf32>
    %245 = vector.shape_cast %244 : vector<1x1x8xf32> to vector<1x8xf32>
    %246 = vector.broadcast %245 : vector<1x8xf32> to vector<128x8xf32>
    %247 = arith.addf %243, %246 : vector<128x8xf32>
    %c0_137 = arith.constant 0 : index
    %c0_138 = arith.constant 0 : index
    %248 = vector.load %arg4[%c0_137, %c0_138] : memref<8x4xf32, #tpu.memory_space<vmem>>, vector<8x4xf32>
    %cst_139 = arith.constant dense<0.000000e+00> : vector<128x4xf32>
    %249 = tpu.matmul %247, %248, %cst_139 {dimension_numbers = #tpu.dot_dimension_numbers<[1], [0], [0], [1], [0, 0, 1, 1], [], []>} : vector<128x8xf32>, vector<8x4xf32>, vector<128x4xf32> -> vector<128x4xf32>
    %cst_140 = arith.constant dense<0xFF800000> : vector<128xf32>
    %250 = vector.multi_reduction <maximumf>, %249, %cst_140 [1] : vector<128x4xf32> to vector<128xf32>
    %cst_141 = arith.constant 0xFF800000 : f32
    %251 = vector.broadcast %cst_141 : f32 to vector<128xf32>
    %252 = arith.maximumf %251, %250 : vector<128xf32>
    %253 = vector.shape_cast %252 : vector<128xf32> to vector<128x1xf32>
    %254 = vector.broadcast %253 : vector<128x1xf32> to vector<128x4xf32>
    %255 = arith.subf %249, %254 : vector<128x4xf32>
    %256 = math.exp %255 : vector<128x4xf32>
    %cst_142 = arith.constant dense<0.000000e+00> : vector<128xf32>
    %257 = vector.multi_reduction <add>, %256, %cst_142 [1] : vector<128x4xf32> to vector<128xf32>
    %258 = vector.shape_cast %257 : vector<128xf32> to vector<128x1xf32>
    %259 = vector.broadcast %258 : vector<128x1xf32> to vector<128x4xf32>
    %260 = arith.divf %256, %259 : vector<128x4xf32>
    %cst_143 = arith.constant 0.000000e+00 : f32
    %261 = vector.broadcast %cst_143 : f32 to vector<128x4xf32>
    %cst_144 = arith.constant dense<0xFF800000> : vector<128xf32>
    %262 = vector.multi_reduction <maximumf>, %260, %cst_144 [1] : vector<128x4xf32> to vector<128xf32>
    %263 = vector.shape_cast %262 : vector<128xf32> to vector<128x1xf32>
    %264 = vector.broadcast %263 : vector<128x1xf32> to vector<128x4xf32>
    %265 = arith.cmpf oge, %260, %264 : vector<128x4xf32>
    %c4_i32_145 = arith.constant 4 : i32
    %266 = vector.broadcast %c4_i32_145 : i32 to vector<128x4xi32>
    %267 = arith.select %265, %6, %266 : vector<128x4xi1>, vector<128x4xi32>
    %cst_146 = arith.constant dense<2147483647> : vector<128xi32>
    %268 = vector.multi_reduction <minsi>, %267, %cst_146 [1] : vector<128x4xi32> to vector<128xi32>
    %269 = vector.shape_cast %268 : vector<128xi32> to vector<128x1xi32>
    %270 = vector.broadcast %269 : vector<128x1xi32> to vector<128x4xi32>
    %271 = arith.cmpi eq, %6, %270 : vector<128x4xi32>
    %cst_147 = arith.constant 0.000000e+00 : f32
    %272 = vector.broadcast %cst_147 : f32 to vector<128x4xf32>
    %273 = arith.select %271, %260, %272 : vector<128x4xi1>, vector<128x4xf32>
    %274 = arith.addf %261, %273 : vector<128x4xf32>
    %cst_148 = arith.constant 0xFF800000 : f32
    %275 = vector.broadcast %cst_148 : f32 to vector<128x4xf32>
    %276 = arith.select %271, %275, %260 : vector<128x4xi1>, vector<128x4xf32>
    %cst_149 = arith.constant dense<0xFF800000> : vector<128xf32>
    %277 = vector.multi_reduction <maximumf>, %276, %cst_149 [1] : vector<128x4xf32> to vector<128xf32>
    %278 = vector.shape_cast %277 : vector<128xf32> to vector<128x1xf32>
    %279 = vector.broadcast %278 : vector<128x1xf32> to vector<128x4xf32>
    %280 = arith.cmpf oge, %276, %279 : vector<128x4xf32>
    %c4_i32_150 = arith.constant 4 : i32
    %281 = vector.broadcast %c4_i32_150 : i32 to vector<128x4xi32>
    %282 = arith.select %280, %6, %281 : vector<128x4xi1>, vector<128x4xi32>
    %cst_151 = arith.constant dense<2147483647> : vector<128xi32>
    %283 = vector.multi_reduction <minsi>, %282, %cst_151 [1] : vector<128x4xi32> to vector<128xi32>
    %284 = vector.shape_cast %283 : vector<128xi32> to vector<128x1xi32>
    %285 = vector.broadcast %284 : vector<128x1xi32> to vector<128x4xi32>
    %286 = arith.cmpi eq, %6, %285 : vector<128x4xi32>
    %cst_152 = arith.constant 0.000000e+00 : f32
    %287 = vector.broadcast %cst_152 : f32 to vector<128x4xf32>
    %288 = arith.select %286, %260, %287 : vector<128x4xi1>, vector<128x4xf32>
    %289 = arith.addf %274, %288 : vector<128x4xf32>
    %c0_153 = arith.constant 0 : index
    %c0_154 = arith.constant 0 : index
    %290 = vector.load %arg5[%c0_153, %c0_154] : memref<8x64xf32, #tpu.memory_space<vmem>>, vector<8x64xf32>
    %cst_155 = arith.constant dense<0.000000e+00> : vector<128x64xf32>
    %291 = tpu.matmul %247, %290, %cst_155 {dimension_numbers = #tpu.dot_dimension_numbers<[1], [0], [0], [1], [0, 0, 1, 1], [], []>} : vector<128x8xf32>, vector<8x64xf32>, vector<128x64xf32> -> vector<128x64xf32>
    %c0_156 = arith.constant 0 : index
    %c0_157 = arith.constant 0 : index
    %292 = vector.load %arg6[%c0_156, %c0_157] : memref<1x64xf32, #tpu.memory_space<vmem>>, vector<1x64xf32>
    %293 = vector.broadcast %292 : vector<1x64xf32> to vector<128x64xf32>
    %294 = arith.addf %291, %293 : vector<128x64xf32>
    %295 = arith.mulf %294, %294 : vector<128x64xf32>
    %296 = arith.mulf %294, %295 : vector<128x64xf32>
    %cst_158 = arith.constant 4.471500e-02 : f32
    %297 = vector.broadcast %cst_158 : f32 to vector<128x64xf32>
    %298 = arith.mulf %297, %296 : vector<128x64xf32>
    %299 = arith.addf %294, %298 : vector<128x64xf32>
    %cst_159 = arith.constant 0.797884583 : f32
    %300 = vector.broadcast %cst_159 : f32 to vector<128x64xf32>
    %301 = arith.mulf %300, %299 : vector<128x64xf32>
    %302 = math.tanh %301 : vector<128x64xf32>
    %cst_160 = arith.constant 1.000000e+00 : f32
    %303 = vector.broadcast %cst_160 : f32 to vector<128x64xf32>
    %304 = arith.addf %303, %302 : vector<128x64xf32>
    %cst_161 = arith.constant 5.000000e-01 : f32
    %305 = vector.broadcast %cst_161 : f32 to vector<128x64xf32>
    %306 = arith.mulf %305, %304 : vector<128x64xf32>
    %307 = arith.mulf %294, %306 : vector<128x64xf32>
    %cst_162 = arith.constant dense<0.000000e+00> : vector<128x64xf32>
    %308 = tpu.matmul %289, %1, %cst_162 {dimension_numbers = #tpu.dot_dimension_numbers<[1], [0], [0], [1], [0, 0, 1, 1], [], []>} : vector<128x4xf32>, vector<4x64xf32>, vector<128x64xf32> -> vector<128x64xf32>
    %309 = arith.mulf %307, %308 : vector<128x64xf32>
    %c0_163 = arith.constant 0 : index
    %c0_164 = arith.constant 0 : index
    %310 = vector.load %arg7[%c0_163, %c0_164] : memref<64x8xf32, #tpu.memory_space<vmem>>, vector<64x8xf32>
    %cst_165 = arith.constant dense<0.000000e+00> : vector<128x8xf32>
    %311 = tpu.matmul %309, %310, %cst_165 {dimension_numbers = #tpu.dot_dimension_numbers<[1], [0], [0], [1], [0, 0, 1, 1], [], []>} : vector<128x64xf32>, vector<64x8xf32>, vector<128x8xf32> -> vector<128x8xf32>
    %c0_166 = arith.constant 0 : index
    %c0_167 = arith.constant 0 : index
    %312 = vector.load %arg8[%c0_166, %c0_167] : memref<4x8xf32, #tpu.memory_space<vmem>>, vector<4x8xf32>
    %cst_168 = arith.constant dense<0.000000e+00> : vector<128x8xf32>
    %313 = tpu.matmul %289, %312, %cst_168 {dimension_numbers = #tpu.dot_dimension_numbers<[1], [0], [0], [1], [0, 0, 1, 1], [], []>} : vector<128x4xf32>, vector<4x8xf32>, vector<128x8xf32> -> vector<128x8xf32>
    %314 = arith.addf %311, %313 : vector<128x8xf32>
    %c3_169 = arith.constant 3 : index
    %c0_170 = arith.constant 0 : index
    %c0_171 = arith.constant 0 : index
    %315 = vector.load %arg9[%c3_169, %c0_170, %c0_171] : memref<4x8x32xf32, #tpu.memory_space<vmem>>, vector<1x8x32xf32>
    %316 = vector.shape_cast %315 : vector<1x8x32xf32> to vector<8x32xf32>
    %cst_172 = arith.constant dense<0.000000e+00> : vector<128x32xf32>
    %317 = tpu.matmul %314, %316, %cst_172 {dimension_numbers = #tpu.dot_dimension_numbers<[1], [0], [0], [1], [0, 0, 1, 1], [], []>} : vector<128x8xf32>, vector<8x32xf32>, vector<128x32xf32> -> vector<128x32xf32>
    %318 = arith.addf %240, %317 : vector<128x32xf32>
    %c0_173 = arith.constant 0 : index
    %c0_174 = arith.constant 0 : index
    %319 = vector.load %arg12[%c0_173, %c0_174] : memref<128x32xf32, #tpu.memory_space<vmem>>, vector<128x32xf32>
    tpu.vector_store %arg12[%c0_173, %c0_174], %318 {strides = array<i32>} : memref<128x32xf32, #tpu.memory_space<vmem>>, vector<128x32xf32>,
    return
  }
  func.func @transform_0(%arg0: i32) -> (i32, i32) {
    %c0_i32 = arith.constant 0 : i32
    %c0_i32_0 = arith.constant 0 : i32
    return %arg0, %c0_i32 : i32, i32
  }
  func.func @transform_1(%arg0: i32) -> (i32, i32, i32) {
    %c0_i32 = arith.constant 0 : i32
    %c0_i32_0 = arith.constant 0 : i32
    %c0_i32_1 = arith.constant 0 : i32
    %c0_i32_2 = arith.constant 0 : i32
    return %c0_i32, %c0_i32_0, %c0_i32_1 : i32, i32, i32
  }
  func.func @transform_2(%arg0: i32) -> (i32, i32, i32) {
    %c0_i32 = arith.constant 0 : i32
    %c0_i32_0 = arith.constant 0 : i32
    %c0_i32_1 = arith.constant 0 : i32
    %c0_i32_2 = arith.constant 0 : i32
    return %c0_i32, %c0_i32_0, %c0_i32_1 : i32, i32, i32
  }
  func.func @transform_3(%arg0: i32) -> (i32, i32) {
    %c0_i32 = arith.constant 0 : i32
    %c0_i32_0 = arith.constant 0 : i32
    %c0_i32_1 = arith.constant 0 : i32
    return %c0_i32, %c0_i32_0 : i32, i32
  }
  func.func @transform_4(%arg0: i32) -> (i32, i32) {
    %c0_i32 = arith.constant 0 : i32
    %c0_i32_0 = arith.constant 0 : i32
    %c0_i32_1 = arith.constant 0 : i32
    return %c0_i32, %c0_i32_0 : i32, i32
  }
  func.func @transform_5(%arg0: i32) -> (i32, i32) {
    %c0_i32 = arith.constant 0 : i32
    %c0_i32_0 = arith.constant 0 : i32
    %c0_i32_1 = arith.constant 0 : i32
    return %c0_i32, %c0_i32_0 : i32, i32
  }
  func.func @transform_6(%arg0: i32) -> (i32, i32) {
    %c0_i32 = arith.constant 0 : i32
    %c0_i32_0 = arith.constant 0 : i32
    %c0_i32_1 = arith.constant 0 : i32
    return %c0_i32, %c0_i32_0 : i32, i32
  }
  func.func @transform_7(%arg0: i32) -> (i32, i32) {
    %c0_i32 = arith.constant 0 : i32
    %c0_i32_0 = arith.constant 0 : i32
    %c0_i32_1 = arith.constant 0 : i32
    return %c0_i32, %c0_i32_0 : i32, i32
  }
  func.func @transform_8(%arg0: i32) -> (i32, i32, i32) {
    %c0_i32 = arith.constant 0 : i32
    %c0_i32_0 = arith.constant 0 : i32
    %c0_i32_1 = arith.constant 0 : i32
    %c0_i32_2 = arith.constant 0 : i32
    return %c0_i32, %c0_i32_0, %c0_i32_1 : i32, i32, i32
  }
  func.func @transform_9(%arg0: i32) -> (i32, i32) {
    %c0_i32 = arith.constant 0 : i32
    %c0_i32_0 = arith.constant 0 : i32
    %c0_i32_1 = arith.constant 0 : i32
    return %c0_i32, %c0_i32_0 : i32, i32
  }
  func.func @transform_10(%arg0: i32) -> (i32, i32) {
    %c0_i32 = arith.constant 0 : i32
    %c0_i32_0 = arith.constant 0 : i32
    %c0_i32_1 = arith.constant 0 : i32
    return %c0_i32, %c0_i32_0 : i32, i32
  }
  func.func @transform_11(%arg0: i32) -> (i32, i32) {
    %c0_i32 = arith.constant 0 : i32
    %c0_i32_0 = arith.constant 0 : i32
    return %arg0, %c0_i32 : i32, i32
  }
}

</mosaic_0001>

<bundles_post_ra>
// kernel: tpu_custom_call.1
= control target key start
LH: loop header
LB: loop body
LE: loop exit
PB: predicated region body
PF: predicated region fallthrough
CT: control target
= control target key end

     0   :  { %vm14616_vm0 = vcmask 261120   ;;  %vm14600_vm1 = vcmask 64512   ;;  %vm299_vm2 = vcmask 31744   ;;  %s14588_s1 = inlined_call_operand.vmem [shape: f32[4,32,8], index: 1, kind: input, shape index: {}]   ;;  %s14589_s0 = inlined_call_operand.vmem [shape: f32[128,32], index: 0, kind: input, shape index: {}]   ;;  %s14590_s2 = inlined_call_operand.vmem [shape: f32[4,1,8], index: 2, kind: input, shape index: {}]   ;;  %s14591_s3 = inlined_call_operand.vmem [shape: f32[8,4], index: 3, kind: input, shape index: {}]   ;;  %s14592_s4 = inlined_call_operand.vmem [shape: f32[8,64], index: 4, kind: input, shape index: {}]   ;;  %s14593_s5 = inlined_call_operand.vmem [shape: f32[1,64], index: 5, kind: input, shape index: {}]   ;;  %s14594_s10 = inlined_call_operand.vmem [shape: f32[4,64], index: 10, kind: input, shape index: {}]   ;;  %s14595_s7 = inlined_call_operand.vmem [shape: f32[4,8], index: 7, kind: input, shape index: {}]   ;;  %s14596_s6 = inlined_call_operand.vmem [shape: f32[64,8], index: 6, kind: input, shape index: {}]   ;;  %s14597_s8 = inlined_call_operand.vmem [shape: f32[4,8,32], index: 8, kind: input, shape index: {}]   ;;  %s14598_s9 = inlined_call_operand.vmem [shape: f32[1,32], index: 9, kind: input, shape index: {}]   ;;  %s14599_s11 = inlined_call_operand.vmem [shape: f32[128,32], index: 11, kind: output, shape index: {}]  }
   0x1   :  { %v65_v0 = vld [vmem:[%s14588_s1 + $0x18] sm:$0xff]  ;;  %v64_v1 = vld [vmem:[%s14588_s1 + $0x10] sm:$0xff]  ;;  %v63_v2 = vld [vmem:[%s14588_s1 + $0x8] sm:$0xff] }
   0x2   :  { %131 = vmatpush.msra.mxu0 %v65_v0  ;;  %v62_v3 = vld [vmem:[%s14588_s1] sm:$0xff]  ;;  %v39_v5 = vld [vmem:[%s14589_s0 + $0x8] sm:$0xff]  ;;  %v40_v6 = vld [vmem:[%s14589_s0 + $0x10] sm:$0xff] }
   0x3   :  { %v38_v4 = vld [vmem:[%s14589_s0] sm:$0xff]  ;;  %v41_v7 = vld [vmem:[%s14589_s0 + $0x18] sm:$0xff]  ;;  %v43_v9 = vld [vmem:[%s14589_s0 + $0x28] sm:$0xff] }
   0x4   :  { %132 = vmatpush.msra.mxu0 %v64_v1  ;;  %v42_v8 = vld [vmem:[%s14589_s0 + $0x20] sm:$0xff]  ;;  %v44_v10 = vld [vmem:[%s14589_s0 + $0x30] sm:$0xff]  ;;  %v45_v11 = vld [vmem:[%s14589_s0 + $0x38] sm:$0xff] }
   0x5   :  { %v46_v12 = vld [vmem:[%s14589_s0 + $0x40] sm:$0xff]  ;;  %v47_v15 = vld [vmem:[%s14589_s0 + $0x48] sm:$0xff]  ;;  %v48_v16 = vld [vmem:[%s14589_s0 + $0x50] sm:$0xff] }
   0x6   :  { %133 = vmatpush.msra.mxu0 %v63_v2  ;;  %v184_v13 = vld [vmem:[%s14591_s3] sm:$0xff]  ;;  %v49_v20 = vld [vmem:[%s14589_s0 + $0x58] sm:$0xff]  ;;  %v51_v26 = vld [vmem:[%s14589_s0 + $0x68] sm:$0xff] }
   0x7   :  { %v1436_v14 = vld [vmem:[%s14592_s4] sm:$0xff]  ;;  %249 = vmatpush.msra.mxu1 %v184_v13  ;;  %v52_v29 = vld [vmem:[%s14589_s0 + $0x70] sm:$0xff]  ;;  %v53_v30 = vld [vmem:[%s14589_s0 + $0x78] sm:$0xff] }
   0x8   :  { %134 = vmatpush.msra.mxu0 %v62_v3  ;;  %1456 = vmatpush.msra.mxu2 %v1436_v14  ;;  %v9101_v17 = vld [vmem:[%s14590_s2] ss:$0 sm:$0xff] }
   0x9   :  { %8037 = vmatmul.msk.f32.vlgmr.msra.gmra.mxu0 %vm14616_vm0, %v38_v4  ;;  %v50_v23 = vld [vmem:[%s14589_s0 + $0x60] sm:$0xff] }
  0x11   :  { %8038 = vmatmul.msk.f32.gmra.mxu0 %vm14616_vm0, %v39_v5 }
  0x19   :  { %8039 = vmatmul.msk.f32.gmra.mxu0 %vm14616_vm0, %v40_v6 }
  0x21   :  { %8040 = vmatmul.msk.f32.gmra.mxu0 %vm14616_vm0, %v41_v7 }
  0x29   :  { %8041 = vmatmul.msk.f32.gmra.mxu0 %vm14616_vm0, %v42_v8 }
  0x31   :  { %8042 = vmatmul.msk.f32.gmra.mxu0 %vm14616_vm0, %v43_v9 }
  0x39   :  { %8043 = vmatmul.msk.f32.gmra.mxu0 %vm14616_vm0, %v44_v10 }
  0x41   :  { %8044 = vmatmul.msk.f32.gmra.mxu0 %vm14616_vm0, %v45_v11 }
  0x49   :  { %8045 = vmatmul.msk.f32.gmra.mxu0 %vm14616_vm0, %v46_v12 }
  0x51   :  { %8046 = vmatmul.msk.f32.gmra.mxu0 %vm14616_vm0, %v47_v15 }
  0x59   :  { %8047 = vmatmul.msk.f32.gmra.mxu0 %vm14616_vm0, %v48_v16 }
  0x61   :  { %8048 = vmatmul.msk.f32.gmra.mxu0 %vm14616_vm0, %v49_v20 }
  0x69   :  { %8049 = vmatmul.msk.f32.gmra.mxu0 %vm14616_vm0, %v50_v23 }
  0x71   :  { %8050 = vmatmul.msk.f32.gmra.mxu0 %vm14616_vm0, %v51_v26 }
  0x79   :  { %8051 = vmatmul.msk.f32.gmra.mxu0 %vm14616_vm0, %v52_v29 }
  0x81   :  { %8052 = vmatmul.msk.f32.gmra.mxu0 %vm14616_vm0, %v53_v30 }
  0x86   :  { %v136_v18 = vpop.f32.mrf.mxu0 }
  0x87   :  { %v137_v19 = vadd.f32 %v9101_v17, %v136_v18 }
  0x89   :  { %8053 = vmatmul.msk.f32.vlgmr.msra.gmra.mxu1 %vm14600_vm1, %v137_v19  ;;  %8069 = vmatmul.msk.f32.vlgmr.msra.gmra.mxu2 %vm14600_vm1, %v137_v19 }
  0x8e   :  { %v139_v21 = vpop.f32.mrf.mxu0 }
  0x8f   :  { %v140_v22 = vadd.f32 %v9101_v17, %v139_v21 }
  0x91   :  { %8054 = vmatmul.msk.f32.gmra.mxu1 %vm14600_vm1, %v140_v22  ;;  %8070 = vmatmul.msk.f32.gmra.mxu2 %vm14600_vm1, %v140_v22 }
  0x96   :  { %v142_v24 = vpop.f32.mrf.mxu0 }
  0x97   :  { %v143_v25 = vadd.f32 %v9101_v17, %v142_v24 }
  0x99   :  { %8055 = vmatmul.msk.f32.gmra.mxu1 %vm14600_vm1, %v143_v25  ;;  %8071 = vmatmul.msk.f32.gmra.mxu2 %vm14600_vm1, %v143_v25 }
  0x9e   :  { %v145_v27 = vpop.f32.mrf.mxu0 }
  0x9f   :  { %v146_v28 = vadd.f32 %v9101_v17, %v145_v27 }
  0xa1   :  { %8056 = vmatmul.msk.f32.gmra.mxu1 %vm14600_vm1, %v146_v28  ;;  %8072 = vmatmul.msk.f32.gmra.mxu2 %vm14600_vm1, %v146_v28 }
  0xa6   :  { %v148_v31 = vpop.f32.mrf.mxu0 }
  0xa7   :  { %v149_v32 = vadd.f32 %v9101_v17, %v148_v31 }
  0xa9   :  { %8057 = vmatmul.msk.f32.gmra.mxu1 %vm14600_vm1, %v149_v32  ;;  %8073 = vmatmul.msk.f32.gmra.mxu2 %vm14600_vm1, %v149_v32 }
  0xae   :  { %v151_v33 = vpop.f32.mrf.mxu0 }
  0xaf   :  { %v152_v34 = vadd.f32 %v9101_v17, %v151_v33 }
  0xb1   :  { %8058 = vmatmul.msk.f32.gmra.mxu1 %vm14600_vm1, %v152_v34  ;;  %8074 = vmatmul.msk.f32.gmra.mxu2 %vm14600_vm1, %v152_v34 }
  0xb6   :  { %v154_v35 = vpop.f32.mrf.mxu0 }
  0xb7   :  { %v155_v36 = vadd.f32 %v9101_v17, %v154_v35 }
  0xb9   :  { %8059 = vmatmul.msk.f32.gmra.mxu1 %vm14600_vm1, %v155_v36  ;;  %8075 = vmatmul.msk.f32.gmra.mxu2 %vm14600_vm1, %v155_v36 }
  0xbe   :  { %v157_v37 = vpop.f32.mrf.mxu0 }
  0xbf   :  { %v158_v38 = vadd.f32 %v9101_v17, %v157_v37 }
  0xc1   :  { %8060 = vmatmul.msk.f32.gmra.mxu1 %vm14600_vm1, %v158_v38  ;;  %8076 = vmatmul.msk.f32.gmra.mxu2 %vm14600_vm1, %v158_v38 }
  0xc6   :  { %v160_v39 = vpop.f32.mrf.mxu0 }
  0xc7   :  { %v161_v40 = vadd.f32 %v9101_v17, %v160_v39 }
  0xc9   :  { %8077 = vmatmul.msk.f32.gmra.mxu2 %vm14600_vm1, %v161_v40  ;;  %8061 = vmatmul.msk.f32.gmra.mxu1 %vm14600_vm1, %v161_v40 }
  0xce   :  { %v163_v41 = vpop.f32.mrf.mxu0 }
  0xcf   :  { %v164_v42 = vadd.f32 %v9101_v17, %v163_v41 }
  0xd1   :  { %8062 = vmatmul.msk.f32.gmra.mxu1 %vm14600_vm1, %v164_v42  ;;  %8078 = vmatmul.msk.f32.gmra.mxu2 %vm14600_vm1, %v164_v42 }
  0xd6   :  { %v166_v43 = vpop.f32.mrf.mxu0 }
  0xd7   :  { %v167_v44 = vadd.f32 %v9101_v17, %v166_v43 }
  0xd9   :  { %8063 = vmatmul.msk.f32.gmra.mxu1 %vm14600_vm1, %v167_v44  ;;  %8079 = vmatmul.msk.f32.gmra.mxu2 %vm14600_vm1, %v167_v44 }
  0xde   :  { %v169_v45 = vpop.f32.mrf.mxu0 }
  0xdf   :  { %v170_v47 = vadd.f32 %v9101_v17, %v169_v45 }
  0xe1   :  { %8064 = vmatmul.msk.f32.gmra.mxu1 %vm14600_vm1, %v170_v47  ;;  %8080 = vmatmul.msk.f32.gmra.mxu2 %vm14600_vm1, %v170_v47 }
  0xe6   :  { %v172_v49 = vpop.f32.mrf.mxu0 }
  0xe7   :  { %v173_v51 = vadd.f32 %v9101_v17, %v172_v49 }
  0xe9   :  { %8065 = vmatmul.msk.f32.gmra.mxu1 %vm14600_vm1, %v173_v51  ;;  %8081 = vmatmul.msk.f32.gmra.mxu2 %vm14600_vm1, %v173_v51 }
  0xee   :  { %v175_v53 = vpop.f32.mrf.mxu0 }
  0xef   :  { %v176_v55 = vadd.f32 %v9101_v17, %v175_v53 }
  0xf1   :  { %8066 = vmatmul.msk.f32.gmra.mxu1 %vm14600_vm1, %v176_v55  ;;  %8082 = vmatmul.msk.f32.gmra.mxu2 %vm14600_vm1, %v176_v55 }
  0xf6   :  { %v178_v57 = vpop.f32.mrf.mxu0 }
  0xf7   :  { %v179_v59 = vadd.f32 %v9101_v17, %v178_v57 }
  0xf9   :  { %8067 = vmatmul.msk.f32.gmra.mxu1 %vm14600_vm1, %v179_v59  ;;  %8083 = vmatmul.msk.f32.gmra.mxu2 %vm14600_vm1, %v179_v59 }
  0xfe   :  { %v181_v61 = vpop.f32.mrf.mxu0 }
  0xff   :  { %v182_v63 = vadd.f32 %v9101_v17, %v181_v61 }
 0x101   :  { %8068 = vmatmul.msk.f32.gmra.mxu1 %vm14600_vm1, %v182_v63  ;;  %8084 = vmatmul.msk.f32.gmra.mxu2 %vm14600_vm1, %v182_v63 }
 0x106   :  { %v251_v46 = vpop.f32.mrf.mxu1 }
 0x107   :  { %v300_v48 = vsel %vm299_vm2, %v251_v46, -inf }
 0x108   :  { %301 = vmax.xlane.f32.xlu0 %v300_v48 }
 0x10e   :  { %v254_v50 = vpop.f32.mrf.mxu1 }
 0x10f   :  { %v303_v52 = vsel %vm299_vm2, %v254_v50, -inf }
 0x110   :  { %304 = vmax.xlane.f32.xlu0 %v303_v52 }
 0x116   :  { %v257_v54 = vpop.f32.mrf.mxu1 }
 0x117   :  { %v306_v56 = vsel %vm299_vm2, %v257_v54, -inf }
 0x118   :  { %307 = vmax.xlane.f32.xlu1 %v306_v56 }
 0x11e   :  { %v260_v58 = vpop.f32.mrf.mxu1 }
 0x11f   :  { %v309_v60 = vsel %vm299_vm2, %v260_v58, -inf }
 0x120   :  { %310 = vmax.xlane.f32.xlu1 %v309_v60 }
 0x126   :  { %v263_v62 = vpop.f32.mrf.mxu1 }
 0x127   :  { %v312_v0 = vsel %vm299_vm2, %v263_v62, -inf }
 0x128   :  { %313 = vmax.xlane.f32.xlu2 %v312_v0 }
 0x12e   :  { %v266_v1 = vpop.f32.mrf.mxu1 }
 0x12f   :  { %v315_v2 = vsel %vm299_vm2, %v266_v1, -inf }
 0x130   :  { %316 = vmax.xlane.f32.xlu2 %v315_v2 }
 0x136   :  { %v269_v3 = vpop.f32.mrf.mxu1 }
 0x137   :  { %v318_v4 = vsel %vm299_vm2, %v269_v3, -inf }
 0x138   :  { %319 = vmax.xlane.f32.xlu0 %v318_v4 }
 0x13e   :  { %v9178_v5 = vpop.f32.mrf.mxu1 }
 0x13f   :  { %v321_v6 = vsel %vm299_vm2, %v9178_v5, -inf }
 0x140   :  { %322 = vmax.xlane.f32.xlu2 %v321_v6 }
 0x146   :  { %v9182_v9 = vpop.f32.mrf.mxu1 }
 0x147   :  { %v324_v19 = vsel %vm299_vm2, %v9182_v9, -inf }
 0x14e   :  { %v9186_v15 = vpop.f32.mrf.mxu1 }
 0x14f   :  { %v327_v26 = vsel %vm299_vm2, %v9186_v15, -inf }
 0x156   :  { %v9196_v23 = vpop.f32.mrf.mxu1 }
 0x157   :  { %v330_v33 = vsel %vm299_vm2, %v9196_v23, -inf }
 0x15e   :  { %v9204_v30 = vpop.f32.mrf.mxu1 }
 0x15f   :  { %v333_v40 = vsel %vm299_vm2, %v9204_v30, -inf }
 0x166   :  { %v9212_v39 = vpop.f32.mrf.mxu1 }
 0x16e   :  { %v9224_v49 = vpop.f32.mrf.mxu1 }
 0x16f   :  { %v339_v53 = vsel %vm299_vm2, %v9224_v49, -inf }
 0x176   :  { %v9235_v57 = vpop.f32.mrf.mxu1 }
 0x17b   :  { %v302_v7 = vpop.xlane.xlu0 %301 }
 0x17c   :  { %v348_v8 = vsub.f32 %v251_v46, %v302_v7  ;;  %v336_v46 = vsel %vm299_vm2, %v9212_v39, -inf }
 0x17e   :  { %v364_v10 = vmul.f32 1.442695, %v348_v8  ;;  %v9243_v61 = vpop.f32.mrf.mxu1 }
 0x180   :  { %8517 = vpow2.f32 %v364_v10 }
 0x183   :  { %v305_v11 = vpop.xlane.xlu0 %304 }
 0x184   :  { %v349_v12 = vsub.f32 %v254_v50, %v305_v11 }
 0x186   :  { %v9184_v13 = vpop.eup %8517  ;;  %v366_v14 = vmul.f32 1.442695, %v349_v12 }
 0x187   :  { %v396_v16 = vsel %vm299_vm2, %v9184_v13, 0.0 }
 0x188   :  { %8519 = vpow2.f32 %v366_v14  ;;  %397 = vadd.xlane.f32.xlu1 %v396_v16 }
 0x18b   :  { %v308_v17 = vpop.xlane.xlu1 %307 }
 0x18c   :  { %v350_v18 = vsub.f32 %v257_v54, %v308_v17 }
 0x18e   :  { %v9192_v20 = vpop.eup %8519  ;;  %v368_v21 = vmul.f32 1.442695, %v350_v18 }
 0x18f   :  { %v399_v22 = vsel %vm299_vm2, %v9192_v20, 0.0 }
 0x190   :  { %8521 = vpow2.f32 %v368_v21  ;;  %400 = vadd.xlane.f32.xlu0 %v399_v22  ;;  %325 = vmax.xlane.f32.xlu1 %v324_v19 }
 0x193   :  { %v311_v24 = vpop.xlane.xlu1 %310 }
 0x194   :  { %v351_v25 = vsub.f32 %v260_v58, %v311_v24  ;;  %v342_v58 = vsel %vm299_vm2, %v9235_v57, -inf }
 0x196   :  { %v9200_v27 = vpop.eup %8521  ;;  %v370_v28 = vmul.f32 1.442695, %v351_v25 }
 0x197   :  { %v402_v29 = vsel %vm299_vm2, %v9200_v27, 0.0 }
 0x198   :  { %8523 = vpow2.f32 %v370_v28  ;;  %403 = vadd.xlane.f32.xlu2 %v402_v29  ;;  %328 = vmax.xlane.f32.xlu0 %v327_v26 }
 0x19b   :  { %v314_v31 = vpop.xlane.xlu2 %313 }
 0x19c   :  { %v352_v32 = vsub.f32 %v263_v62, %v314_v31  ;;  %v345_v62 = vsel %vm299_vm2, %v9243_v61, -inf }
 0x19e   :  { %v9208_v34 = vpop.eup %8523  ;;  %v372_v35 = vmul.f32 1.442695, %v352_v32 }
 0x19f   :  { %v405_v36 = vsel %vm299_vm2, %v9208_v34, 0.0 }
 0x1a0   :  { %8525 = vpow2.f32 %v372_v35  ;;  %406 = vadd.xlane.f32.xlu1 %v405_v36  ;;  %331 = vmax.xlane.f32.xlu2 %v330_v33 }
 0x1a3   :  { %v317_v37 = vpop.xlane.xlu2 %316 }
 0x1a4   :  { %v353_v38 = vsub.f32 %v266_v1, %v317_v37 }
 0x1a6   :  { %v9216_v41 = vpop.eup %8525  ;;  %v374_v42 = vmul.f32 1.442695, %v353_v38 }
 0x1a7   :  { %v408_v43 = vsel %vm299_vm2, %v9216_v41, 0.0 }
 0x1a8   :  { %8527 = vpow2.f32 %v374_v42  ;;  %409 = vadd.xlane.f32.xlu0 %v408_v43  ;;  %334 = vmax.xlane.f32.xlu1 %v333_v40 }
 0x1ab   :  { %v320_v44 = vpop.xlane.xlu0 %319 }
 0x1ac   :  { %v354_v45 = vsub.f32 %v269_v3, %v320_v44 }
 0x1ae   :  { %v9222_v47 = vpop.eup %8527  ;;  %v376_v48 = vmul.f32 1.442695, %v354_v45 }
 0x1af   :  { %v411_v50 = vsel %vm299_vm2, %v9222_v47, 0.0 }
 0x1b0   :  { %8529 = vpow2.f32 %v376_v48  ;;  %412 = vadd.xlane.f32.xlu2 %v411_v50  ;;  %337 = vmax.xlane.f32.xlu0 %v336_v46 }
 0x1b3   :  { %v323_v51 = vpop.xlane.xlu2 %322 }
 0x1b4   :  { %v355_v52 = vsub.f32 %v9178_v5, %v323_v51 }
 0x1b6   :  { %v9231_v54 = vpop.eup %8529  ;;  %v378_v55 = vmul.f32 1.442695, %v355_v52 }
 0x1b7   :  { %v414_v56 = vsel %vm299_vm2, %v9231_v54, 0.0 }
 0x1b8   :  { %8531 = vpow2.f32 %v378_v55  ;;  %415 = vadd.xlane.f32.xlu1 %v414_v56  ;;  %340 = vmax.xlane.f32.xlu2 %v339_v53 }
 0x1be   :  { %v9239_v59 = vpop.eup %8531 }
 0x1bf   :  { %v417_v60 = vsel %vm299_vm2, %v9239_v59, 0.0 }
 0x1c0   :  { %418 = vadd.xlane.f32.xlu0 %v417_v60  ;;  %343 = vmax.xlane.f32.xlu1 %v342_v58 }
 0x1c8   :  { %346 = vmax.xlane.f32.xlu1 %v345_v62 }
 0x1fb   :  { %v398_v63 = vpop.xlane.xlu1 %397 }
 0x1fc   :  { %8533 = vrcp.f32 %v398_v63  ;;  %v455_v7 = vand.u32 2147483648, %v398_v63  ;;  %v453_v10 = vand.u32 2147483647, %v398_v63  ;;  %vm449_vm4 = vweird.f32 %v398_v63 }
 0x1fe   :  { %v456_v16 = vor.u32 1.1754944e-38, %v455_v7  ;;  %vm454_vm6 = vcmp.eq.f32.partialorder %v453_v10, 8.507059e+37 }
 0x202   :  { %v8534_v0 = vpop.eup %8533 }
 0x203   :  { %v445_v1 = vmul.f32 %v8534_v0, %v398_v63  ;;  %v401_v2 = vpop.xlane.xlu0 %400  ;;  %v326_v3 = vpop.xlane.xlu1 %325  ;;  %vm450_vm3 = vweird.f32 %v8534_v0 }
 0x204   :  { %8535 = vrcp.f32 %v401_v2  ;;  %v356_v5 = vsub.f32 %v9182_v9, %v326_v3  ;;  %vm451_vm5 = vmor %vm449_vm4, %vm450_vm3  ;;  %v470_v28 = vand.u32 2147483648, %v401_v2  ;;  %v468_v31 = vand.u32 2147483647, %v401_v2 }
 0x205   :  { %v446_v4 = vsub.f32 1.0, %v445_v1  ;;  %vm464_vm8 = vweird.f32 %v401_v2 }
 0x206   :  { %v380_v8 = vmul.f32 1.442695, %v356_v5  ;;  %v471_v36 = vor.u32 1.1754944e-38, %v470_v28  ;;  %vm469_vm10 = vcmp.eq.f32.partialorder %v468_v31, 8.507059e+37 }
 0x207   :  { %v447_v6 = vmul.f32 %v8534_v0, %v446_v4 }
 0x208   :  { %8537 = vpow2.f32 %v380_v8 }
 0x209   :  { %v448_v11 = vadd.f32 %v8534_v0, %v447_v6 }
 0x20a   :  { %v8536_v12 = vpop.eup %8535 }
 0x20b   :  { %v452_v14 = vsel %vm451_vm5, %v8534_v0, %v448_v11  ;;  %v460_v17 = vmul.f32 %v8536_v12, %v401_v2  ;;  %v404_v18 = vpop.xlane.xlu2 %403  ;;  %v329_v19 = vpop.xlane.xlu0 %328  ;;  %vm465_vm7 = vweird.f32 %v8536_v12 }
 0x20c   :  { %8539 = vrcp.f32 %v404_v18  ;;  %v357_v9 = vsub.f32 %v9186_v15, %v329_v19  ;;  %v457_v22 = vsel %vm454_vm6, %v456_v16, %v452_v14  ;;  %vm466_vm9 = vmor %vm464_vm8, %vm465_vm7  ;;  %v485_v50 = vand.u32 2147483648, %v404_v18 }
 0x20d   :  { %v461_v21 = vsub.f32 1.0, %v460_v17  ;;  %v9250_v24 = vmul.f32 %v9184_v13, %v457_v22  ;;  %v483_v52 = vand.u32 2147483647, %v404_v18  ;;  %vm479_vm12 = vweird.f32 %v404_v18 }
 0x20e   :  { %v9252_v25 = vpop.eup %8537  ;;  %v382_v29 = vmul.f32 1.442695, %v357_v9  ;;  %v486_v58 = vor.u32 1.1754944e-38, %v485_v50 }
 0x20f   :  { %v462_v26 = vmul.f32 %v8536_v12, %v461_v21  ;;  %v420_v32 = vsel %vm299_vm2, %v9252_v25, 0.0  ;;  %v684_v33 = vsel %vm299_vm2, %v9250_v24, -inf  ;;  %vm484_vm14 = vcmp.eq.f32.partialorder %v483_v52, 8.507059e+37 }
 0x210   :  { %8541 = vpow2.f32 %v382_v29  ;;  %421 = vadd.xlane.f32.xlu0 %v420_v32  ;;  %685 = vmax.xlane.f32.xlu2 %v684_v33 }
 0x211   :  { %v463_v35 = vadd.f32 %v8536_v12, %v462_v26 }
 0x212   :  { %v8540_v13 = vpop.eup %8539 }
 0x213   :  { %v467_v15 = vsel %vm466_vm9, %v8536_v12, %v463_v35  ;;  %v475_v37 = vmul.f32 %v8540_v13, %v404_v18  ;;  %v407_v38 = vpop.xlane.xlu1 %406  ;;  %v332_v40 = vpop.xlane.xlu2 %331  ;;  %vm480_vm11 = vweird.f32 %v8540_v13 }
 0x214   :  { %8543 = vrcp.f32 %v407_v38  ;;  %v358_v43 = vsub.f32 %v9196_v23, %v332_v40  ;;  %v472_v44 = vsel %vm469_vm10, %v471_v36, %v467_v15  ;;  %vm481_vm13 = vmor %vm479_vm12, %vm480_vm11  ;;  %v500_v6 = vand.u32 2147483648, %v407_v38 }
 0x215   :  { %v476_v42 = vsub.f32 1.0, %v475_v37  ;;  %v9260_v45 = vmul.f32 %v9192_v20, %v472_v44  ;;  %v498_v8 = vand.u32 2147483647, %v407_v38  ;;  %vm494_vm3 = vweird.f32 %v407_v38 }
 0x216   :  { %v9262_v46 = vpop.eup %8541  ;;  %v384_v51 = vmul.f32 1.442695, %v358_v43  ;;  %v501_v14 = vor.u32 1.1754944e-38, %v500_v6 }
 0x217   :  { %v477_v48 = vmul.f32 %v8540_v13, %v476_v42  ;;  %v423_v53 = vsel %vm299_vm2, %v9262_v46, 0.0  ;;  %v687_v55 = vsel %vm299_vm2, %v9260_v45, -inf  ;;  %vm499_vm5 = vcmp.eq.f32.partialorder %v498_v8, 8.507059e+37 }
 0x218   :  { %8545 = vpow2.f32 %v384_v51  ;;  %424 = vadd.xlane.f32.xlu0 %v423_v53  ;;  %688 = vmax.xlane.f32.xlu2 %v687_v55 }
 0x219   :  { %v478_v56 = vadd.f32 %v8540_v13, %v477_v48 }
 0x21a   :  { %v8544_v20 = vpop.eup %8543 }
 0x21b   :  { %v482_v23 = vsel %vm481_vm13, %v8540_v13, %v478_v56  ;;  %v490_v60 = vmul.f32 %v8544_v20, %v407_v38  ;;  %v410_v62 = vpop.xlane.xlu0 %409  ;;  %v335_v63 = vpop.xlane.xlu1 %334  ;;  %vm495_vm15 = vweird.f32 %v8544_v20 }
 0x21c   :  { %8547 = vrcp.f32 %v410_v62  ;;  %v359_v1 = vsub.f32 %v9204_v30, %v335_v63  ;;  %v487_v2 = vsel %vm484_vm14, %v486_v58, %v482_v23  ;;  %vm496_vm4 = vmor %vm494_vm3, %vm495_vm15  ;;  %v515_v29 = vand.u32 2147483648, %v410_v62 }
 0x21d   :  { %v491_v0 = vsub.f32 1.0, %v490_v60  ;;  %v9270_v3 = vmul.f32 %v9200_v27, %v487_v2  ;;  %v513_v32 = vand.u32 2147483647, %v410_v62  ;;  %vm509_vm7 = vweird.f32 %v410_v62 }
 0x21e   :  { %v9272_v4 = vpop.eup %8545  ;;  %v386_v7 = vmul.f32 1.442695, %v359_v1  ;;  %v516_v15 = vor.u32 1.1754944e-38, %v515_v29 }
 0x21f   :  { %v492_v5 = vmul.f32 %v8544_v20, %v491_v0  ;;  %v426_v10 = vsel %vm299_vm2, %v9272_v4, 0.0  ;;  %v690_v11 = vsel %vm299_vm2, %v9270_v3, -inf  ;;  %vm514_vm9 = vcmp.eq.f32.partialorder %v513_v32, 8.507059e+37 }
 0x220   :  { %8549 = vpow2.f32 %v386_v7  ;;  %427 = vadd.xlane.f32.xlu2 %v426_v10  ;;  %691 = vmax.xlane.f32.xlu1 %v690_v11 }
 0x221   :  { %v493_v12 = vadd.f32 %v8544_v20, %v492_v5 }
 0x222   :  { %v8548_v27 = vpop.eup %8547 }
 0x223   :  { %v497_v30 = vsel %vm496_vm4, %v8544_v20, %v493_v12  ;;  %v505_v16 = vmul.f32 %v8548_v27, %v410_v62  ;;  %v413_v17 = vpop.xlane.xlu2 %412  ;;  %v338_v18 = vpop.xlane.xlu0 %337  ;;  %vm510_vm6 = vweird.f32 %v8548_v27 }
 0x224   :  { %8551 = vrcp.f32 %v413_v17  ;;  %v360_v21 = vsub.f32 %v9212_v39, %v338_v18  ;;  %v502_v9 = vsel %vm499_vm5, %v501_v14, %v497_v30  ;;  %vm511_vm8 = vmor %vm509_vm7, %vm510_vm6  ;;  %v530_v51 = vand.u32 2147483648, %v413_v17 }
 0x225   :  { %v506_v19 = vsub.f32 1.0, %v505_v16  ;;  %v9280_v22 = vmul.f32 %v9208_v34, %v502_v9  ;;  %v528_v53 = vand.u32 2147483647, %v413_v17  ;;  %vm524_vm11 = vweird.f32 %v413_v17 }
 0x226   :  { %v9282_v26 = vpop.eup %8549  ;;  %v388_v31 = vmul.f32 1.442695, %v360_v21  ;;  %v531_v23 = vor.u32 1.1754944e-38, %v530_v51 }
 0x227   :  { %v507_v28 = vmul.f32 %v8548_v27, %v506_v19  ;;  %v693_v33 = vsel %vm299_vm2, %v9280_v22, -inf  ;;  %v429_v35 = vsel %vm299_vm2, %v9282_v26, 0.0  ;;  %vm529_vm13 = vcmp.eq.f32.partialorder %v528_v53, 8.507059e+37 }
 0x228   :  { %8553 = vpow2.f32 %v388_v31  ;;  %694 = vmax.xlane.f32.xlu0 %v693_v33  ;;  %430 = vadd.xlane.f32.xlu1 %v429_v35 }
 0x229   :  { %v508_v13 = vadd.f32 %v8548_v27, %v507_v28 }
 0x22a   :  { %v8552_v34 = vpop.eup %8551 }
 0x22b   :  { %v512_v39 = vsel %vm511_vm8, %v8548_v27, %v508_v13  ;;  %v520_v36 = vmul.f32 %v8552_v34, %v413_v17  ;;  %v416_v37 = vpop.xlane.xlu1 %415  ;;  %v341_v38 = vpop.xlane.xlu2 %340  ;;  %vm525_vm10 = vweird.f32 %v8552_v34 }
 0x22c   :  { %8555 = vrcp.f32 %v416_v37  ;;  %v361_v42 = vsub.f32 %v9224_v49, %v341_v38  ;;  %v517_v43 = vsel %vm514_vm9, %v516_v15, %v512_v39  ;;  %vm526_vm12 = vmor %vm524_vm11, %vm525_vm10  ;;  %v545_v2 = vand.u32 2147483648, %v416_v37 }
 0x22d   :  { %v521_v40 = vsub.f32 1.0, %v520_v36  ;;  %v9290_v44 = vmul.f32 %v9216_v41, %v517_v43  ;;  %v543_v8 = vand.u32 2147483647, %v416_v37  ;;  %vm539_vm15 = vweird.f32 %v416_v37 }
 0x22e   :  { %v9292_v48 = vpop.eup %8553  ;;  %v390_v52 = vmul.f32 1.442695, %v361_v42  ;;  %v60_v38 = vlaneseq }
 0x22f   :  { %v522_v50 = vmul.f32 %v8552_v34, %v521_v40  ;;  %v432_v55 = vsel %vm299_vm2, %v9292_v48, 0.0  ;;  %v696_v56 = vsel %vm299_vm2, %v9290_v44, -inf  ;;  %vm544_vm4 = vcmp.eq.f32.partialorder %v543_v8, 8.507059e+37 }
 0x230   :  { %8557 = vpow2.f32 %v390_v52  ;;  %433 = vadd.xlane.f32.xlu0 %v432_v55  ;;  %697 = vmax.xlane.f32.xlu2 %v696_v56  ;;  %v9327_v40 = vand.u32 127, %v60_v38 }
 0x231   :  { %v523_v20 = vadd.f32 %v8552_v34, %v522_v50 }
 0x232   :  { %v8556_v41 = vpop.eup %8555 }
 0x233   :  { %v527_v49 = vsel %vm526_vm12, %v8552_v34, %v523_v20  ;;  %v535_v58 = vmul.f32 %v8556_v41, %v416_v37  ;;  %v419_v60 = vpop.xlane.xlu0 %418  ;;  %v344_v62 = vpop.xlane.xlu1 %343  ;;  %vm540_vm14 = vweird.f32 %v8556_v41 }
 0x234   :  { %8559 = vrcp.f32 %v419_v60  ;;  %v362_v0 = vsub.f32 %v9235_v57, %v344_v62  ;;  %v532_v1 = vsel %vm529_vm13, %v531_v23, %v527_v49  ;;  %vm541_vm3 = vmor %vm539_vm15, %vm540_vm14  ;;  %v560_v9 = vand.u32 2147483648, %v419_v60 }
 0x235   :  { %v536_v63 = vsub.f32 1.0, %v535_v58  ;;  %v9300_v5 = vmul.f32 %v9222_v47, %v532_v1  ;;  %v546_v47 = vor.u32 1.1754944e-38, %v545_v2  ;;  %v558_v32 = vand.u32 2147483647, %v419_v60 }
 0x236   :  { %v9302_v6 = vpop.eup %8557  ;;  %v392_v10 = vmul.f32 1.442695, %v362_v0  ;;  %vm554_vm6 = vweird.f32 %v419_v60 }
 0x237   :  { %v537_v7 = vmul.f32 %v8556_v41, %v536_v63  ;;  %v435_v11 = vsel %vm299_vm2, %v9302_v6, 0.0  ;;  %v699_v12 = vsel %vm299_vm2, %v9300_v5, -inf  ;;  %vm559_vm8 = vcmp.eq.f32.partialorder %v558_v32, 8.507059e+37 }
 0x238   :  { %8561 = vpow2.f32 %v392_v10  ;;  %436 = vadd.xlane.f32.xlu2 %v435_v11  ;;  %700 = vmax.xlane.f32.xlu1 %v699_v12 }
 0x239   :  { %v538_v27 = vadd.f32 %v8556_v41, %v537_v7 }
 0x23a   :  { %v8560_v57 = vpop.eup %8559 }
 0x23b   :  { %v542_v30 = vsel %vm541_vm3, %v8556_v41, %v538_v27  ;;  %v550_v14 = vmul.f32 %v8560_v57, %v419_v60  ;;  %v347_v16 = vpop.xlane.xlu1 %346  ;;  %vm555_vm5 = vweird.f32 %v8560_v57 }
 0x23c   :  { %v363_v17 = vsub.f32 %v9243_v61, %v347_v16  ;;  %v547_v18 = vsel %vm544_vm4, %v546_v47, %v542_v30  ;;  %vm556_vm7 = vmor %vm554_vm6, %vm555_vm5 }
 0x23d   :  { %v551_v19 = vsub.f32 1.0, %v550_v14  ;;  %v9310_v21 = vmul.f32 %v9231_v54, %v547_v18  ;;  %v561_v54 = vor.u32 1.1754944e-38, %v560_v9 }
 0x23e   :  { %v394_v28 = vmul.f32 1.442695, %v363_v17  ;;  %v9312_v29 = vpop.eup %8561 }
 0x23f   :  { %v552_v31 = vmul.f32 %v8560_v57, %v551_v19  ;;  %v702_v33 = vsel %vm299_vm2, %v9310_v21, -inf  ;;  %v438_v35 = vsel %vm299_vm2, %v9312_v29, 0.0 }
 0x240   :  { %8563 = vpow2.f32 %v394_v28  ;;  %439 = vadd.xlane.f32.xlu2 %v438_v35  ;;  %703 = vmax.xlane.f32.xlu1 %v702_v33 }
 0x241   :  { %v553_v61 = vadd.f32 %v8560_v57, %v552_v31 }
 0x243   :  { %v557_v13 = vsel %vm556_vm7, %v8560_v57, %v553_v61 }
 0x244   :  { %v562_v34 = vsel %vm559_vm8, %v561_v54, %v557_v13 }
 0x245   :  { %v9319_v39 = vmul.f32 %v9239_v59, %v562_v34 }
 0x246   :  { %v9321_v15 = vpop.eup %8563 }
 0x247   :  { %v705_v36 = vsel %vm299_vm2, %v9319_v39, -inf  ;;  %v441_v37 = vsel %vm299_vm2, %v9321_v15, 0.0 }
 0x248   :  { %706 = vmax.xlane.f32.xlu1 %v705_v36  ;;  %442 = vadd.xlane.f32.xlu2 %v441_v37 }
 0x283   :  { %v422_v42 = vpop.xlane.xlu0 %421  ;;  %v686_v43 = vpop.xlane.xlu2 %685 }
 0x284   :  { %8565 = vrcp.f32 %v422_v42  ;;  %vm732_vm9 = vcmp.ge.f32.partialorder %v9250_v24, %v686_v43  ;;  %v575_v58 = vand.u32 2147483648, %v422_v42  ;;  %v573_v62 = vand.u32 2147483647, %v422_v42 }
 0x285   :  { %v748_v59 = vsel %vm732_vm9, %v9327_v40, 4  ;;  %vm569_vm12 = vweird.f32 %v422_v42 }
 0x286   :  { %v9332_v50 = vsel %vm299_vm2, %v748_v59, 2147483647  ;;  %v576_v8 = vor.u32 1.1754944e-38, %v575_v58  ;;  %vm574_vm14 = vcmp.eq.f32.partialorder %v573_v62, 8.507059e+37 }
 0x287   :  { %v766_v51 = vshra.s32 %v9332_v50, 16 }
 0x289   :  { %v9335_v53 = vcvt.s32.f32 %v766_v51 }
 0x28a   :  { %v8566_v52 = vpop.eup %8565 }
 0x28b   :  { %v565_v55 = vmul.f32 %v8566_v52, %v422_v42  ;;  %v425_v56 = vpop.xlane.xlu0 %424  ;;  %v689_v20 = vpop.xlane.xlu2 %688  ;;  %769 = vmin.xlane.f32.xlu0 %v9335_v53  ;;  %vm570_vm11 = vweird.f32 %v8566_v52 }
 0x28c   :  { %8567 = vrcp.f32 %v425_v56  ;;  %vm733_vm10 = vcmp.ge.f32.partialorder %v9260_v45, %v689_v20  ;;  %vm571_vm13 = vmor %vm569_vm12, %vm570_vm11  ;;  %v590_v16 = vand.u32 2147483648, %v425_v56  ;;  %v588_v18 = vand.u32 2147483647, %v425_v56 }
 0x28d   :  { %v566_v41 = vsub.f32 1.0, %v565_v55  ;;  %v749_v49 = vsel %vm733_vm10, %v9327_v40, 4  ;;  %vm584_vm4 = vweird.f32 %v425_v56 }
 0x28e   :  { %v9341_v60 = vsel %vm299_vm2, %v749_v49, 2147483647  ;;  %v591_v33 = vor.u32 1.1754944e-38, %v590_v16  ;;  %vm589_vm6 = vcmp.eq.f32.partialorder %v588_v18, 8.507059e+37 }
 0x28f   :  { %v567_v23 = vmul.f32 %v8566_v52, %v566_v41  ;;  %v781_v63 = vshra.s32 %v9341_v60, 16 }
 0x291   :  { %v568_v0 = vadd.f32 %v8566_v52, %v567_v23  ;;  %v9344_v2 = vcvt.s32.f32 %v781_v63 }
 0x292   :  { %v8568_v1 = vpop.eup %8567 }
 0x293   :  { %v572_v7 = vsel %vm571_vm13, %v8566_v52, %v568_v0  ;;  %v580_v10 = vmul.f32 %v8568_v1, %v425_v56  ;;  %v428_v11 = vpop.xlane.xlu2 %427  ;;  %v692_v12 = vpop.xlane.xlu1 %691  ;;  %784 = vmin.xlane.f32.xlu0 %v9344_v2  ;;  %vm585_vm3 = vweird.f32 %v8568_v1 }
 0x294   :  { %8569 = vrcp.f32 %v428_v11  ;;  %vm734_vm15 = vcmp.ge.f32.partialorder %v9270_v3, %v692_v12  ;;  %v577_v57 = vsel %vm574_vm14, %v576_v8, %v572_v7  ;;  %vm586_vm5 = vmor %vm584_vm4, %vm585_vm3  ;;  %v605_v37 = vand.u32 2147483648, %v428_v11 }
 0x295   :  { %v581_v27 = vsub.f32 1.0, %v580_v10  ;;  %v750_v47 = vsel %vm734_vm15, %v9327_v40, 4  ;;  %v9350_v30 = vmul.f32 %v9252_v25, %v577_v57  ;;  %v603_v51 = vand.u32 2147483647, %v428_v11 }
 0x296   :  { %v9353_v17 = vsel %vm299_vm2, %v750_v47, 2147483647  ;;  %vm599_vm9 = vweird.f32 %v428_v11  ;;  %v606_v41 = vor.u32 1.1754944e-38, %v605_v37 }
 0x297   :  { %v582_v14 = vmul.f32 %v8568_v1, %v581_v27  ;;  %v708_v19 = vsel %vm299_vm2, %v9350_v30, -inf  ;;  %v796_v9 = vshra.s32 %v9353_v17, 16  ;;  %vm604_vm11 = vcmp.eq.f32.partialorder %v603_v51, 8.507059e+37 }
 0x298   :  { %709 = vmax.xlane.f32.xlu1 %v708_v19 }
 0x299   :  { %v583_v28 = vadd.f32 %v8568_v1, %v582_v14  ;;  %v9358_v32 = vcvt.s32.f32 %v796_v9 }
 0x29a   :  { %v8570_v31 = vpop.eup %8569 }
 0x29b   :  { %v587_v25 = vsel %vm586_vm5, %v8568_v1, %v583_v28  ;;  %v595_v35 = vmul.f32 %v8570_v31, %v428_v11  ;;  %v695_v61 = vpop.xlane.xlu0 %694  ;;  %v431_v54 = vpop.xlane.xlu1 %430  ;;  %799 = vmin.xlane.f32.xlu0 %v9358_v32  ;;  %vm600_vm8 = vweird.f32 %v8570_v31 }
 0x29c   :  { %vm735_vm7 = vcmp.ge.f32.partialorder %v9280_v22, %v695_v61  ;;  %8571 = vrcp.f32 %v431_v54  ;;  %v592_v36 = vsel %vm589_vm6, %v591_v33, %v587_v25  ;;  %vm601_vm10 = vmor %vm599_vm9, %vm600_vm8  ;;  %v620_v8 = vand.u32 2147483648, %v431_v54 }
 0x29d   :  { %v596_v13 = vsub.f32 1.0, %v595_v35  ;;  %v751_v34 = vsel %vm735_vm7, %v9327_v40, 4  ;;  %v9368_v59 = vmul.f32 %v9262_v46, %v592_v36  ;;  %v618_v11 = vand.u32 2147483647, %v431_v54 }
 0x29e   :  { %v9364_v38 = vsel %vm299_vm2, %v751_v34, 2147483647  ;;  %vm614_vm14 = vweird.f32 %v431_v54  ;;  %v621_v16 = vor.u32 1.1754944e-38, %v620_v8 }
 0x29f   :  { %v597_v42 = vmul.f32 %v8570_v31, %v596_v13  ;;  %v811_v43 = vshra.s32 %v9364_v38, 16  ;;  %v711_v62 = vsel %vm299_vm2, %v9368_v59, -inf  ;;  %vm619_vm3 = vcmp.eq.f32.partialorder %v618_v11, 8.507059e+37 }
 0x2a1   :  { %v598_v52 = vadd.f32 %v8570_v31, %v597_v42  ;;  %v9370_v55 = vcvt.s32.f32 %v811_v43 }
 0x2a2   :  { %v8572_v56 = vpop.eup %8571 }
 0x2a3   :  { %v602_v20 = vsel %vm601_vm10, %v8570_v31, %v598_v52  ;;  %v610_v49 = vmul.f32 %v8572_v56, %v431_v54  ;;  %v434_v23 = vpop.xlane.xlu0 %433  ;;  %v698_v58 = vpop.xlane.xlu2 %697  ;;  %814 = vmin.xlane.f32.xlu2 %v9370_v55  ;;  %712 = vmax.xlane.f32.xlu0 %v711_v62  ;;  %vm615_vm13 = vweird.f32 %v8572_v56 }
 0x2a4   :  { %8573 = vrcp.f32 %v434_v23  ;;  %vm736_vm12 = vcmp.ge.f32.partialorder %v9290_v44, %v698_v58  ;;  %v607_v63 = vsel %vm604_vm11, %v606_v41, %v602_v20  ;;  %vm616_vm15 = vmor %vm614_vm14, %vm615_vm13  ;;  %v635_v25 = vand.u32 2147483648, %v434_v23 }
 0x2a5   :  { %v611_v46 = vsub.f32 1.0, %v610_v49  ;;  %v752_v0 = vsel %vm736_vm12, %v9327_v40, 4  ;;  %v9378_v1 = vmul.f32 %v9272_v4, %v607_v63  ;;  %v633_v13 = vand.u32 2147483647, %v434_v23 }
 0x2a6   :  { %v9381_v10 = vsel %vm299_vm2, %v752_v0, 2147483647  ;;  %vm629_vm6 = vweird.f32 %v434_v23  ;;  %v636_v51 = vor.u32 1.1754944e-38, %v635_v25 }
 0x2a7   :  { %v612_v7 = vmul.f32 %v8572_v56, %v611_v46  ;;  %v826_v12 = vshra.s32 %v9381_v10, 16  ;;  %v714_v14 = vsel %vm299_vm2, %v9378_v1, -inf  ;;  %vm634_vm8 = vcmp.eq.f32.partialorder %v633_v13, 8.507059e+37 }
 0x2a9   :  { %v613_v27 = vadd.f32 %v8572_v56, %v612_v7  ;;  %v9384_v47 = vcvt.s32.f32 %v826_v12 }
 0x2aa   :  { %v8574_v57 = vpop.eup %8573 }
 0x2ab   :  { %v617_v4 = vsel %vm616_vm15, %v8572_v56, %v613_v27  ;;  %v625_v18 = vmul.f32 %v8574_v57, %v434_v23  ;;  %v437_v19 = vpop.xlane.xlu2 %436  ;;  %715 = vmax.xlane.f32.xlu2 %v714_v14  ;;  %v701_v9 = vpop.xlane.xlu1 %700  ;;  %829 = vmin.xlane.f32.xlu1 %v9384_v47  ;;  %vm630_vm5 = vweird.f32 %v8574_v57 }
 0x2ac   :  { %8575 = vrcp.f32 %v437_v19  ;;  %vm737_vm4 = vcmp.ge.f32.partialorder %v9300_v5, %v701_v9  ;;  %v622_v31 = vsel %vm619_vm3, %v621_v16, %v617_v4  ;;  %vm631_vm7 = vmor %vm629_vm6, %vm630_vm5  ;;  %v650_v23 = vand.u32 2147483648, %v437_v19 }
 0x2ad   :  { %v626_v28 = vsub.f32 1.0, %v625_v18  ;;  %v753_v33 = vsel %vm737_vm4, %v9327_v40, 4  ;;  %v9392_v61 = vmul.f32 %v9282_v26, %v622_v31  ;;  %v648_v0 = vand.u32 2147483647, %v437_v19 }
 0x2ae   :  { %v9395_v54 = vsel %vm299_vm2, %v753_v33, 2147483647  ;;  %vm644_vm11 = vweird.f32 %v437_v19 }
 0x2af   :  { %v627_v35 = vmul.f32 %v8574_v57, %v626_v28  ;;  %v841_v34 = vshra.s32 %v9395_v54, 16  ;;  %v717_v26 = vsel %vm299_vm2, %v9392_v61, -inf  ;;  %vm649_vm13 = vcmp.eq.f32.partialorder %v648_v0, 8.507059e+37 }
 0x2b1   :  { %v628_v36 = vadd.f32 %v8574_v57, %v627_v35  ;;  %v9398_v42 = vcvt.s32.f32 %v841_v34 }
 0x2b2   :  { %v8576_v37 = vpop.eup %8575 }
 0x2b3   :  { %v632_v43 = vsel %vm631_vm7, %v8574_v57, %v628_v36  ;;  %v640_v52 = vmul.f32 %v8576_v37, %v437_v19  ;;  %v440_v56 = vpop.xlane.xlu2 %439  ;;  %v704_v20 = vpop.xlane.xlu1 %703  ;;  %718 = vmax.xlane.f32.xlu1 %v717_v26  ;;  %844 = vmin.xlane.f32.xlu0 %v9398_v42  ;;  %vm645_vm10 = vweird.f32 %v8576_v37  ;;  %v651_v57 = vor.u32 1.1754944e-38, %v650_v23 }
 0x2b4   :  { %8577 = vrcp.f32 %v440_v56  ;;  %vm738_vm9 = vcmp.ge.f32.partialorder %v9310_v21, %v704_v20  ;;  %v637_v49 = vsel %vm634_vm8, %v636_v51, %v632_v43  ;;  %vm646_vm12 = vmor %vm644_vm11, %vm645_vm10  ;;  %v663_v9 = vand.u32 2147483647, %v440_v56 }
 0x2b5   :  { %v641_v41 = vsub.f32 1.0, %v640_v52  ;;  %v754_v58 = vsel %vm738_vm9, %v9327_v40, 4  ;;  %v9406_v46 = vmul.f32 %v9292_v48, %v637_v49  ;;  %v665_v28 = vand.u32 2147483648, %v440_v56 }
 0x2b6   :  { %v9409_v63 = vsel %vm299_vm2, %v754_v58, 2147483647  ;;  %vm659_vm3 = vweird.f32 %v440_v56  ;;  %vm664_vm5 = vcmp.eq.f32.partialorder %v663_v9, 8.507059e+37 }
 0x2b7   :  { %v642_v62 = vmul.f32 %v8576_v37, %v641_v41  ;;  %v856_v7 = vshra.s32 %v9409_v63, 16  ;;  %v720_v48 = vsel %vm299_vm2, %v9406_v46, -inf }
 0x2b9   :  { %v643_v8 = vadd.f32 %v8576_v37, %v642_v62  ;;  %v9412_v12 = vcvt.s32.f32 %v856_v7 }
 0x2ba   :  { %v8578_v11 = vpop.eup %8577 }
 0x2bb   :  { %v647_v27 = vsel %vm646_vm12, %v8576_v37, %v643_v8  ;;  %v655_v14 = vmul.f32 %v8578_v11, %v440_v56  ;;  %v443_v4 = vpop.xlane.xlu2 %442  ;;  %v707_v16 = vpop.xlane.xlu1 %706  ;;  %721 = vmax.xlane.f32.xlu1 %v720_v48  ;;  %859 = vmin.xlane.f32.xlu0 %v9412_v12  ;;  %vm660_vm15 = vweird.f32 %v8578_v11  ;;  %v666_v37 = vor.u32 1.1754944e-38, %v665_v28 }
 0x2bc   :  { %8579 = vrcp.f32 %v443_v4  ;;  %vm739_vm14 = vcmp.ge.f32.partialorder %v9319_v39, %v707_v16  ;;  %v652_v19 = vsel %vm649_vm13, %v651_v57, %v647_v27  ;;  %vm661_vm4 = vmor %vm659_vm3, %vm660_vm15  ;;  %v680_v41 = vand.u32 2147483648, %v443_v4 }
 0x2bd   :  { %v656_v18 = vsub.f32 1.0, %v655_v14  ;;  %v755_v31 = vsel %vm739_vm14, %v9327_v40, 4  ;;  %v9420_v33 = vmul.f32 %v9302_v6, %v652_v19  ;;  %v678_v56 = vand.u32 2147483647, %v443_v4 }
 0x2be   :  { %v9423_v35 = vsel %vm299_vm2, %v755_v31, 2147483647  ;;  %vm674_vm7 = vweird.f32 %v443_v4  ;;  %v681_v62 = vor.u32 1.1754944e-38, %v680_v41  ;;  %v780_v48 = vand.u32 65535, %v9341_v60 }
 0x2bf   :  { %v657_v25 = vmul.f32 %v8578_v11, %v656_v18  ;;  %14651 = vst [vmem:[#allocation2_spill] sm:$0xff] %v9420_v33  ;;  %v871_v13 = vshra.s32 %v9423_v35, 16  ;;  %v723_v26 = vsel %vm299_vm2, %v9420_v33, -inf  ;;  %vm679_vm9 = vcmp.eq.f32.partialorder %v678_v56, 8.507059e+37 }
 0x2c1   :  { %v658_v34 = vadd.f32 %v8578_v11, %v657_v25  ;;  %v9426_v43 = vcvt.s32.f32 %v871_v13 }
 0x2c2   :  { %v8580_v36 = vpop.eup %8579 }
 0x2c3   :  { %v662_v51 = vsel %vm661_vm4, %v8578_v11, %v658_v34  ;;  %v670_v52 = vmul.f32 %v8580_v36, %v443_v4  ;;  %724 = vmax.xlane.f32.xlu1 %v723_v26  ;;  %874 = vmin.xlane.f32.xlu0 %v9426_v43  ;;  %vm675_vm6 = vweird.f32 %v8580_v36 }
 0x2c4   :  { %v667_v6 = vsel %vm664_vm5, %v666_v37, %v662_v51  ;;  %vm676_vm8 = vmor %vm674_vm7, %vm675_vm6 }
 0x2c5   :  { %v671_v20 = vsub.f32 1.0, %v670_v52  ;;  %v9432_v23 = vmul.f32 %v9312_v29, %v667_v6  ;;  %v765_v29 = vand.u32 65535, %v9332_v50  ;;  %v795_v50 = vand.u32 65535, %v9353_v17 }
 0x2c6   :  { %v810_v17 = vand.u32 65535, %v9364_v38  ;;  %v825_v52 = vand.u32 65535, %v9381_v10 }
 0x2c7   :  { %v672_v49 = vmul.f32 %v8580_v36, %v671_v20  ;;  %14652 = vst [vmem:[#allocation3_spill] sm:$0xff] %v9432_v23  ;;  %v726_v7 = vsel %vm299_vm2, %v9432_v23, -inf  ;;  %v767_v14 = vcvt.s32.f32 %v765_v29  ;;  %v797_v28 = vcvt.s32.f32 %v795_v50 }
 0x2c8   :  { %v812_v34 = vcvt.s32.f32 %v810_v17  ;;  %v827_v20 = vcvt.s32.f32 %v825_v52 }
 0x2c9   :  { %v673_v58 = vadd.f32 %v8580_v36, %v672_v49 }
 0x2cb   :  { %v677_v0 = vsel %vm676_vm8, %v8580_v36, %v673_v58  ;;  %727 = vmax.xlane.f32.xlu1 %v726_v7  ;;  %v840_v58 = vand.u32 65535, %v9395_v54 }
 0x2cc   :  { %v682_v8 = vsel %vm679_vm9, %v681_v62, %v677_v0 }
 0x2cd   :  { %v9437_v11 = vmul.f32 %v9321_v15, %v682_v8  ;;  %v782_v15 = vcvt.s32.f32 %v780_v48  ;;  %v842_v8 = vcvt.s32.f32 %v840_v58 }
 0x2cf   :  { %14653 = vst [vmem:[#allocation4_spill] sm:$0xff] %v9437_v11  ;;  %v729_v27 = vsel %vm299_vm2, %v9437_v11, -inf }
 0x2d3   :  { %730 = vmax.xlane.f32.xlu1 %v729_v27 }
 0x2fe   :  { %v9442_v57 = vpop.xlane.xlu0 %769 }
 0x2ff   :  { %vm771_vm10 = vcmp.eq.f32.partialorder %v9335_v53, %v9442_v57 }
 0x300   :  { %v772_v4 = vsel %vm771_vm10, %v767_v14, inf  ;;  %v855_v14 = vand.u32 65535, %v9409_v63 }
 0x301   :  { %773 = vmin.xlane.f32.xlu2 %v772_v4 }
 0x306   :  { %v9447_v16 = vpop.xlane.xlu0 %784 }
 0x307   :  { %vm786_vm11 = vcmp.eq.f32.partialorder %v9344_v2, %v9447_v16 }
 0x308   :  { %v787_v18 = vsel %vm786_vm11, %v782_v15, inf }
 0x309   :  { %788 = vmin.xlane.f32.xlu2 %v787_v18  ;;  %v857_v18 = vcvt.s32.f32 %v855_v14  ;;  %v791_v14 = vcvt.f32.s32 %v9447_v16 }
 0x30b   :  { %v710_v19 = vpop.xlane.xlu1 %709 }
 0x30c   :  { %vm740_vm12 = vcmp.ge.f32.partialorder %v9350_v30, %v710_v19 }
 0x30d   :  { %v756_v9 = vsel %vm740_vm12, %v9327_v40, 4 }
 0x30e   :  { %v9454_v53 = vpop.xlane.xlu0 %799  ;;  %v9457_v60 = vsel %vm299_vm2, %v756_v9, 2147483647  ;;  %v870_v9 = vand.u32 65535, %v9423_v35 }
 0x30f   :  { %vm801_vm13 = vcmp.eq.f32.partialorder %v9358_v32, %v9454_v53  ;;  %v886_v2 = vshra.s32 %v9457_v60, 16  ;;  %v806_v16 = vcvt.f32.s32 %v9454_v53 }
 0x310   :  { %v802_v31 = vsel %vm801_vm13, %v797_v28, inf  ;;  %v872_v17 = vcvt.s32.f32 %v870_v9 }
 0x311   :  { %803 = vmin.xlane.f32.xlu2 %v802_v31  ;;  %v9462_v25 = vcvt.s32.f32 %v886_v2 }
 0x313   :  { %889 = vmin.xlane.f32.xlu0 %v9462_v25 }
 0x316   :  { %v9466_v13 = vpop.xlane.xlu2 %814  ;;  %v713_v36 = vpop.xlane.xlu0 %712 }
 0x317   :  { %vm816_vm14 = vcmp.eq.f32.partialorder %v9370_v55, %v9466_v13  ;;  %vm741_vm15 = vcmp.ge.f32.partialorder %v9368_v59, %v713_v36 }
 0x318   :  { %v817_v32 = vsel %vm816_vm14, %v812_v34, inf  ;;  %v757_v37 = vsel %vm741_vm15, %v9327_v40, 4 }
 0x319   :  { %818 = vmin.xlane.f32.xlu2 %v817_v32  ;;  %v9473_v51 = vsel %vm299_vm2, %v757_v37, 2147483647 }
 0x31a   :  { %v901_v38 = vshra.s32 %v9473_v51, 16 }
 0x31c   :  { %v9477_v26 = vcvt.s32.f32 %v901_v38 }
 0x31e   :  { %v716_v6 = vpop.xlane.xlu2 %715  ;;  %904 = vmin.xlane.f32.xlu0 %v9477_v26  ;;  %v9481_v55 = vpop.xlane.xlu1 %829 }
 0x31f   :  { %vm742_vm3 = vcmp.ge.f32.partialorder %v9378_v1, %v716_v6  ;;  %vm831_vm4 = vcmp.eq.f32.partialorder %v9384_v47, %v9481_v55 }
 0x320   :  { %v758_v41 = vsel %vm742_vm3, %v9327_v40, 4  ;;  %v832_v49 = vsel %vm831_vm4, %v827_v20, inf }
 0x321   :  { %v9487_v56 = vsel %vm299_vm2, %v758_v41, 2147483647  ;;  %833 = vmin.xlane.f32.xlu2 %v832_v49 }
 0x322   :  { %v916_v10 = vshra.s32 %v9487_v56, 16 }
 0x324   :  { %v9491_v62 = vcvt.s32.f32 %v916_v10 }
 0x326   :  { %v9493_v0 = vpop.xlane.xlu0 %844  ;;  %919 = vmin.xlane.f32.xlu0 %v9491_v62  ;;  %v719_v7 = vpop.xlane.xlu1 %718 }
 0x327   :  { %vm743_vm5 = vcmp.ge.f32.partialorder %v9392_v61, %v719_v7  ;;  %vm846_vm6 = vcmp.eq.f32.partialorder %v9398_v42, %v9493_v0  ;;  %v776_v7 = vcvt.f32.s32 %v9442_v57 }
 0x328   :  { %v759_v47 = vsel %vm743_vm5, %v9327_v40, 4  ;;  %v847_v27 = vsel %vm846_vm6, %v842_v8, inf }
 0x329   :  { %848 = vmin.xlane.f32.xlu1 %v847_v27  ;;  %v9501_v29 = vsel %vm299_vm2, %v759_v47, 2147483647  ;;  %v777_v47 = vshll.u32 %v776_v7, 16 }
 0x32a   :  { %v931_v54 = vshra.s32 %v9501_v29, 16 }
 0x32c   :  { %v9505_v4 = vcvt.s32.f32 %v931_v54 }
 0x32e   :  { %v9507_v48 = vpop.xlane.xlu0 %859  ;;  %934 = vmin.xlane.f32.xlu2 %v9505_v4  ;;  %v722_v15 = vpop.xlane.xlu1 %721 }
 0x32f   :  { %vm744_vm7 = vcmp.ge.f32.partialorder %v9406_v46, %v722_v15  ;;  %vm861_vm8 = vcmp.eq.f32.partialorder %v9412_v12, %v9507_v48 }
 0x330   :  { %v760_v42 = vsel %vm744_vm7, %v9327_v40, 4  ;;  %v862_v50 = vsel %vm861_vm8, %v857_v18, inf }
 0x331   :  { %863 = vmin.xlane.f32.xlu1 %v862_v50  ;;  %v9515_v19 = vsel %vm299_vm2, %v760_v42, 2147483647  ;;  %v792_v42 = vshll.u32 %v791_v14, 16 }
 0x332   :  { %v946_v63 = vshra.s32 %v9515_v19, 16 }
 0x334   :  { %v9519_v28 = vcvt.s32.f32 %v946_v63 }
 0x336   :  { %v9521_v2 = vpop.xlane.xlu0 %874  ;;  %949 = vmin.xlane.f32.xlu2 %v9519_v28  ;;  %v725_v31 = vpop.xlane.xlu1 %724 }
 0x337   :  { %vm745_vm9 = vcmp.ge.f32.partialorder %v9420_v33, %v725_v31  ;;  %vm876_vm10 = vcmp.eq.f32.partialorder %v9426_v43, %v9521_v2  ;;  %v885_v31 = vand.u32 65535, %v9457_v60 }
 0x338   :  { %v761_v12 = vsel %vm745_vm9, %v9327_v40, 4  ;;  %v877_v34 = vsel %vm876_vm10, %v872_v17, inf }
 0x339   :  { %878 = vmin.xlane.f32.xlu1 %v877_v34  ;;  %v9529_v36 = vsel %vm299_vm2, %v761_v12, 2147483647  ;;  %v807_v34 = vshll.u32 %v806_v16, 16  ;;  %v887_v53 = vcvt.s32.f32 %v885_v31  ;;  %v915_v16 = vand.u32 65535, %v9487_v56 }
 0x33a   :  { %v961_v35 = vshra.s32 %v9529_v36, 16 }
 0x33c   :  { %v9532_v32 = vcvt.s32.f32 %v961_v35 }
 0x33e   :  { %964 = vmin.xlane.f32.xlu2 %v9532_v32  ;;  %v728_v37 = vpop.xlane.xlu1 %727 }
 0x33f   :  { %vm746_vm11 = vcmp.ge.f32.partialorder %v9432_v23, %v728_v37 }
 0x340   :  { %v762_v38 = vsel %vm746_vm11, %v9327_v40, 4 }
 0x341   :  { %v9538_v43 = vsel %vm299_vm2, %v762_v38, 2147483647 }
 0x342   :  { %v976_v52 = vshra.s32 %v9538_v43, 16 }
 0x344   :  { %v9541_v6 = vcvt.s32.f32 %v976_v52 }
 0x346   :  { %979 = vmin.xlane.f32.xlu2 %v9541_v6  ;;  %v731_v20 = vpop.xlane.xlu1 %730 }
 0x347   :  { %vm747_vm12 = vcmp.ge.f32.partialorder %v9437_v11, %v731_v20  ;;  %v821_v20 = vcvt.f32.s32 %v9466_v13 }
 0x348   :  { %v763_v41 = vsel %vm747_vm12, %v9327_v40, 4 }
 0x349   :  { %v9547_v49 = vsel %vm299_vm2, %v763_v41, 2147483647  ;;  %v822_v7 = vshll.u32 %v821_v20, 16  ;;  %v930_v20 = vand.u32 65535, %v9501_v29 }
 0x34a   :  { %v991_v10 = vshra.s32 %v9547_v49, 16 }
 0x34c   :  { %v9550_v58 = vcvt.s32.f32 %v991_v10 }
 0x34e   :  { %994 = vmin.xlane.f32.xlu2 %v9550_v58 }
 0x374   :  { %v774_v8 = vpop.xlane.xlu2 %773 }
 0x375   :  { %v775_v27 = vcvt.f32.s32 %v774_v8  ;;  %v900_v8 = vand.u32 65535, %v9473_v51 }
 0x377   :  { %v9554_v54 = vadd.s32 %v777_v47, %v775_v27  ;;  %v836_v47 = vcvt.f32.s32 %v9481_v55  ;;  %v902_v14 = vcvt.s32.f32 %v900_v8 }
 0x379   :  { %vm1004_vm13 = vcmp.eq.s32.totalorder %v9327_v40, %v9554_v54 }
 0x37a   :  { %v9563_v15 = vsel %vm1004_vm13, -inf, %v9250_v24 }
 0x37b   :  { %v1068_v18 = vsel %vm299_vm2, %v9563_v15, -inf }
 0x37c   :  { %v789_v57 = vpop.xlane.xlu2 %788  ;;  %1069 = vmax.xlane.f32.xlu0 %v1068_v18 }
 0x37d   :  { %v790_v50 = vcvt.f32.s32 %v789_v57 }
 0x37f   :  { %v9567_v63 = vadd.s32 %v792_v42, %v790_v50  ;;  %v837_v42 = vshll.u32 %v836_v47, 16 }
 0x381   :  { %vm1005_vm14 = vcmp.eq.s32.totalorder %v9327_v40, %v9567_v63 }
 0x382   :  { %v9576_v9 = vsel %vm1005_vm14, -inf, %v9260_v45  ;;  %v1021_v54 = vsel %vm1005_vm14, %v9260_v45, 0.0 }
 0x383   :  { %v1071_v17 = vsel %vm299_vm2, %v9576_v9, -inf }
 0x384   :  { %v804_v12 = vpop.xlane.xlu2 %803  ;;  %1072 = vmax.xlane.f32.xlu0 %v1071_v17  ;;  %v851_v17 = vcvt.f32.s32 %v9493_v0 }
 0x385   :  { %v805_v35 = vcvt.f32.s32 %v804_v12 }
 0x386   :  { %v9581_v37 = vpop.xlane.xlu0 %889 }
 0x387   :  { %v9583_v38 = vadd.s32 %v807_v34, %v805_v35  ;;  %vm891_vm15 = vcmp.eq.f32.partialorder %v9462_v25, %v9581_v37  ;;  %v917_v34 = vcvt.s32.f32 %v915_v16 }
 0x388   :  { %v892_v52 = vsel %vm891_vm15, %v887_v53, inf  ;;  %v852_v53 = vshll.u32 %v851_v17, 16 }
 0x389   :  { %893 = vmin.xlane.f32.xlu1 %v892_v52  ;;  %vm1006_vm3 = vcmp.eq.s32.totalorder %v9327_v40, %v9583_v38 }
 0x38a   :  { %v9594_v60 = vsel %vm1006_vm3, -inf, %v9270_v3 }
 0x38b   :  { %v1074_v41 = vsel %vm299_vm2, %v9594_v60, -inf }
 0x38c   :  { %v819_v10 = vpop.xlane.xlu2 %818  ;;  %1075 = vmax.xlane.f32.xlu0 %v1074_v41 }
 0x38d   :  { %v820_v25 = vcvt.f32.s32 %v819_v10 }
 0x38f   :  { %v9599_v13 = vadd.s32 %v822_v7, %v820_v25  ;;  %v932_v7 = vcvt.s32.f32 %v930_v20  ;;  %v975_v20 = vand.u32 65535, %v9538_v43 }
 0x391   :  { %v9602_v27 = vpop.xlane.xlu0 %904  ;;  %vm1007_vm4 = vcmp.eq.s32.totalorder %v9327_v40, %v9599_v13 }
 0x392   :  { %v9610_v18 = vsel %vm1007_vm4, -inf, %v9280_v22  ;;  %vm906_vm5 = vcmp.eq.f32.partialorder %v9477_v26, %v9602_v27 }
 0x393   :  { %v1077_v51 = vsel %vm299_vm2, %v9610_v18, -inf  ;;  %v907_v57 = vsel %vm906_vm5, %v902_v14, inf }
 0x394   :  { %1078 = vmax.xlane.f32.xlu0 %v1077_v51  ;;  %908 = vmin.xlane.f32.xlu1 %v907_v57  ;;  %v834_v55 = vpop.xlane.xlu2 %833  ;;  %v945_v51 = vand.u32 65535, %v9515_v19 }
 0x395   :  { %v835_v50 = vcvt.f32.s32 %v834_v55 }
 0x397   :  { %v9617_v31 = vadd.s32 %v837_v42, %v835_v50  ;;  %v947_v42 = vcvt.s32.f32 %v945_v51 }
 0x399   :  { %v9620_v12 = vpop.xlane.xlu0 %919  ;;  %vm1008_vm6 = vcmp.eq.s32.totalorder %v9327_v40, %v9617_v31 }
 0x39a   :  { %vm921_vm7 = vcmp.eq.f32.partialorder %v9491_v62, %v9620_v12  ;;  %v9630_v26 = vsel %vm1008_vm6, -inf, %v9290_v44  ;;  %v866_v62 = vcvt.f32.s32 %v9507_v48 }
 0x39b   :  { %v922_v56 = vsel %vm921_vm7, %v917_v34, inf  ;;  %v1080_v35 = vsel %vm299_vm2, %v9630_v26, -inf }
 0x39c   :  { %923 = vmin.xlane.f32.xlu1 %v922_v56  ;;  %1081 = vmax.xlane.f32.xlu0 %v1080_v35  ;;  %v849_v0 = vpop.xlane.xlu1 %848  ;;  %v867_v47 = vshll.u32 %v866_v62, 16  ;;  %v960_v56 = vand.u32 65535, %v9529_v36 }
 0x39d   :  { %v850_v52 = vcvt.f32.s32 %v849_v0 }
 0x39e   :  { %v962_v0 = vcvt.s32.f32 %v960_v56 }
 0x39f   :  { %v9635_v41 = vadd.s32 %v852_v53, %v850_v52 }
 0x3a1   :  { %v9638_v10 = vpop.xlane.xlu2 %934  ;;  %vm1009_vm8 = vcmp.eq.s32.totalorder %v9327_v40, %v9635_v41 }
 0x3a2   :  { %vm936_vm9 = vcmp.eq.f32.partialorder %v9505_v4, %v9638_v10  ;;  %v9648_v25 = vsel %vm1009_vm8, -inf, %v9300_v5  ;;  %v881_v4 = vcvt.f32.s32 %v9521_v2 }
 0x3a3   :  { %v937_v29 = vsel %vm936_vm9, %v932_v7, inf  ;;  %v1083_v8 = vsel %vm299_vm2, %v9648_v25, -inf  ;;  %v977_v7 = vcvt.s32.f32 %v975_v20 }
 0x3a4   :  { %938 = vmin.xlane.f32.xlu0 %v937_v29  ;;  %1084 = vmax.xlane.f32.xlu2 %v1083_v8  ;;  %v864_v48 = vpop.xlane.xlu1 %863  ;;  %v882_v17 = vshll.u32 %v881_v4, 16  ;;  %v990_v29 = vand.u32 65535, %v9547_v49 }
 0x3a5   :  { %v865_v14 = vcvt.f32.s32 %v864_v48 }
 0x3a6   :  { %v992_v48 = vcvt.s32.f32 %v990_v29 }
 0x3a7   :  { %v9653_v57 = vadd.s32 %v867_v47, %v865_v14 }
 0x3a9   :  { %v9656_v55 = vpop.xlane.xlu2 %949  ;;  %vm1010_vm10 = vcmp.eq.s32.totalorder %v9327_v40, %v9653_v57 }
 0x3aa   :  { %vm951_vm11 = vcmp.eq.f32.partialorder %v9519_v28, %v9656_v55  ;;  %v9666_v50 = vsel %vm1010_vm10, -inf, %v9310_v21 }
 0x3ab   :  { %v952_v19 = vsel %vm951_vm11, %v947_v42, inf  ;;  %v1086_v16 = vsel %vm299_vm2, %v9666_v50, -inf }
 0x3ac   :  { %953 = vmin.xlane.f32.xlu0 %v952_v19  ;;  %1087 = vmax.xlane.f32.xlu2 %v1086_v16  ;;  %v879_v2 = vpop.xlane.xlu1 %878 }
 0x3ad   :  { %v880_v34 = vcvt.f32.s32 %v879_v2 }
 0x3af   :  { %v9671_v35 = vadd.s32 %v882_v17, %v880_v34 }
 0x3b1   :  { %v9673_v28 = vpop.xlane.xlu2 %964  ;;  %vm1011_vm12 = vcmp.eq.s32.totalorder %v9327_v40, %v9671_v35  ;;  %v8905_v35 = vld [vmem:[%s14589_s0 + $0x18] sm:$0xff] }
 0x3b2   :  { %vm966_vm15 = vcmp.eq.f32.partialorder %v9532_v32, %v9673_v28  ;;  %v9683_v53 = vsel %vm1011_vm12, -inf, %v9319_v39 }
 0x3b3   :  { %v967_v52 = vsel %vm966_vm15, %v962_v0, inf  ;;  %v1089_v36 = vsel %vm299_vm2, %v9683_v53, -inf }
 0x3b4   :  { %968 = vmin.xlane.f32.xlu0 %v967_v52  ;;  %1090 = vmax.xlane.f32.xlu2 %v1089_v36 }
 0x3b9   :  { %v9688_v62 = vpop.xlane.xlu2 %979 }
 0x3ba   :  { %vm981_vm5 = vcmp.eq.f32.partialorder %v9541_v6, %v9688_v62 }
 0x3bb   :  { %v982_v32 = vsel %vm981_vm5, %v977_v7, inf }
 0x3bc   :  { %983 = vmin.xlane.f32.xlu0 %v982_v32 }
 0x3c1   :  { %v9693_v8 = vpop.xlane.xlu2 %994 }
 0x3c2   :  { %vm996_vm7 = vcmp.eq.f32.partialorder %v9550_v58, %v9693_v8  ;;  %v896_v58 = vcvt.f32.s32 %v9581_v37 }
 0x3c3   :  { %v997_v47 = vsel %vm996_vm7, %v992_v48, inf }
 0x3c4   :  { %998 = vmin.xlane.f32.xlu0 %v997_v47  ;;  %v897_v2 = vshll.u32 %v896_v58, 16 }
 0x3ef   :  { %v1070_v14 = vpop.xlane.xlu0 %1069 }
 0x3f0   :  { %vm1116_vm9 = vcmp.ge.f32.partialorder %v9563_v15, %v1070_v14 }
 0x3f1   :  { %v1132_v43 = vsel %vm1116_vm9, %v9327_v40, 4 }
 0x3f2   :  { %v9700_v51 = vsel %vm299_vm2, %v1132_v43, 2147483647 }
 0x3f3   :  { %v1150_v6 = vshra.s32 %v9700_v51, 16 }
 0x3f5   :  { %v9703_v4 = vcvt.s32.f32 %v1150_v6 }
 0x3f7   :  { %v1073_v49 = vpop.xlane.xlu0 %1072  ;;  %1153 = vmin.xlane.f32.xlu1 %v9703_v4 }
 0x3f8   :  { %vm1117_vm11 = vcmp.ge.f32.partialorder %v9576_v9, %v1073_v49  ;;  %v926_v49 = vcvt.f32.s32 %v9620_v12 }
 0x3f9   :  { %v1133_v42 = vsel %vm1117_vm11, %v9327_v40, 4 }
 0x3fa   :  { %v9710_v15 = vsel %vm299_vm2, %v1133_v42, 2147483647  ;;  %v927_v12 = vshll.u32 %v926_v49, 16 }
 0x3fb   :  { %v1165_v19 = vshra.s32 %v9710_v15, 16 }
 0x3fc   :  { %v894_v16 = vpop.xlane.xlu1 %893 }
 0x3fd   :  { %v895_v17 = vcvt.f32.s32 %v894_v16  ;;  %v9713_v34 = vcvt.s32.f32 %v1165_v19 }
 0x3ff   :  { %v9715_v56 = vadd.s32 %v897_v2, %v895_v17  ;;  %v1076_v0 = vpop.xlane.xlu0 %1075  ;;  %1168 = vmin.xlane.f32.xlu1 %v9713_v34 }
 0x400   :  { %vm1118_vm15 = vcmp.ge.f32.partialorder %v9594_v60, %v1076_v0  ;;  %v911_v60 = vcvt.f32.s32 %v9602_v27 }
 0x401   :  { %v1134_v9 = vsel %vm1118_vm15, %v9327_v40, 4  ;;  %vm1012_vm5 = vcmp.eq.s32.totalorder %v9327_v40, %v9715_v56 }
 0x402   :  { %v9726_v37 = vsel %vm1012_vm5, -inf, %v9350_v30  ;;  %v9729_v52 = vsel %vm299_vm2, %v1134_v9, 2147483647  ;;  %v912_v48 = vshll.u32 %v911_v60, 16 }
 0x403   :  { %v1092_v36 = vsel %vm299_vm2, %v9726_v37, -inf  ;;  %v1180_v20 = vshra.s32 %v9729_v52, 16 }
 0x404   :  { %1093 = vmax.xlane.f32.xlu2 %v1092_v36 }
 0x405   :  { %v9735_v7 = vcvt.s32.f32 %v1180_v20  ;;  %v941_v20 = vcvt.f32.s32 %v9638_v10 }
 0x407   :  { %v1079_v32 = vpop.xlane.xlu0 %1078  ;;  %1183 = vmin.xlane.f32.xlu1 %v9735_v7  ;;  %v909_v29 = vpop.xlane.xlu1 %908  ;;  %v942_v10 = vshll.u32 %v941_v20, 16 }
 0x408   :  { %vm1119_vm7 = vcmp.ge.f32.partialorder %v9610_v18, %v1079_v32  ;;  %v910_v47 = vcvt.f32.s32 %v909_v29 }
 0x409   :  { %v1135_v14 = vsel %vm1119_vm7, %v9327_v40, 4 }
 0x40a   :  { %v9740_v43 = vadd.s32 %v912_v48, %v910_v47  ;;  %v9743_v6 = vsel %vm299_vm2, %v1135_v14, 2147483647 }
 0x40b   :  { %v1195_v27 = vshra.s32 %v9743_v6, 16 }
 0x40c   :  { %vm1013_vm9 = vcmp.eq.s32.totalorder %v9327_v40, %v9740_v43  ;;  %v8917_v43 = vld [vmem:[%s14589_s0 + $0x70] sm:$0xff] }
 0x40d   :  { %v9749_v58 = vcvt.s32.f32 %v1195_v27  ;;  %v9755_v18 = vsel %vm1013_vm9, -inf, %v9368_v59 }
 0x40e   :  { %v1095_v42 = vsel %vm299_vm2, %v9755_v18, -inf }
 0x40f   :  { %1198 = vmin.xlane.f32.xlu1 %v9749_v58  ;;  %v1082_v19 = vpop.xlane.xlu0 %1081  ;;  %1096 = vmax.xlane.f32.xlu2 %v1095_v42  ;;  %v924_v16 = vpop.xlane.xlu1 %923 }
 0x410   :  { %vm1120_vm11 = vcmp.ge.f32.partialorder %v9630_v26, %v1082_v19  ;;  %v925_v2 = vcvt.f32.s32 %v924_v16  ;;  %v956_v19 = vcvt.f32.s32 %v9656_v55 }
 0x411   :  { %v1136_v17 = vsel %vm1120_vm11, %v9327_v40, 4 }
 0x412   :  { %v9762_v0 = vadd.s32 %v927_v12, %v925_v2  ;;  %v9765_v9 = vsel %vm299_vm2, %v1136_v17, 2147483647  ;;  %v957_v55 = vshll.u32 %v956_v19, 16 }
 0x413   :  { %v1210_v36 = vshra.s32 %v9765_v9, 16 }
 0x414   :  { %vm1014_vm15 = vcmp.eq.s32.totalorder %v9327_v40, %v9762_v0 }
 0x415   :  { %v9771_v60 = vcvt.s32.f32 %v1210_v36  ;;  %v9777_v26 = vsel %vm1014_vm15, -inf, %v9378_v1 }
 0x416   :  { %v1098_v32 = vsel %vm299_vm2, %v9777_v26, -inf }
 0x417   :  { %1213 = vmin.xlane.f32.xlu1 %v9771_v60  ;;  %v939_v29 = vpop.xlane.xlu0 %938  ;;  %v1085_v48 = vpop.xlane.xlu2 %1084  ;;  %1099 = vmax.xlane.f32.xlu2 %v1098_v32 }
 0x418   :  { %v940_v47 = vcvt.f32.s32 %v939_v29  ;;  %vm1121_vm7 = vcmp.ge.f32.partialorder %v9648_v25, %v1085_v48 }
 0x419   :  { %v1137_v14 = vsel %vm1121_vm7, %v9327_v40, 4 }
 0x41a   :  { %v9784_v27 = vadd.s32 %v942_v10, %v940_v47  ;;  %v9787_v49 = vsel %vm299_vm2, %v1137_v14, 2147483647  ;;  %v971_v10 = vcvt.f32.s32 %v9673_v28 }
 0x41b   :  { %v1225_v42 = vshra.s32 %v9787_v49, 16 }
 0x41c   :  { %vm14608_vm11 = vcmp.eq.s32.totalorder %v9327_v40, %v9784_v27  ;;  %v972_v28 = vshll.u32 %v971_v10, 16 }
 0x41d   :  { %v9797_v16 = vsel %vm14608_vm11, -inf, %v9392_v61  ;;  %v9799_v25 = vcvt.s32.f32 %v1225_v42 }
 0x41e   :  { %v1101_v12 = vsel %vm299_vm2, %v9797_v16, -inf }
 0x41f   :  { %1102 = vmax.xlane.f32.xlu1 %v1101_v12  ;;  %v954_v2 = vpop.xlane.xlu0 %953  ;;  %1228 = vmin.xlane.f32.xlu0 %v9799_v25  ;;  %v1088_v17 = vpop.xlane.xlu2 %1087 }
 0x420   :  { %v955_v36 = vcvt.f32.s32 %v954_v2  ;;  %vm1122_vm7 = vcmp.ge.f32.partialorder %v9666_v50, %v1088_v17 }
 0x421   :  { %v1138_v20 = vsel %vm1122_vm7, %v9327_v40, 4 }
 0x422   :  { %v9806_v32 = vadd.s32 %v957_v55, %v955_v36  ;;  %v9809_v29 = vsel %vm299_vm2, %v1138_v20, 2147483647  ;;  %v986_v20 = vcvt.f32.s32 %v9688_v62 }
 0x423   :  { %v1240_v48 = vshra.s32 %v9809_v29, 16 }
 0x424   :  { %vm14601_vm1 = vcmp.eq.s32.totalorder %v9327_v40, %v9806_v32 }
 0x425   :  { %v9819_v47 = vsel %vm14601_vm1, -inf, %v9406_v46  ;;  %v9821_v50 = vcvt.s32.f32 %v1240_v48 }
 0x426   :  { %v1104_v14 = vsel %vm299_vm2, %v9819_v47, -inf }
 0x427   :  { %1105 = vmax.xlane.f32.xlu1 %v1104_v14  ;;  %v969_v42 = vpop.xlane.xlu0 %968  ;;  %1243 = vmin.xlane.f32.xlu0 %v9821_v50  ;;  %v1091_v19 = vpop.xlane.xlu2 %1090 }
 0x428   :  { %v970_v12 = vcvt.f32.s32 %v969_v42  ;;  %vm1123_vm7 = vcmp.ge.f32.partialorder %v9683_v53, %v1091_v19  ;;  %v987_v42 = vshll.u32 %v986_v20, 16 }
 0x429   :  { %v1139_v2 = vsel %vm1123_vm7, %v9327_v40, 4 }
 0x42a   :  { %v9828_v17 = vadd.s32 %v972_v28, %v970_v12  ;;  %v9831_v55 = vsel %vm299_vm2, %v1139_v2, 2147483647  ;;  %v1001_v28 = vcvt.f32.s32 %v9693_v8 }
 0x42b   :  { %v1255_v36 = vshra.s32 %v9831_v55, 16 }
 0x42c   :  { %14654 = vst [vmem:[#allocation5_spill] sm:$0xff] %v9828_v17  ;;  %vm14602_vm1 = vcmp.eq.s32.totalorder %v9327_v40, %v9828_v17  ;;  %v1002_v20 = vshll.u32 %v1001_v28, 16 }
 0x42d   :  { %v9841_v48 = vsel %vm14602_vm1, -inf, %v9420_v33  ;;  %v9843_v53 = vcvt.s32.f32 %v1255_v36 }
 0x42e   :  { %v1107_v10 = vsel %vm299_vm2, %v9841_v48, -inf }
 0x42f   :  { %1108 = vmax.xlane.f32.xlu1 %v1107_v10  ;;  %v984_v14 = vpop.xlane.xlu0 %983  ;;  %1258 = vmin.xlane.f32.xlu0 %v9843_v53 }
 0x430   :  { %v985_v62 = vcvt.f32.s32 %v984_v14 }
 0x432   :  { %v9848_v19 = vadd.s32 %v987_v42, %v985_v62  ;;  %v1149_v62 = vand.u32 65535, %v9700_v51  ;;  %v1179_v51 = vand.u32 65535, %v9729_v52  ;;  %v1194_v52 = vand.u32 65535, %v9743_v6 }
 0x434   :  { %14655 = vst [vmem:[#allocation6_spill] sm:$0xff] %v9848_v19  ;;  %vm14603_vm7 = vcmp.eq.s32.totalorder %v9327_v40, %v9848_v19  ;;  %v1151_v28 = vcvt.s32.f32 %v1149_v62 }
 0x435   :  { %v9857_v12 = vsel %vm14603_vm7, -inf, %v9432_v23 }
 0x436   :  { %v1110_v2 = vsel %vm299_vm2, %v9857_v12, -inf }
 0x437   :  { %1111 = vmax.xlane.f32.xlu1 %v1110_v2  ;;  %v999_v36 = vpop.xlane.xlu0 %998 }
 0x438   :  { %v1000_v10 = vcvt.f32.s32 %v999_v36 }
 0x43a   :  { %v9861_v14 = vadd.s32 %v1002_v20, %v1000_v10  ;;  %v1164_v20 = vand.u32 65535, %v9710_v15 }
 0x43c   :  { %14656 = vst [vmem:[#allocation7_spill] sm:$0xff] %v9861_v14  ;;  %vm14605_vm1 = vcmp.eq.s32.totalorder %v9327_v40, %v9861_v14  ;;  %v1166_v14 = vcvt.s32.f32 %v1164_v20  ;;  %v1196_v20 = vcvt.s32.f32 %v1194_v52 }
 0x43d   :  { %v9869_v8 = vsel %vm14605_vm1, -inf, %v9437_v11 }
 0x43e   :  { %v1113_v42 = vsel %vm299_vm2, %v9869_v8, -inf }
 0x43f   :  { %1114 = vmax.xlane.f32.xlu1 %v1113_v42 }
 0x46a   :  { %v9874_v2 = vpop.xlane.xlu1 %1153 }
 0x46b   :  { %vm1155_vm7 = vcmp.eq.f32.partialorder %v9703_v4, %v9874_v2 }
 0x46c   :  { %v1156_v36 = vsel %vm1155_vm7, %v1151_v28, inf  ;;  %v1181_v28 = vcvt.s32.f32 %v1179_v51 }
 0x46d   :  { %1157 = vmin.xlane.f32.xlu2 %v1156_v36 }
 0x472   :  { %v9879_v10 = vpop.xlane.xlu1 %1168 }
 0x473   :  { %vm1170_vm1 = vcmp.eq.f32.partialorder %v9713_v34, %v9879_v10 }
 0x474   :  { %v1171_v11 = vsel %vm1170_vm1, %v1166_v14, inf }
 0x475   :  { %1172 = vmin.xlane.f32.xlu2 %v1171_v11 }
 0x477   :  { %v1094_v42 = vpop.xlane.xlu2 %1093 }
 0x478   :  { %vm1124_vm11 = vcmp.ge.f32.partialorder %v9726_v37, %v1094_v42 }
 0x479   :  { %v1140_v62 = vsel %vm1124_vm11, %v9327_v40, 4 }
 0x47a   :  { %v9886_v4 = vpop.xlane.xlu1 %1183  ;;  %v9889_v15 = vsel %vm299_vm2, %v1140_v62, 2147483647  ;;  %v1209_v62 = vand.u32 65535, %v9765_v9 }
 0x47b   :  { %vm1185_vm7 = vcmp.eq.f32.partialorder %v9735_v7, %v9886_v4  ;;  %v1270_v34 = vshra.s32 %v9889_v15, 16 }
 0x47c   :  { %v1186_v14 = vsel %vm1185_vm7, %v1181_v28, inf }
 0x47d   :  { %1187 = vmin.xlane.f32.xlu2 %v1186_v14  ;;  %v9894_v11 = vcvt.s32.f32 %v1270_v34  ;;  %v1211_v14 = vcvt.s32.f32 %v1209_v62 }
 0x47f   :  { %1273 = vmin.xlane.f32.xlu0 %v9894_v11 }
 0x482   :  { %v1097_v37 = vpop.xlane.xlu2 %1096  ;;  %v9898_v36 = vpop.xlane.xlu1 %1198 }
 0x483   :  { %vm1125_vm1 = vcmp.ge.f32.partialorder %v9755_v18, %v1097_v37  ;;  %vm1200_vm11 = vcmp.eq.f32.partialorder %v9749_v58, %v9898_v36 }
 0x484   :  { %v1141_v7 = vsel %vm1125_vm1, %v9327_v40, 4  ;;  %v1201_v51 = vsel %vm1200_vm11, %v1196_v20, inf  ;;  %v1224_v20 = vand.u32 65535, %v9787_v49 }
 0x485   :  { %1202 = vmin.xlane.f32.xlu2 %v1201_v51  ;;  %v9905_v42 = vsel %vm299_vm2, %v1141_v7, 2147483647 }
 0x486   :  { %v1285_v6 = vshra.s32 %v9905_v42, 16 }
 0x488   :  { %v9909_v28 = vcvt.s32.f32 %v1285_v6  ;;  %v1226_v6 = vcvt.s32.f32 %v1224_v20 }
 0x48a   :  { %1288 = vmin.xlane.f32.xlu0 %v9909_v28  ;;  %v1100_v34 = vpop.xlane.xlu2 %1099  ;;  %v9912_v18 = vpop.xlane.xlu1 %1213 }
 0x48b   :  { %vm1126_vm7 = vcmp.ge.f32.partialorder %v9777_v26, %v1100_v34  ;;  %vm1215_vm1 = vcmp.eq.f32.partialorder %v9771_v60, %v9912_v18 }
 0x48c   :  { %v1142_v58 = vsel %vm1126_vm7, %v9327_v40, 4  ;;  %v1216_v52 = vsel %vm1215_vm1, %v1211_v14, inf  ;;  %v1239_v14 = vand.u32 65535, %v9809_v29 }
 0x48d   :  { %1217 = vmin.xlane.f32.xlu2 %v1216_v52  ;;  %v9919_v37 = vsel %vm299_vm2, %v1142_v58, 2147483647 }
 0x48e   :  { %v1300_v9 = vshra.s32 %v9919_v37, 16 }
 0x490   :  { %v9923_v7 = vcvt.s32.f32 %v1300_v9  ;;  %v1241_v9 = vcvt.s32.f32 %v1239_v14 }
 0x492   :  { %v9925_v51 = vpop.xlane.xlu0 %1228  ;;  %1303 = vmin.xlane.f32.xlu0 %v9923_v7  ;;  %v1103_v26 = vpop.xlane.xlu1 %1102 }
 0x493   :  { %vm1127_vm11 = vcmp.ge.f32.partialorder %v9797_v16, %v1103_v26  ;;  %vm1230_vm7 = vcmp.eq.f32.partialorder %v9799_v25, %v9925_v51  ;;  %v1235_v13 = vcvt.f32.s32 %v9925_v51  ;;  %v8152_v51 = vld [vmem:[%s14588_s1 + $0x28] sm:$0xff] }
 0x494   :  { %v1143_v60 = vsel %vm1127_vm11, %v9327_v40, 4  ;;  %v1231_v62 = vsel %vm1230_vm7, %v1226_v6, inf  ;;  %v1254_v6 = vand.u32 65535, %v9831_v55 }
 0x495   :  { %1232 = vmin.xlane.f32.xlu1 %v1231_v62  ;;  %v9933_v34 = vsel %vm299_vm2, %v1143_v60, 2147483647 }
 0x496   :  { %v1315_v49 = vshra.s32 %v9933_v34, 16 }
 0x498   :  { %v9937_v58 = vcvt.s32.f32 %v1315_v49  ;;  %v1256_v49 = vcvt.s32.f32 %v1254_v6  ;;  %v9979_v6 = vld [vmem:[%s14594_s10] sm:$0xf] }
 0x499   :  { %14657 = vst [vmem:[#allocation8_spill] sm:$0xff] %v9979_v6 }
 0x49a   :  { %v9939_v52 = vpop.xlane.xlu0 %1243  ;;  %1318 = vmin.xlane.f32.xlu2 %v9937_v58  ;;  %v1106_v16 = vpop.xlane.xlu1 %1105 }
 0x49b   :  { %vm1128_vm1 = vcmp.ge.f32.partialorder %v9819_v47, %v1106_v16  ;;  %vm1245_vm11 = vcmp.eq.f32.partialorder %v9821_v50, %v9939_v52 }
 0x49c   :  { %v1144_v25 = vsel %vm1128_vm1, %v9327_v40, 4  ;;  %v1246_v20 = vsel %vm1245_vm11, %v1241_v9, inf }
 0x49d   :  { %1247 = vmin.xlane.f32.xlu0 %v1246_v20  ;;  %v9947_v26 = vsel %vm299_vm2, %v1144_v25, 2147483647 }
 0x49e   :  { %v1330_v29 = vshra.s32 %v9947_v26, 16  ;;  %v1329_v41 = vand.u32 65535, %v9947_v26 }
 0x4a0   :  { %v9951_v60 = vcvt.s32.f32 %v1330_v29 }
 0x4a2   :  { %v9953_v62 = vpop.xlane.xlu0 %1258  ;;  %1333 = vmin.xlane.f32.xlu1 %v9951_v60  ;;  %v1109_v47 = vpop.xlane.xlu1 %1108 }
 0x4a3   :  { %vm1129_vm7 = vcmp.ge.f32.partialorder %v9841_v48, %v1109_v47  ;;  %vm1260_vm1 = vcmp.eq.f32.partialorder %v9843_v53, %v9953_v62  ;;  %v9993_v47 = vld [vmem:[%s14591_s3] sm:$0xff] }
 0x4a4   :  { %v1145_v50 = vsel %vm1129_vm7, %v9327_v40, 4  ;;  %v1261_v14 = vsel %vm1260_vm1, %v1256_v49, inf  ;;  %vm14617_vm7 = vcmask 1043456   ;;  %v8154_v49 = vld [vmem:[%s14588_s1 + $0x38] sm:$0xff] }
 0x4a5   :  { %1262 = vmin.xlane.f32.xlu2 %v1261_v14  ;;  %v9961_v16 = vsel %vm299_vm2, %v1145_v50, 2147483647  ;;  %8085 = vmatpush.msk.msra.mxu3 %vm14617_vm7, %v9979_v6  ;;  %v1160_v50 = vcvt.f32.s32 %v9874_v2  ;;  %v1020_v6 = vsel %vm1004_vm13, %v9250_v24, 0.0 }
 0x4a6   :  { %v1345_v55 = vshra.s32 %v9961_v16, 16  ;;  %2126 = vmatpush.msrb.mxu0 %v8154_v49 }
 0x4a8   :  { %v9964_v9 = vcvt.s32.f32 %v1345_v55  ;;  %v1161_v55 = vshll.u32 %v1160_v50, 16 }
 0x4aa   :  { %1348 = vmin.xlane.f32.xlu0 %v9964_v9  ;;  %v1112_v25 = vpop.xlane.xlu1 %1111 }
 0x4ab   :  { %vm1130_vm11 = vcmp.ge.f32.partialorder %v9857_v12, %v1112_v25  ;;  %v9984_v12 = vld [vmem:[%s14595_s7] sm:$0xf] }
 0x4ac   :  { %v1146_v48 = vsel %vm1130_vm11, %v9327_v40, 4  ;;  %8102 = vmatpush.msk.msrb.mxu1 %vm14617_vm7, %v9984_v12 }
 0x4ad   :  { %v9970_v53 = vsel %vm299_vm2, %v1146_v48, 2147483647 }
 0x4ae   :  { %v1360_v20 = vshra.s32 %v9970_v53, 16  ;;  %2242 = vmatpush.msra.mxu1 %v9993_v47 }
 0x4b0   :  { %v9973_v29 = vcvt.s32.f32 %v1360_v20  ;;  %v1175_v20 = vcvt.f32.s32 %v9879_v10  ;;  %v1190_v10 = vcvt.f32.s32 %v9886_v4 }
 0x4b2   :  { %1363 = vmin.xlane.f32.xlu2 %v9973_v29  ;;  %v1176_v49 = vshll.u32 %v1175_v20, 16  ;;  %v1115_v2 = vpop.xlane.xlu1 %1114 }
 0x4b3   :  { %vm1131_vm13 = vcmp.ge.f32.partialorder %v9869_v8, %v1115_v2  ;;  %v8153_v2 = vld [vmem:[%s14588_s1 + $0x30] sm:$0xff] }
 0x4b4   :  { %2127 = vmatpush.msrb.mxu0 %v8153_v2 }
 0x4b6   :  { %2128 = vmatpush.msrb.mxu0 %v8152_v51 }
 0x4e0   :  { %v1158_v14 = vpop.xlane.xlu2 %1157 }
 0x4e1   :  { %v1159_v25 = vcvt.f32.s32 %v1158_v14 }
 0x4e3   :  { %v1162_v48 = vadd.s32 %v1161_v55, %v1159_v25  ;;  %v1022_v25 = vsel %vm1006_vm3, %v9270_v3, 0.0 }
 0x4e5   :  { %vm1388_vm1 = vcmp.eq.s32.totalorder %v9327_v40, %v1162_v48 }
 0x4e6   :  { %v1404_v19 = vsel %vm1388_vm1, %v9250_v24, 0.0 }
 0x4e7   :  { %v1420_v23 = vadd.f32 %v1404_v19, %v1020_v6 }
 0x4e8   :  { %v1173_v17 = vpop.xlane.xlu2 %1172 }
 0x4e9   :  { %v1174_v33 = vcvt.f32.s32 %v1173_v17  ;;  %8086 = vmatmul.msk.f32.vlgmr.msra.gmra.mxu3 %vm299_vm2, %v1420_v23  ;;  %8103 = vmatmul.msk.f32.vlgmr.msrb.gmra.mxu1 %vm299_vm2, %v1420_v23  ;;  %v1269_v17 = vand.u32 65535, %v9889_v15  ;;  %v1191_v23 = vshll.u32 %v1190_v10, 16  ;;  %v1205_v15 = vcvt.f32.s32 %v9898_v36 }
 0x4ea   :  { %v1284_v10 = vand.u32 65535, %v9905_v42 }
 0x4eb   :  { %v1177_v50 = vadd.s32 %v1176_v49, %v1174_v33  ;;  %v1147_v33 = vsel %vm1131_vm13, %v9327_v40, 4  ;;  %v1271_v63 = vcvt.s32.f32 %v1269_v17 }
 0x4ec   :  { %v10026_v8 = vsel %vm299_vm2, %v1147_v33, 2147483647  ;;  %v1286_v17 = vcvt.s32.f32 %v1284_v10 }
 0x4ed   :  { %vm1389_vm11 = vcmp.eq.s32.totalorder %v9327_v40, %v1177_v50  ;;  %v1375_v49 = vshra.s32 %v10026_v8, 16  ;;  %v1206_v50 = vshll.u32 %v1205_v15, 16 }
 0x4ee   :  { %v1405_v24 = vsel %vm1389_vm11, %v9260_v45, 0.0 }
 0x4ef   :  { %v1421_v19 = vadd.f32 %v1405_v24, %v1021_v54  ;;  %v10042_v54 = vcvt.s32.f32 %v1375_v49  ;;  %v1236_v49 = vshll.u32 %v1235_v13, 16 }
 0x4f0   :  { %v1188_v6 = vpop.xlane.xlu2 %1187 }
 0x4f1   :  { %v1189_v14 = vcvt.f32.s32 %v1188_v6  ;;  %8087 = vmatmul.msk.f32.gmra.mxu3 %vm299_vm2, %v1421_v19  ;;  %8104 = vmatmul.msk.f32.gmra.mxu1 %vm299_vm2, %v1421_v19  ;;  %v1023_v19 = vsel %vm1007_vm4, %v9280_v22, 0.0 }
 0x4f2   :  { %v10021_v4 = vpop.xlane.xlu0 %1273 }
 0x4f3   :  { %v1192_v55 = vadd.s32 %v1191_v23, %v1189_v14  ;;  %vm1275_vm14 = vcmp.eq.f32.partialorder %v9894_v11, %v10021_v4 }
 0x4f4   :  { %v1276_v45 = vsel %vm1275_vm14, %v1271_v63, inf  ;;  %v1299_v63 = vand.u32 65535, %v9919_v37 }
 0x4f5   :  { %vm1390_vm1 = vcmp.eq.s32.totalorder %v9327_v40, %v1192_v55  ;;  %1277 = vmin.xlane.f32.xlu1 %v1276_v45  ;;  %v1024_v45 = vsel %vm1008_vm6, %v9290_v44, 0.0 }
 0x4f6   :  { %v1406_v48 = vsel %vm1390_vm1, %v9270_v3, 0.0  ;;  %v1220_v3 = vcvt.f32.s32 %v9912_v18 }
 0x4f7   :  { %v1422_v20 = vadd.f32 %v1406_v48, %v1022_v25 }
 0x4f8   :  { %v1203_v11 = vpop.xlane.xlu2 %1202  ;;  %v1221_v33 = vshll.u32 %v1220_v3, 16  ;;  %v1025_v3 = vsel %vm1009_vm8, %v9300_v5, 0.0 }
 0x4f9   :  { %v1204_v36 = vcvt.f32.s32 %v1203_v11  ;;  %8088 = vmatmul.msk.f32.gmra.mxu3 %vm299_vm2, %v1422_v20  ;;  %8105 = vmatmul.msk.f32.gmra.mxu1 %vm299_vm2, %v1422_v20  ;;  %v1790_v20 = vld [vmem:[%s14596_s6 + $0x38] sm:$0xff]  ;;  %v1789_v11 = vld [vmem:[%s14596_s6 + $0x30] sm:$0xff] }
 0x4fa   :  { %1917 = vmatpush.msrb.mxu2 %v1790_v20  ;;  %3887 = vmatpush.msrb.mxu1 %v1790_v20 }
 0x4fb   :  { %v1207_v38 = vadd.s32 %v1206_v50, %v1204_v36  ;;  %v1788_v50 = vld [vmem:[%s14596_s6 + $0x28] sm:$0xff] }
 0x4fc   :  { %1918 = vmatpush.msrb.mxu2 %v1789_v11  ;;  %3888 = vmatpush.msrb.mxu1 %v1789_v11  ;;  %v1787_v11 = vld [vmem:[%s14596_s6 + $0x20] sm:$0xff] }
 0x4fd   :  { %vm1391_vm3 = vcmp.eq.s32.totalorder %v9327_v40, %v1207_v38  ;;  %v10046_v24 = vpop.xlane.xlu0 %1288  ;;  %1378 = vmin.xlane.f32.xlu1 %v10042_v54  ;;  %v8902_v38 = vld [vmem:[%s14589_s0] sm:$0xff] }
 0x4fe   :  { %vm1290_vm11 = vcmp.eq.f32.partialorder %v9909_v28, %v10046_v24  ;;  %v1407_v42 = vsel %vm1391_vm3, %v9280_v22, 0.0  ;;  %v1301_v22 = vcvt.s32.f32 %v1299_v63  ;;  %1919 = vmatpush.msrb.mxu2 %v1788_v50  ;;  %3889 = vmatpush.msrb.mxu1 %v1788_v50 }
 0x4ff   :  { %v1291_v6 = vsel %vm1290_vm11, %v1286_v17, inf  ;;  %v1423_v23 = vadd.f32 %v1407_v42, %v1023_v19  ;;  %vm1860_vm11 = vcmask 523264  }
 0x500   :  { %v1218_v18 = vpop.xlane.xlu2 %1217  ;;  %1292 = vmin.xlane.f32.xlu0 %v1291_v6  ;;  %1920 = vmatpush.msrb.mxu2 %v1787_v11 }
 0x501   :  { %v1219_v14 = vcvt.f32.s32 %v1218_v18  ;;  %8089 = vmatmul.msk.f32.gmra.mxu3 %vm299_vm2, %v1423_v23  ;;  %8106 = vmatmul.msk.f32.gmra.mxu1 %vm299_vm2, %v1423_v23  ;;  %v1331_v18 = vcvt.s32.f32 %v1329_v41  ;;  %v10206_v41 = vld [vmem:[%s14592_s4] sm:$0xff] }
 0x502   :  { %3890 = vmatpush.msrb.mxu1 %v1787_v11 }
 0x503   :  { %v1222_v55 = vadd.s32 %v1221_v33, %v1219_v14  ;;  %v1026_v33 = vsel %vm1010_vm10, %v9310_v21, 0.0 }
 0x505   :  { %vm1392_vm4 = vcmp.eq.s32.totalorder %v9327_v40, %v1222_v55  ;;  %v10061_v28 = vpop.xlane.xlu0 %1303 }
 0x506   :  { %vm1305_vm13 = vcmp.eq.f32.partialorder %v9923_v7, %v10061_v28  ;;  %v1408_v15 = vsel %vm1392_vm4, %v9290_v44, 0.0  ;;  %v1314_v44 = vand.u32 65535, %v9933_v34  ;;  %v8151_v7 = vld [vmem:[%s14588_s1 + $0x20] sm:$0xff]  ;;  %v1250_v34 = vcvt.f32.s32 %v9939_v52 }
 0x507   :  { %v1306_v25 = vsel %vm1305_vm13, %v1301_v22, inf  ;;  %v1424_v37 = vadd.f32 %v1408_v15, %v1024_v45  ;;  %2129 = vmatpush.msrb.mxu0 %v8151_v7  ;;  %v1344_v22 = vand.u32 65535, %v9961_v16  ;;  %v1027_v15 = vsel %vm1011_vm12, %v9319_v39, 0.0 }
 0x508   :  { %1307 = vmin.xlane.f32.xlu2 %v1306_v25  ;;  %v1233_v48 = vpop.xlane.xlu1 %1232  ;;  %v1316_v10 = vcvt.s32.f32 %v1314_v44  ;;  %8156 = vmatmul.msk.f32.vlgmr.msrb.gmra.mxu0 %vm14616_vm0, %v8902_v38  ;;  %v1251_v6 = vshll.u32 %v1250_v34, 16  ;;  %v1786_v34 = vld [vmem:[%s14596_s6 + $0x18] sm:$0xff]  ;;  %v1785_v38 = vld [vmem:[%s14596_s6 + $0x10] sm:$0xff] }
 0x509   :  { %v1234_v31 = vcvt.f32.s32 %v1233_v48  ;;  %8090 = vmatmul.msk.f32.gmra.mxu3 %vm299_vm2, %v1424_v37  ;;  %8107 = vmatmul.msk.f32.gmra.mxu1 %vm299_vm2, %v1424_v37  ;;  %v1359_v48 = vand.u32 65535, %v9970_v53  ;;  %v8907_v53 = vld [vmem:[%s14589_s0 + $0x28] sm:$0xff] }
 0x50a   :  { %8221 = vmatpush.msk.msra.mxu0 %vm14617_vm7, %v9984_v12  ;;  %1921 = vmatpush.msrb.mxu2 %v1786_v34 }
 0x50b   :  { %v1237_v2 = vadd.s32 %v1236_v49, %v1234_v31  ;;  %v1361_v20 = vcvt.s32.f32 %v1359_v48  ;;  %v1458_v49 = vpop.f32.mrf.mxu2  ;;  %v8908_v31 = vld [vmem:[%s14589_s0 + $0x30] sm:$0xff]  ;;  %3891 = vmatpush.msrb.mxu1 %v1786_v34 }
 0x50c   :  { %4213 = vmatpush.msrb.mxu0 %v9993_v47  ;;  %v8903_v47 = vld [vmem:[%s14589_s0 + $0x8] sm:$0xff]  ;;  %1922 = vmatpush.msrb.mxu2 %v1785_v38 }
 0x50d   :  { %vm1393_vm6 = vcmp.eq.s32.totalorder %v9327_v40, %v1237_v2  ;;  %v10090_v36 = vpop.xlane.xlu2 %1318  ;;  %v8909_v2 = vld [vmem:[%s14589_s0 + $0x38] sm:$0xff]  ;;  %3892 = vmatpush.msrb.mxu1 %v1785_v38 }
 0x50e   :  { %vm1320_vm14 = vcmp.eq.f32.partialorder %v9937_v58, %v10090_v36  ;;  %v1409_v52 = vsel %vm1393_vm6, %v9300_v5, 0.0  ;;  %v1265_v58 = vcvt.f32.s32 %v9953_v62  ;;  %vm14658_vm6 = vcmp.eq.s32.totalorder %v9327_v40, %v9784_v27 }
 0x50f   :  { %v1321_v17 = vsel %vm1320_vm14, %v1316_v10, inf  ;;  %v1425_v19 = vadd.f32 %v1409_v52, %v1025_v3 }
 0x510   :  { %v1248_v42 = vpop.xlane.xlu0 %1247  ;;  %1322 = vmin.xlane.f32.xlu0 %v1321_v17  ;;  %8157 = vmatmul.msk.f32.gmra.mxu0 %vm14616_vm0, %v8903_v47  ;;  %v1266_v55 = vshll.u32 %v1265_v58, 16  ;;  %v1784_v17 = vld [vmem:[%s14596_s6 + $0x8] sm:$0xff] }
 0x511   :  { %v1249_v23 = vcvt.f32.s32 %v1248_v42  ;;  %8091 = vmatmul.msk.f32.gmra.mxu3 %vm299_vm2, %v1425_v19  ;;  %8108 = vmatmul.msk.f32.gmra.mxu1 %vm299_vm2, %v1425_v19  ;;  %v1783_v19 = vld [vmem:[%s14596_s6] sm:$0xff] }
 0x512   :  { %1923 = vmatpush.msrb.mxu2 %v1784_v17  ;;  %3893 = vmatpush.msrb.mxu1 %v1784_v17  ;;  %v8910_v42 = vld [vmem:[%s14589_s0 + $0x40] sm:$0xff] }
 0x513   :  { %v1252_v5 = vadd.s32 %v1251_v6, %v1249_v23  ;;  %v1461_v44 = vpop.f32.mrf.mxu2 }
 0x514   :  { %1924 = vmatpush.msrb.mxu2 %v1783_v19  ;;  %3894 = vmatpush.msrb.mxu1 %v1783_v19 }
 0x515   :  { %vm1394_vm8 = vcmp.eq.s32.totalorder %v9327_v40, %v1252_v5  ;;  %v10111_v12 = vpop.xlane.xlu1 %1333 }
 0x516   :  { %vm1335_vm1 = vcmp.eq.f32.partialorder %v9951_v60, %v10111_v12  ;;  %v1410_v26 = vsel %vm1394_vm8, %v9310_v21, 0.0  ;;  %v1346_v60 = vcvt.s32.f32 %v1344_v22  ;;  %v8904_v21 = vld [vmem:[%s14589_s0 + $0x10] sm:$0xff]  ;;  %3443 = vmatpush.msra.mxu2 %v10206_v41  ;;  %vm14659_vm8 = vcmp.eq.s32.totalorder %v9327_v40, %v9806_v32 }
 0x517   :  { %v1336_v62 = vsel %vm1335_vm1, %v1331_v18, inf  ;;  %v1426_v14 = vadd.f32 %v1410_v26, %v1026_v33  ;;  %v8912_v33 = vld [vmem:[%s14589_s0 + $0x48] sm:$0xff] }
 0x518   :  { %v1263_v63 = vpop.xlane.xlu2 %1262  ;;  %1337 = vmin.xlane.f32.xlu1 %v1336_v62  ;;  %8158 = vmatmul.msk.f32.gmra.mxu0 %vm14616_vm0, %v8904_v21 }
 0x519   :  { %v1264_v13 = vcvt.f32.s32 %v1263_v63  ;;  %8092 = vmatmul.msk.f32.gmra.mxu3 %vm299_vm2, %v1426_v14  ;;  %8109 = vmatmul.msk.f32.gmra.mxu1 %vm299_vm2, %v1426_v14 }
 0x51b   :  { %v1267_v45 = vadd.s32 %v1266_v55, %v1264_v13  ;;  %v1464_v10 = vpop.f32.mrf.mxu2 }
 0x51d   :  { %vm1395_vm10 = vcmp.eq.s32.totalorder %v9327_v40, %v1267_v45  ;;  %v10128_v57 = vpop.xlane.xlu0 %1348  ;;  %v8913_v45 = vld [vmem:[%s14589_s0 + $0x50] sm:$0xff] }
 0x51e   :  { %vm1350_vm3 = vcmp.eq.f32.partialorder %v9964_v9, %v10128_v57  ;;  %v1411_v16 = vsel %vm1395_vm10, %v9319_v39, 0.0  ;;  %v8906_v9 = vld [vmem:[%s14589_s0 + $0x20] sm:$0xff] }
 0x51f   :  { %v1351_v25 = vsel %vm1350_vm3, %v1346_v60, inf  ;;  %v1427_v37 = vadd.f32 %v1411_v16, %v1027_v15 }
 0x520   :  { %1352 = vmin.xlane.f32.xlu2 %v1351_v25  ;;  %8159 = vmatmul.msk.f32.gmra.mxu0 %vm14616_vm0, %v8905_v35 }
 0x521   :  { %8093 = vmatmul.msk.f32.gmra.mxu3 %vm299_vm2, %v1427_v37  ;;  %8110 = vmatmul.msk.f32.gmra.mxu1 %vm299_vm2, %v1427_v37 }
 0x523   :  { %v1467_v47 = vpop.f32.mrf.mxu2 }
 0x525   :  { %v10144_v51 = vpop.xlane.xlu2 %1363 }
 0x526   :  { %vm1365_vm12 = vcmp.eq.f32.partialorder %v9973_v29, %v10144_v51  ;;  %v10167_v29 = vld [vmem:[%s14593_s5] ss:$0 sm:$0xff] }
 0x527   :  { %v1366_v39 = vsel %vm1365_vm12, %v1361_v20, inf  ;;  %v10170_v7 = vadd.f32 %v10167_v29, %v1458_v49  ;;  %v10189_v52 = vadd.f32 %v10167_v29, %v1461_v44  ;;  %v10211_v58 = vadd.f32 %v10167_v29, %v1464_v10 }
 0x528   :  { %1367 = vmin.xlane.f32.xlu0 %v1366_v39  ;;  %8160 = vmatmul.msk.f32.gmra.mxu0 %vm14616_vm0, %v8906_v9  ;;  %v10222_v55 = vadd.f32 %v10167_v29, %v1467_v47  ;;  %v1280_v9 = vcvt.f32.s32 %v10021_v4 }
 0x529   :  { %v1506_v50 = vmul.f32 %v10170_v7, %v10170_v7  ;;  %v1507_v23 = vmul.f32 %v10189_v52, %v10189_v52  ;;  %v1508_v62 = vmul.f32 %v10211_v58, %v10211_v58 }
 0x52a   :  { %v1509_v21 = vmul.f32 %v10222_v55, %v10222_v55  ;;  %v1281_v34 = vshll.u32 %v1280_v9, 16 }
 0x52b   :  { %v1522_v3 = vmul.f32 %v1506_v50, %v10170_v7  ;;  %v1523_v5 = vmul.f32 %v1507_v23, %v10189_v52  ;;  %v1524_v63 = vmul.f32 %v1508_v62, %v10211_v58  ;;  %v1470_v22 = vpop.f32.mrf.mxu2 }
 0x52c   :  { %v10232_v25 = vadd.f32 %v10167_v29, %v1470_v22  ;;  %v1525_v37 = vmul.f32 %v1509_v21, %v10222_v55 }
 0x52d   :  { %v1538_v6 = vmul.f32 0.044715, %v1522_v3  ;;  %v1539_v26 = vmul.f32 0.044715, %v1523_v5  ;;  %v1540_v60 = vmul.f32 0.044715, %v1524_v63 }
 0x52e   :  { %v1510_v35 = vmul.f32 %v10232_v25, %v10232_v25  ;;  %v1541_v49 = vmul.f32 0.044715, %v1525_v37 }
 0x52f   :  { %v1554_v18 = vadd.f32 %v1538_v6, %v10170_v7  ;;  %v1555_v13 = vadd.f32 %v1539_v26, %v10189_v52  ;;  %v1556_v48 = vadd.f32 %v1540_v60, %v10211_v58  ;;  %v1374_v6 = vand.u32 65535, %v10026_v8 }
 0x530   :  { %8161 = vmatmul.msk.f32.gmra.mxu0 %vm14616_vm0, %v8907_v53  ;;  %v8914_v53 = vld [vmem:[%s14589_s0 + $0x58] sm:$0xff]  ;;  %v1526_v50 = vmul.f32 %v1510_v35, %v10232_v25  ;;  %v1557_v4 = vadd.f32 %v1541_v49, %v10222_v55 }
 0x531   :  { %v1570_v14 = vmul.f32 0.7978846, %v1554_v18  ;;  %v1571_v15 = vmul.f32 0.7978846, %v1555_v13  ;;  %v8915_v18 = vld [vmem:[%s14589_s0 + $0x60] sm:$0xff]  ;;  %v1295_v13 = vcvt.f32.s32 %v10046_v24 }
 0x532   :  { %v1542_v23 = vmul.f32 0.044715, %v1526_v50 }
 0x533   :  { %8581 = vtanh.f32 %v1570_v14  ;;  %v1473_v39 = vpop.f32.mrf.mxu2  ;;  %v1296_v37 = vshll.u32 %v1295_v13, 16 }
 0x534   :  { %8583 = vtanh.f32 %v1571_v15  ;;  %v10245_v38 = vadd.f32 %v10167_v29, %v1473_v39 }
 0x536   :  { %v1511_v47 = vmul.f32 %v10245_v38, %v10245_v38 }
 0x538   :  { %8162 = vmatmul.msk.f32.gmra.mxu0 %vm14616_vm0, %v8908_v31  ;;  %v1572_v31 = vmul.f32 0.7978846, %v1556_v48  ;;  %v1527_v56 = vmul.f32 %v1511_v47, %v10245_v38 }
 0x539   :  { %v8582_v16 = vpop.eup %8581 }
 0x53a   :  { %v1602_v20 = vadd.f32 1.0, %v8582_v16  ;;  %v8584_v11 = vpop.eup %8583  ;;  %8585 = vtanh.f32 %v1572_v31  ;;  %v1543_v9 = vmul.f32 0.044715, %v1527_v56 }
 0x53b   :  { %v1603_v19 = vadd.f32 1.0, %v8584_v11  ;;  %v1476_v26 = vpop.f32.mrf.mxu2  ;;  %v1310_v11 = vcvt.f32.s32 %v10061_v28 }
 0x53c   :  { %v1618_v44 = vmul.f32 0.5, %v1602_v20  ;;  %v10273_v60 = vadd.f32 %v10167_v29, %v1476_v26  ;;  %v1030_v26 = vsel %vm1014_vm15, %v9378_v1, 0.0 }
 0x53d   :  { %v1619_v14 = vmul.f32 0.5, %v1603_v19 }
 0x53e   :  { %v1634_v17 = vmul.f32 %v1618_v44, %v10170_v7  ;;  %v1028_v7 = vsel %vm1012_vm5, %v9350_v30, 0.0 }
 0x53f   :  { %v1635_v15 = vmul.f32 %v1619_v14, %v10189_v52 }
 0x540   :  { %8163 = vmatmul.msk.f32.gmra.mxu0 %vm14616_vm0, %v8909_v2  ;;  %v8586_v63 = vpop.eup %8585 }
 0x541   :  { %v1604_v16 = vadd.f32 1.0, %v8586_v63 }
 0x543   :  { %v1479_v31 = vpop.f32.mrf.mxu2  ;;  %v1620_v52 = vmul.f32 0.5, %v1604_v16 }
 0x545   :  { %v1636_v28 = vmul.f32 %v1620_v52, %v10211_v58 }
 0x548   :  { %8164 = vmatmul.msk.f32.gmra.mxu0 %vm14616_vm0, %v8910_v42 }
 0x550   :  { %8165 = vmatmul.msk.f32.gmra.mxu0 %vm14616_vm0, %v8912_v33  ;;  %v1573_v33 = vmul.f32 0.7978846, %v1557_v4 }
 0x552   :  { %8587 = vtanh.f32 %v1573_v33  ;;  %v1325_v33 = vcvt.f32.s32 %v10090_v36 }
 0x554   :  { %v1326_v36 = vshll.u32 %v1325_v33, 16 }
 0x558   :  { %8166 = vmatmul.msk.f32.gmra.mxu0 %vm14616_vm0, %v8913_v45  ;;  %v1376_v45 = vcvt.s32.f32 %v1374_v6  ;;  %v8588_v44 = vpop.eup %8587 }
 0x559   :  { %v1605_v19 = vadd.f32 1.0, %v8588_v44 }
 0x560   :  { %8167 = vmatmul.msk.f32.gmra.mxu0 %vm14616_vm0, %v8914_v53  ;;  %v1512_v53 = vmul.f32 %v10273_v60, %v10273_v60 }
 0x568   :  { %v1278_v2 = vpop.xlane.xlu1 %1277  ;;  %8168 = vmatmul.msk.f32.gmra.mxu0 %vm14616_vm0, %v8915_v18 }
 0x569   :  { %v1279_v10 = vcvt.f32.s32 %v1278_v2  ;;  %v1029_v2 = vsel %vm1013_vm9, %v9368_v59, 0.0 }
 0x56b   :  { %v1282_v3 = vadd.s32 %v1281_v34, %v1279_v10  ;;  %v1528_v34 = vmul.f32 %v1512_v53, %v10273_v60  ;;  %v10292_v10 = vadd.f32 %v10167_v29, %v1479_v31 }
 0x56c   :  { %v1719_v42 = vpop.f32.mrf.mxu3 }
 0x56d   :  { %vm1396_vm4 = vcmp.eq.s32.totalorder %v9327_v40, %v1282_v3  ;;  %v1767_v5 = vmul.f32 %v1719_v42, %v1634_v17  ;;  %v1559_v3 = vadd.f32 %v1543_v9, %v10245_v38  ;;  %v1311_v42 = vshll.u32 %v1310_v11, 16 }
 0x56e   :  { %v1412_v8 = vsel %vm1396_vm4, %v9350_v30, 0.0  ;;  %v1558_v30 = vadd.f32 %v1542_v23, %v10232_v25  ;;  %v1513_v18 = vmul.f32 %v10292_v10, %v10292_v10 }
 0x56f   :  { %8119 = vmatmul.msk.f32.vlgmr.msrb.gmra.mxu2 %vm1860_vm11, %v1767_v5  ;;  %v1428_v62 = vadd.f32 %v1412_v8, %v1028_v7  ;;  %v1544_v5 = vmul.f32 0.044715, %v1528_v34  ;;  %v1575_v47 = vmul.f32 0.7978846, %v1559_v3  ;;  %v1621_v8 = vmul.f32 0.5, %v1605_v19 }
 0x570   :  { %v10264_v22 = vpop.xlane.xlu1 %1378  ;;  %v1574_v39 = vmul.f32 0.7978846, %v1558_v30  ;;  %v1529_v14 = vmul.f32 %v1513_v18, %v10292_v10  ;;  %v1355_v34 = vcvt.f32.s32 %v10128_v57 }
 0x571   :  { %8094 = vmatmul.msk.f32.gmra.mxu3 %vm299_vm2, %v1428_v62  ;;  %8111 = vmatmul.msk.f32.gmra.mxu1 %vm299_vm2, %v1428_v62  ;;  %vm1380_vm5 = vcmp.eq.f32.partialorder %v10042_v54, %v10264_v22  ;;  %v8916_v54 = vld [vmem:[%s14589_s0 + $0x68] sm:$0xff]  ;;  %v1560_v13 = vadd.f32 %v1544_v5, %v10273_v60  ;;  %v1637_v30 = vmul.f32 %v1621_v8, %v10222_v55  ;;  %v14660_v5 = vld [vmem:[#allocation2_spill] sm:$0xff] }
 0x572   :  { %v1381_v21 = vsel %vm1380_vm5, %v1376_v45, inf  ;;  %8169 = vmatmul.msk.f32.gmra.mxu0 %vm14616_vm0, %v8916_v54  ;;  %8589 = vtanh.f32 %v1574_v39 }
 0x573   :  { %v1293_v24 = vpop.xlane.xlu0 %1292  ;;  %1382 = vmin.xlane.f32.xlu1 %v1381_v21  ;;  %8591 = vtanh.f32 %v1575_v47 }
 0x574   :  { %v1294_v48 = vcvt.f32.s32 %v1293_v24  ;;  %v1722_v20 = vpop.f32.mrf.mxu3 }
 0x575   :  { %v1768_v35 = vmul.f32 %v1722_v20, %v1635_v15  ;;  %v1545_v15 = vmul.f32 0.044715, %v1529_v14  ;;  %v1340_v20 = vcvt.f32.s32 %v10111_v12 }
 0x576   :  { %v1297_v49 = vadd.s32 %v1296_v37, %v1294_v48  ;;  %v1576_v37 = vmul.f32 0.7978846, %v1560_v13 }
 0x577   :  { %8120 = vmatmul.msk.f32.gmra.mxu2 %vm1860_vm11, %v1768_v35  ;;  %v1031_v35 = vsel %vm14658_vm6, %v9392_v61, 0.0  ;;  %v1561_v9 = vadd.f32 %v1545_v15, %v10292_v10  ;;  %v1341_v52 = vshll.u32 %v1340_v20, 16 }
 0x578   :  { %vm1397_vm13 = vcmp.eq.s32.totalorder %v9327_v40, %v1297_v49  ;;  %v8590_v7 = vpop.eup %8589  ;;  %8593 = vtanh.f32 %v1576_v37 }
 0x579   :  { %v1413_v50 = vsel %vm1397_vm13, %v9368_v59, 0.0  ;;  %v1606_v56 = vadd.f32 1.0, %v8590_v7  ;;  %v8592_v48 = vpop.eup %8591  ;;  %vm14670_vm13 = vcmask 64512  }
 0x57a   :  { %v1429_v4 = vadd.f32 %v1413_v50, %v1029_v2  ;;  %8170 = vmatmul.msk.f32.gmra.mxu0 %vm14616_vm0, %v8917_v43  ;;  %v1607_v31 = vadd.f32 1.0, %v8592_v48  ;;  %v1577_v2 = vmul.f32 0.7978846, %v1561_v9 }
 0x57b   :  { %v1308_v17 = vpop.xlane.xlu2 %1307  ;;  %v1622_v55 = vmul.f32 0.5, %v1606_v56 }
 0x57c   :  { %v1309_v6 = vcvt.f32.s32 %v1308_v17  ;;  %v1725_v23 = vpop.f32.mrf.mxu3  ;;  %8095 = vmatmul.msk.f32.gmra.mxu3 %vm299_vm2, %v1429_v4  ;;  %8112 = vmatmul.msk.f32.gmra.mxu1 %vm299_vm2, %v1429_v4  ;;  %8595 = vtanh.f32 %v1577_v2 }
 0x57d   :  { %v1769_v59 = vmul.f32 %v1725_v23, %v1636_v28  ;;  %v1638_v49 = vmul.f32 %v1622_v55, %v10232_v25  ;;  %v1032_v25 = vsel %vm14659_vm8, %v9406_v46, 0.0 }
 0x57e   :  { %v1312_v58 = vadd.s32 %v1311_v42, %v1309_v6  ;;  %v8594_v50 = vpop.eup %8593  ;;  %v1356_v42 = vshll.u32 %v1355_v34, 16 }
 0x57f   :  { %8121 = vmatmul.msk.f32.gmra.mxu2 %vm1860_vm11, %v1769_v59  ;;  %v1608_v19 = vadd.f32 1.0, %v8594_v50  ;;  %v1385_v50 = vcvt.f32.s32 %v10264_v22 }
 0x580   :  { %vm1398_vm9 = vcmp.eq.s32.totalorder %v9327_v40, %v1312_v58 }
 0x581   :  { %v1414_v62 = vsel %vm1398_vm9, %v9378_v1, 0.0  ;;  %v8918_v1 = vld [vmem:[%s14589_s0 + $0x78] sm:$0xff]  ;;  %v1624_v32 = vmul.f32 0.5, %v1608_v19  ;;  %v1386_v19 = vshll.u32 %v1385_v50, 16  ;;  %vm14671_vm9 = vmmov %vm14670_vm13 }
 0x582   :  { %v1430_v63 = vadd.f32 %v1414_v62, %v1030_v26  ;;  %8171 = vmatmul.msk.f32.gmra.mxu0 %vm14616_vm0, %v8918_v1  ;;  %v8596_v43 = vpop.eup %8595  ;;  %v1482_v1 = vpop.f32.mrf.mxu2  ;;  %vm14673_vm6 = vmmov %vm14671_vm9 }
 0x583   :  { %v1323_v45 = vpop.xlane.xlu0 %1322  ;;  %v1640_v8 = vmul.f32 %v1624_v32, %v10273_v60  ;;  %v1609_v33 = vadd.f32 1.0, %v8596_v43  ;;  %v1483_v55 = vadd.f32 %v10167_v29, %v1482_v1  ;;  %vm14675_vm8 = vmmov %vm14673_vm6 }
 0x584   :  { %v1324_v21 = vcvt.f32.s32 %v1323_v45  ;;  %v1728_v24 = vpop.f32.mrf.mxu3  ;;  %8096 = vmatmul.msk.f32.gmra.mxu3 %vm299_vm2, %v1430_v63  ;;  %8113 = vmatmul.msk.f32.gmra.mxu1 %vm299_vm2, %v1430_v63  ;;  %v14663_v45 = vld [vmem:[#allocation3_spill] sm:$0xff] }
 0x585   :  { %v1770_v0 = vmul.f32 %v1728_v24, %v1637_v30  ;;  %v1625_v13 = vmul.f32 0.5, %v1609_v33  ;;  %v14664_v30 = vld [vmem:[#allocation6_spill] sm:$0xff]  ;;  %v1514_v20 = vmul.f32 %v1483_v55, %v1483_v55  ;;  %v2131_v34 = vpop.f32.mrf.mxu0 }
 0x586   :  { %v1327_v16 = vadd.s32 %v1326_v36, %v1324_v21  ;;  %vm14665_vm12 = vcmp.eq.s32.totalorder %v9327_v40, %v14664_v30 }
 0x587   :  { %8122 = vmatmul.msk.f32.gmra.mxu2 %vm1860_vm11, %v1770_v0  ;;  %v1034_v60 = vsel %vm14665_vm12, %v14663_v45, 0.0  ;;  %v1641_v21 = vmul.f32 %v1625_v13, %v10292_v10  ;;  %v1974_v10 = vld [vmem:[%s14597_s8] sm:$0xff] }
 0x588   :  { %vm1399_vm15 = vcmp.eq.s32.totalorder %v9327_v40, %v1327_v16  ;;  %2038 = vmatpush.msrb.mxu3 %v1974_v10 }
 0x589   :  { %v1415_v39 = vsel %vm1399_vm15, %v9392_v61, 0.0  ;;  %v1623_v61 = vmul.f32 0.5, %v1607_v31  ;;  %vm14672_vm15 = vmmov %vm14671_vm9 }
 0x58a   :  { %v1431_v54 = vadd.f32 %v1415_v39, %v1031_v35  ;;  %v1485_v15 = vpop.f32.mrf.mxu2  ;;  %v1530_v35 = vmul.f32 %v1514_v20, %v1483_v55 }
 0x58b   :  { %v1338_v53 = vpop.xlane.xlu1 %1337  ;;  %v1639_v28 = vmul.f32 %v1623_v61, %v10245_v38  ;;  %v14661_v38 = vld [vmem:[#allocation5_spill] sm:$0xff]  ;;  %v10368_v39 = vadd.f32 %v10167_v29, %v1485_v15 }
 0x58c   :  { %v1339_v44 = vcvt.f32.s32 %v1338_v53  ;;  %v1731_v12 = vpop.f32.mrf.mxu3  ;;  %8097 = vmatmul.msk.f32.gmra.mxu3 %vm299_vm2, %v1431_v54  ;;  %8114 = vmatmul.msk.f32.gmra.mxu1 %vm299_vm2, %v1431_v54  ;;  %vm14662_vm10 = vcmp.eq.s32.totalorder %v9327_v40, %v14661_v38  ;;  %v1546_v54 = vmul.f32 0.044715, %v1530_v35  ;;  %v14666_v53 = vld [vmem:[#allocation8_spill] sm:$0xff]  ;;  %v14668_v38 = vld [vmem:[#allocation7_spill] sm:$0xff] }
 0x58d   :  { %v1771_v11 = vmul.f32 %v1731_v12, %v1638_v49  ;;  %v1033_v18 = vsel %vm14662_vm10, %v14660_v5, 0.0  ;;  %8204 = vmatpush.msk.msra.mxu3 %vm14617_vm7, %v14666_v53  ;;  %v1515_v49 = vmul.f32 %v10368_v39, %v10368_v39  ;;  %vm14669_vm5 = vcmp.eq.s32.totalorder %v9327_v40, %v14668_v38 }
 0x58e   :  { %v1342_v27 = vadd.s32 %v1341_v52, %v1339_v44  ;;  %v1562_v31 = vadd.f32 %v1546_v54, %v1483_v55  ;;  %v1812_v52 = vpop.f32.mrf.mxu1 }
 0x58f   :  { %8123 = vmatmul.msk.f32.gmra.mxu2 %vm1860_vm11, %v1771_v11  ;;  %v1531_v44 = vmul.f32 %v1515_v49, %v10368_v39 }
 0x590   :  { %vm1400_vm14 = vcmp.eq.s32.totalorder %v9327_v40, %v1342_v27  ;;  %v1578_v11 = vmul.f32 0.7978846, %v1562_v31 }
 0x591   :  { %v1416_v4 = vsel %vm1400_vm14, %v9406_v46, 0.0  ;;  %v1370_v46 = vcvt.f32.s32 %v10144_v51  ;;  %v1547_v2 = vmul.f32 0.044715, %v1531_v44  ;;  %vm14674_vm14 = vmmov %vm14673_vm6 }
 0x592   :  { %v1432_v3 = vadd.f32 %v1416_v4, %v1032_v25  ;;  %v1488_v16 = vpop.f32.mrf.mxu2  ;;  %8597 = vtanh.f32 %v1578_v11 }
 0x593   :  { %v1353_v17 = vpop.xlane.xlu2 %1352  ;;  %v1371_v26 = vshll.u32 %v1370_v46, 16  ;;  %v10379_v12 = vadd.f32 %v10167_v29, %v1488_v16 }
 0x594   :  { %v1354_v6 = vcvt.f32.s32 %v1353_v17  ;;  %v1734_v23 = vpop.f32.mrf.mxu3  ;;  %8098 = vmatmul.msk.f32.gmra.mxu3 %vm299_vm2, %v1432_v3  ;;  %8115 = vmatmul.msk.f32.gmra.mxu1 %vm299_vm2, %v1432_v3  ;;  %v1563_v3 = vadd.f32 %v1547_v2, %v10368_v39 }
 0x595   :  { %v1772_v57 = vmul.f32 %v1734_v23, %v1639_v28  ;;  %v1516_v61 = vmul.f32 %v10379_v12, %v10379_v12 }
 0x596   :  { %v1357_v59 = vadd.s32 %v1356_v42, %v1354_v6  ;;  %v1815_v17 = vpop.f32.mrf.mxu1  ;;  %v1579_v32 = vmul.f32 0.7978846, %v1563_v3 }
 0x597   :  { %8124 = vmatmul.msk.f32.gmra.mxu2 %vm1860_vm11, %v1772_v57  ;;  %v1532_v25 = vmul.f32 %v1516_v61, %v10379_v12 }
 0x598   :  { %vm1401_vm1 = vcmp.eq.s32.totalorder %v9327_v40, %v1357_v59  ;;  %v8598_v6 = vpop.eup %8597  ;;  %8599 = vtanh.f32 %v1579_v32 }
 0x599   :  { %v1417_v58 = vsel %vm1401_vm1, %v14660_v5, 0.0  ;;  %v1548_v23 = vmul.f32 0.044715, %v1532_v25  ;;  %v1610_v43 = vadd.f32 1.0, %v8598_v6  ;;  %v14667_v5 = vld [vmem:[#allocation4_spill] sm:$0xff]  ;;  %vm14676_vm1 = vmmov %vm14673_vm6 }
 0x59a   :  { %v1433_v47 = vadd.f32 %v1417_v58, %v1033_v18  ;;  %v1491_v37 = vpop.f32.mrf.mxu2  ;;  %v1035_v18 = vsel %vm14669_vm5, %v14667_v5, 0.0  ;;  %vm14677_vm10 = vmmov %vm14676_vm1 }
 0x59b   :  { %v1368_v7 = vpop.xlane.xlu0 %1367  ;;  %v10388_v4 = vadd.f32 %v10167_v29, %v1491_v37  ;;  %v1564_v33 = vadd.f32 %v1548_v23, %v10379_v12  ;;  %vm14679_vm12 = vmmov %vm14676_vm1 }
 0x59c   :  { %v1369_v62 = vcvt.f32.s32 %v1368_v7  ;;  %v1737_v14 = vpop.f32.mrf.mxu3  ;;  %8099 = vmatmul.msk.f32.gmra.mxu3 %vm299_vm2, %v1433_v47  ;;  %8116 = vmatmul.msk.f32.gmra.mxu1 %vm299_vm2, %v1433_v47  ;;  %vm14681_vm5 = vmmov %vm14676_vm1 }
 0x59d   :  { %v1773_v51 = vmul.f32 %v1737_v14, %v1640_v8  ;;  %v1517_v57 = vmul.f32 %v10388_v4, %v10388_v4  ;;  %v2134_v8 = vpop.f32.mrf.mxu0  ;;  %v1580_v13 = vmul.f32 0.7978846, %v1564_v33 }
 0x59e   :  { %v1372_v63 = vadd.s32 %v1371_v26, %v1369_v62  ;;  %v1626_v26 = vmul.f32 0.5, %v1610_v43  ;;  %v1818_v14 = vpop.f32.mrf.mxu1  ;;  %v8600_v30 = vpop.eup %8599 }
 0x59f   :  { %8125 = vmatmul.msk.f32.gmra.mxu2 %vm1860_vm11, %v1773_v51  ;;  %v1533_v47 = vmul.f32 %v1517_v57, %v10388_v4  ;;  %v10413_v51 = vld [vmem:[%s14590_s2 + $0x1] ss:$0 sm:$0xff]  ;;  %8601 = vtanh.f32 %v1580_v13  ;;  %v1611_v16 = vadd.f32 1.0, %v8600_v30 }
 0x5a0   :  { %vm1402_vm3 = vcmp.eq.s32.totalorder %v9327_v40, %v1372_v63  ;;  %v10432_v49 = vadd.f32 %v10413_v51, %v2134_v8 }
 0x5a1   :  { %v1418_v56 = vsel %vm1402_vm3, %v14663_v45, 0.0  ;;  %v1549_v63 = vmul.f32 0.044715, %v1533_v47  ;;  %v1627_v54 = vmul.f32 0.5, %v1611_v16  ;;  %vm14678_vm3 = vmmov %vm14676_vm1 }
 0x5a2   :  { %v1434_v36 = vadd.f32 %v1418_v56, %v1034_v60  ;;  %v1494_v48 = vpop.f32.mrf.mxu2  ;;  %v1642_v60 = vmul.f32 %v1626_v26, %v1483_v55 }
 0x5a3   :  { %v10397_v46 = vadd.f32 %v10167_v29, %v1494_v48  ;;  %v1565_v15 = vadd.f32 %v1549_v63, %v10388_v4  ;;  %v1643_v11 = vmul.f32 %v1627_v54, %v10368_v39 }
 0x5a4   :  { %v1740_v24 = vpop.f32.mrf.mxu3  ;;  %8100 = vmatmul.msk.f32.gmra.mxu3 %vm299_vm2, %v1434_v36  ;;  %8117 = vmatmul.msk.f32.gmra.mxu1 %vm299_vm2, %v1434_v36 }
 0x5a5   :  { %v1774_v0 = vmul.f32 %v1740_v24, %v1641_v21  ;;  %v1518_v62 = vmul.f32 %v10397_v46, %v10397_v46  ;;  %v10420_v24 = vadd.f32 %v10413_v51, %v2131_v34  ;;  %v2137_v37 = vpop.f32.mrf.mxu0  ;;  %v1581_v20 = vmul.f32 0.7978846, %v1565_v15 }
 0x5a6   :  { %v1821_v35 = vpop.f32.mrf.mxu1 }
 0x5a7   :  { %8126 = vmatmul.msk.f32.gmra.mxu2 %vm1860_vm11, %v1774_v0  ;;  %v1534_v56 = vmul.f32 %v1518_v62, %v10397_v46  ;;  %8603 = vtanh.f32 %v1581_v20 }
 0x5a9   :  { %v1550_v48 = vmul.f32 0.044715, %v1534_v56 }
 0x5aa   :  { %v1497_v9 = vpop.f32.mrf.mxu2 }
 0x5ab   :  { %v10417_v36 = vadd.f32 %v10167_v29, %v1497_v9  ;;  %v8602_v9 = vpop.eup %8601  ;;  %v1566_v44 = vadd.f32 %v1550_v48, %v10397_v46 }
 0x5ad   :  { %v1519_v55 = vmul.f32 %v10417_v36, %v10417_v36  ;;  %v1582_v25 = vmul.f32 0.7978846, %v1566_v44 }
 0x5ae   :  { %v1824_v39 = vpop.f32.mrf.mxu1 }
 0x5af   :  { %v1535_v53 = vmul.f32 %v1519_v55, %v10417_v36  ;;  %8605 = vtanh.f32 %v1582_v25 }
 0x5b1   :  { %v1551_v50 = vmul.f32 0.044715, %v1535_v53 }
 0x5b2   :  { %v10381_v27 = vpop.f32.mrf.mxu2 }
 0x5b3   :  { %v10436_v31 = vadd.f32 %v10167_v29, %v10381_v27  ;;  %v2140_v27 = vpop.f32.mrf.mxu0  ;;  %v1567_v23 = vadd.f32 %v1551_v50, %v10417_v36 }
 0x5b4   :  { %v10457_v8 = vadd.f32 %v10413_v51, %v2140_v27 }
 0x5b5   :  { %v1520_v34 = vmul.f32 %v10436_v31, %v10436_v31  ;;  %v1583_v38 = vmul.f32 0.7978846, %v1567_v23 }
 0x5b6   :  { %v1827_v26 = vpop.f32.mrf.mxu1 }
 0x5b7   :  { %8607 = vtanh.f32 %v1583_v38 }
 0x5ba   :  { %v10393_v22 = vpop.f32.mrf.mxu2 }
 0x5bb   :  { %v1504_v23 = vadd.f32 %v10167_v29, %v10393_v22 }
 0x5e6   :  { %v1383_v28 = vpop.xlane.xlu1 %1382 }
 0x5e7   :  { %v1384_v42 = vcvt.f32.s32 %v1383_v28  ;;  %v8604_v28 = vpop.eup %8603 }
 0x5e8   :  { %v8606_v47 = vpop.eup %8605 }
 0x5e9   :  { %v1387_v59 = vadd.s32 %v1386_v19, %v1384_v42  ;;  %v10447_v19 = vadd.f32 %v10413_v51, %v2137_v37  ;;  %v1536_v42 = vmul.f32 %v1520_v34, %v10436_v31  ;;  %v8608_v56 = vpop.eup %8607  ;;  %v1830_v37 = vpop.f32.mrf.mxu1 }
 0x5ea   :  { %v1615_v15 = vadd.f32 1.0, %v8608_v56 }
 0x5eb   :  { %vm1403_vm4 = vcmp.eq.s32.totalorder %v9327_v40, %v1387_v59  ;;  %v1613_v59 = vadd.f32 1.0, %v8604_v28 }
 0x5ec   :  { %v1419_v58 = vsel %vm1403_vm4, %v14667_v5, 0.0  ;;  %v1552_v5 = vmul.f32 0.044715, %v1536_v42  ;;  %v1631_v20 = vmul.f32 0.5, %v1615_v15  ;;  %vm14680_vm4 = vmmov %vm14676_vm1 }
 0x5ed   :  { %v1435_v7 = vadd.f32 %v1419_v58, %v1035_v18  ;;  %v1629_v58 = vmul.f32 0.5, %v1613_v59 }
 0x5ee   :  { %v1568_v33 = vadd.f32 %v1552_v5, %v10436_v31 }
 0x5ef   :  { %8101 = vmatmul.msk.f32.gmra.mxu3 %vm299_vm2, %v1435_v7  ;;  %8118 = vmatmul.msk.f32.gmra.mxu1 %vm299_vm2, %v1435_v7  ;;  %v2143_v7 = vpop.f32.mrf.mxu0  ;;  %v1645_v62 = vmul.f32 %v1629_v58, %v10388_v4 }
 0x5f2   :  { %v1926_v45 = vpop.f32.mrf.mxu2 }
 0x5f3   :  { %v1927_v0 = vadd.f32 %v1926_v45, %v1812_v52  ;;  %v1584_v45 = vmul.f32 0.7978846, %v1568_v33 }
 0x5f4   :  { %v1743_v21 = vpop.f32.mrf.mxu3 }
 0x5f5   :  { %v1775_v1 = vmul.f32 %v1743_v21, %v1642_v60  ;;  %v10466_v21 = vadd.f32 %v10413_v51, %v2143_v7  ;;  %8609 = vtanh.f32 %v1584_v45 }
 0x5f7   :  { %8127 = vmatmul.msk.f32.gmra.mxu2 %vm1860_vm11, %v1775_v1  ;;  %8135 = vmatmul.msk.f32.vlgmr.msrb.gmra.mxu3 %vm14670_vm13, %v1927_v0  ;;  %v2146_v1 = vpop.f32.mrf.mxu0  ;;  %vm14682_vm13 = vmmov %vm14676_vm1 }
 0x5f8   :  { %8172 = vmatmul.msk.f32.vlgmr.msra.gmra.mxu1 %vm14671_vm9, %v10420_v24  ;;  %vm14683_vm9 = vmmov %vm14676_vm1 }
 0x5f9   :  { %5414 = vmatpush.msra.mxu1 %v10206_v41  ;;  %v1612_v41 = vadd.f32 1.0, %v8602_v9 }
 0x5fa   :  { %v1929_v10 = vpop.f32.mrf.mxu2 }
 0x5fb   :  { %v1930_v52 = vadd.f32 %v1929_v10, %v1815_v17  ;;  %v1628_v17 = vmul.f32 0.5, %v1612_v41  ;;  %v10474_v10 = vadd.f32 %v10413_v51, %v2146_v1 }
 0x5fd   :  { %v1644_v57 = vmul.f32 %v1628_v17, %v10379_v12 }
 0x5ff   :  { %v1746_v2 = vpop.f32.mrf.mxu3  ;;  %8136 = vmatmul.msk.f32.gmra.mxu3 %vm14672_vm15, %v1930_v52  ;;  %v2149_v52 = vpop.f32.mrf.mxu0  ;;  %vm14684_vm15 = vmmov %vm14676_vm1 }
 0x600   :  { %v1776_v61 = vmul.f32 %v1746_v2, %v1643_v11  ;;  %8173 = vmatmul.msk.f32.gmra.mxu1 %vm14673_vm6, %v10432_v49  ;;  %v1833_v11 = vpop.f32.mrf.mxu1  ;;  %vm14685_vm6 = vmmov %vm14676_vm1 }
 0x602   :  { %v1932_v3 = vpop.f32.mrf.mxu2  ;;  %8128 = vmatmul.msk.f32.gmra.mxu2 %vm1860_vm11, %v1776_v61  ;;  %v10482_v61 = vadd.f32 %v10413_v51, %v2149_v52 }
 0x603   :  { %v1933_v6 = vadd.f32 %v1932_v3, %v1818_v14  ;;  %v1614_v14 = vadd.f32 1.0, %v8606_v47 }
 0x605   :  { %v1630_v60 = vmul.f32 0.5, %v1614_v14 }
 0x607   :  { %v1749_v32 = vpop.f32.mrf.mxu3  ;;  %8137 = vmatmul.msk.f32.gmra.mxu3 %vm14674_vm14, %v1933_v6  ;;  %v1646_v4 = vmul.f32 %v1630_v60, %v10397_v46  ;;  %v1647_v46 = vmul.f32 %v1631_v20, %v10417_v36  ;;  %v2152_v25 = vpop.f32.mrf.mxu0  ;;  %vm14686_vm14 = vmmov %vm14676_vm1 }
 0x608   :  { %v1777_v43 = vmul.f32 %v1749_v32, %v1644_v57  ;;  %8174 = vmatmul.msk.f32.gmra.mxu1 %vm14675_vm8, %v10447_v19  ;;  %v1836_v3 = vpop.f32.mrf.mxu1  ;;  %v10490_v28 = vadd.f32 %v10413_v51, %v2152_v25  ;;  %v1521_v57 = vmul.f32 %v1504_v23, %v1504_v23  ;;  %vm14687_vm8 = vmmov %vm14676_vm1 }
 0x60a   :  { %v1935_v18 = vpop.f32.mrf.mxu2  ;;  %8129 = vmatmul.msk.f32.gmra.mxu2 %vm1860_vm11, %v1777_v43  ;;  %v1537_v59 = vmul.f32 %v1521_v57, %v1504_v23 }
 0x60b   :  { %v1936_v12 = vadd.f32 %v1935_v18, %v1821_v35  ;;  %v8610_v35 = vpop.eup %8609 }
 0x60c   :  { %v1616_v9 = vadd.f32 1.0, %v8610_v35  ;;  %v1553_v43 = vmul.f32 0.044715, %v1537_v59 }
 0x60e   :  { %v1632_v2 = vmul.f32 0.5, %v1616_v9  ;;  %v1569_v5 = vadd.f32 %v1553_v43, %v1504_v23 }
 0x60f   :  { %v1752_v63 = vpop.f32.mrf.mxu3  ;;  %8138 = vmatmul.msk.f32.gmra.mxu3 %vm14676_vm1, %v1936_v12  ;;  %v2155_v18 = vpop.f32.mrf.mxu0 }
 0x610   :  { %v1778_v13 = vmul.f32 %v1752_v63, %v1645_v62  ;;  %8175 = vmatmul.msk.f32.gmra.mxu1 %vm14677_vm10, %v10457_v8  ;;  %v1648_v36 = vmul.f32 %v1632_v2, %v10436_v31  ;;  %v1839_v31 = vpop.f32.mrf.mxu1  ;;  %v1585_v58 = vmul.f32 0.7978846, %v1569_v5  ;;  %v10504_v47 = vadd.f32 %v10413_v51, %v2155_v18  ;;  %vm14688_vm10 = vmmov %vm14676_vm1 }
 0x612   :  { %v1938_v30 = vpop.f32.mrf.mxu2  ;;  %8130 = vmatmul.msk.f32.gmra.mxu2 %vm1860_vm11, %v1778_v13  ;;  %8611 = vtanh.f32 %v1585_v58 }
 0x613   :  { %v1939_v0 = vadd.f32 %v1938_v30, %v1824_v39 }
 0x617   :  { %v1755_v16 = vpop.f32.mrf.mxu3  ;;  %8139 = vmatmul.msk.f32.gmra.mxu3 %vm14678_vm3, %v1939_v0  ;;  %v2158_v7 = vpop.f32.mrf.mxu0  ;;  %vm14689_vm3 = vmmov %vm14676_vm1 }
 0x618   :  { %v1779_v55 = vmul.f32 %v1755_v16, %v1646_v4  ;;  %8176 = vmatmul.msk.f32.gmra.mxu1 %vm14679_vm12, %v10466_v21  ;;  %v1842_v42 = vpop.f32.mrf.mxu1  ;;  %v10511_v29 = vadd.f32 %v10413_v51, %v2158_v7  ;;  %v8612_v22 = vpop.eup %8611  ;;  %vm14690_vm12 = vmmov %vm14676_vm1 }
 0x619   :  { %v1617_v33 = vadd.f32 1.0, %v8612_v22 }
 0x61a   :  { %v1941_v48 = vpop.f32.mrf.mxu2  ;;  %8131 = vmatmul.msk.f32.gmra.mxu2 %vm1860_vm11, %v1779_v55 }
 0x61b   :  { %v1942_v54 = vadd.f32 %v1941_v48, %v1827_v26  ;;  %v1633_v63 = vmul.f32 0.5, %v1617_v33 }
 0x61d   :  { %v1649_v13 = vmul.f32 %v1633_v63, %v1504_v23 }
 0x61f   :  { %v1758_v53 = vpop.f32.mrf.mxu3  ;;  %8140 = vmatmul.msk.f32.gmra.mxu3 %vm14680_vm4, %v1942_v54  ;;  %v2161_v26 = vpop.f32.mrf.mxu0  ;;  %vm14691_vm4 = vmmov %vm14676_vm1 }
 0x620   :  { %v1780_v44 = vmul.f32 %v1758_v53, %v1647_v46  ;;  %8177 = vmatmul.msk.f32.gmra.mxu1 %vm14681_vm5, %v10474_v10  ;;  %v10495_v6 = vpop.f32.mrf.mxu1  ;;  %v10518_v14 = vadd.f32 %v10413_v51, %v2161_v26  ;;  %vm14692_vm5 = vmmov %vm14676_vm1 }
 0x622   :  { %v1944_v41 = vpop.f32.mrf.mxu2  ;;  %8132 = vmatmul.msk.f32.gmra.mxu2 %vm1860_vm11, %v1780_v44 }
 0x623   :  { %v1945_v50 = vadd.f32 %v1944_v41, %v1830_v37 }
 0x627   :  { %v1761_v34 = vpop.f32.mrf.mxu3  ;;  %8141 = vmatmul.msk.f32.gmra.mxu3 %vm14682_vm13, %v1945_v50  ;;  %v2164_v60 = vpop.f32.mrf.mxu0  ;;  %vm14693_vm13 = vmmov %vm14676_vm1 }
 0x628   :  { %v1781_v27 = vmul.f32 %v1761_v34, %v1648_v36  ;;  %8178 = vmatmul.msk.f32.gmra.mxu1 %vm14683_vm9, %v10482_v61  ;;  %v10499_v32 = vpop.f32.mrf.mxu1  ;;  %v10523_v56 = vadd.f32 %v10413_v51, %v2164_v60  ;;  %vm14694_vm9 = vmmov %vm14676_vm1 }
 0x62a   :  { %v1947_v17 = vpop.f32.mrf.mxu2  ;;  %8133 = vmatmul.msk.f32.gmra.mxu2 %vm1860_vm11, %v1781_v27 }
 0x62b   :  { %v1948_v39 = vadd.f32 %v1947_v17, %v1833_v11 }
 0x62f   :  { %8142 = vmatmul.msk.f32.gmra.mxu3 %vm14684_vm15, %v1948_v39  ;;  %v2167_v16 = vpop.f32.mrf.mxu0  ;;  %vm14695_vm15 = vmmov %vm14676_vm1 }
 0x630   :  { %8179 = vmatmul.msk.f32.gmra.mxu1 %vm14685_vm6, %v10490_v28  ;;  %v10501_v38 = vpop.f32.mrf.mxu1  ;;  %v10533_v37 = vadd.f32 %v10413_v51, %v2167_v16  ;;  %vm14696_vm6 = vmmov %vm14676_vm1 }
 0x637   :  { %v2170_v20 = vpop.f32.mrf.mxu0 }
 0x638   :  { %8180 = vmatmul.msk.f32.gmra.mxu1 %vm14686_vm14, %v10504_v47  ;;  %v10508_v12 = vpop.f32.mrf.mxu1  ;;  %v2171_v35 = vadd.f32 %v10413_v51, %v2170_v20  ;;  %vm14697_vm14 = vmmov %vm14676_vm1 }
 0x63f   :  { %v2173_v53 = vpop.f32.mrf.mxu0 }
 0x640   :  { %8181 = vmatmul.msk.f32.gmra.mxu1 %vm14687_vm8, %v10511_v29  ;;  %v2174_v52 = vadd.f32 %v10413_v51, %v2173_v53  ;;  %vm14698_vm8 = vmmov %vm14676_vm1 }
 0x647   :  { %v2176_v2 = vpop.f32.mrf.mxu0 }
 0x648   :  { %8182 = vmatmul.msk.f32.gmra.mxu1 %vm14676_vm1, %v10518_v14  ;;  %v2177_v50 = vadd.f32 %v10413_v51, %v2176_v2 }
 0x650   :  { %8183 = vmatmul.msk.f32.gmra.mxu1 %vm14688_vm10, %v10523_v56  ;;  %vm14699_vm10 = vmmov %vm14676_vm1 }
 0x658   :  { %8184 = vmatmul.msk.f32.gmra.mxu1 %vm14691_vm4, %v10533_v37  ;;  %vm14702_vm4 = vmmov %vm14676_vm1 }
 0x660   :  { %8185 = vmatmul.msk.f32.gmra.mxu1 %vm14693_vm13, %v2171_v35  ;;  %vm14704_vm13 = vmmov %vm14676_vm1 }
 0x668   :  { %8186 = vmatmul.msk.f32.gmra.mxu1 %vm14696_vm6, %v2174_v52  ;;  %vm14707_vm6 = vmmov %vm14676_vm1 }
 0x66c   :  { %v10515_v62 = vpop.f32.mrf.mxu1 }
 0x670   :  { %8187 = vmatmul.msk.f32.gmra.mxu1 %vm14676_vm1, %v2177_v50 }
 0x672   :  { %v1764_v45 = vpop.f32.mrf.mxu3 }
 0x673   :  { %v1782_v30 = vmul.f32 %v1764_v45, %v1649_v13 }
 0x675   :  { %v10525_v0 = vpop.f32.mrf.mxu1  ;;  %8134 = vmatmul.msk.f32.gmra.mxu2 %vm1860_vm11, %v1782_v30 }
 0x676   :  { %v2292_v1 = vsel %vm299_vm2, %v10525_v0, -inf }
 0x677   :  { %2293 = vmax.xlane.f32.xlu2 %v2292_v1 }
 0x67a   :  { %v1950_v4 = vpop.f32.mrf.mxu2 }
 0x67b   :  { %v1951_v15 = vadd.f32 %v1950_v4, %v1836_v3 }
 0x67d   :  { %v10535_v55 = vpop.f32.mrf.mxu1  ;;  %8143 = vmatmul.msk.f32.gmra.mxu3 %vm14689_vm3, %v1951_v15  ;;  %8188 = vmatmul.msk.f32.vlgmr.msra.gmra.mxu2 %vm14690_vm12, %v10420_v24  ;;  %vm14700_vm3 = vmmov %vm14676_vm1 }
 0x67e   :  { %v2295_v48 = vsel %vm299_vm2, %v10535_v55, -inf  ;;  %vm14701_vm12 = vmmov %vm14676_vm1 }
 0x67f   :  { %2296 = vmax.xlane.f32.xlu0 %v2295_v48 }
 0x685   :  { %v10545_v54 = vpop.f32.mrf.mxu1  ;;  %v1953_v46 = vpop.f32.mrf.mxu2  ;;  %8189 = vmatmul.msk.f32.gmra.mxu2 %vm14692_vm5, %v10432_v49  ;;  %vm14703_vm5 = vmmov %vm14676_vm1 }
 0x686   :  { %v1954_v9 = vadd.f32 %v1953_v46, %v1839_v31  ;;  %v2298_v24 = vsel %vm299_vm2, %v10545_v54, -inf }
 0x687   :  { %2299 = vmax.xlane.f32.xlu1 %v2298_v24 }
 0x688   :  { %8144 = vmatmul.msk.f32.gmra.mxu3 %vm14694_vm9, %v1954_v9  ;;  %vm14705_vm9 = vmmov %vm14676_vm1 }
 0x68d   :  { %v10554_v44 = vpop.f32.mrf.mxu1  ;;  %v1956_v11 = vpop.f32.mrf.mxu2  ;;  %8190 = vmatmul.msk.f32.gmra.mxu2 %vm14695_vm15, %v10447_v19  ;;  %vm14706_vm15 = vmmov %vm14676_vm1 }
 0x68e   :  { %v1957_v41 = vadd.f32 %v1956_v11, %v1842_v42  ;;  %v2301_v49 = vsel %vm299_vm2, %v10554_v44, -inf }
 0x68f   :  { %2302 = vmax.xlane.f32.xlu2 %v2301_v49 }
 0x690   :  { %8145 = vmatmul.msk.f32.gmra.mxu3 %vm14697_vm14, %v1957_v41  ;;  %vm14708_vm14 = vmmov %vm14676_vm1 }
 0x695   :  { %v10563_v36 = vpop.f32.mrf.mxu1  ;;  %v1959_v34 = vpop.f32.mrf.mxu2  ;;  %8191 = vmatmul.msk.f32.gmra.mxu2 %vm14698_vm8, %v10457_v8  ;;  %vm14709_vm8 = vmmov %vm14676_vm1 }
 0x696   :  { %v1960_v19 = vadd.f32 %v1959_v34, %v10495_v6  ;;  %v2304_v27 = vsel %vm299_vm2, %v10563_v36, -inf }
 0x697   :  { %2305 = vmax.xlane.f32.xlu0 %v2304_v27 }
 0x698   :  { %8146 = vmatmul.msk.f32.gmra.mxu3 %vm14699_vm10, %v1960_v19  ;;  %vm14710_vm10 = vmmov %vm14676_vm1 }
 0x69d   :  { %v10572_v25 = vpop.f32.mrf.mxu1  ;;  %v1962_v3 = vpop.f32.mrf.mxu2  ;;  %8192 = vmatmul.msk.f32.gmra.mxu2 %vm14700_vm3, %v10466_v21  ;;  %vm14711_vm3 = vmmov %vm14676_vm1 }
 0x69e   :  { %v1963_v51 = vadd.f32 %v1962_v3, %v10499_v32  ;;  %v2307_v8 = vsel %vm299_vm2, %v10572_v25, -inf }
 0x69f   :  { %2308 = vmax.xlane.f32.xlu1 %v2307_v8 }
 0x6a0   :  { %8147 = vmatmul.msk.f32.gmra.mxu3 %vm14701_vm12, %v1963_v51  ;;  %vm14712_vm12 = vmmov %vm14676_vm1 }
 0x6a5   :  { %v10580_v17 = vpop.f32.mrf.mxu1  ;;  %v1965_v39 = vpop.f32.mrf.mxu2  ;;  %8193 = vmatmul.msk.f32.gmra.mxu2 %vm14702_vm4, %v10474_v10  ;;  %vm14713_vm4 = vmmov %vm14676_vm1 }
 0x6a6   :  { %v1966_v31 = vadd.f32 %v1965_v39, %v10501_v38  ;;  %v2310_v42 = vsel %vm299_vm2, %v10580_v17, -inf }
 0x6a7   :  { %2311 = vmax.xlane.f32.xlu2 %v2310_v42 }
 0x6a8   :  { %8148 = vmatmul.msk.f32.gmra.mxu3 %vm14703_vm5, %v1966_v31  ;;  %vm14714_vm5 = vmmov %vm14676_vm1 }
 0x6ad   :  { %v10588_v21 = vpop.f32.mrf.mxu1  ;;  %v1968_v6 = vpop.f32.mrf.mxu2  ;;  %8194 = vmatmul.msk.f32.gmra.mxu2 %vm14704_vm13, %v10482_v61 }
 0x6ae   :  { %v1969_v23 = vadd.f32 %v1968_v6, %v10508_v12  ;;  %v2313_v57 = vsel %vm299_vm2, %v10588_v21, -inf }
 0x6af   :  { %2314 = vmax.xlane.f32.xlu1 %v2313_v57 }
 0x6b0   :  { %8149 = vmatmul.msk.f32.gmra.mxu3 %vm14705_vm9, %v1969_v23 }
 0x6b5   :  { %8195 = vmatmul.msk.f32.gmra.mxu2 %vm14706_vm15, %v10490_v28  ;;  %v10610_v28 = vpop.f32.mrf.mxu1 }
 0x6b6   :  { %v2316_v22 = vsel %vm299_vm2, %v10610_v28, -inf }
 0x6bd   :  { %8196 = vmatmul.msk.f32.gmra.mxu2 %vm14707_vm6, %v10504_v47  ;;  %v10617_v18 = vpop.f32.mrf.mxu1 }
 0x6be   :  { %v2319_v45 = vsel %vm299_vm2, %v10617_v18, -inf }
 0x6c5   :  { %8197 = vmatmul.msk.f32.gmra.mxu2 %vm14708_vm14, %v10511_v29  ;;  %v10630_v63 = vpop.f32.mrf.mxu1 }
 0x6c6   :  { %v2322_v15 = vsel %vm299_vm2, %v10630_v63, -inf }
 0x6cd   :  { %8198 = vmatmul.msk.f32.gmra.mxu2 %vm14709_vm8, %v10518_v14 }
 0x6d5   :  { %8199 = vmatmul.msk.f32.gmra.mxu2 %vm14676_vm1, %v10523_v56 }
 0x6dd   :  { %8200 = vmatmul.msk.f32.gmra.mxu2 %vm14710_vm10, %v10533_v37 }
 0x6e5   :  { %8201 = vmatmul.msk.f32.gmra.mxu2 %vm14711_vm3, %v2171_v35 }
 0x6ea   :  { %v2294_v10 = vpop.xlane.xlu2 %2293 }
 0x6eb   :  { %v2340_v61 = vsub.f32 %v10525_v0, %v2294_v10  ;;  %v10639_v0 = vpop.f32.mrf.mxu1 }
 0x6ed   :  { %v2356_v59 = vmul.f32 1.442695, %v2340_v61  ;;  %8202 = vmatmul.msk.f32.gmra.mxu2 %vm14712_vm12, %v2174_v52 }
 0x6ef   :  { %8613 = vpow2.f32 %v2356_v59 }
 0x6f2   :  { %v2297_v32 = vpop.xlane.xlu0 %2296 }
 0x6f3   :  { %v2341_v43 = vsub.f32 %v10535_v55, %v2297_v32  ;;  %v10649_v35 = vpop.f32.mrf.mxu1 }
 0x6f5   :  { %v10614_v5 = vpop.eup %8613  ;;  %v2358_v38 = vmul.f32 1.442695, %v2341_v43  ;;  %8203 = vmatmul.msk.f32.gmra.mxu2 %vm14713_vm4, %v2177_v50 }
 0x6f6   :  { %v2388_v58 = vsel %vm299_vm2, %v10614_v5, 0.0 }
 0x6f7   :  { %8615 = vpow2.f32 %v2358_v38  ;;  %2389 = vadd.xlane.f32.xlu0 %v2388_v58 }
 0x6f8   :  { %v1971_v47 = vpop.f32.mrf.mxu2 }
 0x6f9   :  { %v1972_v7 = vadd.f32 %v1971_v47, %v10515_v62 }
 0x6fa   :  { %v2300_v12 = vpop.xlane.xlu1 %2299 }
 0x6fb   :  { %v2342_v29 = vsub.f32 %v10545_v54, %v2300_v12  ;;  %8150 = vmatmul.msk.f32.gmra.mxu3 %vm14714_vm5, %v1972_v7  ;;  %v2325_v54 = vsel %vm299_vm2, %v10639_v0, -inf  ;;  %v10662_v49 = vpop.f32.mrf.mxu1 }
 0x6fc   :  { %v2331_v34 = vsel %vm299_vm2, %v10662_v49, -inf }
 0x6fd   :  { %v10626_v33 = vpop.eup %8615  ;;  %v2360_v26 = vmul.f32 1.442695, %v2342_v29 }
 0x6fe   :  { %v2391_v14 = vsel %vm299_vm2, %v10626_v33, 0.0 }
 0x6ff   :  { %8617 = vpow2.f32 %v2360_v26  ;;  %2392 = vadd.xlane.f32.xlu2 %v2391_v14  ;;  %2317 = vmax.xlane.f32.xlu0 %v2316_v22 }
 0x702   :  { %v2303_v62 = vpop.xlane.xlu2 %2302 }
 0x703   :  { %v2343_v13 = vsub.f32 %v10554_v44, %v2303_v62  ;;  %v2328_v44 = vsel %vm299_vm2, %v10649_v35, -inf  ;;  %v10673_v3 = vpop.f32.mrf.mxu1 }
 0x704   :  { %v2334_v51 = vsel %vm299_vm2, %v10673_v3, -inf }
 0x705   :  { %v10635_v30 = vpop.eup %8617  ;;  %v2362_v60 = vmul.f32 1.442695, %v2343_v13 }
 0x706   :  { %v2394_v56 = vsel %vm299_vm2, %v10635_v30, 0.0 }
 0x707   :  { %8619 = vpow2.f32 %v2362_v60  ;;  %2395 = vadd.xlane.f32.xlu1 %v2394_v56  ;;  %2320 = vmax.xlane.f32.xlu2 %v2319_v45 }
 0x70a   :  { %v2306_v1 = vpop.xlane.xlu0 %2305 }
 0x70b   :  { %v2344_v4 = vsub.f32 %v10563_v36, %v2306_v1  ;;  %v10681_v39 = vpop.f32.mrf.mxu1 }
 0x70c   :  { %v2337_v31 = vsel %vm299_vm2, %v10681_v39, -inf }
 0x70d   :  { %v10644_v16 = vpop.eup %8619  ;;  %v2364_v37 = vmul.f32 1.442695, %v2344_v4 }
 0x70e   :  { %v2397_v55 = vsel %vm299_vm2, %v10644_v16, 0.0 }
 0x70f   :  { %8621 = vpow2.f32 %v2364_v37  ;;  %2398 = vadd.xlane.f32.xlu0 %v2397_v55  ;;  %2323 = vmax.xlane.f32.xlu1 %v2322_v15 }
 0x712   :  { %v2309_v48 = vpop.xlane.xlu1 %2308 }
 0x713   :  { %v2345_v20 = vsub.f32 %v10572_v25, %v2309_v48 }
 0x715   :  { %v10653_v46 = vpop.eup %8621  ;;  %v2366_v9 = vmul.f32 1.442695, %v2345_v20 }
 0x716   :  { %v2400_v24 = vsel %vm299_vm2, %v10653_v46, 0.0 }
 0x717   :  { %8623 = vpow2.f32 %v2366_v9  ;;  %2401 = vadd.xlane.f32.xlu2 %v2400_v24  ;;  %2326 = vmax.xlane.f32.xlu0 %v2325_v54 }
 0x71a   :  { %v2312_v53 = vpop.xlane.xlu2 %2311 }
 0x71b   :  { %v2346_v52 = vsub.f32 %v10580_v17, %v2312_v53 }
 0x71d   :  { %v10660_v11 = vpop.eup %8623  ;;  %v2368_v41 = vmul.f32 1.442695, %v2346_v52 }
 0x71e   :  { %v2403_v2 = vsel %vm299_vm2, %v10660_v11, 0.0 }
 0x71f   :  { %8625 = vpow2.f32 %v2368_v41  ;;  %2404 = vadd.xlane.f32.xlu1 %v2403_v2  ;;  %2329 = vmax.xlane.f32.xlu2 %v2328_v44 }
 0x722   :  { %v2315_v50 = vpop.xlane.xlu1 %2314 }
 0x723   :  { %v2347_v36 = vsub.f32 %v10588_v21, %v2315_v50 }
 0x725   :  { %v10669_v19 = vpop.eup %8625  ;;  %v2370_v27 = vmul.f32 1.442695, %v2347_v36 }
 0x726   :  { %v2406_v25 = vsel %vm299_vm2, %v10669_v19, 0.0 }
 0x727   :  { %8627 = vpow2.f32 %v2370_v27  ;;  %2407 = vadd.xlane.f32.xlu0 %v2406_v25  ;;  %2332 = vmax.xlane.f32.xlu1 %v2331_v34 }
 0x72d   :  { %v10677_v8 = vpop.eup %8627 }
 0x72e   :  { %v2409_v17 = vsel %vm299_vm2, %v10677_v8, 0.0 }
 0x72f   :  { %2410 = vadd.xlane.f32.xlu2 %v2409_v17  ;;  %2335 = vmax.xlane.f32.xlu0 %v2334_v51 }
 0x737   :  { %2338 = vmax.xlane.f32.xlu0 %v2337_v31 }
 0x76a   :  { %v2390_v42 = vpop.xlane.xlu0 %2389 }
 0x76b   :  { %8629 = vrcp.f32 %v2390_v42  ;;  %v2447_v59 = vand.u32 2147483648, %v2390_v42  ;;  %v2445_v43 = vand.u32 2147483647, %v2390_v42  ;;  %vm2441_vm9 = vweird.f32 %v2390_v42 }
 0x76d   :  { %v2448_v7 = vor.u32 1.1754944e-38, %v2447_v59  ;;  %vm2446_vm6 = vcmp.eq.f32.partialorder %v2445_v43, 8.507059e+37 }
 0x771   :  { %v8630_v21 = vpop.eup %8629 }
 0x772   :  { %v2437_v6 = vmul.f32 %v8630_v21, %v2390_v42  ;;  %v2393_v23 = vpop.xlane.xlu2 %2392  ;;  %v2318_v57 = vpop.xlane.xlu0 %2317  ;;  %vm2442_vm13 = vweird.f32 %v8630_v21 }
 0x773   :  { %8631 = vrcp.f32 %v2393_v23  ;;  %v2348_v61 = vsub.f32 %v10610_v28, %v2318_v57  ;;  %vm2443_vm15 = vmor %vm2441_vm9, %vm2442_vm13  ;;  %v2462_v13 = vand.u32 2147483648, %v2393_v23  ;;  %v2460_v1 = vand.u32 2147483647, %v2393_v23 }
 0x774   :  { %v2438_v10 = vsub.f32 1.0, %v2437_v6  ;;  %vm2456_vm8 = vweird.f32 %v2393_v23 }
 0x775   :  { %v2372_v38 = vmul.f32 1.442695, %v2348_v61  ;;  %vm2461_vm10 = vcmp.eq.f32.partialorder %v2460_v1, 8.507059e+37 }
 0x776   :  { %v2439_v32 = vmul.f32 %v8630_v21, %v2438_v10 }
 0x777   :  { %8633 = vpow2.f32 %v2372_v38 }
 0x778   :  { %v2440_v58 = vadd.f32 %v8630_v21, %v2439_v32 }
 0x779   :  { %v8632_v47 = vpop.eup %8631 }
 0x77a   :  { %v2444_v12 = vsel %vm2443_vm15, %v8630_v21, %v2440_v58  ;;  %v2452_v29 = vmul.f32 %v8632_v47, %v2393_v23  ;;  %v2396_v22 = vpop.xlane.xlu1 %2395  ;;  %v2321_v26 = vpop.xlane.xlu2 %2320  ;;  %vm2457_vm14 = vweird.f32 %v8632_v47 }
 0x77b   :  { %v2449_v14 = vsel %vm2446_vm6, %v2448_v7, %v2444_v12  ;;  %8635 = vrcp.f32 %v2396_v22  ;;  %v2349_v28 = vsub.f32 %v10617_v18, %v2321_v26  ;;  %vm2458_vm1 = vmor %vm2456_vm8, %vm2457_vm14  ;;  %v2475_v41 = vand.u32 2147483647, %v2396_v22 }
 0x77c   :  { %v2453_v62 = vsub.f32 1.0, %v2452_v29  ;;  %v10688_v45 = vmul.f32 %v10614_v5, %v2449_v14  ;;  %v2463_v5 = vor.u32 1.1754944e-38, %v2462_v13  ;;  %v2477_v2 = vand.u32 2147483648, %v2396_v22 }
 0x77d   :  { %v10690_v60 = vpop.eup %8633  ;;  %v2374_v4 = vmul.f32 1.442695, %v2349_v28  ;;  %vm2471_vm12 = vweird.f32 %v2396_v22  ;;  %vm2476_vm5 = vcmp.eq.f32.partialorder %v2475_v41, 8.507059e+37 }
 0x77e   :  { %v2454_v56 = vmul.f32 %v8632_v47, %v2453_v62  ;;  %v2412_v15 = vsel %vm299_vm2, %v10690_v60, 0.0  ;;  %v2676_v37 = vsel %vm299_vm2, %v10688_v45, -inf }
 0x77f   :  { %8637 = vpow2.f32 %v2374_v4  ;;  %2413 = vadd.xlane.f32.xlu2 %v2412_v15  ;;  %2677 = vmax.xlane.f32.xlu1 %v2676_v37 }
 0x780   :  { %v2455_v55 = vadd.f32 %v8632_v47, %v2454_v56 }
 0x781   :  { %v8636_v18 = vpop.eup %8635 }
 0x782   :  { %v2459_v48 = vsel %vm2458_vm1, %v8632_v47, %v2455_v55  ;;  %v2467_v20 = vmul.f32 %v8636_v18, %v2396_v22  ;;  %v2399_v54 = vpop.xlane.xlu0 %2398  ;;  %v2324_v9 = vpop.xlane.xlu1 %2323  ;;  %vm2472_vm3 = vweird.f32 %v8636_v18 }
 0x783   :  { %v2464_v24 = vsel %vm2461_vm10, %v2463_v5, %v2459_v48  ;;  %8639 = vrcp.f32 %v2399_v54  ;;  %v2350_v52 = vsub.f32 %v10630_v63, %v2324_v9  ;;  %vm2473_vm4 = vmor %vm2471_vm12, %vm2472_vm3  ;;  %v2478_v63 = vor.u32 1.1754944e-38, %v2477_v2 }
 0x784   :  { %v2468_v53 = vsub.f32 1.0, %v2467_v20  ;;  %v10698_v44 = vmul.f32 %v10626_v33, %v2464_v24  ;;  %v2490_v61 = vand.u32 2147483647, %v2399_v54  ;;  %v2492_v59 = vand.u32 2147483648, %v2399_v54 }
 0x785   :  { %v10700_v50 = vpop.eup %8637  ;;  %v2376_v34 = vmul.f32 1.442695, %v2350_v52  ;;  %vm2486_vm9 = vweird.f32 %v2399_v54 }
 0x786   :  { %v2469_v36 = vmul.f32 %v8636_v18, %v2468_v53  ;;  %v2679_v27 = vsel %vm299_vm2, %v10698_v44, -inf  ;;  %v2415_v25 = vsel %vm299_vm2, %v10700_v50, 0.0  ;;  %vm2491_vm6 = vcmp.eq.f32.partialorder %v2490_v61, 8.507059e+37 }
 0x787   :  { %8641 = vpow2.f32 %v2376_v34  ;;  %2416 = vadd.xlane.f32.xlu2 %v2415_v25  ;;  %2680 = vmax.xlane.f32.xlu1 %v2679_v27 }
 0x788   :  { %v2470_v51 = vadd.f32 %v8636_v18, %v2469_v36 }
 0x789   :  { %v8640_v33 = vpop.eup %8639 }
 0x78a   :  { %v2474_v17 = vsel %vm2473_vm4, %v8636_v18, %v2470_v51  ;;  %v2482_v31 = vmul.f32 %v8640_v33, %v2399_v54  ;;  %v2402_v42 = vpop.xlane.xlu2 %2401  ;;  %v2327_v21 = vpop.xlane.xlu0 %2326  ;;  %vm2487_vm13 = vweird.f32 %v8640_v33 }
 0x78b   :  { %v2479_v6 = vsel %vm2476_vm5, %v2478_v63, %v2474_v17  ;;  %8643 = vrcp.f32 %v2402_v42  ;;  %v2351_v57 = vsub.f32 %v10639_v0, %v2327_v21  ;;  %vm2488_vm15 = vmor %vm2486_vm9, %vm2487_vm13  ;;  %v2493_v0 = vor.u32 1.1754944e-38, %v2492_v59 }
 0x78c   :  { %v2483_v23 = vsub.f32 1.0, %v2482_v31  ;;  %v10708_v10 = vmul.f32 %v10635_v30, %v2479_v6  ;;  %v2505_v56 = vand.u32 2147483647, %v2402_v42  ;;  %v2507_v1 = vand.u32 2147483648, %v2402_v42 }
 0x78d   :  { %v10710_v32 = vpop.eup %8641  ;;  %v2378_v38 = vmul.f32 1.442695, %v2351_v57  ;;  %vm2501_vm8 = vweird.f32 %v2402_v42 }
 0x78e   :  { %v2484_v43 = vmul.f32 %v8640_v33, %v2483_v23  ;;  %v2682_v58 = vsel %vm299_vm2, %v10708_v10, -inf  ;;  %v2418_v47 = vsel %vm299_vm2, %v10710_v32, 0.0  ;;  %vm2506_vm10 = vcmp.eq.f32.partialorder %v2505_v56, 8.507059e+37 }
 0x78f   :  { %2683 = vmax.xlane.f32.xlu0 %v2682_v58  ;;  %8645 = vpow2.f32 %v2378_v38  ;;  %2419 = vadd.xlane.f32.xlu1 %v2418_v47 }
 0x790   :  { %v2485_v7 = vadd.f32 %v8640_v33, %v2484_v43 }
 0x791   :  { %v8644_v30 = vpop.eup %8643 }
 0x792   :  { %v2489_v12 = vsel %vm2488_vm15, %v8640_v33, %v2485_v7  ;;  %v2497_v29 = vmul.f32 %v8644_v30, %v2402_v42  ;;  %v2405_v22 = vpop.xlane.xlu1 %2404  ;;  %v2330_v26 = vpop.xlane.xlu2 %2329  ;;  %vm2502_vm14 = vweird.f32 %v8644_v30 }
 0x793   :  { %v2494_v14 = vsel %vm2491_vm6, %v2493_v0, %v2489_v12  ;;  %8647 = vrcp.f32 %v2405_v22  ;;  %v2352_v28 = vsub.f32 %v10649_v35, %v2330_v26  ;;  %vm2503_vm1 = vmor %vm2501_vm8, %vm2502_vm14  ;;  %v2508_v35 = vor.u32 1.1754944e-38, %v2507_v1 }
 0x794   :  { %v2498_v62 = vsub.f32 1.0, %v2497_v29  ;;  %v10718_v13 = vmul.f32 %v10644_v16, %v2494_v14  ;;  %v2520_v2 = vand.u32 2147483647, %v2405_v22  ;;  %v2522_v36 = vand.u32 2147483648, %v2405_v22 }
 0x795   :  { %v10720_v4 = vpop.eup %8645  ;;  %v2380_v37 = vmul.f32 1.442695, %v2352_v28  ;;  %vm2516_vm12 = vweird.f32 %v2405_v22 }
 0x796   :  { %v2499_v15 = vmul.f32 %v8644_v30, %v2498_v62  ;;  %v2685_v55 = vsel %vm299_vm2, %v10718_v13, -inf  ;;  %v2421_v18 = vsel %vm299_vm2, %v10720_v4, 0.0  ;;  %vm2521_vm5 = vcmp.eq.f32.partialorder %v2520_v2, 8.507059e+37 }
 0x797   :  { %2686 = vmax.xlane.f32.xlu2 %v2685_v55  ;;  %8649 = vpow2.f32 %v2380_v37  ;;  %2422 = vadd.xlane.f32.xlu0 %v2421_v18 }
 0x798   :  { %v2500_v5 = vadd.f32 %v8644_v30, %v2499_v15 }
 0x799   :  { %v8648_v16 = vpop.eup %8647 }
 0x79a   :  { %v2504_v48 = vsel %vm2503_vm1, %v8644_v30, %v2500_v5  ;;  %v2512_v20 = vmul.f32 %v8648_v16, %v2405_v22  ;;  %v2408_v54 = vpop.xlane.xlu0 %2407  ;;  %v2333_v9 = vpop.xlane.xlu1 %2332  ;;  %vm2517_vm3 = vweird.f32 %v8648_v16 }
 0x79b   :  { %v2509_v24 = vsel %vm2506_vm10, %v2508_v35, %v2504_v48  ;;  %8651 = vrcp.f32 %v2408_v54  ;;  %v2353_v52 = vsub.f32 %v10662_v49, %v2333_v9  ;;  %vm2518_vm4 = vmor %vm2516_vm12, %vm2517_vm3  ;;  %v2523_v49 = vor.u32 1.1754944e-38, %v2522_v36 }
 0x79c   :  { %v2513_v53 = vsub.f32 1.0, %v2512_v20  ;;  %v10728_v41 = vmul.f32 %v10653_v46, %v2509_v24  ;;  %v2535_v59 = vand.u32 2147483647, %v2408_v54  ;;  %v2537_v43 = vand.u32 2147483648, %v2408_v54 }
 0x79d   :  { %v10730_v34 = vpop.eup %8649  ;;  %v2382_v25 = vmul.f32 1.442695, %v2353_v52  ;;  %vm2531_vm9 = vweird.f32 %v2408_v54 }
 0x79e   :  { %v2514_v27 = vmul.f32 %v8648_v16, %v2513_v53  ;;  %v2688_v51 = vsel %vm299_vm2, %v10728_v41, -inf  ;;  %v2424_v33 = vsel %vm299_vm2, %v10730_v34, 0.0  ;;  %vm2536_vm6 = vcmp.eq.f32.partialorder %v2535_v59, 8.507059e+37 }
 0x79f   :  { %2689 = vmax.xlane.f32.xlu1 %v2688_v51  ;;  %8653 = vpow2.f32 %v2382_v25  ;;  %2425 = vadd.xlane.f32.xlu2 %v2424_v33 }
 0x7a0   :  { %v2515_v63 = vadd.f32 %v8648_v16, %v2514_v27 }
 0x7a1   :  { %v8652_v46 = vpop.eup %8651 }
 0x7a2   :  { %v2519_v17 = vsel %vm2518_vm4, %v8648_v16, %v2515_v63  ;;  %v2527_v31 = vmul.f32 %v8652_v46, %v2408_v54  ;;  %v2411_v42 = vpop.xlane.xlu2 %2410  ;;  %v2336_v21 = vpop.xlane.xlu0 %2335  ;;  %vm2532_vm13 = vweird.f32 %v8652_v46 }
 0x7a3   :  { %v2524_v6 = vsel %vm2521_vm5, %v2523_v49, %v2519_v17  ;;  %8655 = vrcp.f32 %v2411_v42  ;;  %v2354_v57 = vsub.f32 %v10673_v3, %v2336_v21  ;;  %vm2533_vm15 = vmor %vm2531_vm9, %vm2532_vm13  ;;  %v2538_v3 = vor.u32 1.1754944e-38, %v2537_v43 }
 0x7a4   :  { %v2528_v23 = vsub.f32 1.0, %v2527_v31  ;;  %v10738_v61 = vmul.f32 %v10660_v11, %v2524_v6  ;;  %v2552_v56 = vand.u32 2147483648, %v2411_v42  ;;  %v2550_v55 = vand.u32 2147483647, %v2411_v42 }
 0x7a5   :  { %v10740_v38 = vpop.eup %8653  ;;  %v2384_v47 = vmul.f32 1.442695, %v2354_v57  ;;  %vm2546_vm8 = vweird.f32 %v2411_v42 }
 0x7a6   :  { %v2529_v58 = vmul.f32 %v8652_v46, %v2528_v23  ;;  %v2691_v7 = vsel %vm299_vm2, %v10738_v61, -inf  ;;  %v2427_v30 = vsel %vm299_vm2, %v10740_v38, 0.0  ;;  %vm2551_vm10 = vcmp.eq.f32.partialorder %v2550_v55, 8.507059e+37 }
 0x7a7   :  { %2692 = vmax.xlane.f32.xlu0 %v2691_v7  ;;  %8657 = vpow2.f32 %v2384_v47  ;;  %2428 = vadd.xlane.f32.xlu1 %v2427_v30 }
 0x7a8   :  { %v2530_v0 = vadd.f32 %v8652_v46, %v2529_v58 }
 0x7a9   :  { %v8656_v11 = vpop.eup %8655 }
 0x7aa   :  { %v2534_v12 = vsel %vm2533_vm15, %v8652_v46, %v2530_v0  ;;  %v2542_v29 = vmul.f32 %v8656_v11, %v2411_v42  ;;  %v2339_v22 = vpop.xlane.xlu0 %2338  ;;  %vm2547_vm14 = vweird.f32 %v8656_v11 }
 0x7ab   :  { %v2539_v26 = vsel %vm2536_vm6, %v2538_v3, %v2534_v12  ;;  %v2355_v14 = vsub.f32 %v10681_v39, %v2339_v22  ;;  %vm2548_vm1 = vmor %vm2546_vm8, %vm2547_vm14 }
 0x7ac   :  { %v2543_v62 = vsub.f32 1.0, %v2542_v29  ;;  %v10748_v28 = vmul.f32 %v10669_v19, %v2539_v26  ;;  %v2553_v19 = vor.u32 1.1754944e-38, %v2552_v56 }
 0x7ad   :  { %v2386_v1 = vmul.f32 1.442695, %v2355_v14  ;;  %v10750_v15 = vpop.eup %8657 }
 0x7ae   :  { %v2544_v37 = vmul.f32 %v8656_v11, %v2543_v62  ;;  %v2694_v18 = vsel %vm299_vm2, %v10748_v28, -inf  ;;  %v2430_v5 = vsel %vm299_vm2, %v10750_v15, 0.0 }
 0x7af   :  { %8659 = vpow2.f32 %v2386_v1  ;;  %2695 = vmax.xlane.f32.xlu0 %v2694_v18  ;;  %2431 = vadd.xlane.f32.xlu1 %v2430_v5 }
 0x7b0   :  { %v2545_v39 = vadd.f32 %v8656_v11, %v2544_v37 }
 0x7b2   :  { %v2549_v16 = vsel %vm2548_vm1, %v8656_v11, %v2545_v39 }
 0x7b3   :  { %v2554_v35 = vsel %vm2551_vm10, %v2553_v19, %v2549_v16 }
 0x7b4   :  { %v10757_v48 = vmul.f32 %v10677_v8, %v2554_v35 }
 0x7b5   :  { %v10759_v20 = vpop.eup %8659 }
 0x7b6   :  { %v2697_v54 = vsel %vm299_vm2, %v10757_v48, -inf  ;;  %v2433_v9 = vsel %vm299_vm2, %v10759_v20, 0.0 }
 0x7b7   :  { %2698 = vmax.xlane.f32.xlu0 %v2697_v54  ;;  %2434 = vadd.xlane.f32.xlu1 %v2433_v9 }
 0x7f2   :  { %v2414_v24 = vpop.xlane.xlu2 %2413  ;;  %v2678_v53 = vpop.xlane.xlu1 %2677 }
 0x7f3   :  { %8661 = vrcp.f32 %v2414_v24  ;;  %vm2724_vm3 = vcmp.ge.f32.partialorder %v10688_v45, %v2678_v53  ;;  %v2567_v46 = vand.u32 2147483648, %v2414_v24  ;;  %v2565_v31 = vand.u32 2147483647, %v2414_v24 }
 0x7f4   :  { %v2740_v52 = vsel %vm2724_vm3, %v9327_v40, 4  ;;  %vm2561_vm5 = vweird.f32 %v2414_v24 }
 0x7f5   :  { %v10768_v8 = vsel %vm299_vm2, %v2740_v52, 2147483647  ;;  %v2568_v57 = vor.u32 1.1754944e-38, %v2567_v46  ;;  %vm2566_vm9 = vcmp.eq.f32.partialorder %v2565_v31, 8.507059e+37 }
 0x7f6   :  { %v2758_v2 = vshra.s32 %v10768_v8, 16 }
 0x7f8   :  { %v10771_v27 = vcvt.s32.f32 %v2758_v2 }
 0x7f9   :  { %v8662_v36 = vpop.eup %8661 }
 0x7fa   :  { %v2557_v25 = vmul.f32 %v8662_v36, %v2414_v24  ;;  %v2417_v51 = vpop.xlane.xlu2 %2416  ;;  %v2681_v33 = vpop.xlane.xlu1 %2680  ;;  %2761 = vmin.xlane.f32.xlu2 %v10771_v27  ;;  %vm2562_vm4 = vweird.f32 %v8662_v36 }
 0x7fb   :  { %8663 = vrcp.f32 %v2417_v51  ;;  %vm2725_vm12 = vcmp.ge.f32.partialorder %v10698_v44, %v2681_v33  ;;  %vm2563_vm13 = vmor %vm2561_vm5, %vm2562_vm4  ;;  %v2580_v12 = vand.u32 2147483647, %v2417_v51  ;;  %v2582_v29 = vand.u32 2147483648, %v2417_v51 }
 0x7fc   :  { %v2558_v63 = vsub.f32 1.0, %v2557_v25  ;;  %v2741_v49 = vsel %vm2725_vm12, %v9327_v40, 4  ;;  %vm2576_vm14 = vweird.f32 %v2417_v51 }
 0x7fd   :  { %v10777_v42 = vsel %vm299_vm2, %v2741_v49, 2147483647  ;;  %vm2581_vm1 = vcmp.eq.f32.partialorder %v2580_v12, 8.507059e+37 }
 0x7fe   :  { %v2559_v17 = vmul.f32 %v8662_v36, %v2558_v63  ;;  %v2773_v21 = vshra.s32 %v10777_v42, 16 }
 0x800   :  { %v2560_v6 = vadd.f32 %v8662_v36, %v2559_v17  ;;  %v10780_v59 = vcvt.s32.f32 %v2773_v21 }
 0x801   :  { %v8664_v23 = vpop.eup %8663 }
 0x802   :  { %v2684_v43 = vpop.xlane.xlu0 %2683  ;;  %v2564_v58 = vsel %vm2563_vm13, %v8662_v36, %v2560_v6  ;;  %v2572_v47 = vmul.f32 %v8664_v23, %v2417_v51  ;;  %v2420_v7 = vpop.xlane.xlu1 %2419  ;;  %2776 = vmin.xlane.f32.xlu2 %v10780_v59  ;;  %vm2577_vm6 = vweird.f32 %v8664_v23 }
 0x803   :  { %vm2726_vm15 = vcmp.ge.f32.partialorder %v10708_v10, %v2684_v43  ;;  %v2569_v30 = vsel %vm2566_vm9, %v2568_v57, %v2564_v58  ;;  %8665 = vrcp.f32 %v2420_v7  ;;  %vm2578_vm8 = vmor %vm2576_vm14, %vm2577_vm6  ;;  %v2595_v9 = vand.u32 2147483647, %v2420_v7 }
 0x804   :  { %v2573_v0 = vsub.f32 1.0, %v2572_v47  ;;  %v2742_v11 = vsel %vm2726_vm15, %v9327_v40, 4  ;;  %v10786_v3 = vmul.f32 %v10690_v60, %v2569_v30  ;;  %v2583_v60 = vor.u32 1.1754944e-38, %v2582_v29 }
 0x805   :  { %v10789_v22 = vsel %vm299_vm2, %v2742_v11, 2147483647  ;;  %v2597_v24 = vand.u32 2147483648, %v2420_v7  ;;  %vm2591_vm12 = vweird.f32 %v2420_v7  ;;  %vm2596_vm5 = vcmp.eq.f32.partialorder %v2595_v9, 8.507059e+37 }
 0x806   :  { %v2574_v26 = vmul.f32 %v8664_v23, %v2573_v0  ;;  %v2700_v14 = vsel %vm299_vm2, %v10786_v3, -inf  ;;  %v2788_v62 = vshra.s32 %v10789_v22, 16 }
 0x807   :  { %2701 = vmax.xlane.f32.xlu0 %v2700_v14  ;;  %v2598_v33 = vor.u32 1.1754944e-38, %v2597_v24 }
 0x808   :  { %v2575_v56 = vadd.f32 %v8664_v23, %v2574_v26  ;;  %v10794_v1 = vcvt.s32.f32 %v2788_v62 }
 0x809   :  { %v8666_v37 = vpop.eup %8665 }
 0x80a   :  { %v2687_v55 = vpop.xlane.xlu2 %2686  ;;  %v2579_v18 = vsel %vm2578_vm8, %v8664_v23, %v2575_v56  ;;  %v2587_v5 = vmul.f32 %v8666_v37, %v2420_v7  ;;  %v2423_v39 = vpop.xlane.xlu0 %2422  ;;  %2791 = vmin.xlane.f32.xlu2 %v10794_v1  ;;  %vm2592_vm3 = vweird.f32 %v8666_v37 }
 0x80b   :  { %vm2727_vm10 = vcmp.ge.f32.partialorder %v10718_v13, %v2687_v55  ;;  %v2584_v19 = vsel %vm2581_vm1, %v2583_v60, %v2579_v18  ;;  %8667 = vrcp.f32 %v2423_v39  ;;  %vm2593_vm4 = vmor %vm2591_vm12, %vm2592_vm3  ;;  %v2612_v57 = vand.u32 2147483648, %v2423_v39 }
 0x80c   :  { %v2743_v16 = vsel %vm2727_vm10, %v9327_v40, 4  ;;  %v2588_v35 = vsub.f32 1.0, %v2587_v5  ;;  %v10804_v2 = vmul.f32 %v10700_v50, %v2584_v19  ;;  %v2610_v47 = vand.u32 2147483647, %v2423_v39 }
 0x80d   :  { %v10800_v54 = vsel %vm299_vm2, %v2743_v16, 2147483647  ;;  %vm2606_vm15 = vweird.f32 %v2423_v39 }
 0x80e   :  { %v2803_v53 = vshra.s32 %v10800_v54, 16  ;;  %v2589_v52 = vmul.f32 %v8666_v37, %v2588_v35  ;;  %v2703_v50 = vsel %vm299_vm2, %v10804_v2, -inf  ;;  %vm2611_vm14 = vcmp.eq.f32.partialorder %v2610_v47, 8.507059e+37 }
 0x810   :  { %v10806_v36 = vcvt.s32.f32 %v2803_v53  ;;  %v2590_v25 = vadd.f32 %v8666_v37, %v2589_v52 }
 0x811   :  { %v8668_v51 = vpop.eup %8667 }
 0x812   :  { %v2690_v63 = vpop.xlane.xlu1 %2689  ;;  %2806 = vmin.xlane.f32.xlu1 %v10806_v36  ;;  %v2594_v46 = vsel %vm2593_vm4, %v8666_v37, %v2590_v25  ;;  %v2602_v49 = vmul.f32 %v8668_v51, %v2423_v39  ;;  %v2426_v17 = vpop.xlane.xlu2 %2425  ;;  %2704 = vmax.xlane.f32.xlu2 %v2703_v50  ;;  %vm2607_vm9 = vweird.f32 %v8668_v51 }
 0x813   :  { %vm2728_vm13 = vcmp.ge.f32.partialorder %v10728_v41, %v2690_v63  ;;  %v2599_v31 = vsel %vm2596_vm5, %v2598_v33, %v2594_v46  ;;  %8669 = vrcp.f32 %v2426_v17  ;;  %vm2608_vm6 = vmor %vm2606_vm15, %vm2607_vm9  ;;  %v2627_v55 = vand.u32 2147483648, %v2426_v17 }
 0x814   :  { %v2603_v21 = vsub.f32 1.0, %v2602_v49  ;;  %v2744_v6 = vsel %vm2728_vm13, %v9327_v40, 4  ;;  %v10814_v23 = vmul.f32 %v10710_v32, %v2599_v31  ;;  %v2613_v32 = vor.u32 1.1754944e-38, %v2612_v57 }
 0x815   :  { %v10817_v43 = vsel %vm299_vm2, %v2744_v6, 2147483647  ;;  %v2625_v19 = vand.u32 2147483647, %v2426_v17  ;;  %vm2621_vm10 = vweird.f32 %v2426_v17  ;;  %v2628_v53 = vor.u32 1.1754944e-38, %v2627_v55 }
 0x816   :  { %v2604_v58 = vmul.f32 %v8668_v51, %v2603_v21  ;;  %v2818_v7 = vshra.s32 %v10817_v43, 16  ;;  %v2706_v11 = vsel %vm299_vm2, %v10814_v23, -inf }
 0x817   :  { %vm2626_vm12 = vcmp.eq.f32.partialorder %v2625_v19, 8.507059e+37 }
 0x818   :  { %v2605_v30 = vadd.f32 %v8668_v51, %v2604_v58  ;;  %v10820_v0 = vcvt.s32.f32 %v2818_v7 }
 0x819   :  { %v8670_v12 = vpop.eup %8669 }
 0x81a   :  { %2707 = vmax.xlane.f32.xlu1 %v2706_v11  ;;  %v2693_v29 = vpop.xlane.xlu0 %2692  ;;  %v2609_v26 = vsel %vm2608_vm6, %v8668_v51, %v2605_v30  ;;  %v2617_v14 = vmul.f32 %v8670_v12, %v2426_v17  ;;  %v2429_v62 = vpop.xlane.xlu1 %2428  ;;  %2821 = vmin.xlane.f32.xlu0 %v10820_v0  ;;  %vm2622_vm1 = vweird.f32 %v8670_v12 }
 0x81b   :  { %vm2729_vm8 = vcmp.ge.f32.partialorder %v10738_v61, %v2693_v29  ;;  %v2614_v56 = vsel %vm2611_vm14, %v2613_v32, %v2609_v26  ;;  %8671 = vrcp.f32 %v2429_v62  ;;  %vm2623_vm3 = vmor %vm2621_vm10, %vm2622_vm1  ;;  %v2642_v17 = vand.u32 2147483648, %v2429_v62 }
 0x81c   :  { %v2618_v37 = vsub.f32 1.0, %v2617_v14  ;;  %v2745_v60 = vsel %vm2729_vm8, %v9327_v40, 4  ;;  %v10831_v5 = vmul.f32 %v10720_v4, %v2614_v56  ;;  %v2640_v6 = vand.u32 2147483647, %v2429_v62 }
 0x81d   :  { %v10828_v18 = vsel %vm299_vm2, %v2745_v60, 2147483647  ;;  %vm2636_vm13 = vweird.f32 %v2429_v62  ;;  %v2643_v30 = vor.u32 1.1754944e-38, %v2642_v17 }
 0x81e   :  { %v2619_v39 = vmul.f32 %v8670_v12, %v2618_v37  ;;  %v2833_v16 = vshra.s32 %v10828_v18, 16  ;;  %v2709_v52 = vsel %vm299_vm2, %v10831_v5, -inf  ;;  %vm2641_vm15 = vcmp.eq.f32.partialorder %v2640_v6, 8.507059e+37 }
 0x820   :  { %v2620_v35 = vadd.f32 %v8670_v12, %v2619_v39  ;;  %v10834_v9 = vcvt.s32.f32 %v2833_v16 }
 0x821   :  { %v8672_v24 = vpop.eup %8671 }
 0x822   :  { %v2696_v25 = vpop.xlane.xlu0 %2695  ;;  %v2624_v51 = vsel %vm2623_vm3, %v8670_v12, %v2620_v35  ;;  %v2632_v4 = vmul.f32 %v8672_v24, %v2429_v62  ;;  %v2432_v33 = vpop.xlane.xlu1 %2431  ;;  %2710 = vmax.xlane.f32.xlu0 %v2709_v52  ;;  %2836 = vmin.xlane.f32.xlu2 %v10834_v9  ;;  %vm2637_vm5 = vweird.f32 %v8672_v24 }
 0x823   :  { %vm2730_vm4 = vcmp.ge.f32.partialorder %v10748_v28, %v2696_v25  ;;  %v2629_v63 = vsel %vm2626_vm12, %v2628_v53, %v2624_v51  ;;  %8673 = vrcp.f32 %v2432_v33  ;;  %vm2638_vm9 = vmor %vm2636_vm13, %vm2637_vm5  ;;  %v2657_v56 = vand.u32 2147483648, %v2432_v33 }
 0x824   :  { %v2633_v46 = vsub.f32 1.0, %v2632_v4  ;;  %v2746_v49 = vsel %vm2730_vm4, %v9327_v40, 4  ;;  %v10845_v31 = vmul.f32 %v10730_v34, %v2629_v63  ;;  %v2655_v39 = vand.u32 2147483647, %v2432_v33 }
 0x825   :  { %v10842_v50 = vsel %vm299_vm2, %v2746_v49, 2147483647  ;;  %vm2651_vm8 = vweird.f32 %v2432_v33  ;;  %v2658_v53 = vor.u32 1.1754944e-38, %v2657_v56 }
 0x826   :  { %v2634_v21 = vmul.f32 %v8672_v24, %v2633_v46  ;;  %v2848_v57 = vshra.s32 %v10842_v50, 16  ;;  %v2712_v11 = vsel %vm299_vm2, %v10845_v31, -inf  ;;  %vm2656_vm10 = vcmp.eq.f32.partialorder %v2655_v39, 8.507059e+37 }
 0x828   :  { %v2635_v58 = vadd.f32 %v8672_v24, %v2634_v21  ;;  %v10848_v47 = vcvt.s32.f32 %v2848_v57 }
 0x829   :  { %v8674_v7 = vpop.eup %8673 }
 0x82a   :  { %v2699_v12 = vpop.xlane.xlu0 %2698  ;;  %v2639_v32 = vsel %vm2638_vm9, %v8672_v24, %v2635_v58  ;;  %v2647_v34 = vmul.f32 %v8674_v7, %v2432_v33  ;;  %v2435_v29 = vpop.xlane.xlu1 %2434  ;;  %2713 = vmax.xlane.f32.xlu0 %v2712_v11  ;;  %2851 = vmin.xlane.f32.xlu2 %v10848_v47  ;;  %vm2652_vm14 = vweird.f32 %v8674_v7 }
 0x82b   :  { %vm2731_vm6 = vcmp.ge.f32.partialorder %v10757_v48, %v2699_v12  ;;  %v2644_v26 = vsel %vm2641_vm15, %v2643_v30, %v2639_v32  ;;  %8675 = vrcp.f32 %v2435_v29  ;;  %vm2653_vm1 = vmor %vm2651_vm8, %vm2652_vm14  ;;  %v2672_v63 = vand.u32 2147483648, %v2435_v29 }
 0x82c   :  { %v2648_v14 = vsub.f32 1.0, %v2647_v34  ;;  %v2747_v62 = vsel %vm2731_vm6, %v9327_v40, 4  ;;  %v10859_v60 = vmul.f32 %v10740_v38, %v2644_v26  ;;  %v2670_v49 = vand.u32 2147483647, %v2435_v29 }
 0x82d   :  { %v10856_v37 = vsel %vm299_vm2, %v2747_v62, 2147483647  ;;  %vm2666_vm12 = vweird.f32 %v2435_v29  ;;  %v2673_v21 = vor.u32 1.1754944e-38, %v2672_v63  ;;  %v2757_v30 = vand.u32 65535, %v10768_v8 }
 0x82e   :  { %v2649_v55 = vmul.f32 %v8674_v7, %v2648_v14  ;;  %v2863_v19 = vshra.s32 %v10856_v37, 16  ;;  %v2715_v52 = vsel %vm299_vm2, %v10859_v60, -inf  ;;  %vm2671_vm5 = vcmp.eq.f32.partialorder %v2670_v49, 8.507059e+37 }
 0x82f   :  { %v2759_v12 = vcvt.s32.f32 %v2757_v30  ;;  %v2772_v34 = vand.u32 65535, %v10777_v42  ;;  %v2787_v8 = vand.u32 65535, %v10789_v22  ;;  %v2802_v22 = vand.u32 65535, %v10800_v54 }
 0x830   :  { %v2650_v16 = vadd.f32 %v8674_v7, %v2649_v55  ;;  %v10862_v35 = vcvt.s32.f32 %v2863_v19  ;;  %v2817_v54 = vand.u32 65535, %v10817_v43 }
 0x831   :  { %v8676_v24 = vpop.eup %8675  ;;  %v2789_v42 = vcvt.s32.f32 %v2787_v8 }
 0x832   :  { %v2654_v25 = vsel %vm2653_vm1, %v8674_v7, %v2650_v16  ;;  %v2662_v51 = vmul.f32 %v8676_v24, %v2435_v29  ;;  %2716 = vmax.xlane.f32.xlu0 %v2715_v52  ;;  %2866 = vmin.xlane.f32.xlu2 %v10862_v35  ;;  %vm2667_vm3 = vweird.f32 %v8676_v24  ;;  %v2804_v16 = vcvt.s32.f32 %v2802_v22 }
 0x833   :  { %v2659_v38 = vsel %vm2656_vm10, %v2658_v53, %v2654_v25  ;;  %vm2668_vm4 = vmor %vm2666_vm12, %vm2667_vm3 }
 0x834   :  { %v2663_v4 = vsub.f32 1.0, %v2662_v51  ;;  %v10868_v46 = vmul.f32 %v10750_v15, %v2659_v38 }
 0x836   :  { %14715 = vst [vmem:[#allocation2_spill] sm:$0xff] %v10868_v46  ;;  %v2664_v33 = vmul.f32 %v8676_v24, %v2663_v4  ;;  %v2718_v6 = vsel %vm299_vm2, %v10868_v46, -inf  ;;  %v2819_v4 = vcvt.s32.f32 %v2817_v54 }
 0x838   :  { %v2665_v17 = vadd.f32 %v8676_v24, %v2664_v33 }
 0x83a   :  { %v2669_v57 = vsel %vm2668_vm4, %v8676_v24, %v2665_v17  ;;  %2719 = vmax.xlane.f32.xlu0 %v2718_v6  ;;  %v2832_v17 = vand.u32 65535, %v10828_v18 }
 0x83b   :  { %v2674_v58 = vsel %vm2671_vm5, %v2673_v21, %v2669_v57 }
 0x83c   :  { %v10873_v7 = vmul.f32 %v10759_v20, %v2674_v58  ;;  %v2774_v20 = vcvt.s32.f32 %v2772_v34  ;;  %v2834_v58 = vcvt.s32.f32 %v2832_v17 }
 0x83e   :  { %14716 = vst [vmem:[#allocation5_spill] sm:$0xff] %v10873_v7  ;;  %v2721_v15 = vsel %vm299_vm2, %v10873_v7, -inf }
 0x842   :  { %2722 = vmax.xlane.f32.xlu0 %v2721_v15 }
 0x86d   :  { %v10878_v11 = vpop.xlane.xlu2 %2761 }
 0x86e   :  { %vm2763_vm13 = vcmp.eq.f32.partialorder %v10771_v27, %v10878_v11 }
 0x86f   :  { %v2764_v32 = vsel %vm2763_vm13, %v2759_v12, inf  ;;  %v2847_v12 = vand.u32 65535, %v10842_v50 }
 0x870   :  { %2765 = vmin.xlane.f32.xlu1 %v2764_v32 }
 0x875   :  { %v10883_v29 = vpop.xlane.xlu2 %2776 }
 0x876   :  { %vm2778_vm9 = vcmp.eq.f32.partialorder %v10780_v59, %v10883_v29 }
 0x877   :  { %v2779_v26 = vsel %vm2778_vm9, %v2774_v20, inf }
 0x878   :  { %2780 = vmin.xlane.f32.xlu1 %v2779_v26  ;;  %v2849_v26 = vcvt.s32.f32 %v2847_v12  ;;  %v2783_v12 = vcvt.f32.s32 %v10883_v29 }
 0x87a   :  { %v2702_v14 = vpop.xlane.xlu0 %2701 }
 0x87b   :  { %vm2732_vm15 = vcmp.ge.f32.partialorder %v10786_v3, %v2702_v14 }
 0x87c   :  { %v2748_v62 = vsel %vm2732_vm15, %v9327_v40, 4 }
 0x87d   :  { %v10891_v27 = vsel %vm299_vm2, %v2748_v62, 2147483647  ;;  %v10893_v56 = vpop.xlane.xlu2 %2791  ;;  %v2862_v62 = vand.u32 65535, %v10856_v37 }
 0x87e   :  { %v2878_v55 = vshra.s32 %v10891_v27, 16  ;;  %vm2793_vm6 = vcmp.eq.f32.partialorder %v10794_v1, %v10893_v56  ;;  %v2798_v29 = vcvt.f32.s32 %v10893_v56 }
 0x87f   :  { %v2794_v59 = vsel %vm2793_vm6, %v2789_v42, inf  ;;  %v2864_v22 = vcvt.s32.f32 %v2862_v62  ;;  %v2877_v62 = vand.u32 65535, %v10891_v27 }
 0x880   :  { %v10898_v39 = vcvt.s32.f32 %v2878_v55  ;;  %2795 = vmin.xlane.f32.xlu1 %v2794_v59 }
 0x881   :  { %v2879_v56 = vcvt.s32.f32 %v2877_v62 }
 0x882   :  { %2881 = vmin.xlane.f32.xlu2 %v10898_v39 }
 0x885   :  { %v10902_v19 = vpop.xlane.xlu1 %2806  ;;  %v2705_v24 = vpop.xlane.xlu2 %2704 }
 0x886   :  { %vm2808_vm14 = vcmp.eq.f32.partialorder %v10806_v36, %v10902_v19  ;;  %vm2733_vm8 = vcmp.ge.f32.partialorder %v10804_v2, %v2705_v24 }
 0x887   :  { %v2809_v53 = vsel %vm2808_vm14, %v2804_v16, inf  ;;  %v2749_v1 = vsel %vm2733_vm8, %v9327_v40, 4 }
 0x888   :  { %v10909_v52 = vsel %vm299_vm2, %v2749_v1, 2147483647  ;;  %2810 = vmin.xlane.f32.xlu1 %v2809_v53 }
 0x889   :  { %v2893_v25 = vshra.s32 %v10909_v52, 16 }
 0x88b   :  { %v10913_v38 = vcvt.s32.f32 %v2893_v25 }
 0x88d   :  { %v2708_v51 = vpop.xlane.xlu1 %2707  ;;  %v10916_v36 = vpop.xlane.xlu0 %2821  ;;  %2896 = vmin.xlane.f32.xlu2 %v10913_v38 }
 0x88e   :  { %vm2734_vm1 = vcmp.ge.f32.partialorder %v10814_v23, %v2708_v51  ;;  %vm2823_vm10 = vcmp.eq.f32.partialorder %v10820_v0, %v10916_v36 }
 0x88f   :  { %v2750_v63 = vsel %vm2734_vm1, %v9327_v40, 4  ;;  %v2824_v43 = vsel %vm2823_vm10, %v2819_v4, inf }
 0x890   :  { %v10923_v33 = vsel %vm299_vm2, %v2750_v63, 2147483647  ;;  %2825 = vmin.xlane.f32.xlu1 %v2824_v43 }
 0x891   :  { %v2908_v49 = vshra.s32 %v10923_v33, 16 }
 0x893   :  { %v10927_v21 = vcvt.s32.f32 %v2908_v49 }
 0x895   :  { %v10929_v6 = vpop.xlane.xlu2 %2836  ;;  %v2711_v57 = vpop.xlane.xlu0 %2710  ;;  %2911 = vmin.xlane.f32.xlu2 %v10927_v21 }
 0x896   :  { %vm2735_vm3 = vcmp.ge.f32.partialorder %v10831_v5, %v2711_v57  ;;  %vm2838_vm12 = vcmp.eq.f32.partialorder %v10834_v9, %v10929_v6  ;;  %v2768_v57 = vcvt.f32.s32 %v10878_v11 }
 0x897   :  { %v2751_v0 = vsel %vm2735_vm3, %v9327_v40, 4  ;;  %v2839_v15 = vsel %vm2838_vm12, %v2834_v58, inf }
 0x898   :  { %v10937_v30 = vsel %vm299_vm2, %v2751_v0, 2147483647  ;;  %2840 = vmin.xlane.f32.xlu0 %v2839_v15  ;;  %v2769_v0 = vshll.u32 %v2768_v57, 16 }
 0x899   :  { %v2923_v18 = vshra.s32 %v10937_v30, 16 }
 0x89b   :  { %v10941_v32 = vcvt.s32.f32 %v2923_v18 }
 0x89d   :  { %v10943_v34 = vpop.xlane.xlu2 %2851  ;;  %2926 = vmin.xlane.f32.xlu1 %v10941_v32  ;;  %v2714_v20 = vpop.xlane.xlu0 %2713 }
 0x89e   :  { %vm2736_vm4 = vcmp.ge.f32.partialorder %v10845_v31, %v2714_v20  ;;  %vm2853_vm5 = vcmp.eq.f32.partialorder %v10848_v47, %v10943_v34 }
 0x89f   :  { %v2752_v9 = vsel %vm2736_vm4, %v9327_v40, 4  ;;  %v2854_v14 = vsel %vm2853_vm5, %v2849_v26, inf }
 0x8a0   :  { %v10951_v8 = vsel %vm299_vm2, %v2752_v9, 2147483647  ;;  %2855 = vmin.xlane.f32.xlu0 %v2854_v14  ;;  %v2784_v9 = vshll.u32 %v2783_v12, 16 }
 0x8a1   :  { %v2938_v50 = vshra.s32 %v10951_v8, 16 }
 0x8a3   :  { %v10955_v42 = vcvt.s32.f32 %v2938_v50 }
 0x8a5   :  { %v10957_v55 = vpop.xlane.xlu2 %2866  ;;  %2941 = vmin.xlane.f32.xlu1 %v10955_v42  ;;  %v2717_v59 = vpop.xlane.xlu0 %2716 }
 0x8a6   :  { %vm2737_vm13 = vcmp.ge.f32.partialorder %v10859_v60, %v2717_v59  ;;  %vm2868_vm9 = vcmp.eq.f32.partialorder %v10862_v35, %v10957_v55 }
 0x8a7   :  { %v2753_v47 = vsel %vm2737_vm13, %v9327_v40, 4  ;;  %v2869_v16 = vsel %vm2868_vm9, %v2864_v22, inf }
 0x8a8   :  { %v10965_v24 = vsel %vm299_vm2, %v2753_v47, 2147483647  ;;  %2870 = vmin.xlane.f32.xlu0 %v2869_v16  ;;  %v2799_v16 = vshll.u32 %v2798_v29, 16  ;;  %v2907_v29 = vand.u32 65535, %v10923_v33 }
 0x8a9   :  { %v2953_v37 = vshra.s32 %v10965_v24, 16 }
 0x8ab   :  { %v10968_v53 = vcvt.s32.f32 %v2953_v37 }
 0x8ad   :  { %2956 = vmin.xlane.f32.xlu1 %v10968_v53  ;;  %v2720_v1 = vpop.xlane.xlu0 %2719 }
 0x8ae   :  { %vm2738_vm15 = vcmp.ge.f32.partialorder %v10868_v46, %v2720_v1 }
 0x8af   :  { %v2754_v54 = vsel %vm2738_vm15, %v9327_v40, 4 }
 0x8b0   :  { %v10974_v35 = vsel %vm299_vm2, %v2754_v54, 2147483647 }
 0x8b1   :  { %v2968_v25 = vshra.s32 %v10974_v35, 16 }
 0x8b3   :  { %v10977_v51 = vcvt.s32.f32 %v2968_v25  ;;  %v2813_v25 = vcvt.f32.s32 %v10902_v19  ;;  %v2828_v19 = vcvt.f32.s32 %v10916_v36 }
 0x8b5   :  { %2971 = vmin.xlane.f32.xlu1 %v10977_v51  ;;  %v2723_v4 = vpop.xlane.xlu0 %2722 }
 0x8b6   :  { %vm2739_vm6 = vcmp.ge.f32.partialorder %v10873_v7, %v2723_v4 }
 0x8b7   :  { %v2755_v63 = vsel %vm2739_vm6, %v9327_v40, 4 }
 0x8b8   :  { %v10983_v43 = vsel %vm299_vm2, %v2755_v63, 2147483647 }
 0x8b9   :  { %v2983_v49 = vshra.s32 %v10983_v43, 16 }
 0x8bb   :  { %v10986_v17 = vcvt.s32.f32 %v2983_v49 }
 0x8bd   :  { %2986 = vmin.xlane.f32.xlu1 %v10986_v17 }
 0x8e3   :  { %v2766_v58 = vpop.xlane.xlu1 %2765 }
 0x8e4   :  { %v2767_v15 = vcvt.f32.s32 %v2766_v58  ;;  %v2892_v58 = vand.u32 65535, %v10909_v52 }
 0x8e6   :  { %v10990_v18 = vadd.s32 %v2769_v0, %v2767_v15  ;;  %v2894_v12 = vcvt.s32.f32 %v2892_v58 }
 0x8e8   :  { %vm2996_vm14 = vcmp.eq.s32.totalorder %v9327_v40, %v10990_v18 }
 0x8e9   :  { %v10999_v20 = vsel %vm2996_vm14, -inf, %v10688_v45 }
 0x8ea   :  { %v3060_v26 = vsel %vm299_vm2, %v10999_v20, -inf }
 0x8eb   :  { %v2781_v11 = vpop.xlane.xlu1 %2780  ;;  %3061 = vmax.xlane.f32.xlu2 %v3060_v26 }
 0x8ec   :  { %v2782_v14 = vcvt.f32.s32 %v2781_v11 }
 0x8ee   :  { %v11003_v50 = vadd.s32 %v2784_v9, %v2782_v14  ;;  %v2829_v9 = vshll.u32 %v2828_v19, 16 }
 0x8f0   :  { %vm2997_vm8 = vcmp.eq.s32.totalorder %v9327_v40, %v11003_v50 }
 0x8f1   :  { %v11013_v59 = vsel %vm2997_vm8, -inf, %v10698_v44 }
 0x8f2   :  { %v3063_v22 = vsel %vm299_vm2, %v11013_v59, -inf }
 0x8f3   :  { %v2796_v47 = vpop.xlane.xlu1 %2795  ;;  %3064 = vmax.xlane.f32.xlu2 %v3063_v22  ;;  %v2843_v22 = vcvt.f32.s32 %v10929_v6 }
 0x8f4   :  { %v2797_v37 = vcvt.f32.s32 %v2796_v47 }
 0x8f5   :  { %v11017_v1 = vpop.xlane.xlu2 %2881 }
 0x8f6   :  { %vm2883_vm1 = vcmp.eq.f32.partialorder %v10898_v39, %v11017_v1  ;;  %v11021_v27 = vadd.s32 %v2799_v16, %v2797_v37  ;;  %v2814_v39 = vshll.u32 %v2813_v25, 16  ;;  %v2909_v16 = vcvt.s32.f32 %v2907_v29 }
 0x8f7   :  { %v2884_v54 = vsel %vm2883_vm1, %v2879_v56, inf  ;;  %v2844_v56 = vshll.u32 %v2843_v22, 16  ;;  %v2922_v25 = vand.u32 65535, %v10937_v30 }
 0x8f8   :  { %2885 = vmin.xlane.f32.xlu0 %v2884_v54  ;;  %vm2998_vm10 = vcmp.eq.s32.totalorder %v9327_v40, %v11021_v27 }
 0x8f9   :  { %v11030_v4 = vsel %vm2998_vm10, -inf, %v10708_v10 }
 0x8fa   :  { %v3066_v63 = vsel %vm299_vm2, %v11030_v4, -inf }
 0x8fb   :  { %v2811_v49 = vpop.xlane.xlu1 %2810  ;;  %3067 = vmax.xlane.f32.xlu2 %v3066_v63 }
 0x8fc   :  { %v2812_v57 = vcvt.f32.s32 %v2811_v49 }
 0x8fe   :  { %v11035_v0 = vadd.s32 %v2814_v39, %v2812_v57  ;;  %v2924_v39 = vcvt.s32.f32 %v2922_v25  ;;  %v2967_v25 = vand.u32 65535, %v10974_v35 }
 0x900   :  { %v11038_v15 = vpop.xlane.xlu2 %2896  ;;  %vm2999_vm3 = vcmp.eq.s32.totalorder %v9327_v40, %v11035_v0 }
 0x901   :  { %v11046_v26 = vsel %vm2999_vm3, -inf, %v10718_v13  ;;  %vm2898_vm12 = vcmp.eq.f32.partialorder %v10913_v38, %v11038_v15 }
 0x902   :  { %v3069_v52 = vsel %vm299_vm2, %v11046_v26, -inf  ;;  %v2899_v11 = vsel %vm2898_vm12, %v2894_v12, inf }
 0x903   :  { %3070 = vmax.xlane.f32.xlu2 %v3069_v52  ;;  %2900 = vmin.xlane.f32.xlu0 %v2899_v11  ;;  %v2826_v36 = vpop.xlane.xlu1 %2825  ;;  %v2937_v52 = vand.u32 65535, %v10951_v8 }
 0x904   :  { %v2827_v14 = vcvt.f32.s32 %v2826_v36 }
 0x906   :  { %v11053_v62 = vadd.s32 %v2829_v9, %v2827_v14  ;;  %v2939_v9 = vcvt.s32.f32 %v2937_v52 }
 0x908   :  { %v11056_v47 = vpop.xlane.xlu2 %2911  ;;  %vm3000_vm4 = vcmp.eq.s32.totalorder %v9327_v40, %v11053_v62 }
 0x909   :  { %vm2913_vm5 = vcmp.eq.f32.partialorder %v10927_v21, %v11056_v47  ;;  %v11066_v38 = vsel %vm3000_vm4, -inf, %v10728_v41  ;;  %v2858_v21 = vcvt.f32.s32 %v10943_v34 }
 0x90a   :  { %v2914_v33 = vsel %vm2913_vm5, %v2909_v16, inf  ;;  %v3072_v37 = vsel %vm299_vm2, %v11066_v38, -inf }
 0x90b   :  { %v2841_v6 = vpop.xlane.xlu0 %2840  ;;  %2915 = vmin.xlane.f32.xlu0 %v2914_v33  ;;  %3073 = vmax.xlane.f32.xlu2 %v3072_v37  ;;  %v2859_v19 = vshll.u32 %v2858_v21, 16  ;;  %v2952_v33 = vand.u32 65535, %v10965_v24 }
 0x90c   :  { %v2842_v54 = vcvt.f32.s32 %v2841_v6 }
 0x90d   :  { %v2954_v6 = vcvt.s32.f32 %v2952_v33 }
 0x90e   :  { %v11071_v63 = vadd.s32 %v2844_v56, %v2842_v54 }
 0x910   :  { %v11074_v49 = vpop.xlane.xlu1 %2926  ;;  %vm3001_vm13 = vcmp.eq.s32.totalorder %v9327_v40, %v11071_v63 }
 0x911   :  { %vm2928_vm9 = vcmp.eq.f32.partialorder %v10941_v32, %v11074_v49  ;;  %v11084_v57 = vsel %vm3001_vm13, -inf, %v10738_v61  ;;  %v2873_v32 = vcvt.f32.s32 %v10957_v55 }
 0x912   :  { %v2929_v30 = vsel %vm2928_vm9, %v2924_v39, inf  ;;  %v3075_v58 = vsel %vm299_vm2, %v11084_v57, -inf  ;;  %v2969_v39 = vcvt.s32.f32 %v2967_v25  ;;  %v2903_v25 = vcvt.f32.s32 %v11038_v15 }
 0x913   :  { %3076 = vmax.xlane.f32.xlu1 %v3075_v58  ;;  %v2856_v34 = vpop.xlane.xlu0 %2855  ;;  %2930 = vmin.xlane.f32.xlu2 %v2929_v30  ;;  %v2874_v22 = vshll.u32 %v2873_v32, 16  ;;  %v2982_v30 = vand.u32 65535, %v10983_v43  ;;  %v2918_v15 = vcvt.f32.s32 %v11056_v47 }
 0x914   :  { %v2857_v12 = vcvt.f32.s32 %v2856_v34 }
 0x915   :  { %v2984_v34 = vcvt.s32.f32 %v2982_v30  ;;  %v2919_v47 = vshll.u32 %v2918_v15, 16 }
 0x916   :  { %v11089_v11 = vadd.s32 %v2859_v19, %v2857_v12 }
 0x918   :  { %v11092_v36 = vpop.xlane.xlu1 %2941  ;;  %vm3002_vm15 = vcmp.eq.s32.totalorder %v9327_v40, %v11089_v11 }
 0x919   :  { %vm2943_vm6 = vcmp.eq.f32.partialorder %v10955_v42, %v11092_v36  ;;  %v11102_v14 = vsel %vm3002_vm15, -inf, %v10748_v28 }
 0x91a   :  { %v2944_v8 = vsel %vm2943_vm6, %v2939_v9, inf  ;;  %v3078_v29 = vsel %vm299_vm2, %v11102_v14, -inf  ;;  %v2888_v9 = vcvt.f32.s32 %v11017_v1 }
 0x91b   :  { %3079 = vmax.xlane.f32.xlu1 %v3078_v29  ;;  %v2871_v55 = vpop.xlane.xlu0 %2870  ;;  %2945 = vmin.xlane.f32.xlu2 %v2944_v8 }
 0x91c   :  { %v2872_v16 = vcvt.f32.s32 %v2871_v55  ;;  %v2889_v55 = vshll.u32 %v2888_v9, 16 }
 0x91e   :  { %v11107_v37 = vadd.s32 %v2874_v22, %v2872_v16 }
 0x920   :  { %v11109_v42 = vpop.xlane.xlu1 %2956  ;;  %vm3003_vm1 = vcmp.eq.s32.totalorder %v9327_v40, %v11107_v37 }
 0x921   :  { %vm2958_vm12 = vcmp.eq.f32.partialorder %v10968_v53, %v11109_v42  ;;  %v11119_v56 = vsel %vm3003_vm1, -inf, %v10757_v48 }
 0x922   :  { %v2959_v54 = vsel %vm2958_vm12, %v2954_v6, inf  ;;  %v3081_v24 = vsel %vm299_vm2, %v11119_v56, -inf }
 0x923   :  { %3082 = vmax.xlane.f32.xlu1 %v3081_v24  ;;  %2960 = vmin.xlane.f32.xlu2 %v2959_v54 }
 0x928   :  { %v11124_v21 = vpop.xlane.xlu1 %2971 }
 0x929   :  { %vm2973_vm5 = vcmp.eq.f32.partialorder %v10977_v51, %v11124_v21 }
 0x92a   :  { %v2974_v53 = vsel %vm2973_vm5, %v2969_v39, inf }
 0x92b   :  { %2975 = vmin.xlane.f32.xlu2 %v2974_v53 }
 0x930   :  { %v11129_v58 = vpop.xlane.xlu1 %2986 }
 0x931   :  { %vm2988_vm9 = vcmp.eq.f32.partialorder %v10986_v17, %v11129_v58 }
 0x932   :  { %v2989_v19 = vsel %vm2988_vm9, %v2984_v34, inf  ;;  %v2904_v34 = vshll.u32 %v2903_v25, 16 }
 0x933   :  { %2990 = vmin.xlane.f32.xlu2 %v2989_v19 }
 0x95e   :  { %v3062_v12 = vpop.xlane.xlu2 %3061 }
 0x95f   :  { %vm3108_vm6 = vcmp.ge.f32.partialorder %v10999_v20, %v3062_v12 }
 0x960   :  { %v3124_v35 = vsel %vm3108_vm6, %v9327_v40, 4 }
 0x961   :  { %v11136_v52 = vsel %vm299_vm2, %v3124_v35, 2147483647 }
 0x962   :  { %v3142_v51 = vshra.s32 %v11136_v52, 16 }
 0x964   :  { %v11139_v32 = vcvt.s32.f32 %v3142_v51 }
 0x966   :  { %v3065_v43 = vpop.xlane.xlu2 %3064  ;;  %3145 = vmin.xlane.f32.xlu0 %v11139_v32 }
 0x967   :  { %vm3109_vm12 = vcmp.ge.f32.partialorder %v11013_v59, %v3065_v43 }
 0x968   :  { %v3125_v17 = vsel %vm3109_vm12, %v9327_v40, 4 }
 0x969   :  { %v11146_v20 = vsel %vm299_vm2, %v3125_v17, 2147483647 }
 0x96a   :  { %v3157_v29 = vshra.s32 %v11146_v20, 16 }
 0x96b   :  { %v2886_v8 = vpop.xlane.xlu0 %2885 }
 0x96c   :  { %v2887_v22 = vcvt.f32.s32 %v2886_v8  ;;  %v11149_v16 = vcvt.s32.f32 %v3157_v29 }
 0x96e   :  { %v11151_v33 = vadd.s32 %v2889_v55, %v2887_v22  ;;  %v3068_v6 = vpop.xlane.xlu2 %3067  ;;  %3160 = vmin.xlane.f32.xlu0 %v11149_v16 }
 0x96f   :  { %vm3110_vm5 = vcmp.ge.f32.partialorder %v11030_v4, %v3068_v6 }
 0x970   :  { %vm3004_vm9 = vcmp.eq.s32.totalorder %v9327_v40, %v11151_v33  ;;  %v3126_v59 = vsel %vm3110_vm5, %v9327_v40, 4 }
 0x971   :  { %v11162_v1 = vsel %vm3004_vm9, -inf, %v10786_v3  ;;  %v11165_v54 = vsel %vm299_vm2, %v3126_v59, 2147483647 }
 0x972   :  { %v3084_v24 = vsel %vm299_vm2, %v11162_v1, -inf  ;;  %v3172_v4 = vshra.s32 %v11165_v54, 16 }
 0x973   :  { %3085 = vmax.xlane.f32.xlu1 %v3084_v24 }
 0x974   :  { %v11171_v39 = vcvt.s32.f32 %v3172_v4  ;;  %v2933_v4 = vcvt.f32.s32 %v11074_v49 }
 0x976   :  { %v3071_v53 = vpop.xlane.xlu2 %3070  ;;  %3175 = vmin.xlane.f32.xlu0 %v11171_v39  ;;  %v2901_v30 = vpop.xlane.xlu0 %2900  ;;  %v2934_v49 = vshll.u32 %v2933_v4, 16 }
 0x977   :  { %vm3111_vm6 = vcmp.ge.f32.partialorder %v11046_v26, %v3071_v53  ;;  %v2902_v19 = vcvt.f32.s32 %v2901_v30 }
 0x978   :  { %v3127_v12 = vsel %vm3111_vm6, %v9327_v40, 4 }
 0x979   :  { %v11177_v35 = vsel %vm299_vm2, %v3127_v12, 2147483647  ;;  %v11179_v51 = vadd.s32 %v2904_v34, %v2902_v19 }
 0x97a   :  { %v3187_v43 = vshra.s32 %v11177_v35, 16 }
 0x97b   :  { %vm3005_vm12 = vcmp.eq.s32.totalorder %v9327_v40, %v11179_v51 }
 0x97c   :  { %v11185_v9 = vcvt.s32.f32 %v3187_v43  ;;  %v11191_v26 = vsel %vm3005_vm12, -inf, %v10804_v2 }
 0x97d   :  { %v3087_v17 = vsel %vm299_vm2, %v11191_v26, -inf }
 0x97e   :  { %3190 = vmin.xlane.f32.xlu0 %v11185_v9  ;;  %v3074_v8 = vpop.xlane.xlu2 %3073  ;;  %3088 = vmax.xlane.f32.xlu1 %v3087_v17  ;;  %v2916_v29 = vpop.xlane.xlu0 %2915 }
 0x97f   :  { %vm3112_vm5 = vcmp.ge.f32.partialorder %v11066_v38, %v3074_v8  ;;  %v2917_v55 = vcvt.f32.s32 %v2916_v29  ;;  %v2948_v8 = vcvt.f32.s32 %v11092_v36 }
 0x980   :  { %v3128_v22 = vsel %vm3112_vm5, %v9327_v40, 4 }
 0x981   :  { %v11199_v6 = vsel %vm299_vm2, %v3128_v22, 2147483647  ;;  %v11201_v59 = vadd.s32 %v2919_v47, %v2917_v55  ;;  %v2949_v36 = vshll.u32 %v2948_v8, 16 }
 0x982   :  { %v3202_v24 = vshra.s32 %v11199_v6, 16 }
 0x983   :  { %vm3006_vm6 = vcmp.eq.s32.totalorder %v9327_v40, %v11201_v59 }
 0x984   :  { %v11207_v25 = vcvt.s32.f32 %v3202_v24  ;;  %v11213_v38 = vsel %vm3006_vm6, -inf, %v10814_v23 }
 0x985   :  { %v3090_v30 = vsel %vm299_vm2, %v11213_v38, -inf }
 0x986   :  { %v3077_v53 = vpop.xlane.xlu1 %3076  ;;  %3205 = vmin.xlane.f32.xlu0 %v11207_v25  ;;  %v2931_v34 = vpop.xlane.xlu2 %2930  ;;  %3091 = vmax.xlane.f32.xlu1 %v3090_v30 }
 0x987   :  { %vm3113_vm5 = vcmp.ge.f32.partialorder %v11084_v57, %v3077_v53  ;;  %v2932_v19 = vcvt.f32.s32 %v2931_v34 }
 0x988   :  { %v3129_v12 = vsel %vm3113_vm5, %v9327_v40, 4 }
 0x989   :  { %v11221_v43 = vsel %vm299_vm2, %v3129_v12, 2147483647  ;;  %v11223_v15 = vadd.s32 %v2934_v49, %v2932_v19  ;;  %v2963_v49 = vcvt.f32.s32 %v11109_v42 }
 0x98a   :  { %v3217_v17 = vshra.s32 %v11221_v43, 16 }
 0x98b   :  { %vm14625_vm0 = vcmp.eq.s32.totalorder %v9327_v40, %v11223_v15  ;;  %v2964_v42 = vshll.u32 %v2963_v49, 16 }
 0x98c   :  { %v11229_v29 = vcvt.s32.f32 %v3217_v17  ;;  %v11235_v57 = vsel %vm14625_vm0, -inf, %v10831_v5 }
 0x98d   :  { %v3093_v47 = vsel %vm299_vm2, %v11235_v57, -inf }
 0x98e   :  { %3220 = vmin.xlane.f32.xlu2 %v11229_v29  ;;  %v3080_v55 = vpop.xlane.xlu1 %3079  ;;  %3094 = vmax.xlane.f32.xlu0 %v3093_v47  ;;  %v2946_v22 = vpop.xlane.xlu2 %2945 }
 0x98f   :  { %vm3114_vm5 = vcmp.ge.f32.partialorder %v11102_v14, %v3080_v55  ;;  %v2947_v24 = vcvt.f32.s32 %v2946_v22 }
 0x990   :  { %v3130_v4 = vsel %vm3114_vm5, %v9327_v40, 4 }
 0x991   :  { %v11243_v53 = vsel %vm299_vm2, %v3130_v4, 2147483647  ;;  %v11245_v30 = vadd.s32 %v2949_v36, %v2947_v24  ;;  %v2978_v4 = vcvt.f32.s32 %v11124_v21 }
 0x992   :  { %v3232_v34 = vshra.s32 %v11243_v53, 16 }
 0x993   :  { %vm14618_vm7 = vcmp.eq.s32.totalorder %v9327_v40, %v11245_v30 }
 0x994   :  { %v11251_v19 = vcvt.s32.f32 %v3232_v34  ;;  %v11257_v14 = vsel %vm14618_vm7, -inf, %v10845_v31 }
 0x995   :  { %v3096_v12 = vsel %vm299_vm2, %v11257_v14, -inf }
 0x996   :  { %3235 = vmin.xlane.f32.xlu2 %v11251_v19  ;;  %v3083_v17 = vpop.xlane.xlu1 %3082  ;;  %3097 = vmax.xlane.f32.xlu0 %v3096_v12  ;;  %v2961_v8 = vpop.xlane.xlu2 %2960 }
 0x997   :  { %vm3115_vm5 = vcmp.ge.f32.partialorder %v11119_v56, %v3083_v17  ;;  %v2962_v47 = vcvt.f32.s32 %v2961_v8  ;;  %v2979_v17 = vshll.u32 %v2978_v4, 16 }
 0x998   :  { %v3131_v55 = vsel %vm3115_vm5, %v9327_v40, 4 }
 0x999   :  { %v11265_v22 = vsel %vm299_vm2, %v3131_v55, 2147483647  ;;  %v11267_v36 = vadd.s32 %v2964_v42, %v2962_v47  ;;  %v2993_v42 = vcvt.f32.s32 %v11129_v58 }
 0x99a   :  { %v3247_v24 = vshra.s32 %v11265_v22, 16 }
 0x99b   :  { %vm14619_vm7 = vcmp.eq.s32.totalorder %v9327_v40, %v11267_v36  ;;  %v2994_v4 = vshll.u32 %v2993_v42, 16 }
 0x99c   :  { %v11273_v34 = vcvt.s32.f32 %v3247_v24  ;;  %v11279_v56 = vsel %vm14619_vm7, -inf, %v10859_v60 }
 0x99d   :  { %v3099_v49 = vsel %vm299_vm2, %v11279_v56, -inf }
 0x99e   :  { %3250 = vmin.xlane.f32.xlu2 %v11273_v34  ;;  %3100 = vmax.xlane.f32.xlu0 %v3099_v49  ;;  %v2976_v12 = vpop.xlane.xlu2 %2975 }
 0x99f   :  { %v2977_v21 = vcvt.f32.s32 %v2976_v12 }
 0x9a1   :  { %v11284_v8 = vadd.s32 %v2979_v17, %v2977_v21  ;;  %v3141_v21 = vand.u32 65535, %v11136_v52  ;;  %v3171_v52 = vand.u32 65535, %v11165_v54 }
 0x9a3   :  { %14717 = vst [vmem:[#allocation3_spill] sm:$0xff] %v11284_v8  ;;  %vm14620_vm5 = vcmp.eq.s32.totalorder %v9327_v40, %v11284_v8  ;;  %v3143_v42 = vcvt.s32.f32 %v3141_v21 }
 0x9a4   :  { %v11293_v47 = vsel %vm14620_vm5, -inf, %v10868_v46 }
 0x9a5   :  { %v3102_v55 = vsel %vm299_vm2, %v11293_v47, -inf }
 0x9a6   :  { %3103 = vmax.xlane.f32.xlu0 %v3102_v55  ;;  %v2991_v24 = vpop.xlane.xlu2 %2990 }
 0x9a7   :  { %v2992_v49 = vcvt.f32.s32 %v2991_v24 }
 0x9a9   :  { %v11297_v12 = vadd.s32 %v2994_v4, %v2992_v49  ;;  %v3156_v4 = vand.u32 65535, %v11146_v20  ;;  %v3173_v20 = vcvt.s32.f32 %v3171_v52 }
 0x9ab   :  { %14718 = vst [vmem:[#allocation6_spill] sm:$0xff] %v11297_v12  ;;  %vm14622_vm7 = vcmp.eq.s32.totalorder %v9327_v40, %v11297_v12  ;;  %v3158_v12 = vcvt.s32.f32 %v3156_v4 }
 0x9ac   :  { %v11305_v58 = vsel %vm14622_vm7, -inf, %v10873_v7 }
 0x9ad   :  { %v3105_v17 = vsel %vm299_vm2, %v11305_v58, -inf }
 0x9ae   :  { %3106 = vmax.xlane.f32.xlu0 %v3105_v17 }
 0x9d9   :  { %v11310_v55 = vpop.xlane.xlu0 %3145 }
 0x9da   :  { %vm3147_vm5 = vcmp.eq.f32.partialorder %v11139_v32, %v11310_v55 }
 0x9db   :  { %v3148_v24 = vsel %vm3147_vm5, %v3143_v42, inf }
 0x9dc   :  { %3149 = vmin.xlane.f32.xlu1 %v3148_v24 }
 0x9e1   :  { %v11315_v49 = vpop.xlane.xlu0 %3160 }
 0x9e2   :  { %vm3162_vm7 = vcmp.eq.f32.partialorder %v11149_v16, %v11315_v49 }
 0x9e3   :  { %v3163_v7 = vsel %vm3162_vm7, %v3158_v12, inf }
 0x9e4   :  { %3164 = vmin.xlane.f32.xlu1 %v3163_v7 }
 0x9e6   :  { %v3086_v17 = vpop.xlane.xlu1 %3085 }
 0x9e7   :  { %vm3116_vm0 = vcmp.ge.f32.partialorder %v11162_v1, %v3086_v17  ;;  %v3186_v1 = vand.u32 65535, %v11177_v35  ;;  %v3201_v35 = vand.u32 65535, %v11199_v6  ;;  %v3216_v6 = vand.u32 65535, %v11221_v43 }
 0x9e8   :  { %v3132_v21 = vsel %vm3116_vm0, %v9327_v40, 4 }
 0x9e9   :  { %v11323_v32 = vsel %vm299_vm2, %v3132_v21, 2147483647  ;;  %v11325_v42 = vpop.xlane.xlu0 %3175  ;;  %v3188_v4 = vcvt.s32.f32 %v3186_v1 }
 0x9ea   :  { %v3262_v24 = vshra.s32 %v11323_v32, 16  ;;  %vm3177_vm5 = vcmp.eq.f32.partialorder %v11171_v39, %v11325_v42 }
 0x9eb   :  { %v3178_v16 = vsel %vm3177_vm5, %v3173_v20, inf }
 0x9ec   :  { %v11330_v7 = vcvt.s32.f32 %v3262_v24  ;;  %3179 = vmin.xlane.f32.xlu1 %v3178_v16  ;;  %v3203_v16 = vcvt.s32.f32 %v3201_v35 }
 0x9ee   :  { %3265 = vmin.xlane.f32.xlu2 %v11330_v7 }
 0x9f1   :  { %v3089_v54 = vpop.xlane.xlu1 %3088  ;;  %v11334_v12 = vpop.xlane.xlu0 %3190 }
 0x9f2   :  { %vm3117_vm0 = vcmp.ge.f32.partialorder %v11191_v26, %v3089_v54  ;;  %vm3192_vm7 = vcmp.eq.f32.partialorder %v11185_v9, %v11334_v12 }
 0x9f3   :  { %v3133_v17 = vsel %vm3117_vm0, %v9327_v40, 4  ;;  %v3193_v39 = vsel %vm3192_vm7, %v3188_v4, inf }
 0x9f4   :  { %v11341_v52 = vsel %vm299_vm2, %v3133_v17, 2147483647  ;;  %3194 = vmin.xlane.f32.xlu1 %v3193_v39 }
 0x9f5   :  { %v3277_v21 = vshra.s32 %v11341_v52, 16 }
 0x9f7   :  { %v11345_v20 = vcvt.s32.f32 %v3277_v21  ;;  %v3218_v21 = vcvt.s32.f32 %v3216_v6 }
 0x9f9   :  { %3280 = vmin.xlane.f32.xlu2 %v11345_v20  ;;  %v3092_v24 = vpop.xlane.xlu1 %3091  ;;  %v11348_v26 = vpop.xlane.xlu0 %3205 }
 0x9fa   :  { %vm3118_vm5 = vcmp.ge.f32.partialorder %v11213_v38, %v3092_v24  ;;  %vm3207_vm0 = vcmp.eq.f32.partialorder %v11207_v25, %v11348_v26  ;;  %v3231_v24 = vand.u32 65535, %v11243_v53 }
 0x9fb   :  { %v3134_v9 = vsel %vm3118_vm5, %v9327_v40, 4  ;;  %v3208_v1 = vsel %vm3207_vm0, %v3203_v16, inf }
 0x9fc   :  { %v11355_v54 = vsel %vm299_vm2, %v3134_v9, 2147483647  ;;  %3209 = vmin.xlane.f32.xlu1 %v3208_v1  ;;  %v3233_v6 = vcvt.s32.f32 %v3231_v24 }
 0x9fd   :  { %v3292_v4 = vshra.s32 %v11355_v54, 16 }
 0x9ff   :  { %v11359_v17 = vcvt.s32.f32 %v3292_v4 }
 0xa01   :  { %v11361_v39 = vpop.xlane.xlu2 %3220  ;;  %3295 = vmin.xlane.f32.xlu2 %v11359_v17  ;;  %v3095_v38 = vpop.xlane.xlu0 %3094 }
 0xa02   :  { %vm3222_vm7 = vcmp.eq.f32.partialorder %v11229_v29, %v11361_v39  ;;  %vm3119_vm5 = vcmp.ge.f32.partialorder %v11235_v57, %v3095_v38  ;;  %v3227_v0 = vcvt.f32.s32 %v11361_v39 }
 0xa03   :  { %v3223_v25 = vsel %vm3222_vm7, %v3218_v21, inf  ;;  %v3135_v35 = vsel %vm3119_vm5, %v9327_v40, 4  ;;  %v3246_v21 = vand.u32 65535, %v11265_v22 }
 0xa04   :  { %3224 = vmin.xlane.f32.xlu0 %v3223_v25  ;;  %v11369_v43 = vsel %vm299_vm2, %v3135_v35, 2147483647 }
 0xa05   :  { %v3307_v16 = vshra.s32 %v11369_v43, 16  ;;  %v3248_v24 = vcvt.s32.f32 %v3246_v21 }
 0xa07   :  { %v11373_v9 = vcvt.s32.f32 %v3307_v16 }
 0xa09   :  { %v11375_v1 = vpop.xlane.xlu2 %3235  ;;  %3310 = vmin.xlane.f32.xlu1 %v11373_v9  ;;  %v3098_v29 = vpop.xlane.xlu0 %3097 }
 0xa0a   :  { %vm3237_vm0 = vcmp.eq.f32.partialorder %v11251_v19, %v11375_v1  ;;  %vm3120_vm7 = vcmp.ge.f32.partialorder %v11257_v14, %v3098_v29  ;;  %v3242_v62 = vcvt.f32.s32 %v11375_v1 }
 0xa0b   :  { %v3238_v57 = vsel %vm3237_vm0, %v3233_v6, inf  ;;  %v3136_v4 = vsel %vm3120_vm7, %v9327_v40, 4 }
 0xa0c   :  { %3239 = vmin.xlane.f32.xlu2 %v3238_v57  ;;  %v11383_v53 = vsel %vm299_vm2, %v3136_v4, 2147483647  ;;  %v3243_v1 = vshll.u32 %v3242_v62, 16 }
 0xa0d   :  { %v3322_v38 = vshra.s32 %v11383_v53, 16 }
 0xa0f   :  { %v11387_v25 = vcvt.s32.f32 %v3322_v38  ;;  %v11412_v38 = vpop.f32.mrf.mxu3 }
 0xa10   :  { %14719 = vst [vmem:[#allocation8_spill] sm:$0xff] %v11412_v38 }
 0xa11   :  { %v11389_v35 = vpop.xlane.xlu2 %3250  ;;  %3325 = vmin.xlane.f32.xlu0 %v11387_v25  ;;  %v3101_v19 = vpop.xlane.xlu0 %3100 }
 0xa12   :  { %vm3252_vm5 = vcmp.eq.f32.partialorder %v11273_v34, %v11389_v35  ;;  %vm3121_vm0 = vcmp.ge.f32.partialorder %v11279_v56, %v3101_v19 }
 0xa13   :  { %v3253_v14 = vsel %vm3252_vm5, %v3248_v24, inf  ;;  %v3137_v16 = vsel %vm3121_vm0, %v9327_v40, 4  ;;  %v3152_v24 = vcvt.f32.s32 %v11310_v55 }
 0xa14   :  { %3254 = vmin.xlane.f32.xlu1 %v3253_v14  ;;  %v11397_v22 = vsel %vm299_vm2, %v3137_v16, 2147483647 }
 0xa15   :  { %v3337_v6 = vshra.s32 %v11397_v22, 16  ;;  %v3153_v16 = vshll.u32 %v3152_v24, 16  ;;  %v8919_v24 = vld [vmem:[%s14596_s6 + $0x38] sm:$0xff]  ;;  %v3336_v11 = vand.u32 65535, %v11397_v22 }
 0xa17   :  { %v11400_v29 = vcvt.s32.f32 %v3337_v6  ;;  %v11415_v19 = vpop.f32.mrf.mxu3 }
 0xa18   :  { %14720 = vst [vmem:[#allocation4_spill] sm:$0xff] %v11415_v19 }
 0xa19   :  { %3340 = vmin.xlane.f32.xlu2 %v11400_v29  ;;  %v3104_v57 = vpop.xlane.xlu0 %3103 }
 0xa1a   :  { %vm3122_vm7 = vcmp.ge.f32.partialorder %v11293_v47, %v3104_v57  ;;  %v3167_v57 = vcvt.f32.s32 %v11315_v49 }
 0xa1b   :  { %v3138_v34 = vsel %vm3122_vm7, %v9327_v40, 4 }
 0xa1c   :  { %v11406_v56 = vsel %vm299_vm2, %v3138_v34, 2147483647  ;;  %v3012_v34 = vsel %vm2996_vm14, %v10688_v45, 0.0  ;;  %v3168_v19 = vshll.u32 %v3167_v57, 16 }
 0xa1d   :  { %v3352_v4 = vshra.s32 %v11406_v56, 16 }
 0xa1f   :  { %v11409_v21 = vcvt.s32.f32 %v3352_v4  ;;  %v11424_v8 = vpop.f32.mrf.mxu3 }
 0xa20   :  { %14721 = vst [vmem:[#allocation7_spill] sm:$0xff] %v11424_v8 }
 0xa21   :  { %3355 = vmin.xlane.f32.xlu1 %v11409_v21  ;;  %v3107_v49 = vpop.xlane.xlu0 %3106 }
 0xa22   :  { %vm3123_vm14 = vcmp.ge.f32.partialorder %v11305_v58, %v3107_v49 }
 0xa4f   :  { %v3150_v14 = vpop.xlane.xlu1 %3149 }
 0xa50   :  { %v3151_v47 = vcvt.f32.s32 %v3150_v14  ;;  %v3182_v14 = vcvt.f32.s32 %v11325_v42  ;;  %v3139_v42 = vsel %vm3123_vm14, %v9327_v40, 4 }
 0xa52   :  { %v3154_v6 = vadd.s32 %v3153_v16, %v3151_v47  ;;  %v3013_v16 = vsel %vm2997_vm8, %v10698_v44, 0.0 }
 0xa54   :  { %vm3380_vm5 = vcmp.eq.s32.totalorder %v9327_v40, %v3154_v6  ;;  %v3183_v6 = vshll.u32 %v3182_v14, 16 }
 0xa55   :  { %v3396_v4 = vsel %vm3380_vm5, %v10688_v45, 0.0  ;;  %v8920_v45 = vld [vmem:[%s14596_s6 + $0x30] sm:$0xff] }
 0xa56   :  { %v3412_v38 = vadd.f32 %v3396_v4, %v3012_v34  ;;  %v11454_v34 = vpop.f32.mrf.mxu3  ;;  %v8923_v4 = vld [vmem:[%s14596_s6 + $0x18] sm:$0xff] }
 0xa57   :  { %v3165_v55 = vpop.xlane.xlu1 %3164  ;;  %14722 = vst [vmem:[#allocation9_spill] sm:$0xff] %v11454_v34 }
 0xa58   :  { %v3166_v46 = vcvt.f32.s32 %v3165_v55  ;;  %8205 = vmatmul.msk.f32.vlgmr.msra.gmra.mxu3 %vm299_vm2, %v3412_v38  ;;  %8222 = vmatmul.msk.f32.vlgmr.msra.gmra.mxu0 %vm299_vm2, %v3412_v38  ;;  %v3261_v38 = vand.u32 65535, %v11323_v32  ;;  %v8922_v32 = vld [vmem:[%s14596_s6 + $0x20] sm:$0xff]  ;;  %v11462_v55 = vsel %vm299_vm2, %v3139_v42, 2147483647 }
 0xa59   :  { %5858 = vmatpush.msra.mxu0 %v8919_v24 }
 0xa5a   :  { %v3169_v18 = vadd.s32 %v3168_v19, %v3166_v46  ;;  %v8921_v19 = vld [vmem:[%s14596_s6 + $0x28] sm:$0xff]  ;;  %v3263_v50 = vcvt.s32.f32 %v3261_v38  ;;  %v3367_v38 = vshra.s32 %v11462_v55, 16 }
 0xa5b   :  { %5859 = vmatpush.msra.mxu0 %v8920_v45  ;;  %v3197_v45 = vcvt.f32.s32 %v11334_v12  ;;  %v8926_v12 = vld [vmem:[%s14596_s6] sm:$0xff] }
 0xa5c   :  { %vm3381_vm0 = vcmp.eq.s32.totalorder %v9327_v40, %v3169_v18  ;;  %v8924_v18 = vld [vmem:[%s14596_s6 + $0x10] sm:$0xff]  ;;  %v11484_v27 = vcvt.s32.f32 %v3367_v38 }
 0xa5d   :  { %v3397_v46 = vsel %vm3381_vm0, %v10698_v44, 0.0  ;;  %5860 = vmatpush.msra.mxu0 %v8921_v19 }
 0xa5e   :  { %v3413_v47 = vadd.f32 %v3397_v46, %v3013_v16  ;;  %v8925_v16 = vld [vmem:[%s14596_s6 + $0x8] sm:$0xff] }
 0xa5f   :  { %v3180_v58 = vpop.xlane.xlu1 %3179  ;;  %5861 = vmatpush.msra.mxu0 %v8922_v32  ;;  %v11486_v32 = vpop.f32.mrf.mxu3 }
 0xa60   :  { %v3181_v57 = vcvt.f32.s32 %v3180_v58  ;;  %8206 = vmatmul.msk.f32.gmra.mxu3 %vm299_vm2, %v3413_v47  ;;  %8223 = vmatmul.msk.f32.gmra.mxu0 %vm299_vm2, %v3413_v47  ;;  %v3198_v47 = vshll.u32 %v3197_v45, 16  ;;  %14723 = vst [vmem:[#allocation10_spill] sm:$0xff] %v11486_v32 }
 0xa61   :  { %v11452_v44 = vpop.xlane.xlu2 %3265  ;;  %5862 = vmatpush.msra.mxu0 %v8923_v4  ;;  %v3015_v4 = vsel %vm2999_vm3, %v10718_v13, 0.0 }
 0xa62   :  { %vm3267_vm8 = vcmp.eq.f32.partialorder %v11330_v7, %v11452_v44  ;;  %v3184_v49 = vadd.s32 %v3183_v6, %v3181_v57  ;;  %v3014_v7 = vsel %vm2998_vm10, %v10708_v10, 0.0  ;;  %v3212_v6 = vcvt.f32.s32 %v11348_v26 }
 0xa63   :  { %v3268_v24 = vsel %vm3267_vm8, %v3263_v50, inf  ;;  %5863 = vmatpush.msra.mxu0 %v8924_v18 }
 0xa64   :  { %3269 = vmin.xlane.f32.xlu0 %v3268_v24  ;;  %vm3382_vm7 = vcmp.eq.s32.totalorder %v9327_v40, %v3184_v49  ;;  %v3213_v26 = vshll.u32 %v3212_v6, 16 }
 0xa65   :  { %v3398_v14 = vsel %vm3382_vm7, %v10708_v10, 0.0  ;;  %5864 = vmatpush.msra.mxu0 %v8925_v16  ;;  %v3276_v10 = vand.u32 65535, %v11341_v52  ;;  %v3016_v16 = vsel %vm3000_vm4, %v10728_v41, 0.0 }
 0xa66   :  { %v3414_v46 = vadd.f32 %v3398_v14, %v3014_v7  ;;  %v3291_v7 = vand.u32 65535, %v11355_v54 }
 0xa67   :  { %v3195_v19 = vpop.xlane.xlu1 %3194  ;;  %5865 = vmatpush.msra.mxu0 %v8926_v12  ;;  %v3278_v50 = vcvt.s32.f32 %v3276_v10  ;;  %v11507_v38 = vpop.f32.mrf.mxu3  ;;  %v3228_v12 = vshll.u32 %v3227_v0, 16 }
 0xa68   :  { %v3196_v42 = vcvt.f32.s32 %v3195_v19  ;;  %8207 = vmatmul.msk.f32.gmra.mxu3 %vm299_vm2, %v3414_v46  ;;  %8224 = vmatmul.msk.f32.gmra.mxu0 %vm299_vm2, %v3414_v46  ;;  %14724 = vst [vmem:[#allocation11_spill] sm:$0xff] %v11507_v38 }
 0xa6a   :  { %v3199_v58 = vadd.s32 %v3198_v47, %v3196_v42  ;;  %v3306_v42 = vand.u32 65535, %v11369_v43 }
 0xa6c   :  { %3370 = vmin.xlane.f32.xlu0 %v11484_v27  ;;  %vm3383_vm10 = vcmp.eq.s32.totalorder %v9327_v40, %v3199_v58  ;;  %v11491_v57 = vpop.xlane.xlu2 %3280  ;;  %v3308_v6 = vcvt.s32.f32 %v3306_v42  ;;  %v3445_v42 = vpop.f32.mrf.mxu2 }
 0xa6d   :  { %v3399_v52 = vsel %vm3383_vm10, %v10718_v13, 0.0  ;;  %vm3282_vm5 = vcmp.eq.f32.partialorder %v11345_v20, %v11491_v57  ;;  %v3293_v20 = vcvt.s32.f32 %v3291_v7 }
 0xa6e   :  { %v3283_v49 = vsel %vm3282_vm5, %v3278_v50, inf  ;;  %v3415_v24 = vadd.f32 %v3399_v52, %v3015_v4 }
 0xa6f   :  { %v3210_v18 = vpop.xlane.xlu1 %3209  ;;  %3284 = vmin.xlane.f32.xlu2 %v3283_v49  ;;  %v11530_v52 = vpop.f32.mrf.mxu3 }
 0xa70   :  { %v3211_v45 = vcvt.f32.s32 %v3210_v18  ;;  %8208 = vmatmul.msk.f32.gmra.mxu3 %vm299_vm2, %v3415_v24  ;;  %8225 = vmatmul.msk.f32.gmra.mxu0 %vm299_vm2, %v3415_v24  ;;  %14725 = vst [vmem:[#allocation12_spill] sm:$0xff] %v11530_v52  ;;  %v3257_v24 = vcvt.f32.s32 %v11389_v35 }
 0xa72   :  { %v3214_v14 = vadd.s32 %v3213_v26, %v3211_v45  ;;  %v3258_v0 = vshll.u32 %v3257_v24, 16 }
 0xa74   :  { %vm3384_vm3 = vcmp.eq.s32.totalorder %v9327_v40, %v3214_v14  ;;  %v11505_v13 = vpop.xlane.xlu2 %3295  ;;  %v3448_v62 = vpop.f32.mrf.mxu2 }
 0xa75   :  { %v3400_v46 = vsel %vm3384_vm3, %v10728_v41, 0.0  ;;  %vm3297_vm14 = vcmp.eq.f32.partialorder %v11359_v17, %v11505_v13  ;;  %v3017_v41 = vsel %vm3001_vm13, %v10738_v61, 0.0  ;;  %vm14735_vm3 = vcmp.eq.s32.totalorder %v9327_v40, %v11223_v15 }
 0xa76   :  { %v3298_v54 = vsel %vm3297_vm14, %v3293_v20, inf  ;;  %v3416_v39 = vadd.f32 %v3400_v46, %v3016_v16  ;;  %vm14736_vm14 = vcmask 1043456  }
 0xa77   :  { %v3225_v19 = vpop.xlane.xlu0 %3224  ;;  %3299 = vmin.xlane.f32.xlu1 %v3298_v54  ;;  %v11549_v20 = vpop.f32.mrf.mxu3  ;;  %v3338_v54 = vcvt.s32.f32 %v3336_v11 }
 0xa78   :  { %v3226_v47 = vcvt.f32.s32 %v3225_v19  ;;  %8209 = vmatmul.msk.f32.gmra.mxu3 %vm299_vm2, %v3416_v39  ;;  %8226 = vmatmul.msk.f32.gmra.mxu0 %vm299_vm2, %v3416_v39  ;;  %14726 = vst [vmem:[#allocation13_spill] sm:$0xff] %v11549_v20  ;;  %v3351_v39 = vand.u32 65535, %v11406_v56  ;;  %v11579_v56 = vld [vmem:[%s14593_s5] ss:$0 sm:$0xff] }
 0xa7a   :  { %v3229_v10 = vadd.s32 %v3228_v12, %v3226_v47 }
 0xa7c   :  { %vm3385_vm4 = vcmp.eq.s32.totalorder %v9327_v40, %v3229_v10  ;;  %v11526_v58 = vpop.xlane.xlu1 %3310 }
 0xa7d   :  { %v3401_v17 = vsel %vm3385_vm4, %v10738_v61, 0.0  ;;  %vm3312_vm0 = vcmp.eq.f32.partialorder %v11373_v9, %v11526_v58  ;;  %v3321_v61 = vand.u32 65535, %v11383_v53  ;;  %v3018_v9 = vsel %vm3002_vm15, %v10748_v28, 0.0 }
 0xa7e   :  { %v3417_v50 = vadd.f32 %v3401_v17, %v3017_v41  ;;  %v3313_v4 = vsel %vm3312_vm0, %v3308_v6, inf  ;;  %v3446_v17 = vadd.f32 %v11579_v56, %v3445_v42  ;;  %v3451_v6 = vpop.f32.mrf.mxu2  ;;  %vm14737_vm0 = vcmp.eq.s32.totalorder %v9327_v40, %v11245_v30 }
 0xa7f   :  { %v3240_v43 = vpop.xlane.xlu2 %3239  ;;  %3314 = vmin.xlane.f32.xlu2 %v3313_v4  ;;  %v3323_v45 = vcvt.s32.f32 %v3321_v61  ;;  %v11564_v12 = vpop.f32.mrf.mxu3  ;;  %v11585_v4 = vadd.f32 %v11579_v56, %v3448_v62  ;;  %v11591_v24 = vadd.f32 %v11579_v56, %v3451_v6 }
 0xa80   :  { %v3241_v49 = vcvt.f32.s32 %v3240_v43  ;;  %8210 = vmatmul.msk.f32.gmra.mxu3 %vm299_vm2, %v3417_v50  ;;  %8227 = vmatmul.msk.f32.gmra.mxu0 %vm299_vm2, %v3417_v50  ;;  %14727 = vst [vmem:[#allocation14_spill] sm:$0xff] %v11564_v12  ;;  %v3493_v50 = vmul.f32 %v3446_v17, %v3446_v17 }
 0xa82   :  { %v3244_v63 = vadd.s32 %v3243_v1, %v3241_v49  ;;  %v3509_v43 = vmul.f32 %v3493_v50, %v3446_v17  ;;  %v3494_v49 = vmul.f32 %v11585_v4, %v11585_v4  ;;  %v3272_v50 = vcvt.f32.s32 %v11452_v44 }
 0xa84   :  { %vm3386_vm13 = vcmp.eq.s32.totalorder %v9327_v40, %v3244_v63  ;;  %v11542_v26 = vpop.xlane.xlu0 %3325  ;;  %v3525_v1 = vmul.f32 0.044715, %v3509_v43  ;;  %v3510_v63 = vmul.f32 %v3494_v49, %v11585_v4 }
 0xa85   :  { %v3402_v18 = vsel %vm3386_vm13, %v10748_v28, 0.0  ;;  %vm3327_vm8 = vcmp.eq.f32.partialorder %v11387_v25, %v11542_v26  ;;  %v3019_v25 = vsel %vm3003_vm1, %v10757_v48, 0.0 }
 0xa86   :  { %v3418_v7 = vadd.f32 %v3402_v18, %v3018_v9  ;;  %v3328_v14 = vsel %vm3327_vm8, %v3323_v45, inf  ;;  %v3454_v61 = vpop.f32.mrf.mxu2  ;;  %v3541_v18 = vadd.f32 %v3525_v1, %v3446_v17  ;;  %v3526_v45 = vmul.f32 0.044715, %v3510_v63 }
 0xa87   :  { %v3255_v53 = vpop.xlane.xlu1 %3254  ;;  %3329 = vmin.xlane.f32.xlu0 %v3328_v14  ;;  %v11602_v11 = vadd.f32 %v11579_v56, %v3454_v61  ;;  %vm14738_vm8 = vcmp.eq.s32.totalorder %v9327_v40, %v11267_v36 }
 0xa88   :  { %v3256_v35 = vcvt.f32.s32 %v3255_v53  ;;  %8211 = vmatmul.msk.f32.gmra.mxu3 %vm299_vm2, %v3418_v7  ;;  %8228 = vmatmul.msk.f32.gmra.mxu0 %vm299_vm2, %v3418_v7  ;;  %v3495_v7 = vmul.f32 %v11591_v24, %v11591_v24  ;;  %v3557_v53 = vmul.f32 0.7978846, %v3541_v18 }
 0xa8a   :  { %v3259_v28 = vadd.s32 %v3258_v0, %v3256_v35  ;;  %v8274_v0 = vld [vmem:[%s14588_s1 + $0x58] sm:$0xff]  ;;  %v3511_v35 = vmul.f32 %v3495_v7, %v11591_v24  ;;  %8677 = vtanh.f32 %v3557_v53 }
 0xa8b   :  { %4097 = vmatpush.msrb.mxu3 %v8274_v0 }
 0xa8c   :  { %vm3387_vm15 = vcmp.eq.s32.totalorder %v9327_v40, %v3259_v28  ;;  %v11557_v46 = vpop.xlane.xlu2 %3340  ;;  %v3542_v28 = vadd.f32 %v3526_v45, %v11585_v4  ;;  %v3273_v45 = vshll.u32 %v3272_v50, 16 }
 0xa8d   :  { %v3403_v16 = vsel %vm3387_vm15, %v10757_v48, 0.0  ;;  %vm3342_vm7 = vcmp.eq.f32.partialorder %v11400_v29, %v11557_v46  ;;  %v3353_v48 = vcvt.s32.f32 %v3351_v39  ;;  %v11570_v29 = vpop.f32.mrf.mxu3 }
 0xa8e   :  { %v3419_v19 = vadd.f32 %v3403_v16, %v3019_v25  ;;  %v3343_v22 = vsel %vm3342_vm7, %v3338_v54, inf  ;;  %14728 = vst [vmem:[#allocation15_spill] sm:$0xff] %v11570_v29  ;;  %v3457_v14 = vpop.f32.mrf.mxu2  ;;  %v3527_v16 = vmul.f32 0.044715, %v3511_v35  ;;  %v3496_v54 = vmul.f32 %v11602_v11, %v11602_v11 }
 0xa8f   :  { %3344 = vmin.xlane.f32.xlu1 %v3343_v22  ;;  %v11610_v39 = vadd.f32 %v11579_v56, %v3457_v14 }
 0xa90   :  { %8212 = vmatmul.msk.f32.gmra.mxu3 %vm299_vm2, %v3419_v19  ;;  %8229 = vmatmul.msk.f32.gmra.mxu0 %vm299_vm2, %v3419_v19  ;;  %v3558_v19 = vmul.f32 0.7978846, %v3542_v28  ;;  %v8678_v22 = vpop.eup %8677  ;;  %v3366_v28 = vand.u32 65535, %v11462_v55 }
 0xa91   :  { %v3589_v62 = vadd.f32 1.0, %v8678_v22  ;;  %v3497_v43 = vmul.f32 %v11610_v39, %v11610_v39 }
 0xa92   :  { %8679 = vtanh.f32 %v3558_v19 }
 0xa93   :  { %v3605_v63 = vmul.f32 0.5, %v3589_v62  ;;  %v3513_v53 = vmul.f32 %v3497_v43, %v11610_v39  ;;  %v3368_v43 = vcvt.s32.f32 %v3366_v28 }
 0xa94   :  { %v11566_v37 = vpop.xlane.xlu1 %3355 }
 0xa95   :  { %vm3357_vm1 = vcmp.eq.f32.partialorder %v11409_v21, %v11566_v37  ;;  %v11572_v10 = vpop.f32.mrf.mxu3  ;;  %v3621_v44 = vmul.f32 %v3605_v63, %v3446_v17  ;;  %v3529_v19 = vmul.f32 0.044715, %v3513_v53 }
 0xa96   :  { %v3358_v47 = vsel %vm3357_vm1, %v3353_v48, inf  ;;  %14729 = vst [vmem:[#allocation16_spill] sm:$0xff] %v11572_v10  ;;  %v3512_v48 = vmul.f32 %v3496_v54, %v11602_v11  ;;  %v3460_v42 = vpop.f32.mrf.mxu2  ;;  %vm14742_vm1 = vmmov %vm14736_vm14 }
 0xa97   :  { %3359 = vmin.xlane.f32.xlu2 %v3358_v47  ;;  %v3543_v47 = vadd.f32 %v3527_v16, %v11591_v24  ;;  %v11621_v14 = vadd.f32 %v11579_v56, %v3460_v42  ;;  %v3545_v33 = vadd.f32 %v3529_v19, %v11610_v39 }
 0xa98   :  { %v3528_v1 = vmul.f32 0.044715, %v3512_v48  ;;  %v8680_v18 = vpop.eup %8679  ;;  %v3020_v48 = vsel %vm3004_vm9, %v10786_v3, 0.0 }
 0xa99   :  { %v3559_v49 = vmul.f32 0.7978846, %v3543_v47  ;;  %v3590_v16 = vadd.f32 1.0, %v8680_v18  ;;  %v3498_v62 = vmul.f32 %v11621_v14, %v11621_v14  ;;  %v3561_v28 = vmul.f32 0.7978846, %v3545_v33 }
 0xa9a   :  { %v3544_v35 = vadd.f32 %v3528_v1, %v11602_v11 }
 0xa9b   :  { %8681 = vtanh.f32 %v3559_v49  ;;  %v3606_v1 = vmul.f32 0.5, %v3590_v16  ;;  %v3514_v63 = vmul.f32 %v3498_v62, %v11621_v14  ;;  %v8273_v62 = vld [vmem:[%s14588_s1 + $0x50] sm:$0xff] }
 0xa9c   :  { %v3560_v50 = vmul.f32 0.7978846, %v3544_v35  ;;  %4098 = vmatpush.msrb.mxu3 %v8273_v62 }
 0xa9d   :  { %v11574_v41 = vpop.f32.mrf.mxu3 }
 0xa9e   :  { %14730 = vst [vmem:[#allocation17_spill] sm:$0xff] %v11574_v41  ;;  %v3463_v22 = vpop.f32.mrf.mxu2  ;;  %8683 = vtanh.f32 %v3560_v50 }
 0xa9f   :  { %v11644_v18 = vadd.f32 %v11579_v56, %v3463_v22  ;;  %8685 = vtanh.f32 %v3561_v28 }
 0xaa1   :  { %v8682_v49 = vpop.eup %8681  ;;  %v3499_v16 = vmul.f32 %v11644_v18, %v11644_v18 }
 0xaa5   :  { %v11582_v21 = vpop.f32.mrf.mxu3 }
 0xaa6   :  { %14731 = vst [vmem:[#allocation18_spill] sm:$0xff] %v11582_v21  ;;  %v3466_v19 = vpop.f32.mrf.mxu2 }
 0xaa7   :  { %v11662_v50 = vadd.f32 %v11579_v56, %v3466_v19 }
 0xaad   :  { %v11593_v9 = vpop.f32.mrf.mxu3 }
 0xaae   :  { %14732 = vst [vmem:[#allocation19_spill] sm:$0xff] %v11593_v9 }
 0xab5   :  { %v11605_v25 = vpop.f32.mrf.mxu3 }
 0xab6   :  { %14733 = vst [vmem:[#allocation20_spill] sm:$0xff] %v11605_v25 }
 0xabd   :  { %v11614_v6 = vpop.f32.mrf.mxu3 }
 0xabe   :  { %14734 = vst [vmem:[#allocation21_spill] sm:$0xff] %v11614_v6 }
 0xad7   :  { %v3270_v61 = vpop.xlane.xlu0 %3269 }
 0xad8   :  { %v3271_v7 = vcvt.f32.s32 %v3270_v61  ;;  %v3287_v61 = vcvt.f32.s32 %v11491_v57  ;;  %v3622_v57 = vmul.f32 %v3606_v1, %v11585_v4  ;;  %v3021_v4 = vsel %vm3005_vm12, %v10804_v2, 0.0 }
 0xada   :  { %v3274_v0 = vadd.s32 %v3273_v45, %v3271_v7  ;;  %v3591_v7 = vadd.f32 1.0, %v8682_v49  ;;  %v3288_v53 = vshll.u32 %v3287_v61, 16 }
 0xadb   :  { %v3702_v54 = vpop.f32.mrf.mxu3 }
 0xadc   :  { %vm3388_vm10 = vcmp.eq.s32.totalorder %v9327_v40, %v3274_v0  ;;  %v3750_v42 = vmul.f32 %v3702_v54, %v3621_v44  ;;  %v3607_v22 = vmul.f32 0.5, %v3591_v7 }
 0xadd   :  { %v3404_v47 = vsel %vm3388_vm10, %v10786_v3, 0.0 }
 0xade   :  { %v3420_v17 = vadd.f32 %v3404_v47, %v3020_v48  ;;  %8238 = vmatmul.msk.f32.vlgmr.msrb.gmra.mxu1 %vm1860_vm11, %v3750_v42  ;;  %v8684_v48 = vpop.eup %8683  ;;  %v3302_v47 = vcvt.f32.s32 %v11505_v13  ;;  %v3623_v51 = vmul.f32 %v3607_v22, %v11591_v24  ;;  %v3317_v24 = vcvt.f32.s32 %v11526_v58 }
 0xadf   :  { %v11634_v55 = vpop.xlane.xlu0 %3370  ;;  %v3592_v49 = vadd.f32 1.0, %v8684_v48 }
 0xae0   :  { %8213 = vmatmul.msk.f32.gmra.mxu3 %vm299_vm2, %v3420_v17  ;;  %8230 = vmatmul.msk.f32.gmra.mxu0 %vm299_vm2, %v3420_v17  ;;  %vm3372_vm9 = vcmp.eq.f32.partialorder %v11484_v27, %v11634_v55  ;;  %v3530_v27 = vmul.f32 0.044715, %v3514_v63  ;;  %v3515_v17 = vmul.f32 %v3499_v16, %v11644_v18  ;;  %v3303_v61 = vshll.u32 %v3302_v47, 16 }
 0xae1   :  { %v3373_v3 = vsel %vm3372_vm9, %v3368_v43, inf  ;;  %v3318_v58 = vshll.u32 %v3317_v24, 16  ;;  %v3024_v24 = vsel %vm14737_vm0, %v10845_v31, 0.0 }
 0xae2   :  { %3374 = vmin.xlane.f32.xlu0 %v3373_v3  ;;  %v3285_v45 = vpop.xlane.xlu2 %3284  ;;  %v3546_v43 = vadd.f32 %v3530_v27, %v11621_v14  ;;  %v3531_v63 = vmul.f32 0.044715, %v3515_v17  ;;  %v8272_v17 = vld [vmem:[%s14588_s1 + $0x48] sm:$0xff] }
 0xae3   :  { %v3286_v0 = vcvt.f32.s32 %v3285_v45  ;;  %v3705_v35 = vpop.f32.mrf.mxu3  ;;  %v3500_v45 = vmul.f32 %v11662_v50, %v11662_v50  ;;  %4099 = vmatpush.msrb.mxu3 %v8272_v17 }
 0xae4   :  { %v3751_v44 = vmul.f32 %v3705_v35, %v3622_v57  ;;  %v3562_v7 = vmul.f32 0.7978846, %v3546_v43  ;;  %v3022_v35 = vsel %vm3006_vm6, %v10814_v23, 0.0  ;;  %v3547_v16 = vadd.f32 %v3531_v63, %v11644_v18 }
 0xae5   :  { %v3289_v54 = vadd.s32 %v3288_v53, %v3286_v0  ;;  %v8686_v53 = vpop.eup %8685  ;;  %v3608_v0 = vmul.f32 0.5, %v3592_v49  ;;  %v3516_v28 = vmul.f32 %v3500_v45, %v11662_v50  ;;  %v3332_v43 = vcvt.f32.s32 %v11542_v26  ;;  %v8928_v26 = vld [vmem:[%s14595_s7] sm:$0xf] }
 0xae6   :  { %8239 = vmatmul.msk.f32.gmra.mxu1 %vm1860_vm11, %v3751_v44  ;;  %8687 = vtanh.f32 %v3562_v7  ;;  %v3593_v22 = vadd.f32 1.0, %v8686_v53 }
 0xae7   :  { %vm3389_vm5 = vcmp.eq.s32.totalorder %v9327_v40, %v3289_v54  ;;  %v3624_v19 = vmul.f32 %v3608_v0, %v11602_v11  ;;  %v8271_v11 = vld [vmem:[%s14588_s1 + $0x40] sm:$0xff]  ;;  %v3333_v63 = vshll.u32 %v3332_v43, 16  ;;  %v3347_v0 = vcvt.f32.s32 %v11557_v46  ;;  %v14740_v43 = vld [vmem:[#allocation3_spill] sm:$0xff] }
 0xae8   :  { %v3405_v42 = vsel %vm3389_vm5, %v10804_v2, 0.0  ;;  %v3609_v62 = vmul.f32 0.5, %v3593_v22  ;;  %4100 = vmatpush.msrb.mxu3 %v8271_v11  ;;  %vm14741_vm7 = vcmp.eq.s32.totalorder %v9327_v40, %v14740_v43  ;;  %vm14746_vm5 = vcmask 64512  }
 0xae9   :  { %v3421_v13 = vadd.f32 %v3405_v42, %v3021_v4  ;;  %v3532_v4 = vmul.f32 0.044715, %v3516_v28  ;;  %v3563_v42 = vmul.f32 0.7978846, %v3547_v16  ;;  %vm14752_vm0 = vmmov %vm14746_vm5 }
 0xaea   :  { %v3300_v1 = vpop.xlane.xlu1 %3299  ;;  %8341 = vmatpush.msk.msra.mxu3 %vm14736_vm14, %v8928_v26  ;;  %vm14750_vm14 = vmmov %vm14746_vm5 }
 0xaeb   :  { %v3301_v2 = vcvt.f32.s32 %v3300_v1  ;;  %v3708_v3 = vpop.f32.mrf.mxu3  ;;  %8214 = vmatmul.msk.f32.gmra.mxu3 %vm299_vm2, %v3421_v13  ;;  %8231 = vmatmul.msk.f32.gmra.mxu0 %vm299_vm2, %v3421_v13  ;;  %v3023_v1 = vsel %vm14735_vm3, %v10831_v5, 0.0  ;;  %8689 = vtanh.f32 %v3563_v42 }
 0xaec   :  { %v3752_v33 = vmul.f32 %v3708_v3, %v3623_v51  ;;  %v8688_v13 = vpop.eup %8687  ;;  %v3625_v3 = vmul.f32 %v3609_v62, %v11610_v39 }
 0xaed   :  { %v3304_v57 = vadd.s32 %v3303_v61, %v3301_v2  ;;  %v3548_v61 = vadd.f32 %v3532_v4, %v11662_v50 }
 0xaee   :  { %8240 = vmatmul.msk.f32.gmra.mxu1 %vm1860_vm11, %v3752_v33  ;;  %v3594_v33 = vadd.f32 1.0, %v8688_v13 }
 0xaef   :  { %vm3390_vm12 = vcmp.eq.s32.totalorder %v9327_v40, %v3304_v57  ;;  %v3564_v7 = vmul.f32 0.7978846, %v3548_v61 }
 0xaf0   :  { %v3406_v44 = vsel %vm3390_vm12, %v10814_v23, 0.0  ;;  %v3610_v39 = vmul.f32 0.5, %v3594_v33  ;;  %vm14747_vm12 = vcmask 261120  }
 0xaf1   :  { %v3422_v27 = vadd.f32 %v3406_v44, %v3022_v35  ;;  %v8690_v53 = vpop.eup %8689  ;;  %8691 = vtanh.f32 %v3564_v7  ;;  %vm14749_vm3 = vmmov %vm14747_vm12 }
 0xaf2   :  { %v3315_v54 = vpop.xlane.xlu2 %3314  ;;  %v3595_v16 = vadd.f32 1.0, %v8690_v53 }
 0xaf3   :  { %v3316_v48 = vcvt.f32.s32 %v3315_v54  ;;  %v3711_v47 = vpop.f32.mrf.mxu3  ;;  %8215 = vmatmul.msk.f32.gmra.mxu3 %vm299_vm2, %v3422_v27  ;;  %8232 = vmatmul.msk.f32.gmra.mxu0 %vm299_vm2, %v3422_v27  ;;  %v3626_v27 = vmul.f32 %v3610_v39, %v11621_v14  ;;  %v3348_v54 = vshll.u32 %v3347_v0, 16  ;;  %v3025_v14 = vsel %vm14738_vm8, %v10859_v60, 0.0  ;;  %vm14754_vm8 = vmmov %vm14752_vm0 }
 0xaf4   :  { %v3753_v59 = vmul.f32 %v3711_v47, %v3624_v19  ;;  %v3611_v30 = vmul.f32 0.5, %v3595_v16 }
 0xaf5   :  { %v3319_v23 = vadd.s32 %v3318_v58, %v3316_v48 }
 0xaf6   :  { %8241 = vmatmul.msk.f32.gmra.mxu1 %vm1860_vm11, %v3753_v59 }
 0xaf7   :  { %vm3391_vm6 = vcmp.eq.s32.totalorder %v9327_v40, %v3319_v23  ;;  %v8692_v48 = vpop.eup %8691  ;;  %v3627_v23 = vmul.f32 %v3611_v30, %v11644_v18 }
 0xaf8   :  { %v3407_v51 = vsel %vm3391_vm6, %v10831_v5, 0.0  ;;  %v3596_v42 = vadd.f32 1.0, %v8692_v48  ;;  %vm14748_vm6 = vmmov %vm14746_vm5 }
 0xaf9   :  { %v3423_v49 = vadd.f32 %v3407_v51, %v3023_v1 }
 0xafa   :  { %v3330_v2 = vpop.xlane.xlu0 %3329  ;;  %v3612_v36 = vmul.f32 0.5, %v3596_v42 }
 0xafb   :  { %v3331_v15 = vcvt.f32.s32 %v3330_v2  ;;  %v3714_v45 = vpop.f32.mrf.mxu3  ;;  %8216 = vmatmul.msk.f32.gmra.mxu3 %vm299_vm2, %v3423_v49  ;;  %8233 = vmatmul.msk.f32.gmra.mxu0 %vm299_vm2, %v3423_v49 }
 0xafc   :  { %v3754_v5 = vmul.f32 %v3714_v45, %v3625_v3  ;;  %v3628_v49 = vmul.f32 %v3612_v36, %v11662_v50  ;;  %v3469_v3 = vpop.f32.mrf.mxu2  ;;  %v8929_v50 = vld [vmem:[%s14594_s10] sm:$0xf] }
 0xafd   :  { %v3334_v57 = vadd.s32 %v3333_v63, %v3331_v15  ;;  %v3470_v26 = vadd.f32 %v11579_v56, %v3469_v3  ;;  %v8254_v15 = vld [vmem:[%s14597_s8 + $0x8] sm:$0xff] }
 0xafe   :  { %8242 = vmatmul.msk.f32.gmra.mxu1 %vm1860_vm11, %v3754_v5  ;;  %4009 = vmatpush.msrb.mxu2 %v8254_v15 }
 0xaff   :  { %vm3392_vm4 = vcmp.eq.s32.totalorder %v9327_v40, %v3334_v57  ;;  %v3501_v63 = vmul.f32 %v3470_v26, %v3470_v26 }
 0xb00   :  { %v3408_v35 = vsel %vm3392_vm4, %v10845_v31, 0.0  ;;  %v3362_v31 = vcvt.f32.s32 %v11566_v37  ;;  %8324 = vmatpush.msk.msra.mxu2 %vm14742_vm1, %v8929_v50  ;;  %vm14751_vm4 = vmmov %vm14749_vm3 }
 0xb01   :  { %v3424_v44 = vadd.f32 %v3408_v35, %v3024_v24  ;;  %v3517_v45 = vmul.f32 %v3501_v63, %v3470_v26  ;;  %vm14757_vm1 = vmmov %vm14749_vm3 }
 0xb02   :  { %v3345_v28 = vpop.xlane.xlu1 %3344  ;;  %v3363_v62 = vshll.u32 %v3362_v31, 16 }
 0xb03   :  { %v3346_v19 = vcvt.f32.s32 %v3345_v28  ;;  %v3717_v22 = vpop.f32.mrf.mxu3  ;;  %8217 = vmatmul.msk.f32.gmra.mxu3 %vm299_vm2, %v3424_v44  ;;  %8234 = vmatmul.msk.f32.gmra.mxu0 %vm299_vm2, %v3424_v44  ;;  %v3533_v57 = vmul.f32 0.044715, %v3517_v45  ;;  %v3783_v28 = vpop.f32.mrf.mxu0 }
 0xb04   :  { %v3755_v46 = vmul.f32 %v3717_v22, %v3626_v27  ;;  %v3472_v33 = vpop.f32.mrf.mxu2 }
 0xb05   :  { %v3349_v58 = vadd.s32 %v3348_v54, %v3346_v19  ;;  %v11747_v7 = vadd.f32 %v11579_v56, %v3472_v33  ;;  %v3549_v53 = vadd.f32 %v3533_v57, %v3470_v26  ;;  %v3377_v54 = vcvt.f32.s32 %v11634_v55 }
 0xb06   :  { %8243 = vmatmul.msk.f32.gmra.mxu1 %vm1860_vm11, %v3755_v46 }
 0xb07   :  { %vm3393_vm13 = vcmp.eq.s32.totalorder %v9327_v40, %v3349_v58  ;;  %v3502_v39 = vmul.f32 %v11747_v7, %v11747_v7  ;;  %v3565_v44 = vmul.f32 0.7978846, %v3549_v53  ;;  %v3378_v48 = vshll.u32 %v3377_v54, 16 }
 0xb08   :  { %v3409_v47 = vsel %vm3393_vm13, %v10859_v60, 0.0  ;;  %v14739_v60 = vld [vmem:[#allocation2_spill] sm:$0xff]  ;;  %vm14753_vm13 = vmmov %vm14749_vm3 }
 0xb09   :  { %v3425_v59 = vadd.f32 %v3409_v47, %v3025_v14  ;;  %v3026_v18 = vsel %vm14741_vm7, %v14739_v60, 0.0  ;;  %v3518_v24 = vmul.f32 %v3502_v39, %v11747_v7  ;;  %8693 = vtanh.f32 %v3565_v44  ;;  %v8931_v44 = vld [vmem:[%s14591_s3] sm:$0xff]  ;;  %vm14756_vm7 = vmmov %vm14752_vm0 }
 0xb0a   :  { %v3360_v4 = vpop.xlane.xlu2 %3359 }
 0xb0b   :  { %v3361_v17 = vcvt.f32.s32 %v3360_v4  ;;  %v3720_v11 = vpop.f32.mrf.mxu3  ;;  %8218 = vmatmul.msk.f32.gmra.mxu3 %vm299_vm2, %v3425_v59  ;;  %8235 = vmatmul.msk.f32.gmra.mxu0 %vm299_vm2, %v3425_v59  ;;  %v3534_v27 = vmul.f32 0.044715, %v3518_v24  ;;  %v3786_v59 = vpop.f32.mrf.mxu0  ;;  %v8930_v24 = vld [vmem:[%s14589_s0] sm:$0xff] }
 0xb0c   :  { %v3756_v37 = vmul.f32 %v3720_v11, %v3627_v23  ;;  %v3475_v5 = vpop.f32.mrf.mxu2 }
 0xb0d   :  { %v3364_v13 = vadd.s32 %v3363_v62, %v3361_v17  ;;  %v11753_v35 = vadd.f32 %v11579_v56, %v3475_v5  ;;  %v3550_v58 = vadd.f32 %v3534_v27, %v11747_v7  ;;  %v14743_v62 = vld [vmem:[#allocation5_spill] sm:$0xff]  ;;  %v14744_v17 = vld [vmem:[#allocation6_spill] sm:$0xff] }
 0xb0e   :  { %8244 = vmatmul.msk.f32.gmra.mxu1 %vm1860_vm11, %v3756_v37  ;;  %vm14745_vm9 = vcmp.eq.s32.totalorder %v9327_v40, %v14744_v17 }
 0xb0f   :  { %vm3394_vm15 = vcmp.eq.s32.totalorder %v9327_v40, %v3364_v13  ;;  %v3503_v16 = vmul.f32 %v11753_v35, %v11753_v35  ;;  %v8694_v14 = vpop.eup %8693  ;;  %v3566_v42 = vmul.f32 0.7978846, %v3550_v58  ;;  %v3027_v11 = vsel %vm14745_vm9, %v14743_v62, 0.0  ;;  %vm14759_vm9 = vmmov %vm14757_vm1 }
 0xb10   :  { %v3410_v1 = vsel %vm3394_vm15, %v14739_v60, 0.0  ;;  %v3597_v55 = vadd.f32 1.0, %v8694_v14  ;;  %vm14755_vm15 = vmmov %vm14749_vm3 }
 0xb11   :  { %v3426_v51 = vadd.f32 %v3410_v1, %v3026_v18  ;;  %v3519_v22 = vmul.f32 %v3503_v16, %v11753_v35  ;;  %8695 = vtanh.f32 %v3566_v42 }
 0xb13   :  { %v3723_v61 = vpop.f32.mrf.mxu3  ;;  %8219 = vmatmul.msk.f32.gmra.mxu3 %vm299_vm2, %v3426_v51  ;;  %8236 = vmatmul.msk.f32.gmra.mxu0 %vm299_vm2, %v3426_v51  ;;  %v3535_v23 = vmul.f32 0.044715, %v3519_v22  ;;  %v3613_v51 = vmul.f32 0.5, %v3597_v55  ;;  %v3789_v33 = vpop.f32.mrf.mxu0 }
 0xb14   :  { %v3757_v2 = vmul.f32 %v3723_v61, %v3628_v49  ;;  %v3478_v0 = vpop.f32.mrf.mxu2 }
 0xb15   :  { %v11759_v19 = vadd.f32 %v11579_v56, %v3478_v0  ;;  %v3551_v1 = vadd.f32 %v3535_v23, %v11753_v35  ;;  %v3629_v63 = vmul.f32 %v3613_v51, %v3470_v26 }
 0xb16   :  { %8245 = vmatmul.msk.f32.gmra.mxu1 %vm1860_vm11, %v3757_v2 }
 0xb17   :  { %v3504_v47 = vmul.f32 %v11759_v19, %v11759_v19  ;;  %v3567_v3 = vmul.f32 0.7978846, %v3551_v1  ;;  %v8696_v15 = vpop.eup %8695 }
 0xb18   :  { %v3598_v26 = vadd.f32 1.0, %v8696_v15 }
 0xb19   :  { %v3520_v13 = vmul.f32 %v3504_v47, %v11759_v19  ;;  %8697 = vtanh.f32 %v3567_v3 }
 0xb1a   :  { %v3614_v22 = vmul.f32 0.5, %v3598_v26 }
 0xb1b   :  { %v3536_v49 = vmul.f32 0.044715, %v3520_v13  ;;  %v3792_v58 = vpop.f32.mrf.mxu0 }
 0xb1c   :  { %v3481_v30 = vpop.f32.mrf.mxu2 }
 0xb1d   :  { %v11773_v43 = vadd.f32 %v11579_v56, %v3481_v30  ;;  %v3552_v57 = vadd.f32 %v3536_v49, %v11759_v19  ;;  %v8933_v49 = vld [vmem:[%s14589_s0 + $0x10] sm:$0xff] }
 0xb1f   :  { %v3505_v2 = vmul.f32 %v11773_v43, %v11773_v43 }
 0xb21   :  { %v3521_v39 = vmul.f32 %v3505_v2, %v11773_v43 }
 0xb23   :  { %v3537_v27 = vmul.f32 0.044715, %v3521_v39  ;;  %v3795_v1 = vpop.f32.mrf.mxu0  ;;  %v8934_v39 = vld [vmem:[%s14589_s0 + $0x18] sm:$0xff] }
 0xb24   :  { %v3484_v61 = vpop.f32.mrf.mxu2 }
 0xb25   :  { %v11784_v53 = vadd.f32 %v11579_v56, %v3484_v61  ;;  %v3553_v47 = vadd.f32 %v3537_v27, %v11773_v43 }
 0xb27   :  { %v3506_v16 = vmul.f32 %v11784_v53, %v11784_v53 }
 0xb2b   :  { %v3798_v26 = vpop.f32.mrf.mxu0 }
 0xb2c   :  { %v3487_v54 = vpop.f32.mrf.mxu2 }
 0xb55   :  { %v3375_v46 = vpop.xlane.xlu0 %3374 }
 0xb56   :  { %v3376_v31 = vcvt.f32.s32 %v3375_v46  ;;  %v8698_v46 = vpop.eup %8697 }
 0xb57   :  { %v3599_v23 = vadd.f32 1.0, %v8698_v46  ;;  %v8935_v46 = vld [vmem:[%s14589_s0 + $0x20] sm:$0xff] }
 0xb58   :  { %v3379_v4 = vadd.s32 %v3378_v48, %v3376_v31  ;;  %v3522_v48 = vmul.f32 %v3506_v16, %v11784_v53  ;;  %v11799_v31 = vadd.f32 %v11579_v56, %v3487_v54 }
 0xb5a   :  { %vm3395_vm10 = vcmp.eq.s32.totalorder %v9327_v40, %v3379_v4  ;;  %v8932_v4 = vld [vmem:[%s14589_s0 + $0x8] sm:$0xff]  ;;  %v3507_v17 = vmul.f32 %v11799_v31, %v11799_v31 }
 0xb5b   :  { %v3411_v37 = vsel %vm3395_vm10, %v14743_v62, 0.0  ;;  %v3896_v36 = vpop.f32.mrf.mxu1  ;;  %v3538_v62 = vmul.f32 0.044715, %v3522_v48  ;;  %vm14758_vm10 = vmmov %vm14752_vm0 }
 0xb5c   :  { %v3427_v60 = vadd.f32 %v3411_v37, %v3027_v11  ;;  %v3897_v18 = vadd.f32 %v3896_v36, %v3783_v28  ;;  %v3568_v28 = vmul.f32 0.7978846, %v3552_v57  ;;  %v3569_v11 = vmul.f32 0.7978846, %v3553_v47 }
 0xb5d   :  { %v3523_v36 = vmul.f32 %v3507_v17, %v11799_v31 }
 0xb5e   :  { %8220 = vmatmul.msk.f32.gmra.mxu3 %vm299_vm2, %v3427_v60  ;;  %8237 = vmatmul.msk.f32.gmra.mxu0 %vm299_vm2, %v3427_v60  ;;  %8699 = vtanh.f32 %v3568_v28 }
 0xb5f   :  { %8255 = vmatmul.msk.f32.vlgmr.msrb.gmra.mxu2 %vm14746_vm5, %v3897_v18  ;;  %8701 = vtanh.f32 %v3569_v11  ;;  %v3554_v18 = vadd.f32 %v3538_v62, %v11784_v53  ;;  %vm14760_vm5 = vmmov %vm14752_vm0 }
 0xb63   :  { %v3726_v50 = vpop.f32.mrf.mxu3  ;;  %v3899_v5 = vpop.f32.mrf.mxu1 }
 0xb64   :  { %v3758_v45 = vmul.f32 %v3726_v50, %v3629_v63  ;;  %v3900_v0 = vadd.f32 %v3899_v5, %v3786_v59  ;;  %v3630_v59 = vmul.f32 %v3614_v22, %v11747_v7  ;;  %v8700_v37 = vpop.eup %8699  ;;  %v3615_v7 = vmul.f32 0.5, %v3599_v23 }
 0xb65   :  { %v3600_v61 = vadd.f32 1.0, %v8700_v37  ;;  %v3570_v63 = vmul.f32 0.7978846, %v3554_v18  ;;  %v8702_v50 = vpop.eup %8701 }
 0xb66   :  { %8246 = vmatmul.msk.f32.gmra.mxu1 %vm1860_vm11, %v3758_v45  ;;  %8276 = vmatmul.msk.f32.vlgmr.msrb.gmra.mxu3 %vm14747_vm12, %v8930_v24  ;;  %v3631_v51 = vmul.f32 %v3615_v7, %v11753_v35  ;;  %vm14761_vm12 = vmmov %vm14757_vm1 }
 0xb67   :  { %8256 = vmatmul.msk.f32.gmra.mxu2 %vm14748_vm6, %v3900_v0  ;;  %6184 = vmatpush.msrb.mxu3 %v8931_v44  ;;  %v3616_v15 = vmul.f32 0.5, %v3600_v61  ;;  %8703 = vtanh.f32 %v3570_v63  ;;  %v3601_v0 = vadd.f32 1.0, %v8702_v50  ;;  %vm14762_vm6 = vmmov %vm14757_vm1  ;;  %v8941_v61 = vld [vmem:[%s14589_s0 + $0x50] sm:$0xff]  ;;  %v8943_v50 = vld [vmem:[%s14589_s0 + $0x60] sm:$0xff] }
 0xb69   :  { %v3632_v57 = vmul.f32 %v3616_v15, %v11759_v19  ;;  %v3617_v27 = vmul.f32 0.5, %v3601_v0 }
 0xb6b   :  { %v3902_v30 = vpop.f32.mrf.mxu1  ;;  %v3633_v19 = vmul.f32 %v3617_v27, %v11773_v43 }
 0xb6c   :  { %v3903_v14 = vadd.f32 %v3902_v30, %v3789_v33  ;;  %v3539_v33 = vmul.f32 0.044715, %v3523_v36 }
 0xb6d   :  { %v8704_v16 = vpop.eup %8703 }
 0xb6e   :  { %8277 = vmatmul.msk.f32.gmra.mxu3 %vm14749_vm3, %v8932_v4  ;;  %v3729_v42 = vpop.f32.mrf.mxu3  ;;  %v3555_v35 = vadd.f32 %v3539_v33, %v11799_v31  ;;  %vm14763_vm3 = vmmov %vm14757_vm1  ;;  %v8942_v33 = vld [vmem:[%s14589_s0 + $0x58] sm:$0xff] }
 0xb6f   :  { %8257 = vmatmul.msk.f32.gmra.mxu2 %vm14750_vm14, %v3903_v14  ;;  %v3759_v55 = vmul.f32 %v3729_v42, %v3630_v59  ;;  %v3801_v14 = vpop.f32.mrf.mxu0  ;;  %v8936_v42 = vld [vmem:[%s14589_s0 + $0x28] sm:$0xff]  ;;  %vm14764_vm14 = vmmov %vm14757_vm1 }
 0xb70   :  { %v3571_v28 = vmul.f32 0.7978846, %v3555_v35 }
 0xb71   :  { %8247 = vmatmul.msk.f32.gmra.mxu1 %vm1860_vm11, %v3759_v55 }
 0xb72   :  { %8705 = vtanh.f32 %v3571_v28 }
 0xb73   :  { %v3905_v13 = vpop.f32.mrf.mxu1 }
 0xb74   :  { %v3906_v60 = vadd.f32 %v3905_v13, %v3792_v58  ;;  %v3602_v58 = vadd.f32 1.0, %v8704_v16 }
 0xb76   :  { %8278 = vmatmul.msk.f32.gmra.mxu3 %vm14751_vm4, %v8933_v49  ;;  %v3732_v2 = vpop.f32.mrf.mxu3  ;;  %v3618_v47 = vmul.f32 0.5, %v3602_v58  ;;  %v3490_v49 = vpop.f32.mrf.mxu2  ;;  %vm14765_vm4 = vmmov %vm14757_vm1 }
 0xb77   :  { %8258 = vmatmul.msk.f32.gmra.mxu2 %vm14752_vm0, %v3906_v60  ;;  %v3760_v3 = vmul.f32 %v3732_v2, %v3631_v51  ;;  %v3804_v37 = vpop.f32.mrf.mxu0  ;;  %v8940_v51 = vld [vmem:[%s14589_s0 + $0x48] sm:$0xff]  ;;  %v3491_v2 = vadd.f32 %v11579_v56, %v3490_v49  ;;  %vm14766_vm0 = vmmov %vm14757_vm1 }
 0xb78   :  { %v8706_v59 = vpop.eup %8705  ;;  %v3634_v43 = vmul.f32 %v3618_v47, %v11784_v53  ;;  %v8937_v53 = vld [vmem:[%s14589_s0 + $0x30] sm:$0xff]  ;;  %v8944_v56 = vld [vmem:[%s14589_s0 + $0x68] sm:$0xff] }
 0xb79   :  { %8248 = vmatmul.msk.f32.gmra.mxu1 %vm1860_vm11, %v3760_v3  ;;  %v3603_v55 = vadd.f32 1.0, %v8706_v59  ;;  %v3508_v3 = vmul.f32 %v3491_v2, %v3491_v2 }
 0xb7b   :  { %v3908_v45 = vpop.f32.mrf.mxu1  ;;  %v3619_v11 = vmul.f32 0.5, %v3603_v55  ;;  %v3524_v63 = vmul.f32 %v3508_v3, %v3491_v2 }
 0xb7c   :  { %v3909_v5 = vadd.f32 %v3908_v45, %v3795_v1  ;;  %v8938_v1 = vld [vmem:[%s14589_s0 + $0x38] sm:$0xff] }
 0xb7d   :  { %v3635_v36 = vmul.f32 %v3619_v11, %v11799_v31  ;;  %v8939_v31 = vld [vmem:[%s14589_s0 + $0x40] sm:$0xff]  ;;  %v3540_v15 = vmul.f32 0.044715, %v3524_v63 }
 0xb7e   :  { %8279 = vmatmul.msk.f32.gmra.mxu3 %vm14753_vm13, %v8934_v39  ;;  %v3735_v24 = vpop.f32.mrf.mxu3  ;;  %vm14767_vm13 = vmmov %vm14766_vm0 }
 0xb7f   :  { %8259 = vmatmul.msk.f32.gmra.mxu2 %vm14754_vm8, %v3909_v5  ;;  %v3761_v44 = vmul.f32 %v3735_v24, %v3632_v57  ;;  %v3556_v45 = vadd.f32 %v3540_v15, %v3491_v2  ;;  %v8945_v57 = vld [vmem:[%s14589_s0 + $0x70] sm:$0xff]  ;;  %vm14768_vm8 = vmmov %vm14766_vm0  ;;  %v3807_v24 = vpop.f32.mrf.mxu0 }
 0xb81   :  { %8249 = vmatmul.msk.f32.gmra.mxu1 %vm1860_vm11, %v3761_v44  ;;  %v3572_v5 = vmul.f32 0.7978846, %v3556_v45 }
 0xb83   :  { %v3911_v54 = vpop.f32.mrf.mxu1  ;;  %8707 = vtanh.f32 %v3572_v5 }
 0xb84   :  { %v3912_v22 = vadd.f32 %v3911_v54, %v3798_v26  ;;  %v8946_v26 = vld [vmem:[%s14589_s0 + $0x78] sm:$0xff] }
 0xb86   :  { %8280 = vmatmul.msk.f32.gmra.mxu3 %vm14755_vm15, %v8935_v46  ;;  %v3738_v30 = vpop.f32.mrf.mxu3  ;;  %vm14769_vm15 = vmmov %vm14766_vm0 }
 0xb87   :  { %8260 = vmatmul.msk.f32.gmra.mxu2 %vm14756_vm7, %v3912_v22  ;;  %v3762_v48 = vmul.f32 %v3738_v30, %v3633_v19  ;;  %v3810_v22 = vpop.f32.mrf.mxu0  ;;  %vm14770_vm7 = vmmov %vm14760_vm5  ;;  %v11891_v19 = vld [vmem:[%s14590_s2 + $0x2] ss:$0 sm:$0xff] }
 0xb88   :  { %v8947_v30 = vld [vmem:[%s14592_s4] sm:$0xff] }
 0xb89   :  { %8250 = vmatmul.msk.f32.gmra.mxu1 %vm1860_vm11, %v3762_v48  ;;  %v8708_v35 = vpop.eup %8707 }
 0xb8a   :  { %v3604_v39 = vadd.f32 1.0, %v8708_v35 }
 0xb8b   :  { %v3914_v4 = vpop.f32.mrf.mxu1 }
 0xb8c   :  { %v3915_v23 = vadd.f32 %v3914_v4, %v3801_v14  ;;  %v3620_v0 = vmul.f32 0.5, %v3604_v39 }
 0xb8e   :  { %8281 = vmatmul.msk.f32.gmra.mxu3 %vm14757_vm1, %v8936_v42  ;;  %v3741_v62 = vpop.f32.mrf.mxu3  ;;  %v3636_v44 = vmul.f32 %v3620_v0, %v3491_v2  ;;  %vm14771_vm1 = vmmov %vm14760_vm5 }
 0xb8f   :  { %8261 = vmatmul.msk.f32.gmra.mxu2 %vm14758_vm10, %v3915_v23  ;;  %v3763_v17 = vmul.f32 %v3741_v62, %v3634_v43  ;;  %vm14772_vm10 = vmmov %vm14771_vm1  ;;  %v3813_v48 = vpop.f32.mrf.mxu0 }
 0xb91   :  { %8251 = vmatmul.msk.f32.gmra.mxu1 %vm1860_vm11, %v3763_v17 }
 0xb93   :  { %v3917_v7 = vpop.f32.mrf.mxu1 }
 0xb94   :  { %v3918_v13 = vadd.f32 %v3917_v7, %v3804_v37 }
 0xb96   :  { %8282 = vmatmul.msk.f32.gmra.mxu3 %vm14759_vm9, %v8937_v53  ;;  %v3744_v60 = vpop.f32.mrf.mxu3  ;;  %vm14773_vm9 = vmmov %vm14771_vm1 }
 0xb97   :  { %8262 = vmatmul.msk.f32.gmra.mxu2 %vm14760_vm5, %v3918_v13  ;;  %v3764_v18 = vmul.f32 %v3744_v60, %v3635_v36  ;;  %vm14774_vm5 = vmmov %vm14771_vm1  ;;  %v3816_v42 = vpop.f32.mrf.mxu0 }
 0xb99   :  { %8252 = vmatmul.msk.f32.gmra.mxu1 %vm1860_vm11, %v3764_v18 }
 0xb9e   :  { %8283 = vmatmul.msk.f32.gmra.mxu3 %vm14761_vm12, %v8938_v1  ;;  %vm14775_vm12 = vmmov %vm14771_vm1 }
 0xb9f   :  { %v3819_v13 = vpop.f32.mrf.mxu0 }
 0xba6   :  { %8284 = vmatmul.msk.f32.gmra.mxu3 %vm14762_vm6, %v8939_v31  ;;  %vm14776_vm6 = vmmov %vm14771_vm1 }
 0xba7   :  { %v3822_v1 = vpop.f32.mrf.mxu0 }
 0xbae   :  { %8285 = vmatmul.msk.f32.gmra.mxu3 %vm14763_vm3, %v8940_v51  ;;  %vm14777_vm3 = vmmov %vm14771_vm1 }
 0xbaf   :  { %v3825_v2 = vpop.f32.mrf.mxu0 }
 0xbb6   :  { %8286 = vmatmul.msk.f32.gmra.mxu3 %vm14764_vm14, %v8941_v61  ;;  %vm14778_vm14 = vmmov %vm14771_vm1 }
 0xbbe   :  { %8287 = vmatmul.msk.f32.gmra.mxu3 %vm14765_vm4, %v8942_v33  ;;  %vm14779_vm4 = vmmov %vm14771_vm1 }
 0xbc6   :  { %8288 = vmatmul.msk.f32.gmra.mxu3 %vm14766_vm0, %v8943_v50  ;;  %vm14780_vm0 = vmmov %vm14771_vm1 }
 0xbce   :  { %8289 = vmatmul.msk.f32.gmra.mxu3 %vm14767_vm13, %v8944_v56  ;;  %vm14781_vm13 = vmmov %vm14780_vm0 }
 0xbd6   :  { %8290 = vmatmul.msk.f32.gmra.mxu3 %vm14768_vm8, %v8945_v57  ;;  %vm14782_vm8 = vmmov %vm14780_vm0 }
 0xbde   :  { %8291 = vmatmul.msk.f32.gmra.mxu3 %vm14769_vm15, %v8946_v26  ;;  %vm14783_vm15 = vmmov %vm14780_vm0 }
 0xbe1   :  { %v3747_v28 = vpop.f32.mrf.mxu3 }
 0xbe2   :  { %v3765_v27 = vmul.f32 %v3747_v28, %v3636_v44 }
 0xbe3   :  { %v3920_v16 = vpop.f32.mrf.mxu1 }
 0xbe4   :  { %v3921_v54 = vadd.f32 %v3920_v16, %v3807_v24  ;;  %8253 = vmatmul.msk.f32.gmra.mxu1 %vm1860_vm11, %v3765_v27  ;;  %v3828_v24 = vpop.f32.mrf.mxu0 }
 0xbe6   :  { %8263 = vmatmul.msk.f32.gmra.mxu2 %vm14770_vm7, %v3921_v54  ;;  %vm14784_vm7 = vmmov %vm14780_vm0 }
 0xbe9   :  { %v4102_v46 = vpop.f32.mrf.mxu3 }
 0xbea   :  { %v4103_v58 = vadd.f32 %v11891_v19, %v4102_v46 }
 0xbec   :  { %8292 = vmatmul.msk.f32.vlgmr.msrb.gmra.mxu0 %vm14771_vm1, %v4103_v58  ;;  %8308 = vmatmul.msk.f32.vlgmr.msra.gmra.mxu1 %vm14772_vm10, %v4103_v58  ;;  %vm14785_vm1 = vmmov %vm14780_vm0 }
 0xbed   :  { %7385 = vmatpush.msrb.mxu0 %v8947_v30  ;;  %vm14786_vm10 = vmmov %vm14780_vm0 }
 0xbee   :  { %v3923_v14 = vpop.f32.mrf.mxu1 }
 0xbef   :  { %v3924_v47 = vadd.f32 %v3923_v14, %v3810_v22 }
 0xbf1   :  { %v4105_v59 = vpop.f32.mrf.mxu3  ;;  %8264 = vmatmul.msk.f32.gmra.mxu2 %vm14773_vm9, %v3924_v47  ;;  %vm14787_vm9 = vmmov %vm14780_vm0 }
 0xbf2   :  { %v4106_v4 = vadd.f32 %v11891_v19, %v4105_v59 }
 0xbf4   :  { %8293 = vmatmul.msk.f32.gmra.mxu0 %vm14774_vm5, %v4106_v4  ;;  %8309 = vmatmul.msk.f32.gmra.mxu1 %vm14775_vm12, %v4106_v4  ;;  %vm14788_vm5 = vmmov %vm14780_vm0 }
 0xbf5   :  { %vm14789_vm12 = vmmov %vm14780_vm0 }
 0xbf6   :  { %v3926_v23 = vpop.f32.mrf.mxu1 }
 0xbf7   :  { %v3927_v43 = vadd.f32 %v3926_v23, %v3813_v48 }
 0xbf9   :  { %v4108_v55 = vpop.f32.mrf.mxu3  ;;  %8265 = vmatmul.msk.f32.gmra.mxu2 %vm14776_vm6, %v3927_v43  ;;  %vm14790_vm6 = vmmov %vm14780_vm0 }
 0xbfa   :  { %v4109_v62 = vadd.f32 %v11891_v19, %v4108_v55 }
 0xbfc   :  { %8294 = vmatmul.msk.f32.gmra.mxu0 %vm14777_vm3, %v4109_v62  ;;  %8310 = vmatmul.msk.f32.gmra.mxu1 %vm14778_vm14, %v4109_v62  ;;  %vm14791_vm3 = vmmov %vm14780_vm0 }
 0xbfd   :  { %vm14792_vm14 = vmmov %vm14780_vm0 }
 0xbfe   :  { %v3929_v17 = vpop.f32.mrf.mxu1 }
 0xbff   :  { %v3930_v11 = vadd.f32 %v3929_v17, %v3816_v42 }
 0xc01   :  { %v4111_v37 = vpop.f32.mrf.mxu3  ;;  %8266 = vmatmul.msk.f32.gmra.mxu2 %vm14779_vm4, %v3930_v11  ;;  %vm14793_vm4 = vmmov %vm14780_vm0 }
 0xc02   :  { %v4112_v7 = vadd.f32 %v11891_v19, %v4111_v37 }
 0xc04   :  { %8295 = vmatmul.msk.f32.gmra.mxu0 %vm14780_vm0, %v4112_v7  ;;  %8311 = vmatmul.msk.f32.gmra.mxu1 %vm14781_vm13, %v4112_v7  ;;  %vm14794_vm13 = vmmov %vm14780_vm0 }
 0xc06   :  { %v3932_v36 = vpop.f32.mrf.mxu1 }
 0xc07   :  { %v3933_v53 = vadd.f32 %v3932_v36, %v3819_v13 }
 0xc09   :  { %v4114_v60 = vpop.f32.mrf.mxu3  ;;  %8267 = vmatmul.msk.f32.gmra.mxu2 %vm14782_vm8, %v3933_v53  ;;  %vm14795_vm8 = vmmov %vm14780_vm0 }
 0xc0a   :  { %v4115_v18 = vadd.f32 %v11891_v19, %v4114_v60 }
 0xc0c   :  { %8296 = vmatmul.msk.f32.gmra.mxu0 %vm14783_vm15, %v4115_v18  ;;  %8312 = vmatmul.msk.f32.gmra.mxu1 %vm14784_vm7, %v4115_v18  ;;  %vm14796_vm15 = vmmov %vm14780_vm0 }
 0xc0d   :  { %vm14797_vm7 = vmmov %vm14780_vm0 }
 0xc0e   :  { %v3935_v31 = vpop.f32.mrf.mxu1 }
 0xc0f   :  { %v3936_v51 = vadd.f32 %v3935_v31, %v3822_v1 }
 0xc11   :  { %v4117_v49 = vpop.f32.mrf.mxu3  ;;  %8268 = vmatmul.msk.f32.gmra.mxu2 %vm14785_vm1, %v3936_v51  ;;  %vm14798_vm1 = vmmov %vm14780_vm0 }
 0xc12   :  { %v4118_v61 = vadd.f32 %v11891_v19, %v4117_v49 }
 0xc14   :  { %8297 = vmatmul.msk.f32.gmra.mxu0 %vm14786_vm10, %v4118_v61  ;;  %8313 = vmatmul.msk.f32.gmra.mxu1 %vm14787_vm9, %v4118_v61  ;;  %vm14799_vm10 = vmmov %vm14780_vm0 }
 0xc15   :  { %vm14800_vm9 = vmmov %vm14780_vm0 }
 0xc16   :  { %v3938_v3 = vpop.f32.mrf.mxu1 }
 0xc17   :  { %v3939_v33 = vadd.f32 %v3938_v3, %v3825_v2 }
 0xc19   :  { %v4120_v63 = vpop.f32.mrf.mxu3  ;;  %8269 = vmatmul.msk.f32.gmra.mxu2 %vm14788_vm5, %v3939_v33  ;;  %vm14801_vm5 = vmmov %vm14780_vm0 }
 0xc1a   :  { %v4121_v15 = vadd.f32 %v11891_v19, %v4120_v63 }
 0xc1c   :  { %8298 = vmatmul.msk.f32.gmra.mxu0 %vm14789_vm12, %v4121_v15  ;;  %8314 = vmatmul.msk.f32.gmra.mxu1 %vm14790_vm6, %v4121_v15  ;;  %vm14802_vm12 = vmmov %vm14780_vm0 }
 0xc1d   :  { %vm14803_vm6 = vmmov %vm14780_vm0 }
 0xc21   :  { %v4123_v50 = vpop.f32.mrf.mxu3 }
 0xc22   :  { %v4124_v45 = vadd.f32 %v11891_v19, %v4123_v50 }
 0xc24   :  { %8299 = vmatmul.msk.f32.gmra.mxu0 %vm14791_vm3, %v4124_v45  ;;  %8315 = vmatmul.msk.f32.gmra.mxu1 %vm14792_vm14, %v4124_v45  ;;  %vm14804_vm3 = vmmov %vm14780_vm0 }
 0xc25   :  { %vm14805_vm14 = vmmov %vm14780_vm0 }
 0xc29   :  { %v4126_v5 = vpop.f32.mrf.mxu3 }
 0xc2a   :  { %v4127_v56 = vadd.f32 %v11891_v19, %v4126_v5 }
 0xc2c   :  { %8316 = vmatmul.msk.f32.gmra.mxu1 %vm14793_vm4, %v4127_v56  ;;  %8300 = vmatmul.msk.f32.gmra.mxu0 %vm14780_vm0, %v4127_v56  ;;  %vm14806_vm4 = vmmov %vm14780_vm0 }
 0xc31   :  { %v4129_v35 = vpop.f32.mrf.mxu3 }
 0xc32   :  { %v4130_v57 = vadd.f32 %v11891_v19, %v4129_v35 }
 0xc34   :  { %8301 = vmatmul.msk.f32.gmra.mxu0 %vm14794_vm13, %v4130_v57  ;;  %8317 = vmatmul.msk.f32.gmra.mxu1 %vm14795_vm8, %v4130_v57  ;;  %vm14807_vm13 = vmmov %vm14780_vm0 }
 0xc39   :  { %v4132_v39 = vpop.f32.mrf.mxu3 }
 0xc3a   :  { %v4133_v0 = vadd.f32 %v11891_v19, %v4132_v39 }
 0xc3c   :  { %8302 = vmatmul.msk.f32.gmra.mxu0 %vm14796_vm15, %v4133_v0  ;;  %8318 = vmatmul.msk.f32.gmra.mxu1 %vm14797_vm7, %v4133_v0 }
 0xc41   :  { %v4135_v28 = vpop.f32.mrf.mxu3 }
 0xc42   :  { %v4136_v27 = vadd.f32 %v11891_v19, %v4135_v28 }
 0xc44   :  { %8303 = vmatmul.msk.f32.gmra.mxu0 %vm14799_vm10, %v4136_v27  ;;  %8319 = vmatmul.msk.f32.gmra.mxu1 %vm14800_vm9, %v4136_v27 }
 0xc49   :  { %v4138_v22 = vpop.f32.mrf.mxu3 }
 0xc4a   :  { %v4139_v46 = vadd.f32 %v11891_v19, %v4138_v22 }
 0xc4c   :  { %8304 = vmatmul.msk.f32.gmra.mxu0 %vm14801_vm5, %v4139_v46  ;;  %8320 = vmatmul.msk.f32.gmra.mxu1 %vm14802_vm12, %v4139_v46 }
 0xc51   :  { %v4141_v48 = vpop.f32.mrf.mxu3 }
 0xc52   :  { %v4142_v14 = vadd.f32 %v11891_v19, %v4141_v48 }
 0xc54   :  { %8305 = vmatmul.msk.f32.gmra.mxu0 %vm14803_vm6, %v4142_v14  ;;  %8321 = vmatmul.msk.f32.gmra.mxu1 %vm14804_vm3, %v4142_v14 }
 0xc59   :  { %v4144_v4 = vpop.f32.mrf.mxu3 }
 0xc5a   :  { %v4145_v23 = vadd.f32 %v11891_v19, %v4144_v4 }
 0xc5c   :  { %8306 = vmatmul.msk.f32.gmra.mxu0 %vm14805_vm14, %v4145_v23  ;;  %8322 = vmatmul.msk.f32.gmra.mxu1 %vm14806_vm4, %v4145_v23 }
 0xc61   :  { %v3941_v26 = vpop.f32.mrf.mxu1  ;;  %v4147_v55 = vpop.f32.mrf.mxu3 }
 0xc62   :  { %v3942_v44 = vadd.f32 %v3941_v26, %v3828_v24  ;;  %v4148_v62 = vadd.f32 %v11891_v19, %v4147_v55 }
 0xc64   :  { %8270 = vmatmul.msk.f32.gmra.mxu2 %vm14798_vm1, %v3942_v44  ;;  %8307 = vmatmul.msk.f32.gmra.mxu0 %vm14780_vm0, %v4148_v62 }
 0xc65   :  { %8323 = vmatmul.msk.f32.gmra.mxu1 %vm14807_vm13, %v4148_v62 }
 0xc69   :  { %v4215_v16 = vpop.f32.mrf.mxu0 }
 0xc6a   :  { %v4263_v54 = vsel %vm299_vm2, %v4215_v16, -inf }
 0xc6b   :  { %4264 = vmax.xlane.f32.xlu1 %v4263_v54 }
 0xc71   :  { %v4218_v58 = vpop.f32.mrf.mxu0 }
 0xc72   :  { %v4266_v30 = vsel %vm299_vm2, %v4218_v58, -inf }
 0xc73   :  { %4267 = vmax.xlane.f32.xlu2 %v4266_v30 }
 0xc79   :  { %v4221_v47 = vpop.f32.mrf.mxu0 }
 0xc7a   :  { %v4269_v59 = vsel %vm299_vm2, %v4221_v47, -inf }
 0xc7b   :  { %4270 = vmax.xlane.f32.xlu0 %v4269_v59 }
 0xc81   :  { %v4224_v43 = vpop.f32.mrf.mxu0 }
 0xc82   :  { %v4272_v42 = vsel %vm299_vm2, %v4224_v43, -inf }
 0xc83   :  { %4273 = vmax.xlane.f32.xlu1 %v4272_v42 }
 0xc89   :  { %v4227_v17 = vpop.f32.mrf.mxu0 }
 0xc8a   :  { %v4275_v11 = vsel %vm299_vm2, %v4227_v17, -inf }
 0xc8b   :  { %4276 = vmax.xlane.f32.xlu2 %v4275_v11 }
 0xc91   :  { %v4230_v37 = vpop.f32.mrf.mxu0 }
 0xc92   :  { %v4278_v7 = vsel %vm299_vm2, %v4230_v37, -inf }
 0xc93   :  { %4279 = vmax.xlane.f32.xlu0 %v4278_v7 }
 0xc99   :  { %v4233_v13 = vpop.f32.mrf.mxu0 }
 0xc9a   :  { %v4281_v36 = vsel %vm299_vm2, %v4233_v13, -inf }
 0xc9b   :  { %4282 = vmax.xlane.f32.xlu1 %v4281_v36 }
 0xca1   :  { %v11958_v53 = vpop.f32.mrf.mxu0 }
 0xca2   :  { %v4284_v19 = vsel %vm299_vm2, %v11958_v53, -inf }
 0xca3   :  { %4285 = vmax.xlane.f32.xlu0 %v4284_v19 }
 0xca9   :  { %v11962_v1 = vpop.f32.mrf.mxu0 }
 0xcaa   :  { %v4287_v50 = vsel %vm299_vm2, %v11962_v1, -inf }
 0xcb1   :  { %v11966_v3 = vpop.f32.mrf.mxu0 }
 0xcb2   :  { %v4290_v0 = vsel %vm299_vm2, %v11966_v3, -inf }
 0xcb9   :  { %v11976_v35 = vpop.f32.mrf.mxu0 }
 0xcba   :  { %v4293_v54 = vsel %vm299_vm2, %v11976_v35, -inf }
 0xcc1   :  { %v11984_v28 = vpop.f32.mrf.mxu0 }
 0xcc9   :  { %v11992_v14 = vpop.f32.mrf.mxu0 }
 0xcca   :  { %v4299_v55 = vsel %vm299_vm2, %v11992_v14, -inf }
 0xcd1   :  { %v12004_v11 = vpop.f32.mrf.mxu0 }
 0xcde   :  { %v4265_v60 = vpop.xlane.xlu1 %4264 }
 0xcdf   :  { %v4311_v18 = vsub.f32 %v4215_v16, %v4265_v60 }
 0xce1   :  { %v4327_v31 = vmul.f32 1.442695, %v4311_v18 }
 0xce3   :  { %8709 = vpow2.f32 %v4327_v31  ;;  %v12015_v31 = vpop.f32.mrf.mxu0 }
 0xce6   :  { %v4268_v51 = vpop.xlane.xlu2 %4267 }
 0xce7   :  { %v4312_v49 = vsub.f32 %v4218_v58, %v4268_v51  ;;  %v4305_v51 = vsel %vm299_vm2, %v12015_v31, -inf }
 0xce9   :  { %v11964_v61 = vpop.eup %8709  ;;  %v4329_v2 = vmul.f32 1.442695, %v4312_v49 }
 0xcea   :  { %v4359_v33 = vsel %vm299_vm2, %v11964_v61, 0.0 }
 0xceb   :  { %8711 = vpow2.f32 %v4329_v2  ;;  %4360 = vadd.xlane.f32.xlu2 %v4359_v33  ;;  %v12023_v2 = vpop.f32.mrf.mxu0 }
 0xcec   :  { %v4308_v33 = vsel %vm299_vm2, %v12023_v2, -inf }
 0xcee   :  { %v4271_v63 = vpop.xlane.xlu0 %4270 }
 0xcef   :  { %v4313_v15 = vsub.f32 %v4221_v47, %v4271_v63  ;;  %v4296_v47 = vsel %vm299_vm2, %v11984_v28, -inf }
 0xcf1   :  { %v11972_v45 = vpop.eup %8711  ;;  %v4331_v5 = vmul.f32 1.442695, %v4313_v15 }
 0xcf2   :  { %v4362_v56 = vsel %vm299_vm2, %v11972_v45, 0.0 }
 0xcf3   :  { %8713 = vpow2.f32 %v4331_v5  ;;  %4363 = vadd.xlane.f32.xlu1 %v4362_v56  ;;  %4288 = vmax.xlane.f32.xlu2 %v4287_v50 }
 0xcf6   :  { %v4274_v57 = vpop.xlane.xlu1 %4273 }
 0xcf7   :  { %v4314_v39 = vsub.f32 %v4224_v43, %v4274_v57 }
 0xcf9   :  { %v11980_v24 = vpop.eup %8713  ;;  %v4333_v26 = vmul.f32 1.442695, %v4314_v39 }
 0xcfa   :  { %v4365_v44 = vsel %vm299_vm2, %v11980_v24, 0.0 }
 0xcfb   :  { %8715 = vpow2.f32 %v4333_v26  ;;  %4366 = vadd.xlane.f32.xlu0 %v4365_v44  ;;  %4291 = vmax.xlane.f32.xlu1 %v4290_v0 }
 0xcfe   :  { %v4277_v27 = vpop.xlane.xlu2 %4276 }
 0xcff   :  { %v4315_v16 = vsub.f32 %v4227_v17, %v4277_v27 }
 0xd01   :  { %v11988_v22 = vpop.eup %8715  ;;  %v4335_v46 = vmul.f32 1.442695, %v4315_v16 }
 0xd02   :  { %v4368_v58 = vsel %vm299_vm2, %v11988_v22, 0.0 }
 0xd03   :  { %8717 = vpow2.f32 %v4335_v46  ;;  %4369 = vadd.xlane.f32.xlu2 %v4368_v58  ;;  %4294 = vmax.xlane.f32.xlu0 %v4293_v54 }
 0xd06   :  { %v4280_v30 = vpop.xlane.xlu0 %4279 }
 0xd07   :  { %v4316_v48 = vsub.f32 %v4230_v37, %v4280_v30 }
 0xd09   :  { %v11996_v59 = vpop.eup %8717  ;;  %v4337_v4 = vmul.f32 1.442695, %v4316_v48 }
 0xd0a   :  { %v4371_v23 = vsel %vm299_vm2, %v11996_v59, 0.0 }
 0xd0b   :  { %8719 = vpow2.f32 %v4337_v4  ;;  %4372 = vadd.xlane.f32.xlu1 %v4371_v23  ;;  %4297 = vmax.xlane.f32.xlu2 %v4296_v47 }
 0xd0e   :  { %v4283_v43 = vpop.xlane.xlu1 %4282 }
 0xd0f   :  { %v4317_v42 = vsub.f32 %v4233_v13, %v4283_v43  ;;  %v4302_v13 = vsel %vm299_vm2, %v12004_v11, -inf }
 0xd11   :  { %v12002_v62 = vpop.eup %8719  ;;  %v4339_v17 = vmul.f32 1.442695, %v4317_v42 }
 0xd12   :  { %v4374_v37 = vsel %vm299_vm2, %v12002_v62, 0.0 }
 0xd13   :  { %8721 = vpow2.f32 %v4339_v17  ;;  %4375 = vadd.xlane.f32.xlu0 %v4374_v37  ;;  %4300 = vmax.xlane.f32.xlu1 %v4299_v55 }
 0xd16   :  { %v4286_v7 = vpop.xlane.xlu0 %4285 }
 0xd17   :  { %v4318_v36 = vsub.f32 %v11958_v53, %v4286_v7 }
 0xd19   :  { %v12011_v19 = vpop.eup %8721  ;;  %v4341_v60 = vmul.f32 1.442695, %v4318_v36 }
 0xd1a   :  { %v4377_v18 = vsel %vm299_vm2, %v12011_v19, 0.0 }
 0xd1b   :  { %8723 = vpow2.f32 %v4341_v60  ;;  %4378 = vadd.xlane.f32.xlu2 %v4377_v18  ;;  %4303 = vmax.xlane.f32.xlu0 %v4302_v13 }
 0xd21   :  { %v12019_v49 = vpop.eup %8723 }
 0xd22   :  { %v4380_v53 = vsel %vm299_vm2, %v12019_v49, 0.0 }
 0xd23   :  { %4381 = vadd.xlane.f32.xlu1 %v4380_v53  ;;  %4306 = vmax.xlane.f32.xlu2 %v4305_v51 }
 0xd2b   :  { %4309 = vmax.xlane.f32.xlu2 %v4308_v33 }
 0xd5e   :  { %v4361_v63 = vpop.xlane.xlu2 %4360 }
 0xd5f   :  { %8725 = vrcp.f32 %v4361_v63  ;;  %v4418_v0 = vand.u32 2147483648, %v4361_v63  ;;  %v4416_v44 = vand.u32 2147483647, %v4361_v63  ;;  %vm4412_vm15 = vweird.f32 %v4361_v63 }
 0xd61   :  { %v4419_v46 = vor.u32 1.1754944e-38, %v4418_v0  ;;  %vm4417_vm1 = vcmp.eq.f32.partialorder %v4416_v44, 8.507059e+37 }
 0xd65   :  { %v8726_v15 = vpop.eup %8725 }
 0xd66   :  { %v4408_v50 = vmul.f32 %v8726_v15, %v4361_v63  ;;  %v4364_v5 = vpop.xlane.xlu1 %4363  ;;  %v4289_v56 = vpop.xlane.xlu2 %4288  ;;  %vm4413_vm8 = vweird.f32 %v8726_v15 }
 0xd67   :  { %8727 = vrcp.f32 %v4364_v5  ;;  %v4319_v39 = vsub.f32 %v11962_v1, %v4289_v56  ;;  %vm4414_vm7 = vmor %vm4412_vm15, %vm4413_vm8  ;;  %v4431_v42 = vand.u32 2147483647, %v4364_v5  ;;  %v4433_v55 = vand.u32 2147483648, %v4364_v5 }
 0xd68   :  { %v4409_v57 = vsub.f32 1.0, %v4408_v50  ;;  %vm4427_vm9 = vweird.f32 %v4364_v5 }
 0xd69   :  { %v4343_v27 = vmul.f32 1.442695, %v4319_v39  ;;  %vm4432_vm12 = vcmp.eq.f32.partialorder %v4431_v42, 8.507059e+37 }
 0xd6a   :  { %v4410_v26 = vmul.f32 %v8726_v15, %v4409_v57 }
 0xd6b   :  { %8729 = vpow2.f32 %v4343_v27 }
 0xd6c   :  { %v4411_v16 = vadd.f32 %v8726_v15, %v4410_v26 }
 0xd6d   :  { %v8728_v54 = vpop.eup %8727 }
 0xd6e   :  { %v4415_v58 = vsel %vm4414_vm7, %v8726_v15, %v4411_v16  ;;  %v4423_v30 = vmul.f32 %v8728_v54, %v4364_v5  ;;  %v4367_v48 = vpop.xlane.xlu0 %4366  ;;  %v4292_v47 = vpop.xlane.xlu1 %4291  ;;  %vm4428_vm10 = vweird.f32 %v8728_v54 }
 0xd6f   :  { %v4420_v4 = vsel %vm4417_vm1, %v4419_v46, %v4415_v58  ;;  %8731 = vrcp.f32 %v4367_v48  ;;  %v4320_v1 = vsub.f32 %v11966_v3, %v4292_v47  ;;  %vm4429_vm5 = vmor %vm4427_vm9, %vm4428_vm10  ;;  %v4434_v3 = vor.u32 1.1754944e-38, %v4433_v55 }
 0xd70   :  { %v4424_v23 = vsub.f32 1.0, %v4423_v30  ;;  %v12030_v43 = vmul.f32 %v11964_v61, %v4420_v4  ;;  %v4446_v57 = vand.u32 2147483647, %v4367_v48  ;;  %v4448_v5 = vand.u32 2147483648, %v4367_v48 }
 0xd71   :  { %v12032_v17 = vpop.eup %8729  ;;  %v4345_v7 = vmul.f32 1.442695, %v4320_v1  ;;  %vm4442_vm3 = vweird.f32 %v4367_v48 }
 0xd72   :  { %v4425_v37 = vmul.f32 %v8728_v54, %v4424_v23  ;;  %v4647_v36 = vsel %vm299_vm2, %v12030_v43, -inf  ;;  %v4383_v13 = vsel %vm299_vm2, %v12032_v17, 0.0  ;;  %vm4447_vm4 = vcmp.eq.f32.partialorder %v4446_v57, 8.507059e+37 }
 0xd73   :  { %4648 = vmax.xlane.f32.xlu0 %v4647_v36  ;;  %8733 = vpow2.f32 %v4345_v7  ;;  %4384 = vadd.xlane.f32.xlu1 %v4383_v13 }
 0xd74   :  { %v4426_v60 = vadd.f32 %v8728_v54, %v4425_v37 }
 0xd75   :  { %v8732_v61 = vpop.eup %8731 }
 0xd76   :  { %v4430_v18 = vsel %vm4429_vm5, %v8728_v54, %v4426_v60  ;;  %v4438_v51 = vmul.f32 %v8732_v61, %v4367_v48  ;;  %v4370_v53 = vpop.xlane.xlu2 %4369  ;;  %v4295_v33 = vpop.xlane.xlu0 %4294  ;;  %vm4443_vm6 = vweird.f32 %v8732_v61 }
 0xd77   :  { %v4435_v63 = vsel %vm4432_vm12, %v4434_v3, %v4430_v18  ;;  %8735 = vrcp.f32 %v4370_v53  ;;  %v4321_v50 = vsub.f32 %v11976_v35, %v4295_v33  ;;  %vm4444_vm14 = vmor %vm4442_vm3, %vm4443_vm6  ;;  %v4449_v35 = vor.u32 1.1754944e-38, %v4448_v5 }
 0xd78   :  { %v4439_v15 = vsub.f32 1.0, %v4438_v51  ;;  %v12040_v56 = vmul.f32 %v11972_v45, %v4435_v63  ;;  %v4461_v42 = vand.u32 2147483647, %v4370_v53  ;;  %v4463_v48 = vand.u32 2147483648, %v4370_v53 }
 0xd79   :  { %v12042_v39 = vpop.eup %8733  ;;  %v4347_v26 = vmul.f32 1.442695, %v4321_v50  ;;  %vm4457_vm13 = vweird.f32 %v4370_v53 }
 0xd7a   :  { %v4440_v0 = vmul.f32 %v8732_v61, %v4439_v15  ;;  %v4650_v44 = vsel %vm299_vm2, %v12040_v56, -inf  ;;  %v4386_v27 = vsel %vm299_vm2, %v12042_v39, 0.0  ;;  %vm4462_vm15 = vcmp.eq.f32.partialorder %v4461_v42, 8.507059e+37 }
 0xd7b   :  { %4651 = vmax.xlane.f32.xlu0 %v4650_v44  ;;  %8737 = vpow2.f32 %v4347_v26  ;;  %4387 = vadd.xlane.f32.xlu1 %v4386_v27 }
 0xd7c   :  { %v4441_v16 = vadd.f32 %v8732_v61, %v4440_v0 }
 0xd7d   :  { %v8736_v45 = vpop.eup %8735 }
 0xd7e   :  { %v4445_v54 = vsel %vm4444_vm14, %v8732_v61, %v4441_v16  ;;  %v4453_v46 = vmul.f32 %v8736_v45, %v4370_v53  ;;  %v4373_v58 = vpop.xlane.xlu1 %4372  ;;  %v4298_v30 = vpop.xlane.xlu2 %4297  ;;  %vm4458_vm0 = vweird.f32 %v8736_v45 }
 0xd7f   :  { %v4450_v47 = vsel %vm4447_vm4, %v4449_v35, %v4445_v54  ;;  %8739 = vrcp.f32 %v4373_v58  ;;  %v4322_v23 = vsub.f32 %v11984_v28, %v4298_v30  ;;  %vm4459_vm8 = vmor %vm4457_vm13, %vm4458_vm0  ;;  %v4464_v28 = vor.u32 1.1754944e-38, %v4463_v48 }
 0xd80   :  { %v4454_v4 = vsub.f32 1.0, %v4453_v46  ;;  %v12050_v1 = vmul.f32 %v11980_v24, %v4450_v47  ;;  %v4476_v57 = vand.u32 2147483647, %v4373_v58  ;;  %v4478_v53 = vand.u32 2147483648, %v4373_v58 }
 0xd81   :  { %v12052_v55 = vpop.eup %8737  ;;  %v4349_v7 = vmul.f32 1.442695, %v4322_v23  ;;  %vm4472_vm1 = vweird.f32 %v4373_v58 }
 0xd82   :  { %v4455_v37 = vmul.f32 %v8736_v45, %v4454_v4  ;;  %v4653_v36 = vsel %vm299_vm2, %v12050_v1, -inf  ;;  %v4389_v13 = vsel %vm299_vm2, %v12052_v55, 0.0  ;;  %vm4477_vm9 = vcmp.eq.f32.partialorder %v4476_v57, 8.507059e+37 }
 0xd83   :  { %4654 = vmax.xlane.f32.xlu2 %v4653_v36  ;;  %8741 = vpow2.f32 %v4349_v7  ;;  %4390 = vadd.xlane.f32.xlu0 %v4389_v13 }
 0xd84   :  { %v4456_v60 = vadd.f32 %v8736_v45, %v4455_v37 }
 0xd85   :  { %v8740_v24 = vpop.eup %8739 }
 0xd86   :  { %v4460_v61 = vsel %vm4459_vm8, %v8736_v45, %v4456_v60  ;;  %v4468_v3 = vmul.f32 %v8740_v24, %v4373_v58  ;;  %v4376_v18 = vpop.xlane.xlu0 %4375  ;;  %v4301_v51 = vpop.xlane.xlu1 %4300  ;;  %vm4473_vm7 = vweird.f32 %v8740_v24 }
 0xd87   :  { %v4465_v33 = vsel %vm4462_vm15, %v4464_v28, %v4460_v61  ;;  %8743 = vrcp.f32 %v4376_v18  ;;  %v4323_v15 = vsub.f32 %v11992_v14, %v4301_v51  ;;  %vm4474_vm10 = vmor %vm4472_vm1, %vm4473_vm7  ;;  %v4479_v14 = vor.u32 1.1754944e-38, %v4478_v53 }
 0xd88   :  { %v4469_v63 = vsub.f32 1.0, %v4468_v3  ;;  %v12060_v50 = vmul.f32 %v11988_v22, %v4465_v33  ;;  %v4491_v42 = vand.u32 2147483647, %v4376_v18  ;;  %v4493_v58 = vand.u32 2147483648, %v4376_v18 }
 0xd89   :  { %v12062_v5 = vpop.eup %8741  ;;  %v4351_v26 = vmul.f32 1.442695, %v4323_v15  ;;  %vm4487_vm12 = vweird.f32 %v4376_v18 }
 0xd8a   :  { %v4470_v0 = vmul.f32 %v8740_v24, %v4469_v63  ;;  %v4656_v44 = vsel %vm299_vm2, %v12060_v50, -inf  ;;  %v4392_v27 = vsel %vm299_vm2, %v12062_v5, 0.0  ;;  %vm4492_vm3 = vcmp.eq.f32.partialorder %v4491_v42, 8.507059e+37 }
 0xd8b   :  { %4657 = vmax.xlane.f32.xlu1 %v4656_v44  ;;  %8745 = vpow2.f32 %v4351_v26  ;;  %4393 = vadd.xlane.f32.xlu2 %v4392_v27 }
 0xd8c   :  { %v4471_v16 = vadd.f32 %v8740_v24, %v4470_v0 }
 0xd8d   :  { %v8744_v22 = vpop.eup %8743 }
 0xd8e   :  { %v4475_v45 = vsel %vm4474_vm10, %v8740_v24, %v4471_v16  ;;  %v4483_v35 = vmul.f32 %v8744_v22, %v4376_v18  ;;  %v4379_v54 = vpop.xlane.xlu2 %4378  ;;  %v4304_v46 = vpop.xlane.xlu0 %4303  ;;  %vm4488_vm5 = vweird.f32 %v8744_v22 }
 0xd8f   :  { %v4480_v30 = vsel %vm4477_vm9, %v4479_v14, %v4475_v45  ;;  %8747 = vrcp.f32 %v4379_v54  ;;  %v4324_v4 = vsub.f32 %v12004_v11, %v4304_v46  ;;  %vm4489_vm6 = vmor %vm4487_vm12, %vm4488_vm5  ;;  %v4494_v11 = vor.u32 1.1754944e-38, %v4493_v58 }
 0xd90   :  { %v4484_v47 = vsub.f32 1.0, %v4483_v35  ;;  %v12070_v23 = vmul.f32 %v11996_v59, %v4480_v30  ;;  %v4506_v57 = vand.u32 2147483647, %v4379_v54  ;;  %v4508_v18 = vand.u32 2147483648, %v4379_v54 }
 0xd91   :  { %v12072_v48 = vpop.eup %8745  ;;  %v4353_v7 = vmul.f32 1.442695, %v4324_v4  ;;  %vm4502_vm4 = vweird.f32 %v4379_v54 }
 0xd92   :  { %v4485_v37 = vmul.f32 %v8744_v22, %v4484_v47  ;;  %v4659_v36 = vsel %vm299_vm2, %v12070_v23, -inf  ;;  %v4395_v13 = vsel %vm299_vm2, %v12072_v48, 0.0  ;;  %vm4507_vm13 = vcmp.eq.f32.partialorder %v4506_v57, 8.507059e+37 }
 0xd93   :  { %4660 = vmax.xlane.f32.xlu0 %v4659_v36  ;;  %8749 = vpow2.f32 %v4353_v7  ;;  %4396 = vadd.xlane.f32.xlu1 %v4395_v13 }
 0xd94   :  { %v4486_v60 = vadd.f32 %v8744_v22, %v4485_v37 }
 0xd95   :  { %v8748_v59 = vpop.eup %8747 }
 0xd96   :  { %v4490_v24 = vsel %vm4489_vm6, %v8744_v22, %v4486_v60  ;;  %v4498_v28 = vmul.f32 %v8748_v59, %v4379_v54  ;;  %v4382_v61 = vpop.xlane.xlu1 %4381  ;;  %v4307_v3 = vpop.xlane.xlu2 %4306  ;;  %vm4503_vm14 = vweird.f32 %v8748_v59 }
 0xd97   :  { %v4495_v51 = vsel %vm4492_vm3, %v4494_v11, %v4490_v24  ;;  %8751 = vrcp.f32 %v4382_v61  ;;  %v4325_v63 = vsub.f32 %v12015_v31, %v4307_v3  ;;  %vm4504_vm0 = vmor %vm4502_vm4, %vm4503_vm14  ;;  %v4509_v31 = vor.u32 1.1754944e-38, %v4508_v18 }
 0xd98   :  { %v4499_v33 = vsub.f32 1.0, %v4498_v28  ;;  %v12080_v15 = vmul.f32 %v12002_v62, %v4495_v51  ;;  %v4523_v4 = vand.u32 2147483648, %v4382_v61  ;;  %v4521_v37 = vand.u32 2147483647, %v4382_v61 }
 0xd99   :  { %v12082_v53 = vpop.eup %8749  ;;  %v4355_v26 = vmul.f32 1.442695, %v4325_v63  ;;  %vm4517_vm15 = vweird.f32 %v4382_v61 }
 0xd9a   :  { %v4500_v0 = vmul.f32 %v8748_v59, %v4499_v33  ;;  %v4662_v44 = vsel %vm299_vm2, %v12080_v15, -inf  ;;  %v4398_v27 = vsel %vm299_vm2, %v12082_v53, 0.0  ;;  %vm4522_vm1 = vcmp.eq.f32.partialorder %v4521_v37, 8.507059e+37 }
 0xd9b   :  { %4663 = vmax.xlane.f32.xlu2 %v4662_v44  ;;  %8753 = vpow2.f32 %v4355_v26  ;;  %4399 = vadd.xlane.f32.xlu0 %v4398_v27 }
 0xd9c   :  { %v4501_v16 = vadd.f32 %v8748_v59, %v4500_v0 }
 0xd9d   :  { %v8752_v62 = vpop.eup %8751 }
 0xd9e   :  { %v4505_v22 = vsel %vm4504_vm0, %v8748_v59, %v4501_v16  ;;  %v4513_v14 = vmul.f32 %v8752_v62, %v4382_v61  ;;  %v4310_v45 = vpop.xlane.xlu2 %4309  ;;  %vm4518_vm8 = vweird.f32 %v8752_v62 }
 0xd9f   :  { %v4510_v35 = vsel %vm4507_vm13, %v4509_v31, %v4505_v22  ;;  %v4326_v46 = vsub.f32 %v12023_v2, %v4310_v45  ;;  %vm4519_vm7 = vmor %vm4517_vm15, %vm4518_vm8 }
 0xda0   :  { %v4514_v30 = vsub.f32 1.0, %v4513_v14  ;;  %v12090_v47 = vmul.f32 %v12011_v19, %v4510_v35  ;;  %v4524_v19 = vor.u32 1.1754944e-38, %v4523_v4 }
 0xda1   :  { %v4357_v42 = vmul.f32 1.442695, %v4326_v46  ;;  %v12092_v58 = vpop.eup %8753 }
 0xda2   :  { %v4515_v54 = vmul.f32 %v8752_v62, %v4514_v30  ;;  %v4665_v7 = vsel %vm299_vm2, %v12090_v47, -inf  ;;  %v4401_v36 = vsel %vm299_vm2, %v12092_v58, 0.0 }
 0xda3   :  { %8755 = vpow2.f32 %v4357_v42  ;;  %4666 = vmax.xlane.f32.xlu2 %v4665_v7  ;;  %4402 = vadd.xlane.f32.xlu0 %v4401_v36 }
 0xda4   :  { %v4516_v2 = vadd.f32 %v8752_v62, %v4515_v54 }
 0xda6   :  { %v4520_v13 = vsel %vm4519_vm7, %v8752_v62, %v4516_v2 }
 0xda7   :  { %v4525_v60 = vsel %vm4522_vm1, %v4524_v19, %v4520_v13 }
 0xda8   :  { %v12099_v59 = vmul.f32 %v12019_v49, %v4525_v60 }
 0xda9   :  { %v12101_v11 = vpop.eup %8755 }
 0xdaa   :  { %v4668_v24 = vsel %vm299_vm2, %v12099_v59, -inf  ;;  %v4404_v28 = vsel %vm299_vm2, %v12101_v11, 0.0 }
 0xdab   :  { %4669 = vmax.xlane.f32.xlu2 %v4668_v24  ;;  %4405 = vadd.xlane.f32.xlu0 %v4404_v28 }
 0xde6   :  { %v4649_v61 = vpop.xlane.xlu0 %4648  ;;  %v4385_v3 = vpop.xlane.xlu1 %4384 }
 0xde7   :  { %vm4695_vm10 = vcmp.ge.f32.partialorder %v12030_v43, %v4649_v61  ;;  %8757 = vrcp.f32 %v4385_v3  ;;  %v4538_v16 = vand.u32 2147483648, %v4385_v3  ;;  %v4536_v22 = vand.u32 2147483647, %v4385_v3 }
 0xde8   :  { %v4711_v51 = vsel %vm4695_vm10, %v9327_v40, 4  ;;  %vm4532_vm12 = vweird.f32 %v4385_v3 }
 0xde9   :  { %v12110_v49 = vsel %vm299_vm2, %v4711_v51, 2147483647  ;;  %v4539_v30 = vor.u32 1.1754944e-38, %v4538_v16  ;;  %vm4537_vm3 = vcmp.eq.f32.partialorder %v4536_v22, 8.507059e+37 }
 0xdea   :  { %v4729_v33 = vshra.s32 %v12110_v49, 16 }
 0xdec   :  { %v12113_v63 = vcvt.s32.f32 %v4729_v33 }
 0xded   :  { %v8758_v57 = vpop.eup %8757 }
 0xdee   :  { %v4652_v18 = vpop.xlane.xlu0 %4651  ;;  %v4528_v0 = vmul.f32 %v8758_v57, %v4385_v3  ;;  %v4388_v26 = vpop.xlane.xlu1 %4387  ;;  %4732 = vmin.xlane.f32.xlu1 %v12113_v63  ;;  %vm4533_vm5 = vweird.f32 %v8758_v57 }
 0xdef   :  { %vm4696_vm9 = vcmp.ge.f32.partialorder %v12040_v56, %v4652_v18  ;;  %8759 = vrcp.f32 %v4388_v26  ;;  %vm4534_vm6 = vmor %vm4532_vm12, %vm4533_vm5  ;;  %v4551_v13 = vand.u32 2147483647, %v4388_v26  ;;  %v4553_v60 = vand.u32 2147483648, %v4388_v26 }
 0xdf0   :  { %v4529_v44 = vsub.f32 1.0, %v4528_v0  ;;  %v4712_v27 = vsel %vm4696_vm9, %v9327_v40, 4  ;;  %vm4547_vm0 = vweird.f32 %v4388_v26 }
 0xdf1   :  { %v12119_v62 = vsel %vm299_vm2, %v4712_v27, 2147483647  ;;  %vm4552_vm8 = vcmp.eq.f32.partialorder %v4551_v13, 8.507059e+37 }
 0xdf2   :  { %v4530_v31 = vmul.f32 %v8758_v57, %v4529_v44  ;;  %v4744_v14 = vshra.s32 %v12119_v62, 16 }
 0xdf4   :  { %v4531_v45 = vadd.f32 %v8758_v57, %v4530_v31  ;;  %v12122_v35 = vcvt.s32.f32 %v4744_v14 }
 0xdf5   :  { %v8760_v46 = vpop.eup %8759 }
 0xdf6   :  { %v4655_v4 = vpop.xlane.xlu2 %4654  ;;  %v4535_v42 = vsel %vm4534_vm6, %v8758_v57, %v4531_v45  ;;  %v4543_v54 = vmul.f32 %v8760_v46, %v4388_v26  ;;  %4747 = vmin.xlane.f32.xlu1 %v12122_v35  ;;  %v4391_v37 = vpop.xlane.xlu0 %4390  ;;  %vm4548_vm4 = vweird.f32 %v8760_v46 }
 0xdf7   :  { %vm4697_vm14 = vcmp.ge.f32.partialorder %v12050_v1, %v4655_v4  ;;  %v4540_v7 = vsel %vm4537_vm3, %v4539_v30, %v4535_v42  ;;  %8761 = vrcp.f32 %v4391_v37  ;;  %vm4549_vm13 = vmor %vm4547_vm0, %vm4548_vm4  ;;  %v4568_v14 = vand.u32 2147483648, %v4391_v37 }
 0xdf8   :  { %v4544_v36 = vsub.f32 1.0, %v4543_v54  ;;  %v4713_v2 = vsel %vm4697_vm14, %v9327_v40, 4  ;;  %v12128_v19 = vmul.f32 %v12032_v17, %v4540_v7  ;;  %v4554_v17 = vor.u32 1.1754944e-38, %v4553_v60 }
 0xdf9   :  { %v12131_v24 = vsel %vm299_vm2, %v4713_v2, 2147483647  ;;  %v4566_v4 = vand.u32 2147483647, %v4391_v37  ;;  %vm4562_vm1 = vweird.f32 %v4391_v37 }
 0xdfa   :  { %v4545_v28 = vmul.f32 %v8760_v46, %v4544_v36  ;;  %v4671_v61 = vsel %vm299_vm2, %v12128_v19, -inf  ;;  %v4759_v3 = vshra.s32 %v12131_v24, 16  ;;  %v4569_v36 = vor.u32 1.1754944e-38, %v4568_v14 }
 0xdfb   :  { %4672 = vmax.xlane.f32.xlu2 %v4671_v61  ;;  %vm4567_vm9 = vcmp.eq.f32.partialorder %v4566_v4, 8.507059e+37 }
 0xdfc   :  { %v4546_v51 = vadd.f32 %v8760_v46, %v4545_v28  ;;  %v12136_v33 = vcvt.s32.f32 %v4759_v3 }
 0xdfd   :  { %v8762_v57 = vpop.eup %8761 }
 0xdfe   :  { %v4658_v18 = vpop.xlane.xlu1 %4657  ;;  %v4550_v0 = vsel %vm4549_vm13, %v8760_v46, %v4546_v51  ;;  %v4558_v44 = vmul.f32 %v8762_v57, %v4391_v37  ;;  %4762 = vmin.xlane.f32.xlu1 %v12136_v33  ;;  %v4394_v27 = vpop.xlane.xlu2 %4393  ;;  %vm4563_vm7 = vweird.f32 %v8762_v57 }
 0xdff   :  { %vm4698_vm15 = vcmp.ge.f32.partialorder %v12060_v50, %v4658_v18  ;;  %v4555_v16 = vsel %vm4552_vm8, %v4554_v17, %v4550_v0  ;;  %8763 = vrcp.f32 %v4394_v27  ;;  %vm4564_vm10 = vmor %vm4562_vm1, %vm4563_vm7  ;;  %v4583_v17 = vand.u32 2147483648, %v4394_v27 }
 0xe00   :  { %v4714_v31 = vsel %vm4698_vm15, %v9327_v40, 4  ;;  %v4559_v22 = vsub.f32 1.0, %v4558_v44  ;;  %v12146_v46 = vmul.f32 %v12042_v39, %v4555_v16  ;;  %vm4577_vm6 = vweird.f32 %v4394_v27 }
 0xe01   :  { %v12142_v26 = vsel %vm299_vm2, %v4714_v31, 2147483647 }
 0xe02   :  { %v4774_v45 = vshra.s32 %v12142_v26, 16  ;;  %v4560_v30 = vmul.f32 %v8762_v57, %v4559_v22  ;;  %v4674_v13 = vsel %vm299_vm2, %v12146_v46, -inf }
 0xe04   :  { %v12148_v42 = vcvt.s32.f32 %v4774_v45  ;;  %v4561_v54 = vadd.f32 %v8762_v57, %v4560_v30 }
 0xe05   :  { %v8764_v7 = vpop.eup %8763 }
 0xe06   :  { %v4661_v2 = vpop.xlane.xlu0 %4660  ;;  %4777 = vmin.xlane.f32.xlu0 %v12148_v42  ;;  %v4565_v60 = vsel %vm4564_vm10, %v8762_v57, %v4561_v54  ;;  %v4573_v39 = vmul.f32 %v8764_v7, %v4394_v27  ;;  %v4397_v28 = vpop.xlane.xlu1 %4396  ;;  %4675 = vmax.xlane.f32.xlu1 %v4674_v13  ;;  %vm4578_vm12 = vweird.f32 %v8764_v7  ;;  %v4581_v57 = vand.u32 2147483647, %v4394_v27 }
 0xe07   :  { %vm4699_vm5 = vcmp.ge.f32.partialorder %v12070_v23, %v4661_v2  ;;  %v4570_v61 = vsel %vm4567_vm9, %v4569_v36, %v4565_v60  ;;  %8765 = vrcp.f32 %v4397_v28  ;;  %vm4579_vm3 = vmor %vm4577_vm6, %vm4578_vm12  ;;  %v4598_v13 = vand.u32 2147483648, %v4397_v28 }
 0xe08   :  { %v4574_v3 = vsub.f32 1.0, %v4573_v39  ;;  %v4715_v37 = vsel %vm4699_vm5, %v9327_v40, 4  ;;  %v12156_v51 = vmul.f32 %v12052_v55, %v4570_v61  ;;  %v4584_v55 = vor.u32 1.1754944e-38, %v4583_v17 }
 0xe09   :  { %v12159_v18 = vsel %vm299_vm2, %v4715_v37, 2147483647  ;;  %vm4582_vm14 = vcmp.eq.f32.partialorder %v4581_v57, 8.507059e+37  ;;  %v4596_v61 = vand.u32 2147483647, %v4397_v28  ;;  %vm4592_vm13 = vweird.f32 %v4397_v28 }
 0xe0a   :  { %v4575_v0 = vmul.f32 %v8764_v7, %v4574_v3  ;;  %v4789_v44 = vshra.s32 %v12159_v18, 16  ;;  %v4677_v22 = vsel %vm299_vm2, %v12156_v51, -inf  ;;  %v4599_v57 = vor.u32 1.1754944e-38, %v4598_v13 }
 0xe0b   :  { %vm4597_vm15 = vcmp.eq.f32.partialorder %v4596_v61, 8.507059e+37 }
 0xe0c   :  { %v4576_v16 = vadd.f32 %v8764_v7, %v4575_v0  ;;  %v12162_v31 = vcvt.s32.f32 %v4789_v44 }
 0xe0d   :  { %v8766_v14 = vpop.eup %8765 }
 0xe0e   :  { %4678 = vmax.xlane.f32.xlu0 %v4677_v22  ;;  %v4664_v45 = vpop.xlane.xlu2 %4663  ;;  %v4580_v30 = vsel %vm4579_vm3, %v8764_v7, %v4576_v16  ;;  %v4588_v4 = vmul.f32 %v8766_v14, %v4397_v28  ;;  %v4400_v54 = vpop.xlane.xlu0 %4399  ;;  %4792 = vmin.xlane.f32.xlu2 %v12162_v31  ;;  %vm4593_vm0 = vweird.f32 %v8766_v14 }
 0xe0f   :  { %vm4700_vm4 = vcmp.ge.f32.partialorder %v12080_v15, %v4664_v45  ;;  %v4585_v36 = vsel %vm4582_vm14, %v4584_v55, %v4580_v30  ;;  %8767 = vrcp.f32 %v4400_v54  ;;  %vm4594_vm8 = vmor %vm4592_vm13, %vm4593_vm0  ;;  %vm4607_vm10 = vweird.f32 %v4400_v54 }
 0xe10   :  { %v4589_v27 = vsub.f32 1.0, %v4588_v4  ;;  %v4716_v2 = vsel %vm4700_vm4, %v9327_v40, 4  ;;  %v12173_v39 = vmul.f32 %v12062_v5, %v4585_v36  ;;  %v4613_v4 = vand.u32 2147483648, %v4400_v54 }
 0xe11   :  { %v12170_v60 = vsel %vm299_vm2, %v4716_v2, 2147483647  ;;  %v4611_v2 = vand.u32 2147483647, %v4400_v54 }
 0xe12   :  { %v4590_v7 = vmul.f32 %v8766_v14, %v4589_v27  ;;  %v4804_v3 = vshra.s32 %v12170_v60, 16  ;;  %v4680_v44 = vsel %vm299_vm2, %v12173_v39, -inf }
 0xe13   :  { %vm4612_vm5 = vcmp.eq.f32.partialorder %v4611_v2, 8.507059e+37 }
 0xe14   :  { %v4591_v37 = vadd.f32 %v8766_v14, %v4590_v7  ;;  %v12176_v17 = vcvt.s32.f32 %v4804_v3 }
 0xe15   :  { %v8768_v0 = vpop.eup %8767 }
 0xe16   :  { %v4667_v16 = vpop.xlane.xlu2 %4666  ;;  %v4595_v22 = vsel %vm4594_vm8, %v8766_v14, %v4591_v37  ;;  %v4603_v5 = vmul.f32 %v8768_v0, %v4400_v54  ;;  %v4403_v55 = vpop.xlane.xlu0 %4402  ;;  %4681 = vmax.xlane.f32.xlu2 %v4680_v44  ;;  %4807 = vmin.xlane.f32.xlu1 %v12176_v17  ;;  %vm4608_vm1 = vweird.f32 %v8768_v0  ;;  %v4614_v37 = vor.u32 1.1754944e-38, %v4613_v4 }
 0xe17   :  { %vm4701_vm7 = vcmp.ge.f32.partialorder %v12090_v47, %v4667_v16  ;;  %v4600_v45 = vsel %vm4597_vm15, %v4599_v57, %v4595_v22  ;;  %8769 = vrcp.f32 %v4403_v55  ;;  %vm4609_vm9 = vmor %vm4607_vm10, %vm4608_vm1  ;;  %vm4622_vm3 = vweird.f32 %v4403_v55 }
 0xe18   :  { %v4604_v28 = vsub.f32 1.0, %v4603_v5  ;;  %v4717_v30 = vsel %vm4701_vm7, %v9327_v40, 4  ;;  %v12187_v27 = vmul.f32 %v12072_v48, %v4600_v45 }
 0xe19   :  { %v12184_v36 = vsel %vm299_vm2, %v4717_v30, 2147483647 }
 0xe1a   :  { %v4605_v14 = vmul.f32 %v8768_v0, %v4604_v28  ;;  %v4819_v13 = vshra.s32 %v12184_v36, 16  ;;  %v4683_v57 = vsel %vm299_vm2, %v12187_v27, -inf  ;;  %v4628_v28 = vand.u32 2147483648, %v4403_v55 }
 0xe1c   :  { %v4606_v7 = vadd.f32 %v8768_v0, %v4605_v14  ;;  %v12190_v61 = vcvt.s32.f32 %v4819_v13  ;;  %v4626_v14 = vand.u32 2147483647, %v4403_v55 }
 0xe1d   :  { %v8770_v3 = vpop.eup %8769 }
 0xe1e   :  { %v4670_v44 = vpop.xlane.xlu2 %4669  ;;  %v4610_v16 = vsel %vm4609_vm9, %v8768_v0, %v4606_v7  ;;  %v4618_v48 = vmul.f32 %v8770_v3, %v4403_v55  ;;  %v4406_v22 = vpop.xlane.xlu0 %4405  ;;  %4684 = vmax.xlane.f32.xlu2 %v4683_v57  ;;  %4822 = vmin.xlane.f32.xlu1 %v12190_v61  ;;  %vm4623_vm6 = vweird.f32 %v8770_v3  ;;  %v4629_v57 = vor.u32 1.1754944e-38, %v4628_v28 }
 0xe1f   :  { %vm4702_vm12 = vcmp.ge.f32.partialorder %v12099_v59, %v4670_v44  ;;  %v4615_v5 = vsel %vm4612_vm5, %v4614_v37, %v4610_v16  ;;  %8771 = vrcp.f32 %v4406_v22  ;;  %vm4624_vm14 = vmor %vm4622_vm3, %vm4623_vm6  ;;  %vm4627_vm4 = vcmp.eq.f32.partialorder %v4626_v14, 8.507059e+37 }
 0xe20   :  { %v4619_v54 = vsub.f32 1.0, %v4618_v48  ;;  %v4718_v45 = vsel %vm4702_vm12, %v9327_v40, 4  ;;  %v12201_v4 = vmul.f32 %v12082_v53, %v4615_v5  ;;  %vm4637_vm13 = vweird.f32 %v4406_v22 }
 0xe21   :  { %v12198_v30 = vsel %vm299_vm2, %v4718_v45, 2147483647 }
 0xe22   :  { %v4620_v0 = vmul.f32 %v8770_v3, %v4619_v54  ;;  %v4834_v2 = vshra.s32 %v12198_v30, 16  ;;  %v4686_v44 = vsel %vm299_vm2, %v12201_v4, -inf  ;;  %v4643_v54 = vand.u32 2147483648, %v4406_v22 }
 0xe24   :  { %v4621_v13 = vadd.f32 %v8770_v3, %v4620_v0  ;;  %v12204_v7 = vcvt.s32.f32 %v4834_v2  ;;  %v4641_v0 = vand.u32 2147483647, %v4406_v22  ;;  %v4644_v28 = vor.u32 1.1754944e-38, %v4643_v54 }
 0xe25   :  { %v8772_v37 = vpop.eup %8771 }
 0xe26   :  { %v4625_v16 = vsel %vm4624_vm14, %v8770_v3, %v4621_v13  ;;  %v4633_v48 = vmul.f32 %v8772_v37, %v4406_v22  ;;  %4687 = vmax.xlane.f32.xlu2 %v4686_v44  ;;  %4837 = vmin.xlane.f32.xlu1 %v12204_v7  ;;  %vm4638_vm0 = vweird.f32 %v8772_v37  ;;  %vm4642_vm15 = vcmp.eq.f32.partialorder %v4641_v0, 8.507059e+37 }
 0xe27   :  { %v4630_v53 = vsel %vm4627_vm4, %v4629_v57, %v4625_v16  ;;  %vm4639_vm8 = vmor %vm4637_vm13, %vm4638_vm0  ;;  %v4728_v44 = vand.u32 65535, %v12110_v49  ;;  %v4758_v49 = vand.u32 65535, %v12131_v24  ;;  %v4773_v24 = vand.u32 65535, %v12142_v26 }
 0xe28   :  { %v4634_v5 = vsub.f32 1.0, %v4633_v48  ;;  %v12210_v45 = vmul.f32 %v12092_v58, %v4630_v53 }
 0xe29   :  { %v4730_v22 = vcvt.s32.f32 %v4728_v44 }
 0xe2a   :  { %14808 = vst [vmem:[#allocation2_spill] sm:$0xff] %v12210_v45  ;;  %v4635_v55 = vmul.f32 %v8772_v37, %v4634_v5  ;;  %v4689_v3 = vsel %vm299_vm2, %v12210_v45, -inf }
 0xe2c   :  { %v4636_v2 = vadd.f32 %v8772_v37, %v4635_v55 }
 0xe2e   :  { %v4640_v14 = vsel %vm4639_vm8, %v8772_v37, %v4636_v2  ;;  %4690 = vmax.xlane.f32.xlu2 %v4689_v3  ;;  %v4743_v37 = vand.u32 65535, %v12119_v62  ;;  %v4760_v62 = vcvt.s32.f32 %v4758_v49 }
 0xe2f   :  { %v4645_v13 = vsel %vm4642_vm15, %v4644_v28, %v4640_v14  ;;  %v4775_v14 = vcvt.s32.f32 %v4773_v24 }
 0xe30   :  { %v12215_v57 = vmul.f32 %v12101_v11, %v4645_v13  ;;  %v4745_v11 = vcvt.s32.f32 %v4743_v37 }
 0xe32   :  { %14809 = vst [vmem:[#allocation3_spill] sm:$0xff] %v12215_v57  ;;  %v4692_v58 = vsel %vm299_vm2, %v12215_v57, -inf }
 0xe36   :  { %4693 = vmax.xlane.f32.xlu2 %v4692_v58 }
 0xe61   :  { %v12220_v16 = vpop.xlane.xlu1 %4732 }
 0xe62   :  { %vm4734_vm7 = vcmp.eq.f32.partialorder %v12113_v63, %v12220_v16 }
 0xe63   :  { %v4735_v48 = vsel %vm4734_vm7, %v4730_v22, inf  ;;  %v4788_v22 = vand.u32 65535, %v12159_v18 }
 0xe64   :  { %4736 = vmin.xlane.f32.xlu0 %v4735_v48 }
 0xe69   :  { %v12225_v53 = vpop.xlane.xlu1 %4747 }
 0xe6a   :  { %vm4749_vm1 = vcmp.eq.f32.partialorder %v12122_v35, %v12225_v53 }
 0xe6b   :  { %v4750_v5 = vsel %vm4749_vm1, %v4745_v11, inf  ;;  %v4790_v11 = vcvt.s32.f32 %v4788_v22 }
 0xe6c   :  { %4751 = vmin.xlane.f32.xlu0 %v4750_v5 }
 0xe6e   :  { %v4673_v54 = vpop.xlane.xlu2 %4672 }
 0xe6f   :  { %vm4703_vm10 = vcmp.ge.f32.partialorder %v12128_v19, %v4673_v54 }
 0xe70   :  { %v4719_v55 = vsel %vm4703_vm10, %v9327_v40, 4 }
 0xe71   :  { %v12233_v63 = vsel %vm299_vm2, %v4719_v55, 2147483647  ;;  %v12235_v0 = vpop.xlane.xlu1 %4762  ;;  %v4803_v55 = vand.u32 65535, %v12170_v60 }
 0xe72   :  { %vm4764_vm9 = vcmp.eq.f32.partialorder %v12136_v33, %v12235_v0  ;;  %v4849_v35 = vshra.s32 %v12233_v63, 16 }
 0xe73   :  { %v4765_v2 = vsel %vm4764_vm9, %v4760_v62, inf  ;;  %v4805_v24 = vcvt.s32.f32 %v4803_v55 }
 0xe74   :  { %4766 = vmin.xlane.f32.xlu0 %v4765_v2  ;;  %v12240_v28 = vcvt.s32.f32 %v4849_v35 }
 0xe76   :  { %4852 = vmin.xlane.f32.xlu1 %v12240_v28 }
 0xe79   :  { %v12244_v3 = vpop.xlane.xlu0 %4777  ;;  %v4676_v13 = vpop.xlane.xlu1 %4675 }
 0xe7a   :  { %vm4779_vm5 = vcmp.eq.f32.partialorder %v12148_v42, %v12244_v3  ;;  %vm4704_vm12 = vcmp.ge.f32.partialorder %v12146_v46, %v4676_v13  ;;  %v4784_v9 = vcvt.f32.s32 %v12244_v3 }
 0xe7b   :  { %v4780_v33 = vsel %vm4779_vm5, %v4775_v14, inf  ;;  %v4720_v58 = vsel %vm4704_vm12, %v9327_v40, 4 }
 0xe7c   :  { %v12251_v44 = vsel %vm299_vm2, %v4720_v58, 2147483647  ;;  %4781 = vmin.xlane.f32.xlu0 %v4780_v33  ;;  %v4818_v33 = vand.u32 65535, %v12184_v36 }
 0xe7d   :  { %v4864_v26 = vshra.s32 %v12251_v44, 16 }
 0xe7f   :  { %v12255_v48 = vcvt.s32.f32 %v4864_v26 }
 0xe81   :  { %v4679_v37 = vpop.xlane.xlu0 %4678  ;;  %4867 = vmin.xlane.f32.xlu1 %v12255_v48  ;;  %v12259_v42 = vpop.xlane.xlu2 %4792 }
 0xe82   :  { %vm4705_vm6 = vcmp.ge.f32.partialorder %v12156_v51, %v4679_v37  ;;  %vm4794_vm3 = vcmp.eq.f32.partialorder %v12162_v31, %v12259_v42  ;;  %v4820_v37 = vcvt.s32.f32 %v4818_v33 }
 0xe83   :  { %v4721_v5 = vsel %vm4705_vm6, %v9327_v40, 4  ;;  %v4795_v54 = vsel %vm4794_vm3, %v4790_v11, inf }
 0xe84   :  { %v12265_v49 = vsel %vm299_vm2, %v4721_v5, 2147483647  ;;  %4796 = vmin.xlane.f32.xlu0 %v4795_v54  ;;  %v4833_v54 = vand.u32 65535, %v12198_v30 }
 0xe85   :  { %v4879_v18 = vshra.s32 %v12265_v49, 16 }
 0xe87   :  { %v12269_v62 = vcvt.s32.f32 %v4879_v18 }
 0xe89   :  { %v12271_v35 = vpop.xlane.xlu1 %4807  ;;  %4882 = vmin.xlane.f32.xlu1 %v12269_v62  ;;  %v4682_v2 = vpop.xlane.xlu2 %4681 }
 0xe8a   :  { %vm4706_vm14 = vcmp.ge.f32.partialorder %v12173_v39, %v4682_v2  ;;  %vm4809_vm4 = vcmp.eq.f32.partialorder %v12176_v17, %v12271_v35 }
 0xe8b   :  { %v4722_v31 = vsel %vm4706_vm14, %v9327_v40, 4  ;;  %v4810_v14 = vsel %vm4809_vm4, %v4805_v24, inf  ;;  %v4835_v24 = vcvt.s32.f32 %v4833_v54 }
 0xe8c   :  { %v12279_v13 = vsel %vm299_vm2, %v4722_v31, 2147483647  ;;  %4811 = vmin.xlane.f32.xlu2 %v4810_v14 }
 0xe8d   :  { %v4894_v60 = vshra.s32 %v12279_v13, 16 }
 0xe8f   :  { %v12283_v58 = vcvt.s32.f32 %v4894_v60 }
 0xe91   :  { %v12285_v26 = vpop.xlane.xlu1 %4822  ;;  %4897 = vmin.xlane.f32.xlu0 %v12283_v58  ;;  %v4685_v22 = vpop.xlane.xlu2 %4684 }
 0xe92   :  { %vm4707_vm0 = vcmp.ge.f32.partialorder %v12187_v27, %v4685_v22  ;;  %vm4824_vm13 = vcmp.eq.f32.partialorder %v12190_v61, %v12285_v26 }
 0xe93   :  { %v4723_v17 = vsel %vm4707_vm0, %v9327_v40, 4  ;;  %v4825_v11 = vsel %vm4824_vm13, %v4820_v37, inf }
 0xe94   :  { %v12293_v5 = vsel %vm299_vm2, %v4723_v17, 2147483647  ;;  %4826 = vmin.xlane.f32.xlu2 %v4825_v11 }
 0xe95   :  { %v4909_v36 = vshra.s32 %v12293_v5, 16 }
 0xe97   :  { %v12297_v18 = vcvt.s32.f32 %v4909_v36 }
 0xe99   :  { %v12299_v55 = vpop.xlane.xlu1 %4837  ;;  %4912 = vmin.xlane.f32.xlu0 %v12297_v18  ;;  %v4688_v2 = vpop.xlane.xlu2 %4687 }
 0xe9a   :  { %vm4708_vm8 = vcmp.ge.f32.partialorder %v12201_v4, %v4688_v2  ;;  %vm4839_vm15 = vcmp.eq.f32.partialorder %v12204_v7, %v12299_v55 }
 0xe9b   :  { %v4724_v61 = vsel %vm4708_vm8, %v9327_v40, 4  ;;  %v4840_v31 = vsel %vm4839_vm15, %v4835_v24, inf }
 0xe9c   :  { %v12307_v14 = vsel %vm299_vm2, %v4724_v61, 2147483647  ;;  %4841 = vmin.xlane.f32.xlu2 %v4840_v31  ;;  %v4739_v61 = vcvt.f32.s32 %v12220_v16 }
 0xe9d   :  { %v4924_v30 = vshra.s32 %v12307_v14, 16 }
 0xe9f   :  { %v12310_v60 = vcvt.s32.f32 %v4924_v30  ;;  %v4740_v30 = vshll.u32 %v4739_v61, 16 }
 0xea1   :  { %4927 = vmin.xlane.f32.xlu0 %v12310_v60  ;;  %v4691_v33 = vpop.xlane.xlu2 %4690 }
 0xea2   :  { %vm4709_vm7 = vcmp.ge.f32.partialorder %v12210_v45, %v4691_v33 }
 0xea3   :  { %v4725_v22 = vsel %vm4709_vm7, %v9327_v40, 4 }
 0xea4   :  { %v12316_v7 = vsel %vm299_vm2, %v4725_v22, 2147483647 }
 0xea5   :  { %v4939_v37 = vshra.s32 %v12316_v7, 16 }
 0xea7   :  { %v12319_v17 = vcvt.s32.f32 %v4939_v37  ;;  %v4754_v37 = vcvt.f32.s32 %v12225_v53  ;;  %v4769_v53 = vcvt.f32.s32 %v12235_v0 }
 0xea9   :  { %4942 = vmin.xlane.f32.xlu0 %v12319_v17  ;;  %v4694_v11 = vpop.xlane.xlu2 %4693 }
 0xeaa   :  { %vm4710_vm1 = vcmp.ge.f32.partialorder %v12215_v57, %v4694_v11 }
 0xeab   :  { %v4726_v36 = vsel %vm4710_vm1, %v9327_v40, 4 }
 0xeac   :  { %v12325_v54 = vsel %vm299_vm2, %v4726_v36, 2147483647 }
 0xead   :  { %v4954_v2 = vshra.s32 %v12325_v54, 16 }
 0xeaf   :  { %v12328_v24 = vcvt.s32.f32 %v4954_v2  ;;  %v4755_v2 = vshll.u32 %v4754_v37, 16 }
 0xeb1   :  { %4957 = vmin.xlane.f32.xlu0 %v12328_v24 }
 0xed7   :  { %v4737_v31 = vpop.xlane.xlu0 %4736 }
 0xed8   :  { %v4738_v33 = vcvt.f32.s32 %v4737_v31 }
 0xeda   :  { %v12332_v22 = vadd.s32 %v4740_v30, %v4738_v33  ;;  %v4848_v33 = vand.u32 65535, %v12233_v63 }
 0xedc   :  { %vm4967_vm10 = vcmp.eq.s32.totalorder %v9327_v40, %v12332_v22  ;;  %v4850_v0 = vcvt.s32.f32 %v4848_v33 }
 0xedd   :  { %v12341_v11 = vsel %vm4967_vm10, -inf, %v12030_v43 }
 0xede   :  { %v5031_v36 = vsel %vm299_vm2, %v12341_v11, -inf }
 0xedf   :  { %v4752_v16 = vpop.xlane.xlu0 %4751  ;;  %5032 = vmax.xlane.f32.xlu1 %v5031_v36 }
 0xee0   :  { %v4753_v61 = vcvt.f32.s32 %v4752_v16  ;;  %v4770_v16 = vshll.u32 %v4769_v53, 16 }
 0xee2   :  { %v12345_v31 = vadd.s32 %v4755_v2, %v4753_v61 }
 0xee4   :  { %vm4968_vm9 = vcmp.eq.s32.totalorder %v9327_v40, %v12345_v31 }
 0xee5   :  { %v12354_v30 = vsel %vm4968_vm9, -inf, %v12040_v56 }
 0xee6   :  { %v5034_v36 = vsel %vm299_vm2, %v12354_v30, -inf }
 0xee7   :  { %v4767_v37 = vpop.xlane.xlu0 %4766  ;;  %5035 = vmax.xlane.f32.xlu1 %v5034_v36  ;;  %v4785_v36 = vshll.u32 %v4784_v9, 16 }
 0xee8   :  { %v4768_v2 = vcvt.f32.s32 %v4767_v37  ;;  %v4863_v37 = vand.u32 65535, %v12251_v44 }
 0xee9   :  { %v12359_v61 = vpop.xlane.xlu1 %4852 }
 0xeea   :  { %v12361_v6 = vadd.s32 %v4770_v16, %v4768_v2  ;;  %vm4854_vm5 = vcmp.eq.f32.partialorder %v12240_v28, %v12359_v61  ;;  %v4865_v2 = vcvt.s32.f32 %v4863_v37  ;;  %v4814_v37 = vcvt.f32.s32 %v12271_v35 }
 0xeeb   :  { %v4855_v25 = vsel %vm4854_vm5, %v4850_v0, inf }
 0xeec   :  { %4856 = vmin.xlane.f32.xlu2 %v4855_v25  ;;  %vm4969_vm12 = vcmp.eq.s32.totalorder %v9327_v40, %v12361_v6  ;;  %v4799_v25 = vcvt.f32.s32 %v12259_v42 }
 0xeed   :  { %v12372_v63 = vsel %vm4969_vm12, -inf, %v12050_v1 }
 0xeee   :  { %v5037_v53 = vsel %vm299_vm2, %v12372_v63, -inf }
 0xeef   :  { %v4782_v33 = vpop.xlane.xlu0 %4781  ;;  %5038 = vmax.xlane.f32.xlu1 %v5037_v53  ;;  %v4800_v53 = vshll.u32 %v4799_v25, 16 }
 0xef0   :  { %v4783_v28 = vcvt.f32.s32 %v4782_v33 }
 0xef2   :  { %v12377_v3 = vadd.s32 %v4785_v36, %v4783_v28  ;;  %v4878_v36 = vand.u32 65535, %v12265_v49 }
 0xef4   :  { %v12380_v16 = vpop.xlane.xlu1 %4867  ;;  %vm4970_vm6 = vcmp.eq.s32.totalorder %v9327_v40, %v12377_v3  ;;  %v4880_v41 = vcvt.s32.f32 %v4878_v36 }
 0xef5   :  { %v12388_v0 = vsel %vm4970_vm6, -inf, %v12060_v50  ;;  %vm4869_vm3 = vcmp.eq.f32.partialorder %v12255_v48, %v12380_v16 }
 0xef6   :  { %v5040_v9 = vsel %vm299_vm2, %v12388_v0, -inf  ;;  %v4870_v44 = vsel %vm4869_vm3, %v4865_v2, inf  ;;  %v4815_v2 = vshll.u32 %v4814_v37, 16 }
 0xef7   :  { %5041 = vmax.xlane.f32.xlu1 %v5040_v9  ;;  %4871 = vmin.xlane.f32.xlu2 %v4870_v44  ;;  %v4797_v42 = vpop.xlane.xlu0 %4796  ;;  %v4893_v44 = vand.u32 65535, %v12279_v13 }
 0xef8   :  { %v4798_v33 = vcvt.f32.s32 %v4797_v42 }
 0xefa   :  { %v12395_v28 = vadd.s32 %v4800_v53, %v4798_v33  ;;  %v4895_v33 = vcvt.s32.f32 %v4893_v44 }
 0xefc   :  { %v12398_v21 = vpop.xlane.xlu1 %4882  ;;  %vm4971_vm14 = vcmp.eq.s32.totalorder %v9327_v40, %v12395_v28 }
 0xefd   :  { %vm4884_vm4 = vcmp.eq.f32.partialorder %v12269_v62, %v12398_v21  ;;  %v12408_v48 = vsel %vm4971_vm14, -inf, %v12070_v23  ;;  %v4829_v62 = vcvt.f32.s32 %v12285_v26 }
 0xefe   :  { %v4885_v49 = vsel %vm4884_vm4, %v4880_v41, inf  ;;  %v5043_v25 = vsel %vm299_vm2, %v12408_v48, -inf }
 0xeff   :  { %4886 = vmin.xlane.f32.xlu2 %v4885_v49  ;;  %5044 = vmax.xlane.f32.xlu1 %v5043_v25  ;;  %v4812_v35 = vpop.xlane.xlu2 %4811  ;;  %v4830_v37 = vshll.u32 %v4829_v62, 16  ;;  %v4908_v25 = vand.u32 65535, %v12293_v5 }
 0xf00   :  { %v4813_v9 = vcvt.f32.s32 %v4812_v35 }
 0xf02   :  { %v12413_v42 = vadd.s32 %v4815_v2, %v4813_v9  ;;  %v4910_v9 = vcvt.s32.f32 %v4908_v25 }
 0xf04   :  { %v12416_v53 = vpop.xlane.xlu0 %4897  ;;  %vm4972_vm0 = vcmp.eq.s32.totalorder %v9327_v40, %v12413_v42 }
 0xf05   :  { %vm4899_vm13 = vcmp.eq.f32.partialorder %v12283_v58, %v12416_v53  ;;  %v12426_v41 = vsel %vm4972_vm0, -inf, %v12080_v15  ;;  %v4844_v58 = vcvt.f32.s32 %v12299_v55  ;;  %v4904_v29 = vcvt.f32.s32 %v12416_v53 }
 0xf06   :  { %v4900_v13 = vsel %vm4899_vm13, %v4895_v33, inf  ;;  %v5046_v36 = vsel %vm299_vm2, %v12426_v41, -inf }
 0xf07   :  { %4901 = vmin.xlane.f32.xlu1 %v4900_v13  ;;  %5047 = vmax.xlane.f32.xlu0 %v5046_v36  ;;  %v4827_v26 = vpop.xlane.xlu2 %4826  ;;  %v4845_v33 = vshll.u32 %v4844_v58, 16  ;;  %v4923_v36 = vand.u32 65535, %v12307_v14  ;;  %v4938_v58 = vand.u32 65535, %v12316_v7  ;;  %v4905_v53 = vshll.u32 %v4904_v29, 16 }
 0xf08   :  { %v4828_v49 = vcvt.f32.s32 %v4827_v26 }
 0xf0a   :  { %v12431_v35 = vadd.s32 %v4830_v37, %v4828_v49  ;;  %v4925_v37 = vcvt.s32.f32 %v4923_v36 }
 0xf0c   :  { %v12434_v2 = vpop.xlane.xlu0 %4912  ;;  %vm4973_vm8 = vcmp.eq.s32.totalorder %v9327_v40, %v12431_v35 }
 0xf0d   :  { %vm4914_vm15 = vcmp.eq.f32.partialorder %v12297_v18, %v12434_v2  ;;  %v12444_v44 = vsel %vm4973_vm8, -inf, %v12090_v47  ;;  %v4919_v20 = vcvt.f32.s32 %v12434_v2 }
 0xf0e   :  { %v4915_v5 = vsel %vm4914_vm15, %v4910_v9, inf  ;;  %v5049_v62 = vsel %vm299_vm2, %v12444_v44, -inf }
 0xf0f   :  { %4916 = vmin.xlane.f32.xlu1 %v4915_v5  ;;  %5050 = vmax.xlane.f32.xlu0 %v5049_v62  ;;  %v4842_v55 = vpop.xlane.xlu2 %4841  ;;  %v4940_v5 = vcvt.s32.f32 %v4938_v58  ;;  %v4953_v62 = vand.u32 65535, %v12325_v54  ;;  %v4920_v2 = vshll.u32 %v4919_v20, 16 }
 0xf10   :  { %v4843_v13 = vcvt.f32.s32 %v4842_v55 }
 0xf12   :  { %v12449_v26 = vadd.s32 %v4845_v33, %v4843_v13  ;;  %v4955_v33 = vcvt.s32.f32 %v4953_v62 }
 0xf14   :  { %v12451_v18 = vpop.xlane.xlu0 %4927  ;;  %vm4974_vm7 = vcmp.eq.s32.totalorder %v9327_v40, %v12449_v26 }
 0xf15   :  { %vm4929_vm1 = vcmp.eq.f32.partialorder %v12310_v60, %v12451_v18  ;;  %v12461_v49 = vsel %vm4974_vm7, -inf, %v12099_v59  ;;  %v4934_v38 = vcvt.f32.s32 %v12451_v18 }
 0xf16   :  { %v4930_v25 = vsel %vm4929_vm1, %v4925_v37, inf  ;;  %v5052_v14 = vsel %vm299_vm2, %v12461_v49, -inf }
 0xf17   :  { %4931 = vmin.xlane.f32.xlu1 %v4930_v25  ;;  %5053 = vmax.xlane.f32.xlu0 %v5052_v14  ;;  %v4935_v18 = vshll.u32 %v4934_v38, 16 }
 0xf1c   :  { %v12466_v9 = vpop.xlane.xlu0 %4942 }
 0xf1d   :  { %vm4944_vm5 = vcmp.eq.f32.partialorder %v12319_v17, %v12466_v9  ;;  %v4949_v34 = vcvt.f32.s32 %v12466_v9 }
 0xf1e   :  { %v4945_v60 = vsel %vm4944_vm5, %v4940_v5, inf }
 0xf1f   :  { %4946 = vmin.xlane.f32.xlu1 %v4945_v60 }
 0xf24   :  { %v12471_v55 = vpop.xlane.xlu0 %4957 }
 0xf25   :  { %vm4959_vm3 = vcmp.eq.f32.partialorder %v12328_v24, %v12471_v55  ;;  %v4859_v24 = vcvt.f32.s32 %v12359_v61 }
 0xf26   :  { %v4960_v13 = vsel %vm4959_vm3, %v4955_v33, inf }
 0xf27   :  { %4961 = vmin.xlane.f32.xlu1 %v4960_v13  ;;  %v4860_v60 = vshll.u32 %v4859_v24, 16 }
 0xf52   :  { %v5033_v36 = vpop.xlane.xlu1 %5032 }
 0xf53   :  { %vm5079_vm4 = vcmp.ge.f32.partialorder %v12341_v11, %v5033_v36 }
 0xf54   :  { %v5095_v7 = vsel %vm5079_vm4, %v9327_v40, 4 }
 0xf55   :  { %v12478_v37 = vsel %vm299_vm2, %v5095_v7, 2147483647 }
 0xf56   :  { %v5113_v17 = vshra.s32 %v12478_v37, 16 }
 0xf58   :  { %v12481_v25 = vcvt.s32.f32 %v5113_v17 }
 0xf5a   :  { %v5036_v54 = vpop.xlane.xlu1 %5035  ;;  %5116 = vmin.xlane.f32.xlu2 %v12481_v25 }
 0xf5b   :  { %vm5080_vm13 = vcmp.ge.f32.partialorder %v12354_v30, %v5036_v54 }
 0xf5c   :  { %v5096_v14 = vsel %vm5080_vm13, %v9327_v40, 4 }
 0xf5d   :  { %v12488_v11 = vsel %vm299_vm2, %v5096_v14, 2147483647 }
 0xf5e   :  { %v5128_v58 = vshra.s32 %v12488_v11, 16 }
 0xf5f   :  { %v4857_v5 = vpop.xlane.xlu2 %4856 }
 0xf60   :  { %v4858_v62 = vcvt.f32.s32 %v4857_v5  ;;  %v12491_v33 = vcvt.s32.f32 %v5128_v58 }
 0xf62   :  { %v12493_v13 = vadd.s32 %v4860_v60, %v4858_v62  ;;  %v5039_v36 = vpop.xlane.xlu1 %5038  ;;  %5131 = vmin.xlane.f32.xlu2 %v12491_v33 }
 0xf63   :  { %vm5081_vm15 = vcmp.ge.f32.partialorder %v12372_v63, %v5039_v36  ;;  %v4874_v63 = vcvt.f32.s32 %v12380_v16 }
 0xf64   :  { %v5097_v30 = vsel %vm5081_vm15, %v9327_v40, 4  ;;  %vm4975_vm1 = vcmp.eq.s32.totalorder %v9327_v40, %v12493_v13 }
 0xf65   :  { %v12501_v61 = vsel %vm299_vm2, %v5097_v30, 2147483647  ;;  %v12507_v7 = vsel %vm4975_vm1, -inf, %v12128_v19  ;;  %v4875_v5 = vshll.u32 %v4874_v63, 16 }
 0xf66   :  { %v5055_v17 = vsel %vm299_vm2, %v12507_v7, -inf  ;;  %v5143_v54 = vshra.s32 %v12501_v61, 16 }
 0xf67   :  { %5056 = vmax.xlane.f32.xlu0 %v5055_v17  ;;  %v4889_v17 = vcvt.f32.s32 %v12398_v21 }
 0xf68   :  { %v12513_v24 = vcvt.s32.f32 %v5143_v54 }
 0xf69   :  { %v4890_v21 = vshll.u32 %v4889_v17, 16 }
 0xf6a   :  { %v5042_v14 = vpop.xlane.xlu1 %5041  ;;  %5146 = vmin.xlane.f32.xlu2 %v12513_v24  ;;  %v4872_v58 = vpop.xlane.xlu2 %4871 }
 0xf6b   :  { %vm5082_vm5 = vcmp.ge.f32.partialorder %v12388_v0, %v5042_v14  ;;  %v4873_v60 = vcvt.f32.s32 %v4872_v58 }
 0xf6c   :  { %v5098_v62 = vsel %vm5082_vm5, %v9327_v40, 4 }
 0xf6d   :  { %v12519_v36 = vsel %vm299_vm2, %v5098_v62, 2147483647  ;;  %v12521_v30 = vadd.s32 %v4875_v5, %v4873_v60 }
 0xf6e   :  { %v5158_v16 = vshra.s32 %v12519_v36, 16 }
 0xf6f   :  { %vm4976_vm3 = vcmp.eq.s32.totalorder %v9327_v40, %v12521_v30 }
 0xf70   :  { %v12527_v54 = vcvt.s32.f32 %v5158_v16  ;;  %v12533_v0 = vsel %vm4976_vm3, -inf, %v12146_v46 }
 0xf71   :  { %v5058_v63 = vsel %vm299_vm2, %v12533_v0, -inf }
 0xf72   :  { %5161 = vmin.xlane.f32.xlu2 %v12527_v54  ;;  %v5045_v14 = vpop.xlane.xlu1 %5044  ;;  %5059 = vmax.xlane.f32.xlu0 %v5058_v63  ;;  %v4887_v58 = vpop.xlane.xlu2 %4886 }
 0xf73   :  { %vm5083_vm4 = vcmp.ge.f32.partialorder %v12408_v48, %v5045_v14  ;;  %v4888_v5 = vcvt.f32.s32 %v4887_v58 }
 0xf74   :  { %v5099_v60 = vsel %vm5083_vm4, %v9327_v40, 4 }
 0xf75   :  { %v12541_v62 = vsel %vm299_vm2, %v5099_v60, 2147483647  ;;  %v12543_v16 = vadd.s32 %v4890_v21, %v4888_v5 }
 0xf76   :  { %v5173_v10 = vshra.s32 %v12541_v62, 16 }
 0xf77   :  { %vm4977_vm13 = vcmp.eq.s32.totalorder %v9327_v40, %v12543_v16 }
 0xf78   :  { %v12549_v63 = vcvt.s32.f32 %v5173_v10  ;;  %v12555_v48 = vsel %vm4977_vm13, -inf, %v12156_v51 }
 0xf79   :  { %v5061_v17 = vsel %vm299_vm2, %v12555_v48, -inf }
 0xf7a   :  { %5176 = vmin.xlane.f32.xlu2 %v12549_v63  ;;  %v4902_v14 = vpop.xlane.xlu1 %4901  ;;  %v5048_v58 = vpop.xlane.xlu0 %5047  ;;  %5062 = vmax.xlane.f32.xlu0 %v5061_v17 }
 0xf7b   :  { %v4903_v21 = vcvt.f32.s32 %v4902_v14  ;;  %vm5084_vm15 = vcmp.ge.f32.partialorder %v12426_v41, %v5048_v58 }
 0xf7c   :  { %v5100_v10 = vsel %vm5084_vm15, %v9327_v40, 4 }
 0xf7d   :  { %v12562_v5 = vadd.s32 %v4905_v53, %v4903_v21  ;;  %v12565_v60 = vsel %vm299_vm2, %v5100_v10, 2147483647 }
 0xf7e   :  { %v5188_v12 = vshra.s32 %v12565_v60, 16 }
 0xf7f   :  { %vm14636_vm5 = vcmp.eq.s32.totalorder %v9327_v40, %v12562_v5 }
 0xf80   :  { %v12575_v29 = vsel %vm14636_vm5, -inf, %v12173_v39  ;;  %v12577_v41 = vcvt.s32.f32 %v5188_v12 }
 0xf81   :  { %v5064_v17 = vsel %vm299_vm2, %v12575_v29, -inf }
 0xf82   :  { %5065 = vmax.xlane.f32.xlu2 %v5064_v17  ;;  %v4917_v14 = vpop.xlane.xlu1 %4916  ;;  %5191 = vmin.xlane.f32.xlu1 %v12577_v41  ;;  %v5051_v58 = vpop.xlane.xlu0 %5050 }
 0xf83   :  { %v4918_v53 = vcvt.f32.s32 %v4917_v14  ;;  %vm5085_vm4 = vcmp.ge.f32.partialorder %v12444_v44, %v5051_v58 }
 0xf84   :  { %v5101_v21 = vsel %vm5085_vm4, %v9327_v40, 4 }
 0xf85   :  { %v12584_v10 = vadd.s32 %v4920_v2, %v4918_v53  ;;  %v12587_v52 = vsel %vm299_vm2, %v5101_v21, 2147483647 }
 0xf86   :  { %v5203_v12 = vshra.s32 %v12587_v52, 16 }
 0xf87   :  { %vm14629_vm15 = vcmp.eq.s32.totalorder %v9327_v40, %v12584_v10 }
 0xf88   :  { %v12597_v20 = vsel %vm14629_vm15, -inf, %v12187_v27  ;;  %v12599_v44 = vcvt.s32.f32 %v5203_v12 }
 0xf89   :  { %v5067_v17 = vsel %vm299_vm2, %v12597_v20, -inf }
 0xf8a   :  { %5068 = vmax.xlane.f32.xlu2 %v5067_v17  ;;  %v4932_v14 = vpop.xlane.xlu1 %4931  ;;  %5206 = vmin.xlane.f32.xlu1 %v12599_v44  ;;  %v5054_v58 = vpop.xlane.xlu0 %5053 }
 0xf8b   :  { %v4933_v2 = vcvt.f32.s32 %v4932_v14  ;;  %vm5086_vm4 = vcmp.ge.f32.partialorder %v12461_v49, %v5054_v58  ;;  %v4950_v58 = vshll.u32 %v4949_v34, 16 }
 0xf8c   :  { %v5102_v53 = vsel %vm5086_vm4, %v9327_v40, 4 }
 0xf8d   :  { %v12606_v21 = vadd.s32 %v4935_v18, %v4933_v2  ;;  %v12609_v32 = vsel %vm299_vm2, %v5102_v53, 2147483647  ;;  %v4964_v2 = vcvt.f32.s32 %v12471_v55 }
 0xf8e   :  { %v5218_v12 = vshra.s32 %v12609_v32, 16 }
 0xf8f   :  { %vm14630_vm15 = vcmp.eq.s32.totalorder %v9327_v40, %v12606_v21  ;;  %v4965_v34 = vshll.u32 %v4964_v2, 16 }
 0xf90   :  { %v12619_v38 = vsel %vm14630_vm15, -inf, %v12201_v4  ;;  %v12621_v49 = vcvt.s32.f32 %v5218_v12 }
 0xf91   :  { %v5070_v17 = vsel %vm299_vm2, %v12619_v38, -inf }
 0xf92   :  { %5071 = vmax.xlane.f32.xlu2 %v5070_v17  ;;  %v4947_v14 = vpop.xlane.xlu1 %4946  ;;  %5221 = vmin.xlane.f32.xlu1 %v12621_v49 }
 0xf93   :  { %v4948_v9 = vcvt.f32.s32 %v4947_v14 }
 0xf95   :  { %v12626_v18 = vadd.s32 %v4950_v58, %v4948_v9 }
 0xf97   :  { %14810 = vst [vmem:[#allocation5_spill] sm:$0xff] %v12626_v18  ;;  %vm14631_vm4 = vcmp.eq.s32.totalorder %v9327_v40, %v12626_v18 }
 0xf98   :  { %v12635_v53 = vsel %vm14631_vm4, -inf, %v12210_v45 }
 0xf99   :  { %v5073_v12 = vsel %vm299_vm2, %v12635_v53, -inf }
 0xf9a   :  { %5074 = vmax.xlane.f32.xlu2 %v5073_v12  ;;  %v4962_v17 = vpop.xlane.xlu1 %4961  ;;  %v5112_v12 = vand.u32 65535, %v12478_v37  ;;  %v5142_v37 = vand.u32 65535, %v12501_v61  ;;  %v5157_v61 = vand.u32 65535, %v12519_v36 }
 0xf9b   :  { %v4963_v14 = vcvt.f32.s32 %v4962_v17 }
 0xf9c   :  { %v5114_v2 = vcvt.s32.f32 %v5112_v12 }
 0xf9d   :  { %v12639_v58 = vadd.s32 %v4965_v34, %v4963_v14  ;;  %v5127_v34 = vand.u32 65535, %v12488_v11  ;;  %v5144_v11 = vcvt.s32.f32 %v5142_v37 }
 0xf9f   :  { %14811 = vst [vmem:[#allocation6_spill] sm:$0xff] %v12639_v58  ;;  %vm14633_vm15 = vcmp.eq.s32.totalorder %v9327_v40, %v12639_v58  ;;  %v5129_v58 = vcvt.s32.f32 %v5127_v34  ;;  %v5159_v34 = vcvt.s32.f32 %v5157_v61 }
 0xfa0   :  { %v12647_v55 = vsel %vm14633_vm15, -inf, %v12215_v57 }
 0xfa1   :  { %v5076_v9 = vsel %vm299_vm2, %v12647_v55, -inf }
 0xfa2   :  { %5077 = vmax.xlane.f32.xlu2 %v5076_v9 }
 0xfcd   :  { %v12652_v8 = vpop.xlane.xlu2 %5116 }
 0xfce   :  { %vm5118_vm4 = vcmp.eq.f32.partialorder %v12481_v25, %v12652_v8 }
 0xfcf   :  { %v5119_v17 = vsel %vm5118_vm4, %v5114_v2, inf }
 0xfd0   :  { %5120 = vmin.xlane.f32.xlu0 %v5119_v17 }
 0xfd5   :  { %v12657_v14 = vpop.xlane.xlu2 %5131 }
 0xfd6   :  { %vm5133_vm15 = vcmp.eq.f32.partialorder %v12491_v33, %v12657_v14 }
 0xfd7   :  { %v5134_v57 = vsel %vm5133_vm15, %v5129_v58, inf }
 0xfd8   :  { %5135 = vmin.xlane.f32.xlu0 %v5134_v57 }
 0xfda   :  { %v5057_v9 = vpop.xlane.xlu0 %5056 }
 0xfdb   :  { %vm5087_vm5 = vcmp.ge.f32.partialorder %v12507_v7, %v5057_v9 }
 0xfdc   :  { %v5103_v12 = vsel %vm5087_vm5, %v9327_v40, 4 }
 0xfdd   :  { %v12665_v25 = vsel %vm299_vm2, %v5103_v12, 2147483647  ;;  %v12667_v2 = vpop.xlane.xlu2 %5146  ;;  %v5172_v12 = vand.u32 65535, %v12541_v62 }
 0xfde   :  { %vm5148_vm4 = vcmp.eq.f32.partialorder %v12513_v24, %v12667_v2  ;;  %v5233_v33 = vshra.s32 %v12665_v25, 16 }
 0xfdf   :  { %v5149_v58 = vsel %vm5148_vm4, %v5144_v11, inf }
 0xfe0   :  { %5150 = vmin.xlane.f32.xlu0 %v5149_v58  ;;  %v12672_v57 = vcvt.s32.f32 %v5233_v33  ;;  %v5174_v58 = vcvt.s32.f32 %v5172_v12 }
 0xfe2   :  { %5236 = vmin.xlane.f32.xlu1 %v12672_v57 }
 0xfe5   :  { %v5060_v7 = vpop.xlane.xlu0 %5059  ;;  %v12676_v17 = vpop.xlane.xlu2 %5161 }
 0xfe6   :  { %vm5088_vm5 = vcmp.ge.f32.partialorder %v12533_v0, %v5060_v7  ;;  %vm5163_vm15 = vcmp.eq.f32.partialorder %v12527_v54, %v12676_v17 }
 0xfe7   :  { %v5104_v24 = vsel %vm5088_vm5, %v9327_v40, 4  ;;  %v5164_v37 = vsel %vm5163_vm15, %v5159_v34, inf  ;;  %v5187_v34 = vand.u32 65535, %v12565_v60 }
 0xfe8   :  { %v12683_v9 = vsel %vm299_vm2, %v5104_v24, 2147483647  ;;  %5165 = vmin.xlane.f32.xlu0 %v5164_v37 }
 0xfe9   :  { %v5248_v36 = vshra.s32 %v12683_v9, 16  ;;  %v5247_v6 = vand.u32 65535, %v12683_v9 }
 0xfeb   :  { %v12687_v11 = vcvt.s32.f32 %v5248_v36  ;;  %v5189_v36 = vcvt.s32.f32 %v5187_v34 }
 0xfed   :  { %5251 = vmin.xlane.f32.xlu1 %v12687_v11  ;;  %v5063_v33 = vpop.xlane.xlu0 %5062  ;;  %v12690_v0 = vpop.xlane.xlu2 %5176 }
 0xfee   :  { %vm5089_vm4 = vcmp.ge.f32.partialorder %v12555_v48, %v5063_v33  ;;  %vm5178_vm5 = vcmp.eq.f32.partialorder %v12549_v63, %v12690_v0 }
 0xfef   :  { %v5105_v54 = vsel %vm5089_vm4, %v9327_v40, 4  ;;  %v5179_v61 = vsel %vm5178_vm5, %v5174_v58, inf  ;;  %v5202_v58 = vand.u32 65535, %v12587_v52 }
 0xff0   :  { %v12697_v7 = vsel %vm299_vm2, %v5105_v54, 2147483647  ;;  %5180 = vmin.xlane.f32.xlu0 %v5179_v61 }
 0xff1   :  { %v5263_v62 = vshra.s32 %v12697_v7, 16 }
 0xff3   :  { %v12701_v24 = vcvt.s32.f32 %v5263_v62  ;;  %v5204_v62 = vcvt.s32.f32 %v5202_v58 }
 0xff5   :  { %v12703_v37 = vpop.xlane.xlu1 %5191  ;;  %5266 = vmin.xlane.f32.xlu1 %v12701_v24  ;;  %v5066_v48 = vpop.xlane.xlu2 %5065 }
 0xff6   :  { %vm5090_vm15 = vcmp.ge.f32.partialorder %v12575_v29, %v5066_v48  ;;  %vm5193_vm4 = vcmp.eq.f32.partialorder %v12577_v41, %v12703_v37  ;;  %v5198_v3 = vcvt.f32.s32 %v12703_v37 }
 0xff7   :  { %v5106_v63 = vsel %vm5090_vm15, %v9327_v40, 4  ;;  %v5194_v12 = vsel %vm5193_vm4, %v5189_v36, inf  ;;  %v5217_v36 = vand.u32 65535, %v12609_v32 }
 0xff8   :  { %v12711_v33 = vsel %vm299_vm2, %v5106_v63, 2147483647  ;;  %5195 = vmin.xlane.f32.xlu2 %v5194_v12 }
 0xff9   :  { %v5278_v60 = vshra.s32 %v12711_v33, 16 }
 0xffb   :  { %v12715_v54 = vcvt.s32.f32 %v5278_v60  ;;  %v5219_v60 = vcvt.s32.f32 %v5217_v36  ;;  %v12754_v36 = vpop.f32.mrf.mxu2 }
 0xffc   :  { %14812 = vst [vmem:[#allocation22_spill] sm:$0xff] %v12754_v36 }
 0xffd   :  { %v12717_v61 = vpop.xlane.xlu1 %5206  ;;  %5281 = vmin.xlane.f32.xlu0 %v12715_v54  ;;  %v5069_v29 = vpop.xlane.xlu2 %5068 }
 0xffe   :  { %vm5091_vm5 = vcmp.ge.f32.partialorder %v12597_v20, %v5069_v29  ;;  %vm5208_vm15 = vcmp.eq.f32.partialorder %v12599_v44, %v12717_v61  ;;  %v5213_v28 = vcvt.f32.s32 %v12717_v61 }
 0xfff   :  { %v5107_v41 = vsel %vm5091_vm5, %v9327_v40, 4  ;;  %v5209_v34 = vsel %vm5208_vm15, %v5204_v62, inf }
0x1000   :  { %v12725_v48 = vsel %vm299_vm2, %v5107_v41, 2147483647  ;;  %5210 = vmin.xlane.f32.xlu1 %v5209_v34 }
0x1001   :  { %v5293_v52 = vshra.s32 %v12725_v48, 16  ;;  %v5292_v42 = vand.u32 65535, %v12725_v48 }
0x1003   :  { %v12729_v63 = vcvt.s32.f32 %v5293_v52 }
0x1005   :  { %v12731_v12 = vpop.xlane.xlu1 %5221  ;;  %5296 = vmin.xlane.f32.xlu2 %v12729_v63  ;;  %v5072_v20 = vpop.xlane.xlu2 %5071 }
0x1006   :  { %vm5092_vm4 = vcmp.ge.f32.partialorder %v12619_v38, %v5072_v20  ;;  %vm5223_vm5 = vcmp.eq.f32.partialorder %v12621_v49, %v12731_v12  ;;  %v5123_v20 = vcvt.f32.s32 %v12652_v8 }
0x1007   :  { %v5108_v44 = vsel %vm5092_vm4, %v9327_v40, 4  ;;  %v5224_v58 = vsel %vm5223_vm5, %v5219_v60, inf  ;;  %v12757_v60 = vpop.f32.mrf.mxu2 }
0x1008   :  { %v12739_v29 = vsel %vm299_vm2, %v5108_v44, 2147483647  ;;  %5225 = vmin.xlane.f32.xlu0 %v5224_v58  ;;  %14813 = vst [vmem:[#allocation23_spill] sm:$0xff] %v12757_v60  ;;  %v5124_v58 = vshll.u32 %v5123_v20, 16 }
0x1009   :  { %v5308_v32 = vshra.s32 %v12739_v29, 16 }
0x100b   :  { %v12742_v62 = vcvt.s32.f32 %v5308_v32 }
0x100d   :  { %5311 = vmin.xlane.f32.xlu1 %v12742_v62  ;;  %v5075_v41 = vpop.xlane.xlu2 %5074 }
0x100e   :  { %vm5093_vm15 = vcmp.ge.f32.partialorder %v12635_v53, %v5075_v41  ;;  %v5138_v41 = vcvt.f32.s32 %v12657_v14  ;;  %v8948_v14 = vld [vmem:[%s14596_s6 + $0x38] sm:$0xff] }
0x100f   :  { %v5109_v38 = vsel %vm5093_vm15, %v9327_v40, 4  ;;  %v12766_v18 = vpop.f32.mrf.mxu2 }
0x1010   :  { %v12748_v49 = vsel %vm299_vm2, %v5109_v38, 2147483647  ;;  %v4983_v38 = vsel %vm4967_vm10, %v12030_v43, 0.0  ;;  %14814 = vst [vmem:[#allocation24_spill] sm:$0xff] %v12766_v18  ;;  %v5139_v60 = vshll.u32 %v5138_v41, 16 }
0x1011   :  { %v5323_v34 = vshra.s32 %v12748_v49, 16 }
0x1013   :  { %v12751_v52 = vcvt.s32.f32 %v5323_v34 }
0x1015   :  { %5326 = vmin.xlane.f32.xlu0 %v12751_v52  ;;  %v5078_v20 = vpop.xlane.xlu2 %5077 }
0x1016   :  { %vm5094_vm5 = vcmp.ge.f32.partialorder %v12647_v55, %v5078_v20 }
0x1017   :  { %v5110_v41 = vsel %vm5094_vm5, %v9327_v40, 4 }
0x1043   :  { %v5121_v44 = vpop.xlane.xlu0 %5120 }
0x1044   :  { %v5122_v53 = vcvt.f32.s32 %v5121_v44  ;;  %v5153_v44 = vcvt.f32.s32 %v12667_v2 }
0x1046   :  { %v5125_v32 = vadd.s32 %v5124_v58, %v5122_v53  ;;  %v5154_v31 = vshll.u32 %v5153_v44, 16  ;;  %v4985_v44 = vsel %vm4969_vm12, %v12050_v1, 0.0 }
0x1048   :  { %vm5351_vm4 = vcmp.eq.s32.totalorder %v9327_v40, %v5125_v32  ;;  %v8951_v32 = vld [vmem:[%s14596_s6 + $0x20] sm:$0xff] }
0x1049   :  { %v5367_v34 = vsel %vm5351_vm4, %v12030_v43, 0.0  ;;  %v8949_v43 = vld [vmem:[%s14596_s6 + $0x30] sm:$0xff] }
0x104a   :  { %v5383_v36 = vadd.f32 %v5367_v34, %v4983_v38  ;;  %v8952_v34 = vld [vmem:[%s14596_s6 + $0x18] sm:$0xff] }
0x104b   :  { %v5136_v8 = vpop.xlane.xlu0 %5135 }
0x104c   :  { %v5137_v45 = vcvt.f32.s32 %v5136_v8  ;;  %8325 = vmatmul.msk.f32.vlgmr.msra.gmra.mxu2 %vm299_vm2, %v5383_v36  ;;  %8342 = vmatmul.msk.f32.vlgmr.msra.gmra.mxu3 %vm299_vm2, %v5383_v36  ;;  %v4984_v36 = vsel %vm4968_vm9, %v12040_v56, 0.0 }
0x104d   :  { %7829 = vmatpush.msra.mxu3 %v8948_v14  ;;  %v12804_v14 = vsel %vm299_vm2, %v5110_v41, 2147483647  ;;  %v5183_v41 = vcvt.f32.s32 %v12690_v0 }
0x104e   :  { %v5140_v22 = vadd.s32 %v5139_v60, %v5137_v45  ;;  %v5232_v45 = vand.u32 65535, %v12665_v25  ;;  %v8950_v60 = vld [vmem:[%s14596_s6 + $0x28] sm:$0xff] }
0x104f   :  { %7830 = vmatpush.msra.mxu3 %v8949_v43  ;;  %v5168_v43 = vcvt.f32.s32 %v12676_v17  ;;  %v8955_v17 = vld [vmem:[%s14596_s6] sm:$0xff] }
0x1050   :  { %vm5352_vm10 = vcmp.eq.s32.totalorder %v9327_v40, %v5140_v22  ;;  %v5234_v38 = vcvt.s32.f32 %v5232_v45  ;;  %v8953_v22 = vld [vmem:[%s14596_s6 + $0x10] sm:$0xff] }
0x1051   :  { %v5368_v58 = vsel %vm5352_vm10, %v12040_v56, 0.0  ;;  %7831 = vmatpush.msra.mxu3 %v8950_v60  ;;  %v12794_v56 = vpop.f32.mrf.mxu2 }
0x1052   :  { %v5384_v53 = vadd.f32 %v5368_v58, %v4984_v36  ;;  %14815 = vst [vmem:[#allocation25_spill] sm:$0xff] %v12794_v56  ;;  %v8954_v36 = vld [vmem:[%s14596_s6 + $0x8] sm:$0xff]  ;;  %v5338_v58 = vshra.s32 %v12804_v14, 16 }
0x1053   :  { %v5151_v2 = vpop.xlane.xlu0 %5150  ;;  %7832 = vmatpush.msra.mxu3 %v8951_v32 }
0x1054   :  { %v5152_v55 = vcvt.f32.s32 %v5151_v2  ;;  %8326 = vmatmul.msk.f32.gmra.mxu2 %vm299_vm2, %v5384_v53  ;;  %8343 = vmatmul.msk.f32.gmra.mxu3 %vm299_vm2, %v5384_v53  ;;  %v5169_v53 = vshll.u32 %v5168_v43, 16  ;;  %v12826_v32 = vcvt.s32.f32 %v5338_v58  ;;  %v4987_v58 = vsel %vm4971_vm14, %v12070_v23, 0.0 }
0x1055   :  { %v12796_v25 = vpop.xlane.xlu1 %5236  ;;  %7833 = vmatpush.msra.mxu3 %v8952_v34  ;;  %v4986_v34 = vsel %vm4970_vm6, %v12060_v50, 0.0 }
0x1056   :  { %v5155_v8 = vadd.s32 %v5154_v31, %v5152_v55  ;;  %vm5238_vm9 = vcmp.eq.f32.partialorder %v12672_v57, %v12796_v25 }
0x1057   :  { %v5239_v20 = vsel %vm5238_vm9, %v5234_v38, inf  ;;  %7834 = vmatpush.msra.mxu3 %v8953_v22  ;;  %v5249_v38 = vcvt.s32.f32 %v5247_v6  ;;  %v5184_v22 = vshll.u32 %v5183_v41, 16 }
0x1058   :  { %vm5353_vm15 = vcmp.eq.s32.totalorder %v9327_v40, %v5155_v8  ;;  %5240 = vmin.xlane.f32.xlu2 %v5239_v20 }
0x1059   :  { %v5369_v57 = vsel %vm5353_vm15, %v12050_v1, 0.0  ;;  %7835 = vmatpush.msra.mxu3 %v8954_v36  ;;  %v12828_v31 = vpop.f32.mrf.mxu2 }
0x105a   :  { %v5385_v45 = vadd.f32 %v5369_v57, %v4985_v44  ;;  %14816 = vst [vmem:[#allocation26_spill] sm:$0xff] %v12828_v31  ;;  %v5262_v44 = vand.u32 65535, %v12697_v7 }
0x105b   :  { %v5166_v60 = vpop.xlane.xlu0 %5165  ;;  %7836 = vmatpush.msra.mxu3 %v8955_v17  ;;  %v5199_v17 = vshll.u32 %v5198_v3, 16 }
0x105c   :  { %v5167_v2 = vcvt.f32.s32 %v5166_v60  ;;  %8327 = vmatmul.msk.f32.gmra.mxu2 %vm299_vm2, %v5385_v45  ;;  %8344 = vmatmul.msk.f32.gmra.mxu3 %vm299_vm2, %v5385_v45 }
0x105e   :  { %v5170_v1 = vadd.s32 %v5169_v53, %v5167_v2  ;;  %v5277_v2 = vand.u32 65535, %v12711_v33 }
0x1060   :  { %vm5354_vm12 = vcmp.eq.s32.totalorder %v9327_v40, %v5170_v1  ;;  %v12832_v55 = vpop.xlane.xlu1 %5251  ;;  %5341 = vmin.xlane.f32.xlu2 %v12826_v32  ;;  %v4988_v1 = vsel %vm4972_vm0, %v12080_v15, 0.0 }
0x1061   :  { %v5370_v9 = vsel %vm5354_vm12, %v12060_v50, 0.0  ;;  %vm5253_vm4 = vcmp.eq.f32.partialorder %v12687_v11, %v12832_v55  ;;  %v5264_v11 = vcvt.s32.f32 %v5262_v44  ;;  %v12849_v36 = vpop.f32.mrf.mxu2 }
0x1062   :  { %v5254_v8 = vsel %vm5253_vm4, %v5249_v38, inf  ;;  %v5386_v20 = vadd.f32 %v5370_v9, %v4986_v34  ;;  %14817 = vst [vmem:[#allocation27_spill] sm:$0xff] %v12849_v36  ;;  %v5214_v9 = vshll.u32 %v5213_v28, 16 }
0x1063   :  { %v5181_v0 = vpop.xlane.xlu0 %5180  ;;  %5255 = vmin.xlane.f32.xlu1 %v5254_v8 }
0x1064   :  { %v5182_v43 = vcvt.f32.s32 %v5181_v0  ;;  %8328 = vmatmul.msk.f32.gmra.mxu2 %vm299_vm2, %v5386_v20  ;;  %8345 = vmatmul.msk.f32.gmra.mxu3 %vm299_vm2, %v5386_v20  ;;  %v5294_v0 = vcvt.s32.f32 %v5292_v42 }
0x1066   :  { %v5185_v57 = vadd.s32 %v5184_v22, %v5182_v43  ;;  %v4989_v22 = vsel %vm4973_vm8, %v12090_v47, 0.0 }
0x1068   :  { %vm5355_vm6 = vcmp.eq.s32.totalorder %v9327_v40, %v5185_v57  ;;  %v12847_v50 = vpop.xlane.xlu1 %5266 }
0x1069   :  { %v5371_v45 = vsel %vm5355_vm6, %v12070_v23, 0.0  ;;  %vm5268_vm10 = vcmp.eq.f32.partialorder %v12701_v24, %v12847_v50  ;;  %v5279_v24 = vcvt.s32.f32 %v5277_v2  ;;  %v12872_v34 = vpop.f32.mrf.mxu2  ;;  %vm14828_vm6 = vcmp.eq.s32.totalorder %v9327_v40, %v12562_v5 }
0x106a   :  { %v5387_v7 = vadd.f32 %v5371_v45, %v4987_v58  ;;  %v5269_v60 = vsel %vm5268_vm10, %v5264_v11, inf  ;;  %14818 = vst [vmem:[#allocation28_spill] sm:$0xff] %v12872_v34  ;;  %v5307_v11 = vand.u32 65535, %v12739_v29  ;;  %v4990_v45 = vsel %vm4974_vm7, %v12099_v59, 0.0 }
0x106b   :  { %5270 = vmin.xlane.f32.xlu0 %v5269_v60  ;;  %v5196_v37 = vpop.xlane.xlu2 %5195  ;;  %vm14829_vm10 = vcmask 1043456  }
0x106c   :  { %v5197_v53 = vcvt.f32.s32 %v5196_v37  ;;  %8329 = vmatmul.msk.f32.gmra.mxu2 %vm299_vm2, %v5387_v7  ;;  %8346 = vmatmul.msk.f32.gmra.mxu3 %vm299_vm2, %v5387_v7  ;;  %v5322_v37 = vand.u32 65535, %v12748_v49  ;;  %v12921_v49 = vld [vmem:[%s14593_s5] ss:$0 sm:$0xff] }
0x106e   :  { %v5200_v6 = vadd.s32 %v5199_v17, %v5197_v53  ;;  %v5324_v26 = vcvt.s32.f32 %v5322_v37 }
0x1070   :  { %vm5356_vm14 = vcmp.eq.s32.totalorder %v9327_v40, %v5200_v6  ;;  %v12863_v23 = vpop.xlane.xlu0 %5281  ;;  %v5416_v6 = vpop.f32.mrf.mxu1 }
0x1071   :  { %v5372_v41 = vsel %vm5356_vm14, %v12080_v15, 0.0  ;;  %vm5283_vm5 = vcmp.eq.f32.partialorder %v12715_v54, %v12863_v23  ;;  %v5228_v15 = vcvt.f32.s32 %v12731_v12  ;;  %v12891_v58 = vpop.f32.mrf.mxu2 }
0x1072   :  { %v5388_v38 = vadd.f32 %v5372_v41, %v4988_v1  ;;  %v5284_v33 = vsel %vm5283_vm5, %v5279_v24, inf  ;;  %14819 = vst [vmem:[#allocation29_spill] sm:$0xff] %v12891_v58  ;;  %v5417_v1 = vadd.f32 %v12921_v49, %v5416_v6  ;;  %vm14830_vm5 = vcmp.eq.s32.totalorder %v9327_v40, %v12584_v10 }
0x1073   :  { %v5211_v61 = vpop.xlane.xlu1 %5210  ;;  %5285 = vmin.xlane.f32.xlu1 %v5284_v33  ;;  %v5229_v12 = vshll.u32 %v5228_v15, 16 }
0x1074   :  { %v5212_v8 = vcvt.f32.s32 %v5211_v61  ;;  %8330 = vmatmul.msk.f32.gmra.mxu2 %vm299_vm2, %v5388_v38  ;;  %8347 = vmatmul.msk.f32.gmra.mxu3 %vm299_vm2, %v5388_v38  ;;  %v5464_v41 = vmul.f32 %v5417_v1, %v5417_v1 }
0x1076   :  { %v5215_v20 = vadd.s32 %v5214_v9, %v5212_v8  ;;  %v5480_v33 = vmul.f32 %v5464_v41, %v5417_v1 }
0x1078   :  { %vm5357_vm0 = vcmp.eq.s32.totalorder %v9327_v40, %v5215_v20  ;;  %v12879_v54 = vpop.xlane.xlu2 %5296  ;;  %v5419_v24 = vpop.f32.mrf.mxu1  ;;  %v5496_v9 = vmul.f32 0.044715, %v5480_v33  ;;  %v5243_v33 = vcvt.f32.s32 %v12796_v25  ;;  %v5337_v25 = vand.u32 65535, %v12804_v14 }
0x1079   :  { %v5373_v43 = vsel %vm5357_vm0, %v12090_v47, 0.0  ;;  %vm5298_vm9 = vcmp.eq.f32.partialorder %v12729_v63, %v12879_v54  ;;  %v5309_v63 = vcvt.s32.f32 %v5307_v11  ;;  %v12906_v17 = vpop.f32.mrf.mxu2  ;;  %v12927_v61 = vadd.f32 %v12921_v49, %v5419_v24  ;;  %v8394_v11 = vld [vmem:[%s14588_s1 + $0x78] sm:$0xff] }
0x107a   :  { %v5389_v44 = vadd.f32 %v5373_v43, %v4989_v22  ;;  %v5299_v48 = vsel %vm5298_vm9, %v5294_v0, inf  ;;  %14820 = vst [vmem:[#allocation30_spill] sm:$0xff] %v12906_v17  ;;  %v5512_v0 = vadd.f32 %v5496_v9, %v5417_v1  ;;  %6068 = vmatpush.msrb.mxu2 %v8394_v11  ;;  %vm14831_vm9 = vcmp.eq.s32.totalorder %v9327_v40, %v12606_v21 }
0x107b   :  { %v5226_v57 = vpop.xlane.xlu0 %5225  ;;  %5300 = vmin.xlane.f32.xlu2 %v5299_v48  ;;  %v5465_v8 = vmul.f32 %v12927_v61, %v12927_v61 }
0x107c   :  { %v5227_v3 = vcvt.f32.s32 %v5226_v57  ;;  %8331 = vmatmul.msk.f32.gmra.mxu2 %vm299_vm2, %v5389_v44  ;;  %8348 = vmatmul.msk.f32.gmra.mxu3 %vm299_vm2, %v5389_v44  ;;  %v5528_v48 = vmul.f32 0.7978846, %v5512_v0 }
0x107d   :  { %v5481_v20 = vmul.f32 %v5465_v8, %v12927_v61 }
0x107e   :  { %v5230_v35 = vadd.s32 %v5229_v12, %v5227_v3  ;;  %8773 = vtanh.f32 %v5528_v48 }
0x107f   :  { %v5497_v43 = vmul.f32 0.044715, %v5481_v20 }
0x1080   :  { %vm5358_vm8 = vcmp.eq.s32.totalorder %v9327_v40, %v5230_v35  ;;  %v12894_v47 = vpop.xlane.xlu1 %5311 }
0x1081   :  { %v5374_v7 = vsel %vm5358_vm8, %v12099_v59, 0.0  ;;  %vm5313_vm15 = vcmp.eq.f32.partialorder %v12742_v62, %v12894_v47  ;;  %v12912_v62 = vpop.f32.mrf.mxu2  ;;  %v5513_v3 = vadd.f32 %v5497_v43, %v12927_v61 }
0x1082   :  { %v5390_v60 = vadd.f32 %v5374_v7, %v4990_v45  ;;  %v5314_v29 = vsel %vm5313_vm15, %v5309_v63, inf  ;;  %14821 = vst [vmem:[#allocation31_spill] sm:$0xff] %v12912_v62 }
0x1083   :  { %5315 = vmin.xlane.f32.xlu0 %v5314_v29 }
0x1084   :  { %8332 = vmatmul.msk.f32.gmra.mxu2 %vm299_vm2, %v5390_v60  ;;  %8349 = vmatmul.msk.f32.gmra.mxu3 %vm299_vm2, %v5390_v60  ;;  %v5529_v60 = vmul.f32 0.7978846, %v5513_v3  ;;  %v8774_v29 = vpop.eup %8773 }
0x1085   :  { %v5560_v6 = vadd.f32 1.0, %v8774_v29 }
0x1086   :  { %8775 = vtanh.f32 %v5529_v60 }
0x1087   :  { %v5576_v20 = vmul.f32 0.5, %v5560_v6 }
0x1088   :  { %v12908_v53 = vpop.xlane.xlu0 %5326 }
0x1089   :  { %vm5328_vm7 = vcmp.eq.f32.partialorder %v12751_v52, %v12908_v53  ;;  %v12914_v2 = vpop.f32.mrf.mxu2  ;;  %v5422_v52 = vpop.f32.mrf.mxu1 }
0x108a   :  { %v5329_v59 = vsel %vm5328_vm7, %v5324_v26, inf  ;;  %14822 = vst [vmem:[#allocation32_spill] sm:$0xff] %v12914_v2  ;;  %v12935_v15 = vadd.f32 %v12921_v49, %v5422_v52  ;;  %vm14835_vm7 = vmmov %vm14829_vm10 }
0x108b   :  { %5330 = vmin.xlane.f32.xlu1 %v5329_v59 }
0x108c   :  { %v5466_v44 = vmul.f32 %v12935_v15, %v12935_v15  ;;  %v8776_v0 = vpop.eup %8775 }
0x108e   :  { %v5482_v57 = vmul.f32 %v5466_v44, %v12935_v15  ;;  %v5244_v44 = vshll.u32 %v5243_v33, 16 }
0x1090   :  { %v5498_v45 = vmul.f32 0.044715, %v5482_v57 }
0x1091   :  { %v12916_v28 = vpop.f32.mrf.mxu2  ;;  %v5425_v22 = vpop.f32.mrf.mxu1 }
0x1092   :  { %14823 = vst [vmem:[#allocation33_spill] sm:$0xff] %v12916_v28  ;;  %v12941_v12 = vadd.f32 %v12921_v49, %v5425_v22  ;;  %v5514_v59 = vadd.f32 %v5498_v45, %v12935_v15  ;;  %v5561_v45 = vadd.f32 1.0, %v8776_v0 }
0x1094   :  { %v5467_v7 = vmul.f32 %v12941_v12, %v12941_v12  ;;  %v5530_v8 = vmul.f32 0.7978846, %v5514_v59  ;;  %v4991_v59 = vsel %vm4975_vm1, %v12128_v19, 0.0  ;;  %v5577_v14 = vmul.f32 0.5, %v5561_v45 }
0x1096   :  { %v5483_v26 = vmul.f32 %v5467_v7, %v12941_v12  ;;  %8777 = vtanh.f32 %v5530_v8 }
0x1098   :  { %v5499_v9 = vmul.f32 0.044715, %v5483_v26 }
0x1099   :  { %v12924_v38 = vpop.f32.mrf.mxu2  ;;  %v5428_v63 = vpop.f32.mrf.mxu1 }
0x109a   :  { %14824 = vst [vmem:[#allocation34_spill] sm:$0xff] %v12924_v38  ;;  %v12952_v37 = vadd.f32 %v12921_v49, %v5428_v63  ;;  %v5515_v3 = vadd.f32 %v5499_v9, %v12941_v12  ;;  %v5592_v63 = vmul.f32 %v5576_v20, %v5417_v1  ;;  %v5258_v9 = vcvt.f32.s32 %v12832_v55 }
0x109b   :  { %v5339_v20 = vcvt.s32.f32 %v5337_v25 }
0x109c   :  { %v5468_v41 = vmul.f32 %v12952_v37, %v12952_v37  ;;  %v8778_v33 = vpop.eup %8777 }
0x109e   :  { %v5484_v43 = vmul.f32 %v5468_v41, %v12952_v37  ;;  %v5531_v41 = vmul.f32 0.7978846, %v5515_v3 }
0x10a0   :  { %v5500_v60 = vmul.f32 0.044715, %v5484_v43  ;;  %8779 = vtanh.f32 %v5531_v41  ;;  %v5593_v43 = vmul.f32 %v5577_v14, %v12927_v61  ;;  %v4992_v61 = vsel %vm4976_vm3, %v12146_v46, 0.0 }
0x10a1   :  { %v12931_v42 = vpop.f32.mrf.mxu2  ;;  %v5431_v52 = vpop.f32.mrf.mxu1 }
0x10a2   :  { %14825 = vst [vmem:[#allocation35_spill] sm:$0xff] %v12931_v42  ;;  %v12963_v57 = vadd.f32 %v12921_v49, %v5431_v52 }
0x10a4   :  { %v5469_v26 = vmul.f32 %v12963_v57, %v12963_v57 }
0x10a6   :  { %v5485_v13 = vmul.f32 %v5469_v26, %v12963_v57  ;;  %v8780_v26 = vpop.eup %8779 }
0x10a7   :  { %v5563_v30 = vadd.f32 1.0, %v8780_v26 }
0x10a8   :  { %v5501_v45 = vmul.f32 0.044715, %v5485_v13 }
0x10a9   :  { %v12947_v35 = vpop.f32.mrf.mxu2  ;;  %v5434_v1 = vpop.f32.mrf.mxu1 }
0x10aa   :  { %14826 = vst [vmem:[#allocation36_spill] sm:$0xff] %v12947_v35  ;;  %v12986_v0 = vadd.f32 %v12921_v49, %v5434_v1  ;;  %v5517_v14 = vadd.f32 %v5501_v45, %v12963_v57 }
0x10ac   :  { %v5470_v25 = vmul.f32 %v12986_v0, %v12986_v0 }
0x10ae   :  { %v5486_v41 = vmul.f32 %v5470_v25, %v12986_v0 }
0x10b1   :  { %v12956_v24 = vpop.f32.mrf.mxu2 }
0x10b2   :  { %14827 = vst [vmem:[#allocation37_spill] sm:$0xff] %v12956_v24 }
0x10cb   :  { %v5241_v22 = vpop.xlane.xlu2 %5240 }
0x10cc   :  { %v5242_v48 = vcvt.f32.s32 %v5241_v22 }
0x10ce   :  { %v5245_v11 = vadd.s32 %v5244_v44, %v5242_v48  ;;  %v5562_v44 = vadd.f32 1.0, %v8778_v33  ;;  %v5259_v48 = vshll.u32 %v5258_v9, 16 }
0x10cf   :  { %v5673_v7 = vpop.f32.mrf.mxu2 }
0x10d0   :  { %vm5359_vm12 = vcmp.eq.s32.totalorder %v9327_v40, %v5245_v11  ;;  %v5721_v29 = vmul.f32 %v5673_v7, %v5592_v63 }
0x10d1   :  { %v5375_v6 = vsel %vm5359_vm12, %v12128_v19, 0.0  ;;  %v5516_v19 = vadd.f32 %v5500_v60, %v12952_v37  ;;  %v5437_v60 = vpop.f32.mrf.mxu1 }
0x10d2   :  { %v5391_v52 = vadd.f32 %v5375_v6, %v4991_v59  ;;  %8358 = vmatmul.msk.f32.vlgmr.msra.gmra.mxu0 %vm1860_vm11, %v5721_v29  ;;  %v5578_v29 = vmul.f32 0.5, %v5562_v44  ;;  %v5273_v59 = vcvt.f32.s32 %v12847_v50  ;;  %v13001_v1 = vadd.f32 %v12921_v49, %v5437_v60  ;;  %v8393_v50 = vld [vmem:[%s14588_s1 + $0x70] sm:$0xff] }
0x10d3   :  { %v12977_v8 = vpop.xlane.xlu2 %5341  ;;  %v5532_v63 = vmul.f32 0.7978846, %v5516_v19  ;;  %6069 = vmatpush.msrb.mxu2 %v8393_v50  ;;  %v5533_v44 = vmul.f32 0.7978846, %v5517_v14  ;;  %v5303_v50 = vcvt.f32.s32 %v12879_v54  ;;  %v8957_v54 = vld [vmem:[%s14595_s7] sm:$0xf] }
0x10d4   :  { %vm5343_vm4 = vcmp.eq.f32.partialorder %v12826_v32, %v12977_v8  ;;  %8333 = vmatmul.msk.f32.gmra.mxu2 %vm299_vm2, %v5391_v52  ;;  %8350 = vmatmul.msk.f32.gmra.mxu3 %vm299_vm2, %v5391_v52  ;;  %v5594_v9 = vmul.f32 %v5578_v29, %v12935_v15  ;;  %v5579_v15 = vmul.f32 0.5, %v5563_v30 }
0x10d5   :  { %v5344_v22 = vsel %vm5343_vm4, %v5339_v20, inf  ;;  %8781 = vtanh.f32 %v5532_v63  ;;  %v5274_v20 = vshll.u32 %v5273_v59, 16 }
0x10d6   :  { %v5256_v55 = vpop.xlane.xlu1 %5255  ;;  %5345 = vmin.xlane.f32.xlu2 %v5344_v22  ;;  %v5502_v22 = vmul.f32 0.044715, %v5486_v41  ;;  %8783 = vtanh.f32 %v5533_v44  ;;  %v5595_v60 = vmul.f32 %v5579_v15, %v12941_v12  ;;  %v8391_v12 = vld [vmem:[%s14588_s1 + $0x60] sm:$0xff]  ;;  %v5318_v15 = vcvt.f32.s32 %v12894_v47 }
0x10d7   :  { %v5257_v32 = vcvt.f32.s32 %v5256_v55  ;;  %v5676_v3 = vpop.f32.mrf.mxu2  ;;  %v5471_v55 = vmul.f32 %v13001_v1, %v13001_v1 }
0x10d8   :  { %v5722_v11 = vmul.f32 %v5676_v3, %v5593_v43  ;;  %v4993_v3 = vsel %vm4977_vm13, %v12156_v51, 0.0  ;;  %v5518_v25 = vadd.f32 %v5502_v22, %v12986_v0  ;;  %v5304_v22 = vshll.u32 %v5303_v50, 16  ;;  %v14833_v50 = vld [vmem:[#allocation5_spill] sm:$0xff] }
0x10d9   :  { %v5260_v7 = vadd.s32 %v5259_v48, %v5257_v32  ;;  %v5288_v32 = vcvt.f32.s32 %v12863_v23  ;;  %v5487_v63 = vmul.f32 %v5471_v55, %v13001_v1  ;;  %vm14834_vm15 = vcmp.eq.s32.totalorder %v9327_v40, %v14833_v50 }
0x10da   :  { %8359 = vmatmul.msk.f32.gmra.mxu0 %vm1860_vm11, %v5722_v11 }
0x10db   :  { %vm5360_vm1 = vcmp.eq.s32.totalorder %v9327_v40, %v5260_v7  ;;  %v8782_v48 = vpop.eup %8781  ;;  %v5289_v23 = vshll.u32 %v5288_v32, 16  ;;  %v4995_v32 = vsel %vm14830_vm5, %v12187_v27, 0.0 }
0x10dc   :  { %v5376_v6 = vsel %vm5360_vm1, %v12146_v46, 0.0  ;;  %v5564_v29 = vadd.f32 1.0, %v8782_v48  ;;  %v8784_v14 = vpop.eup %8783  ;;  %vm14839_vm1 = vcmask 64512  }
0x10dd   :  { %v5392_v52 = vadd.f32 %v5376_v6, %v4992_v61  ;;  %v5503_v61 = vmul.f32 0.044715, %v5487_v63  ;;  %v5534_v6 = vmul.f32 0.7978846, %v5518_v25  ;;  %vm14845_vm5 = vmmov %vm14839_vm1 }
0x10de   :  { %v5271_v33 = vpop.xlane.xlu0 %5270  ;;  %v5580_v41 = vmul.f32 0.5, %v5564_v29 }
0x10df   :  { %v5272_v46 = vcvt.f32.s32 %v5271_v33  ;;  %v5679_v19 = vpop.f32.mrf.mxu2  ;;  %8334 = vmatmul.msk.f32.gmra.mxu2 %vm299_vm2, %v5392_v52  ;;  %8351 = vmatmul.msk.f32.gmra.mxu3 %vm299_vm2, %v5392_v52  ;;  %v8392_v52 = vld [vmem:[%s14588_s1 + $0x68] sm:$0xff]  ;;  %v4994_v33 = vsel %vm14828_vm6, %v12173_v39, 0.0  ;;  %8785 = vtanh.f32 %v5534_v6 }
0x10e0   :  { %v5723_v13 = vmul.f32 %v5679_v19, %v5594_v9  ;;  %6070 = vmatpush.msrb.mxu2 %v8392_v52  ;;  %v5596_v19 = vmul.f32 %v5580_v41, %v12952_v37 }
0x10e1   :  { %v5275_v43 = vadd.s32 %v5274_v20, %v5272_v46  ;;  %v5519_v20 = vadd.f32 %v5503_v61, %v13001_v1 }
0x10e2   :  { %8360 = vmatmul.msk.f32.gmra.mxu0 %vm1860_vm11, %v5723_v13  ;;  %6071 = vmatpush.msrb.mxu2 %v8391_v12  ;;  %v5565_v13 = vadd.f32 1.0, %v8784_v14 }
0x10e3   :  { %vm5361_vm3 = vcmp.eq.s32.totalorder %v9327_v40, %v5275_v43  ;;  %v5535_v44 = vmul.f32 0.7978846, %v5519_v20 }
0x10e4   :  { %v5377_v11 = vsel %vm5361_vm3, %v12156_v51, 0.0  ;;  %8461 = vmatpush.msk.msra.mxu2 %vm14829_vm10, %v8957_v54  ;;  %v5581_v37 = vmul.f32 0.5, %v5565_v13  ;;  %vm14840_vm3 = vcmask 261120   ;;  %vm14843_vm10 = vmmov %vm14839_vm1 }
0x10e5   :  { %v5393_v45 = vadd.f32 %v5377_v11, %v4993_v3  ;;  %v8786_v48 = vpop.eup %8785  ;;  %8787 = vtanh.f32 %v5535_v44  ;;  %vm14842_vm6 = vmmov %vm14840_vm3 }
0x10e6   :  { %v5286_v7 = vpop.xlane.xlu1 %5285  ;;  %v5566_v25 = vadd.f32 1.0, %v8786_v48 }
0x10e7   :  { %v5287_v26 = vcvt.f32.s32 %v5286_v7  ;;  %v5682_v59 = vpop.f32.mrf.mxu2  ;;  %8335 = vmatmul.msk.f32.gmra.mxu2 %vm299_vm2, %v5393_v45  ;;  %8352 = vmatmul.msk.f32.gmra.mxu3 %vm299_vm2, %v5393_v45  ;;  %v5597_v45 = vmul.f32 %v5581_v37, %v12963_v57  ;;  %v5319_v7 = vshll.u32 %v5318_v15, 16  ;;  %v4996_v57 = vsel %vm14831_vm9, %v12201_v4, 0.0  ;;  %vm14847_vm9 = vmmov %vm14839_vm1 }
0x10e8   :  { %v5724_v16 = vmul.f32 %v5682_v59, %v5595_v60  ;;  %v5582_v10 = vmul.f32 0.5, %v5566_v25 }
0x10e9   :  { %v5290_v51 = vadd.s32 %v5289_v23, %v5287_v26 }
0x10ea   :  { %8361 = vmatmul.msk.f32.gmra.mxu0 %vm1860_vm11, %v5724_v16 }
0x10eb   :  { %vm5362_vm13 = vcmp.eq.s32.totalorder %v9327_v40, %v5290_v51  ;;  %v8788_v26 = vpop.eup %8787  ;;  %v5598_v51 = vmul.f32 %v5582_v10, %v12986_v0 }
0x10ec   :  { %v5378_v9 = vsel %vm5362_vm13, %v12173_v39, 0.0  ;;  %v5567_v6 = vadd.f32 1.0, %v8788_v26  ;;  %vm14841_vm13 = vmmov %vm14839_vm1 }
0x10ed   :  { %v5394_v30 = vadd.f32 %v5378_v9, %v4994_v33 }
0x10ee   :  { %v5301_v46 = vpop.xlane.xlu2 %5300  ;;  %v5583_v21 = vmul.f32 0.5, %v5567_v6 }
0x10ef   :  { %v5302_v5 = vcvt.f32.s32 %v5301_v46  ;;  %v5685_v55 = vpop.f32.mrf.mxu2  ;;  %8336 = vmatmul.msk.f32.gmra.mxu2 %vm299_vm2, %v5394_v30  ;;  %8353 = vmatmul.msk.f32.gmra.mxu3 %vm299_vm2, %v5394_v30 }
0x10f0   :  { %v5725_v39 = vmul.f32 %v5685_v55, %v5596_v19  ;;  %v5599_v30 = vmul.f32 %v5583_v21, %v13001_v1  ;;  %v5440_v19 = vpop.f32.mrf.mxu1  ;;  %v8958_v1 = vld [vmem:[%s14594_s10] sm:$0xf] }
0x10f1   :  { %v5305_v43 = vadd.s32 %v5304_v22, %v5302_v5  ;;  %v5441_v54 = vadd.f32 %v12921_v49, %v5440_v19  ;;  %v8374_v22 = vld [vmem:[%s14597_s8 + $0x10] sm:$0xff] }
0x10f2   :  { %8362 = vmatmul.msk.f32.gmra.mxu0 %vm1860_vm11, %v5725_v39  ;;  %5980 = vmatpush.msrb.mxu1 %v8374_v22 }
0x10f3   :  { %vm5363_vm14 = vcmp.eq.s32.totalorder %v9327_v40, %v5305_v43  ;;  %v5472_v5 = vmul.f32 %v5441_v54, %v5441_v54 }
0x10f4   :  { %v5379_v3 = vsel %vm5363_vm14, %v12187_v27, 0.0  ;;  %v5333_v27 = vcvt.f32.s32 %v12908_v53  ;;  %8444 = vmatpush.msk.msra.mxu1 %vm14835_vm7, %v8958_v1  ;;  %vm14844_vm14 = vmmov %vm14840_vm3 }
0x10f5   :  { %v5395_v11 = vadd.f32 %v5379_v3, %v4995_v32  ;;  %v5488_v55 = vmul.f32 %v5472_v5, %v5441_v54 }
0x10f6   :  { %v5316_v63 = vpop.xlane.xlu0 %5315  ;;  %v5334_v41 = vshll.u32 %v5333_v27, 16 }
0x10f7   :  { %v5317_v60 = vcvt.f32.s32 %v5316_v63  ;;  %v5688_v29 = vpop.f32.mrf.mxu2  ;;  %8337 = vmatmul.msk.f32.gmra.mxu2 %vm299_vm2, %v5395_v11  ;;  %8354 = vmatmul.msk.f32.gmra.mxu3 %vm299_vm2, %v5395_v11  ;;  %v5504_v44 = vmul.f32 0.044715, %v5488_v55  ;;  %v5754_v63 = vpop.f32.mrf.mxu3 }
0x10f8   :  { %v5726_v47 = vmul.f32 %v5688_v29, %v5597_v45  ;;  %v5443_v13 = vpop.f32.mrf.mxu1 }
0x10f9   :  { %v5320_v23 = vadd.s32 %v5319_v7, %v5317_v60  ;;  %v13089_v43 = vadd.f32 %v12921_v49, %v5443_v13  ;;  %v5520_v48 = vadd.f32 %v5504_v44, %v5441_v54  ;;  %v5348_v7 = vcvt.f32.s32 %v12977_v8 }
0x10fa   :  { %8363 = vmatmul.msk.f32.gmra.mxu0 %vm1860_vm11, %v5726_v47 }
0x10fb   :  { %vm5364_vm0 = vcmp.eq.s32.totalorder %v9327_v40, %v5320_v23  ;;  %v5473_v37 = vmul.f32 %v13089_v43, %v13089_v43  ;;  %v5536_v11 = vmul.f32 0.7978846, %v5520_v48  ;;  %v5349_v26 = vshll.u32 %v5348_v7, 16 }
0x10fc   :  { %v5380_v59 = vsel %vm5364_vm0, %v12201_v4, 0.0  ;;  %v14832_v4 = vld [vmem:[#allocation2_spill] sm:$0xff]  ;;  %vm14846_vm0 = vmmov %vm14840_vm3 }
0x10fd   :  { %v5396_v16 = vadd.f32 %v5380_v59, %v4996_v57  ;;  %v4997_v0 = vsel %vm14834_vm15, %v14832_v4, 0.0  ;;  %v5489_v32 = vmul.f32 %v5473_v37, %v13089_v43  ;;  %8789 = vtanh.f32 %v5536_v11  ;;  %v8959_v11 = vld [vmem:[%s14589_s0] sm:$0xff]  ;;  %vm14849_vm15 = vmmov %vm14839_vm1 }
0x10fe   :  { %v5331_v61 = vpop.xlane.xlu1 %5330  ;;  %vm14850_vm7 = vmmov %vm14846_vm0 }
0x10ff   :  { %v5332_v52 = vcvt.f32.s32 %v5331_v61  ;;  %v5691_v12 = vpop.f32.mrf.mxu2  ;;  %8338 = vmatmul.msk.f32.gmra.mxu2 %vm299_vm2, %v5396_v16  ;;  %8355 = vmatmul.msk.f32.gmra.mxu3 %vm299_vm2, %v5396_v16  ;;  %v5505_v45 = vmul.f32 0.044715, %v5489_v32  ;;  %v5757_v61 = vpop.f32.mrf.mxu3 }
0x1100   :  { %v5727_v53 = vmul.f32 %v5691_v12, %v5598_v51  ;;  %v5446_v39 = vpop.f32.mrf.mxu1  ;;  %v14836_v12 = vld [vmem:[#allocation3_spill] sm:$0xff] }
0x1101   :  { %v5335_v14 = vadd.s32 %v5334_v41, %v5332_v52  ;;  %v13095_v3 = vadd.f32 %v12921_v49, %v5446_v39  ;;  %v5521_v47 = vadd.f32 %v5505_v45, %v13089_v43 }
0x1102   :  { %8364 = vmatmul.msk.f32.gmra.mxu0 %vm1860_vm11, %v5727_v53  ;;  %v14837_v53 = vld [vmem:[#allocation6_spill] sm:$0xff] }
0x1103   :  { %vm5365_vm8 = vcmp.eq.s32.totalorder %v9327_v40, %v5335_v14  ;;  %v5474_v25 = vmul.f32 %v13095_v3, %v13095_v3  ;;  %v8790_v57 = vpop.eup %8789  ;;  %v5537_v6 = vmul.f32 0.7978846, %v5521_v47  ;;  %vm14838_vm4 = vcmp.eq.s32.totalorder %v9327_v40, %v14837_v53 }
0x1104   :  { %v5381_v33 = vsel %vm5365_vm8, %v14832_v4, 0.0  ;;  %v5568_v8 = vadd.f32 1.0, %v8790_v57  ;;  %v4998_v14 = vsel %vm14838_vm4, %v14836_v12, 0.0  ;;  %vm14848_vm8 = vmmov %vm14846_vm0 }
0x1105   :  { %v5397_v9 = vadd.f32 %v5381_v33, %v4997_v0  ;;  %v5490_v29 = vmul.f32 %v5474_v25, %v13095_v3  ;;  %8791 = vtanh.f32 %v5537_v6  ;;  %vm14852_vm4 = vmmov %vm14846_vm0 }
0x1107   :  { %v5694_v20 = vpop.f32.mrf.mxu2  ;;  %8339 = vmatmul.msk.f32.gmra.mxu2 %vm299_vm2, %v5397_v9  ;;  %8356 = vmatmul.msk.f32.gmra.mxu3 %vm299_vm2, %v5397_v9  ;;  %v5506_v16 = vmul.f32 0.044715, %v5490_v29  ;;  %v5584_v9 = vmul.f32 0.5, %v5568_v8  ;;  %v5760_v22 = vpop.f32.mrf.mxu3 }
0x1108   :  { %v5728_v46 = vmul.f32 %v5694_v20, %v5599_v30  ;;  %v5449_v15 = vpop.f32.mrf.mxu1 }
0x1109   :  { %v13101_v60 = vadd.f32 %v12921_v49, %v5449_v15  ;;  %v5522_v33 = vadd.f32 %v5506_v16, %v13095_v3  ;;  %v5600_v5 = vmul.f32 %v5584_v9, %v5441_v54 }
0x110a   :  { %8365 = vmatmul.msk.f32.gmra.mxu0 %vm1860_vm11, %v5728_v46 }
0x110b   :  { %v5475_v59 = vmul.f32 %v13101_v60, %v13101_v60  ;;  %v5538_v19 = vmul.f32 0.7978846, %v5522_v33  ;;  %v8792_v13 = vpop.eup %8791 }
0x110c   :  { %v5569_v32 = vadd.f32 1.0, %v8792_v13 }
0x110d   :  { %v5491_v41 = vmul.f32 %v5475_v59, %v13101_v60  ;;  %8793 = vtanh.f32 %v5538_v19 }
0x110e   :  { %v5585_v7 = vmul.f32 0.5, %v5569_v32 }
0x110f   :  { %v5507_v46 = vmul.f32 0.044715, %v5491_v41 }
0x1110   :  { %v5452_v23 = vpop.f32.mrf.mxu1  ;;  %v5601_v59 = vmul.f32 %v5585_v7, %v13089_v43 }
0x1111   :  { %v13110_v52 = vadd.f32 %v12921_v49, %v5452_v23  ;;  %v5523_v48 = vadd.f32 %v5507_v46, %v13101_v60 }
0x1113   :  { %v5476_v30 = vmul.f32 %v13110_v52, %v13110_v52  ;;  %v5539_v45 = vmul.f32 0.7978846, %v5523_v48  ;;  %v8794_v29 = vpop.eup %8793 }
0x1114   :  { %v5570_v16 = vadd.f32 1.0, %v8794_v29 }
0x1115   :  { %v5492_v1 = vmul.f32 %v5476_v30, %v13110_v52  ;;  %8795 = vtanh.f32 %v5539_v45 }
0x1116   :  { %v5586_v53 = vmul.f32 0.5, %v5570_v16 }
0x1117   :  { %v5508_v54 = vmul.f32 0.044715, %v5492_v1 }
0x1118   :  { %v5455_v20 = vpop.f32.mrf.mxu1 }
0x1119   :  { %v13125_v39 = vadd.f32 %v12921_v49, %v5455_v20  ;;  %v8961_v20 = vld [vmem:[%s14589_s0 + $0x10] sm:$0xff] }
0x111b   :  { %v8796_v43 = vpop.eup %8795 }
0x111c   :  { %v5571_v33 = vadd.f32 1.0, %v8796_v43 }
0x1120   :  { %v5458_v25 = vpop.f32.mrf.mxu1 }
0x1121   :  { %v13138_v23 = vadd.f32 %v12921_v49, %v5458_v25 }
0x1123   :  { %v5478_v41 = vmul.f32 %v13138_v23, %v13138_v23 }
0x1149   :  { %v5346_v10 = vpop.xlane.xlu2 %5345 }
0x114a   :  { %v5347_v27 = vcvt.f32.s32 %v5346_v10  ;;  %v5763_v10 = vpop.f32.mrf.mxu3 }
0x114c   :  { %v5350_v51 = vadd.s32 %v5349_v26, %v5347_v27  ;;  %v5524_v27 = vadd.f32 %v5508_v54, %v13110_v52 }
0x114e   :  { %vm5366_vm12 = vcmp.eq.s32.totalorder %v9327_v40, %v5350_v51  ;;  %v8960_v51 = vld [vmem:[%s14589_s0 + $0x8] sm:$0xff] }
0x114f   :  { %v5382_v21 = vsel %vm5366_vm12, %v14836_v12, 0.0  ;;  %v5867_v4 = vpop.f32.mrf.mxu0  ;;  %v5540_v12 = vmul.f32 0.7978846, %v5524_v27  ;;  %vm14851_vm12 = vmmov %vm14839_vm1 }
0x1150   :  { %v5398_v50 = vadd.f32 %v5382_v21, %v4998_v14  ;;  %v5868_v0 = vadd.f32 %v5867_v4, %v5754_v63  ;;  %v5477_v63 = vmul.f32 %v13125_v39, %v13125_v39  ;;  %v5494_v14 = vmul.f32 %v5478_v41, %v13138_v23 }
0x1151   :  { %8797 = vtanh.f32 %v5540_v12 }
0x1152   :  { %8340 = vmatmul.msk.f32.gmra.mxu2 %vm299_vm2, %v5398_v50  ;;  %8357 = vmatmul.msk.f32.gmra.mxu3 %vm299_vm2, %v5398_v50  ;;  %v5493_v47 = vmul.f32 %v5477_v63, %v13125_v39  ;;  %v5766_v9 = vpop.f32.mrf.mxu3  ;;  %v5510_v19 = vmul.f32 0.044715, %v5494_v14 }
0x1153   :  { %8375 = vmatmul.msk.f32.vlgmr.msrb.gmra.mxu1 %vm14839_vm1, %v5868_v0  ;;  %v5602_v0 = vmul.f32 %v5586_v53, %v13095_v3 }
0x1154   :  { %v5509_v8 = vmul.f32 0.044715, %v5493_v47  ;;  %v5526_v3 = vadd.f32 %v5510_v19, %v13138_v23  ;;  %v8970_v19 = vld [vmem:[%s14589_s0 + $0x58] sm:$0xff] }
0x1156   :  { %v5525_v4 = vadd.f32 %v5509_v8, %v13125_v39  ;;  %v5542_v54 = vmul.f32 0.7978846, %v5526_v3  ;;  %v8964_v8 = vld [vmem:[%s14589_s0 + $0x28] sm:$0xff] }
0x1157   :  { %v5697_v55 = vpop.f32.mrf.mxu2  ;;  %v5870_v37 = vpop.f32.mrf.mxu0 }
0x1158   :  { %v5729_v44 = vmul.f32 %v5697_v55, %v5600_v5  ;;  %v5871_v15 = vadd.f32 %v5870_v37, %v5757_v61  ;;  %v5541_v13 = vmul.f32 0.7978846, %v5525_v4  ;;  %v8798_v5 = vpop.eup %8797  ;;  %v8965_v4 = vld [vmem:[%s14589_s0 + $0x30] sm:$0xff] }
0x1159   :  { %v5572_v37 = vadd.f32 1.0, %v8798_v5  ;;  %v8971_v5 = vld [vmem:[%s14589_s0 + $0x60] sm:$0xff] }
0x115a   :  { %8366 = vmatmul.msk.f32.gmra.mxu0 %vm1860_vm11, %v5729_v44  ;;  %8396 = vmatmul.msk.f32.vlgmr.msrb.gmra.mxu2 %vm14840_vm3, %v8959_v11  ;;  %8799 = vtanh.f32 %v5541_v13  ;;  %v5769_v11 = vpop.f32.mrf.mxu3  ;;  %vm14853_vm3 = vmmov %vm14846_vm0 }
0x115b   :  { %8376 = vmatmul.msk.f32.gmra.mxu1 %vm14841_vm13, %v5871_v15  ;;  %v8962_v15 = vld [vmem:[%s14589_s0 + $0x18] sm:$0xff]  ;;  %v5588_v63 = vmul.f32 0.5, %v5572_v37  ;;  %8801 = vtanh.f32 %v5542_v54  ;;  %vm14854_vm13 = vmmov %vm14846_vm0 }
0x115d   :  { %v5604_v7 = vmul.f32 %v5588_v63, %v13110_v52 }
0x115f   :  { %v5873_v26 = vpop.f32.mrf.mxu0 }
0x1160   :  { %v5874_v57 = vadd.f32 %v5873_v26, %v5760_v22  ;;  %v5587_v22 = vmul.f32 0.5, %v5571_v33  ;;  %v8800_v45 = vpop.eup %8799  ;;  %v8968_v33 = vld [vmem:[%s14589_s0 + $0x48] sm:$0xff] }
0x1161   :  { %v5573_v29 = vadd.f32 1.0, %v8800_v45 }
0x1162   :  { %v5700_v61 = vpop.f32.mrf.mxu2  ;;  %8397 = vmatmul.msk.f32.gmra.mxu2 %vm14842_vm6, %v8960_v51  ;;  %v5603_v44 = vmul.f32 %v5587_v22, %v13101_v60  ;;  %vm14855_vm6 = vmmov %vm14846_vm0 }
0x1163   :  { %v5730_v6 = vmul.f32 %v5700_v61, %v5601_v59  ;;  %8377 = vmatmul.msk.f32.gmra.mxu1 %vm14843_vm10, %v5874_v57  ;;  %v5589_v27 = vmul.f32 0.5, %v5573_v29  ;;  %v8802_v57 = vpop.eup %8801  ;;  %v5772_v59 = vpop.f32.mrf.mxu3  ;;  %vm14856_vm10 = vmmov %vm14846_vm0 }
0x1164   :  { %v5574_v51 = vadd.f32 1.0, %v8802_v57 }
0x1165   :  { %8367 = vmatmul.msk.f32.gmra.mxu0 %vm1860_vm11, %v5730_v6  ;;  %v5605_v52 = vmul.f32 %v5589_v27, %v13125_v39 }
0x1166   :  { %v5590_v12 = vmul.f32 0.5, %v5574_v51 }
0x1167   :  { %v5876_v21 = vpop.f32.mrf.mxu0 }
0x1168   :  { %v5877_v50 = vadd.f32 %v5876_v21, %v5763_v10  ;;  %v8963_v10 = vld [vmem:[%s14589_s0 + $0x20] sm:$0xff]  ;;  %v5606_v21 = vmul.f32 %v5590_v12, %v13138_v23 }
0x1169   :  { %v8967_v23 = vld [vmem:[%s14589_s0 + $0x40] sm:$0xff] }
0x116a   :  { %v5703_v30 = vpop.f32.mrf.mxu2  ;;  %8398 = vmatmul.msk.f32.gmra.mxu2 %vm14844_vm14, %v8961_v20  ;;  %vm14857_vm14 = vmmov %vm14846_vm0 }
0x116b   :  { %v5731_v46 = vmul.f32 %v5703_v30, %v5602_v0  ;;  %8378 = vmatmul.msk.f32.gmra.mxu1 %vm14845_vm5, %v5877_v50  ;;  %v5775_v53 = vpop.f32.mrf.mxu3  ;;  %v8966_v0 = vld [vmem:[%s14589_s0 + $0x38] sm:$0xff]  ;;  %v8969_v30 = vld [vmem:[%s14589_s0 + $0x50] sm:$0xff]  ;;  %vm14858_vm5 = vmmov %vm14846_vm0 }
0x116d   :  { %8368 = vmatmul.msk.f32.gmra.mxu0 %vm1860_vm11, %v5731_v46 }
0x116f   :  { %v5879_v1 = vpop.f32.mrf.mxu0 }
0x1170   :  { %v5880_v55 = vadd.f32 %v5879_v1, %v5766_v9  ;;  %v5461_v9 = vpop.f32.mrf.mxu1 }
0x1171   :  { %v5462_v20 = vadd.f32 %v12921_v49, %v5461_v9  ;;  %v8972_v49 = vld [vmem:[%s14589_s0 + $0x68] sm:$0xff] }
0x1172   :  { %v5706_v48 = vpop.f32.mrf.mxu2  ;;  %8399 = vmatmul.msk.f32.gmra.mxu2 %vm14846_vm0, %v8962_v15 }
0x1173   :  { %v5732_v32 = vmul.f32 %v5706_v48, %v5603_v44  ;;  %8379 = vmatmul.msk.f32.gmra.mxu1 %vm14847_vm9, %v5880_v55  ;;  %v5479_v46 = vmul.f32 %v5462_v20, %v5462_v20  ;;  %v8973_v44 = vld [vmem:[%s14589_s0 + $0x70] sm:$0xff]  ;;  %vm14859_vm9 = vmmov %vm14846_vm0  ;;  %v5778_v48 = vpop.f32.mrf.mxu3 }
0x1175   :  { %8369 = vmatmul.msk.f32.gmra.mxu0 %vm1860_vm11, %v5732_v32  ;;  %v5495_v13 = vmul.f32 %v5479_v46, %v5462_v20  ;;  %v8974_v32 = vld [vmem:[%s14589_s0 + $0x78] sm:$0xff] }
0x1177   :  { %v5882_v25 = vpop.f32.mrf.mxu0  ;;  %v5511_v22 = vmul.f32 0.044715, %v5495_v13 }
0x1178   :  { %v5883_v60 = vadd.f32 %v5882_v25, %v5769_v11 }
0x1179   :  { %v5527_v1 = vadd.f32 %v5511_v22, %v5462_v20 }
0x117a   :  { %v5709_v47 = vpop.f32.mrf.mxu2  ;;  %8400 = vmatmul.msk.f32.gmra.mxu2 %vm14848_vm8, %v8963_v10  ;;  %vm14860_vm8 = vmmov %vm14846_vm0 }
0x117b   :  { %v5733_v26 = vmul.f32 %v5709_v47, %v5604_v7  ;;  %8380 = vmatmul.msk.f32.gmra.mxu1 %vm14849_vm15, %v5883_v60  ;;  %v5543_v3 = vmul.f32 0.7978846, %v5527_v1  ;;  %v5781_v25 = vpop.f32.mrf.mxu3  ;;  %vm14861_vm15 = vmmov %vm14839_vm1  ;;  %v13230_v7 = vld [vmem:[%s14590_s2 + $0x3] ss:$0 sm:$0xff] }
0x117d   :  { %8370 = vmatmul.msk.f32.gmra.mxu0 %vm1860_vm11, %v5733_v26  ;;  %8803 = vtanh.f32 %v5543_v3 }
0x117f   :  { %v5885_v16 = vpop.f32.mrf.mxu0 }
0x1180   :  { %v5886_v61 = vadd.f32 %v5885_v16, %v5772_v59 }
0x1182   :  { %v5712_v6 = vpop.f32.mrf.mxu2  ;;  %8401 = vmatmul.msk.f32.gmra.mxu2 %vm14850_vm7, %v8964_v8  ;;  %vm14862_vm7 = vmmov %vm14839_vm1 }
0x1183   :  { %v5734_v41 = vmul.f32 %v5712_v6, %v5605_v52  ;;  %8381 = vmatmul.msk.f32.gmra.mxu1 %vm14851_vm12, %v5886_v61  ;;  %v8804_v55 = vpop.eup %8803  ;;  %vm14863_vm12 = vmmov %vm14839_vm1  ;;  %v5784_v10 = vpop.f32.mrf.mxu3 }
0x1184   :  { %v5575_v37 = vadd.f32 1.0, %v8804_v55 }
0x1185   :  { %8371 = vmatmul.msk.f32.gmra.mxu0 %vm1860_vm11, %v5734_v41 }
0x1186   :  { %v5591_v15 = vmul.f32 0.5, %v5575_v37 }
0x1187   :  { %v5888_v43 = vpop.f32.mrf.mxu0 }
0x1188   :  { %v5889_v14 = vadd.f32 %v5888_v43, %v5775_v53  ;;  %v5607_v11 = vmul.f32 %v5591_v15, %v5462_v20 }
0x118a   :  { %v5715_v39 = vpop.f32.mrf.mxu2  ;;  %8402 = vmatmul.msk.f32.gmra.mxu2 %vm14852_vm4, %v8965_v4  ;;  %vm14864_vm4 = vmmov %vm14839_vm1 }
0x118b   :  { %v5735_v50 = vmul.f32 %v5715_v39, %v5606_v21  ;;  %8382 = vmatmul.msk.f32.gmra.mxu1 %vm14839_vm1, %v5889_v14  ;;  %v5787_v52 = vpop.f32.mrf.mxu3 }
0x118d   :  { %8372 = vmatmul.msk.f32.gmra.mxu0 %vm1860_vm11, %v5735_v50 }
0x1192   :  { %8403 = vmatmul.msk.f32.gmra.mxu2 %vm14853_vm3, %v8966_v0  ;;  %vm14865_vm3 = vmmov %vm14839_vm1 }
0x1193   :  { %v5790_v53 = vpop.f32.mrf.mxu3 }
0x119a   :  { %8404 = vmatmul.msk.f32.gmra.mxu2 %vm14854_vm13, %v8967_v23  ;;  %vm14866_vm13 = vmmov %vm14839_vm1 }
0x119b   :  { %v5793_v50 = vpop.f32.mrf.mxu3 }
0x11a2   :  { %8405 = vmatmul.msk.f32.gmra.mxu2 %vm14855_vm6, %v8968_v33  ;;  %vm14867_vm6 = vmmov %vm14839_vm1 }
0x11aa   :  { %8406 = vmatmul.msk.f32.gmra.mxu2 %vm14856_vm10, %v8969_v30  ;;  %vm14868_vm10 = vmmov %vm14839_vm1  ;;  %v5796_v30 = vpop.f32.mrf.mxu3 }
0x11b2   :  { %8407 = vmatmul.msk.f32.gmra.mxu2 %vm14857_vm14, %v8970_v19  ;;  %vm14869_vm14 = vmmov %vm14839_vm1 }
0x11ba   :  { %8408 = vmatmul.msk.f32.gmra.mxu2 %vm14858_vm5, %v8971_v5  ;;  %vm14870_vm5 = vmmov %vm14839_vm1 }
0x11c2   :  { %8409 = vmatmul.msk.f32.gmra.mxu2 %vm14846_vm0, %v8972_v49  ;;  %vm14871_vm0 = vmmov %vm14839_vm1 }
0x11ca   :  { %8410 = vmatmul.msk.f32.gmra.mxu2 %vm14859_vm9, %v8973_v44  ;;  %vm14872_vm9 = vmmov %vm14871_vm0 }
0x11d2   :  { %8411 = vmatmul.msk.f32.gmra.mxu2 %vm14860_vm8, %v8974_v32  ;;  %vm14873_vm8 = vmmov %vm14871_vm0 }
0x11d5   :  { %v5718_v54 = vpop.f32.mrf.mxu2 }
0x11d6   :  { %v5736_v63 = vmul.f32 %v5718_v54, %v5607_v11 }
0x11d7   :  { %v5891_v45 = vpop.f32.mrf.mxu0 }
0x11d8   :  { %v5892_v60 = vadd.f32 %v5891_v45, %v5778_v48  ;;  %8373 = vmatmul.msk.f32.gmra.mxu0 %vm1860_vm11, %v5736_v63  ;;  %v5799_v48 = vpop.f32.mrf.mxu3 }
0x11da   :  { %8383 = vmatmul.msk.f32.gmra.mxu1 %vm14861_vm15, %v5892_v60  ;;  %vm14874_vm15 = vmmov %vm14871_vm0 }
0x11dd   :  { %v6073_v29 = vpop.f32.mrf.mxu2 }
0x11de   :  { %v6074_v47 = vadd.f32 %v13230_v7, %v6073_v29 }
0x11e0   :  { %8412 = vmatmul.msk.f32.vlgmr.msrb.gmra.mxu3 %vm14862_vm7, %v6074_v47  ;;  %8428 = vmatmul.msk.f32.vlgmr.msrb.gmra.mxu0 %vm14863_vm12, %v6074_v47  ;;  %vm14875_vm7 = vmmov %vm14871_vm0 }
0x11e1   :  { %vm14876_vm12 = vmmov %vm14871_vm0 }
0x11e2   :  { %v5894_v26 = vpop.f32.mrf.mxu0 }
0x11e3   :  { %v5895_v27 = vadd.f32 %v5894_v26, %v5781_v25 }
0x11e5   :  { %8384 = vmatmul.msk.f32.gmra.mxu1 %vm14864_vm4, %v5895_v27  ;;  %v6076_v57 = vpop.f32.mrf.mxu2  ;;  %vm14877_vm4 = vmmov %vm14871_vm0 }
0x11e6   :  { %v6077_v59 = vadd.f32 %v13230_v7, %v6076_v57 }
0x11e8   :  { %8413 = vmatmul.msk.f32.gmra.mxu3 %vm14839_vm1, %v6077_v59  ;;  %8429 = vmatmul.msk.f32.gmra.mxu0 %vm14865_vm3, %v6077_v59  ;;  %vm14878_vm1 = vmmov %vm14871_vm0 }
0x11e9   :  { %vm14879_vm3 = vmmov %vm14871_vm0 }
0x11ea   :  { %v5897_v16 = vpop.f32.mrf.mxu0 }
0x11eb   :  { %v5898_v61 = vadd.f32 %v5897_v16, %v5784_v10 }
0x11ed   :  { %8385 = vmatmul.msk.f32.gmra.mxu1 %vm14866_vm13, %v5898_v61  ;;  %v6079_v51 = vpop.f32.mrf.mxu2  ;;  %vm14880_vm13 = vmmov %vm14871_vm0 }
0x11ee   :  { %v6080_v6 = vadd.f32 %v13230_v7, %v6079_v51 }
0x11f0   :  { %8414 = vmatmul.msk.f32.gmra.mxu3 %vm14867_vm6, %v6080_v6  ;;  %8430 = vmatmul.msk.f32.gmra.mxu0 %vm14868_vm10, %v6080_v6  ;;  %vm14881_vm6 = vmmov %vm14871_vm0 }
0x11f1   :  { %vm14882_vm10 = vmmov %vm14871_vm0 }
0x11f2   :  { %v5900_v8 = vpop.f32.mrf.mxu0 }
0x11f3   :  { %v5901_v41 = vadd.f32 %v5900_v8, %v5787_v52 }
0x11f5   :  { %8386 = vmatmul.msk.f32.gmra.mxu1 %vm14869_vm14, %v5901_v41  ;;  %v6082_v12 = vpop.f32.mrf.mxu2  ;;  %vm14883_vm14 = vmmov %vm14871_vm0 }
0x11f6   :  { %v6083_v43 = vadd.f32 %v13230_v7, %v6082_v12 }
0x11f8   :  { %8415 = vmatmul.msk.f32.gmra.mxu3 %vm14870_vm5, %v6083_v43  ;;  %8431 = vmatmul.msk.f32.gmra.mxu0 %vm14871_vm0, %v6083_v43  ;;  %vm14884_vm5 = vmmov %vm14871_vm0 }
0x11fa   :  { %v5903_v14 = vpop.f32.mrf.mxu0 }
0x11fb   :  { %v5904_v21 = vadd.f32 %v5903_v14, %v5790_v53 }
0x11fd   :  { %8387 = vmatmul.msk.f32.gmra.mxu1 %vm14872_vm9, %v5904_v21  ;;  %v6085_v39 = vpop.f32.mrf.mxu2  ;;  %vm14885_vm9 = vmmov %vm14871_vm0 }
0x11fe   :  { %v6086_v4 = vadd.f32 %v13230_v7, %v6085_v39 }
0x1200   :  { %8416 = vmatmul.msk.f32.gmra.mxu3 %vm14873_vm8, %v6086_v4  ;;  %8432 = vmatmul.msk.f32.gmra.mxu0 %vm14874_vm15, %v6086_v4  ;;  %vm14886_vm8 = vmmov %vm14871_vm0 }
0x1201   :  { %vm14887_vm15 = vmmov %vm14871_vm0 }
0x1202   :  { %v5906_v0 = vpop.f32.mrf.mxu0 }
0x1203   :  { %v5907_v23 = vadd.f32 %v5906_v0, %v5793_v50 }
0x1205   :  { %8388 = vmatmul.msk.f32.gmra.mxu1 %vm14875_vm7, %v5907_v23  ;;  %v6088_v33 = vpop.f32.mrf.mxu2  ;;  %vm14888_vm7 = vmmov %vm14871_vm0 }
0x1206   :  { %v6089_v9 = vadd.f32 %v13230_v7, %v6088_v33 }
0x1208   :  { %8417 = vmatmul.msk.f32.gmra.mxu3 %vm14876_vm12, %v6089_v9  ;;  %8433 = vmatmul.msk.f32.gmra.mxu0 %vm14877_vm4, %v6089_v9  ;;  %vm14889_vm12 = vmmov %vm14871_vm0 }
0x1209   :  { %vm14890_vm4 = vmmov %vm14871_vm0 }
0x120a   :  { %v5909_v20 = vpop.f32.mrf.mxu0 }
0x120b   :  { %v5910_v46 = vadd.f32 %v5909_v20, %v5796_v30 }
0x120d   :  { %8389 = vmatmul.msk.f32.gmra.mxu1 %vm14878_vm1, %v5910_v46  ;;  %v6091_v19 = vpop.f32.mrf.mxu2  ;;  %vm14891_vm1 = vmmov %vm14871_vm0 }
0x120e   :  { %v6092_v13 = vadd.f32 %v13230_v7, %v6091_v19 }
0x1210   :  { %8418 = vmatmul.msk.f32.gmra.mxu3 %vm14879_vm3, %v6092_v13  ;;  %8434 = vmatmul.msk.f32.gmra.mxu0 %vm14880_vm13, %v6092_v13  ;;  %vm14892_vm3 = vmmov %vm14871_vm0 }
0x1211   :  { %vm14893_vm13 = vmmov %vm14871_vm0 }
0x1215   :  { %v6094_v22 = vpop.f32.mrf.mxu2 }
0x1216   :  { %v6095_v5 = vadd.f32 %v13230_v7, %v6094_v22 }
0x1218   :  { %8419 = vmatmul.msk.f32.gmra.mxu3 %vm14881_vm6, %v6095_v5  ;;  %8435 = vmatmul.msk.f32.gmra.mxu0 %vm14882_vm10, %v6095_v5  ;;  %vm14894_vm6 = vmmov %vm14871_vm0 }
0x1219   :  { %vm14895_vm10 = vmmov %vm14871_vm0 }
0x121d   :  { %v6097_v1 = vpop.f32.mrf.mxu2 }
0x121e   :  { %v6098_v3 = vadd.f32 %v13230_v7, %v6097_v1 }
0x1220   :  { %8436 = vmatmul.msk.f32.gmra.mxu0 %vm14883_vm14, %v6098_v3  ;;  %8420 = vmatmul.msk.f32.gmra.mxu3 %vm14884_vm5, %v6098_v3  ;;  %vm14896_vm14 = vmmov %vm14871_vm0 }
0x1221   :  { %vm14897_vm5 = vmmov %vm14871_vm0 }
0x1225   :  { %v6100_v49 = vpop.f32.mrf.mxu2 }
0x1226   :  { %v6101_v55 = vadd.f32 %v13230_v7, %v6100_v49 }
0x1228   :  { %8421 = vmatmul.msk.f32.gmra.mxu3 %vm14871_vm0, %v6101_v55  ;;  %8437 = vmatmul.msk.f32.gmra.mxu0 %vm14885_vm9, %v6101_v55 }
0x122d   :  { %v6103_v44 = vpop.f32.mrf.mxu2 }
0x122e   :  { %v6104_v37 = vadd.f32 %v13230_v7, %v6103_v44 }
0x1230   :  { %8422 = vmatmul.msk.f32.gmra.mxu3 %vm14886_vm8, %v6104_v37  ;;  %8438 = vmatmul.msk.f32.gmra.mxu0 %vm14887_vm15, %v6104_v37 }
0x1235   :  { %v6106_v11 = vpop.f32.mrf.mxu2 }
0x1236   :  { %v6107_v54 = vadd.f32 %v13230_v7, %v6106_v11 }
0x1238   :  { %8423 = vmatmul.msk.f32.gmra.mxu3 %vm14889_vm12, %v6107_v54  ;;  %8439 = vmatmul.msk.f32.gmra.mxu0 %vm14890_vm4, %v6107_v54 }
0x123d   :  { %v6109_v45 = vpop.f32.mrf.mxu2 }
0x123e   :  { %v6110_v60 = vadd.f32 %v13230_v7, %v6109_v45 }
0x1240   :  { %8424 = vmatmul.msk.f32.gmra.mxu3 %vm14891_vm1, %v6110_v60  ;;  %8440 = vmatmul.msk.f32.gmra.mxu0 %vm14892_vm3, %v6110_v60 }
0x1245   :  { %v6112_v47 = vpop.f32.mrf.mxu2 }
0x1246   :  { %v6113_v26 = vadd.f32 %v13230_v7, %v6112_v47 }
0x1248   :  { %8425 = vmatmul.msk.f32.gmra.mxu3 %vm14893_vm13, %v6113_v26  ;;  %8441 = vmatmul.msk.f32.gmra.mxu0 %vm14894_vm6, %v6113_v26 }
0x124d   :  { %v6115_v59 = vpop.f32.mrf.mxu2 }
0x124e   :  { %v6116_v16 = vadd.f32 %v13230_v7, %v6115_v59 }
0x1250   :  { %8426 = vmatmul.msk.f32.gmra.mxu3 %vm14895_vm10, %v6116_v16  ;;  %8442 = vmatmul.msk.f32.gmra.mxu0 %vm14896_vm14, %v6116_v16 }
0x1255   :  { %v5912_v15 = vpop.f32.mrf.mxu0  ;;  %v6118_v51 = vpop.f32.mrf.mxu2 }
0x1256   :  { %v5913_v32 = vadd.f32 %v5912_v15, %v5799_v48  ;;  %v6119_v6 = vadd.f32 %v13230_v7, %v6118_v51 }
0x1258   :  { %8390 = vmatmul.msk.f32.gmra.mxu1 %vm14888_vm7, %v5913_v32  ;;  %8427 = vmatmul.msk.f32.gmra.mxu3 %vm14897_vm5, %v6119_v6 }
0x1259   :  { %8443 = vmatmul.msk.f32.gmra.mxu0 %vm14871_vm0, %v6119_v6 }
0x1263   :  { %v6186_v63 = vpop.f32.mrf.mxu3 }
0x1264   :  { %v6234_v25 = vsel %vm299_vm2, %v6186_v63, -inf }
0x1265   :  { %6235 = vmax.xlane.f32.xlu0 %v6234_v25 }
0x126b   :  { %v6189_v29 = vpop.f32.mrf.mxu3 }
0x126c   :  { %v6237_v10 = vsel %vm299_vm2, %v6189_v29, -inf }
0x126d   :  { %6238 = vmax.xlane.f32.xlu1 %v6237_v10 }
0x1273   :  { %v6192_v27 = vpop.f32.mrf.mxu3 }
0x1274   :  { %v6240_v57 = vsel %vm299_vm2, %v6192_v27, -inf }
0x1275   :  { %6241 = vmax.xlane.f32.xlu2 %v6240_v57 }
0x127b   :  { %v6195_v61 = vpop.f32.mrf.mxu3 }
0x127c   :  { %v6243_v52 = vsel %vm299_vm2, %v6195_v61, -inf }
0x127d   :  { %6244 = vmax.xlane.f32.xlu0 %v6243_v52 }
0x1283   :  { %v6198_v8 = vpop.f32.mrf.mxu3 }
0x1284   :  { %v6246_v41 = vsel %vm299_vm2, %v6198_v8, -inf }
0x1285   :  { %6247 = vmax.xlane.f32.xlu1 %v6246_v41 }
0x128b   :  { %v6201_v12 = vpop.f32.mrf.mxu3 }
0x128c   :  { %v6249_v53 = vsel %vm299_vm2, %v6201_v12, -inf }
0x128d   :  { %6250 = vmax.xlane.f32.xlu2 %v6249_v53 }
0x1293   :  { %v6204_v43 = vpop.f32.mrf.mxu3 }
0x1294   :  { %v6252_v14 = vsel %vm299_vm2, %v6204_v43, -inf }
0x1295   :  { %6253 = vmax.xlane.f32.xlu0 %v6252_v14 }
0x129b   :  { %v13294_v21 = vpop.f32.mrf.mxu3 }
0x129c   :  { %v6255_v7 = vsel %vm299_vm2, %v13294_v21, -inf }
0x129d   :  { %6256 = vmax.xlane.f32.xlu2 %v6255_v7 }
0x12a3   :  { %v13298_v50 = vpop.f32.mrf.mxu3 }
0x12a4   :  { %v6258_v22 = vsel %vm299_vm2, %v13298_v50, -inf }
0x12ab   :  { %v13302_v20 = vpop.f32.mrf.mxu3 }
0x12ac   :  { %v6261_v37 = vsel %vm299_vm2, %v13302_v20, -inf }
0x12b3   :  { %v13312_v49 = vpop.f32.mrf.mxu3 }
0x12b4   :  { %v6264_v45 = vsel %vm299_vm2, %v13312_v49, -inf }
0x12bb   :  { %v13320_v11 = vpop.f32.mrf.mxu3 }
0x12c3   :  { %v13328_v26 = vpop.f32.mrf.mxu3 }
0x12c4   :  { %v6270_v51 = vsel %vm299_vm2, %v13328_v26, -inf }
0x12cb   :  { %v13340_v41 = vpop.f32.mrf.mxu3 }
0x12d8   :  { %v6236_v39 = vpop.xlane.xlu0 %6235 }
0x12d9   :  { %v6282_v4 = vsub.f32 %v6186_v63, %v6236_v39 }
0x12db   :  { %v6298_v0 = vmul.f32 1.442695, %v6282_v4 }
0x12dd   :  { %8805 = vpow2.f32 %v6298_v0  ;;  %v13351_v0 = vpop.f32.mrf.mxu3 }
0x12e0   :  { %v6239_v23 = vpop.xlane.xlu1 %6238 }
0x12e1   :  { %v6283_v33 = vsub.f32 %v6189_v29, %v6239_v23  ;;  %v6276_v23 = vsel %vm299_vm2, %v13351_v0, -inf }
0x12e3   :  { %v13300_v9 = vpop.eup %8805  ;;  %v6300_v30 = vmul.f32 1.442695, %v6283_v33 }
0x12e4   :  { %v6330_v46 = vsel %vm299_vm2, %v13300_v9, 0.0 }
0x12e5   :  { %8807 = vpow2.f32 %v6300_v30  ;;  %6331 = vadd.xlane.f32.xlu1 %v6330_v46  ;;  %v13359_v30 = vpop.f32.mrf.mxu3 }
0x12e6   :  { %v6279_v46 = vsel %vm299_vm2, %v13359_v30, -inf }
0x12e8   :  { %v6242_v19 = vpop.xlane.xlu2 %6241 }
0x12e9   :  { %v6284_v13 = vsub.f32 %v6192_v27, %v6242_v19  ;;  %v6267_v27 = vsel %vm299_vm2, %v13320_v11, -inf }
0x12eb   :  { %v13308_v5 = vpop.eup %8807  ;;  %v6302_v1 = vmul.f32 1.442695, %v6284_v13 }
0x12ec   :  { %v6333_v3 = vsel %vm299_vm2, %v13308_v5, 0.0 }
0x12ed   :  { %8809 = vpow2.f32 %v6302_v1  ;;  %6334 = vadd.xlane.f32.xlu0 %v6333_v3  ;;  %6259 = vmax.xlane.f32.xlu1 %v6258_v22 }
0x12f0   :  { %v6245_v55 = vpop.xlane.xlu0 %6244 }
0x12f1   :  { %v6285_v44 = vsub.f32 %v6195_v61, %v6245_v55 }
0x12f3   :  { %v13316_v48 = vpop.eup %8809  ;;  %v6304_v15 = vmul.f32 1.442695, %v6285_v44 }
0x12f4   :  { %v6336_v32 = vsel %vm299_vm2, %v13316_v48, 0.0 }
0x12f5   :  { %8811 = vpow2.f32 %v6304_v15  ;;  %6337 = vadd.xlane.f32.xlu2 %v6336_v32  ;;  %6262 = vmax.xlane.f32.xlu0 %v6261_v37 }
0x12f8   :  { %v6248_v54 = vpop.xlane.xlu1 %6247 }
0x12f9   :  { %v6286_v63 = vsub.f32 %v6198_v8, %v6248_v54 }
0x12fb   :  { %v13324_v25 = vpop.eup %8811  ;;  %v6306_v60 = vmul.f32 1.442695, %v6286_v63 }
0x12fc   :  { %v6339_v29 = vsel %vm299_vm2, %v13324_v25, 0.0 }
0x12fd   :  { %8813 = vpow2.f32 %v6306_v60  ;;  %6340 = vadd.xlane.f32.xlu1 %v6339_v29  ;;  %6265 = vmax.xlane.f32.xlu2 %v6264_v45 }
0x1300   :  { %v6251_v47 = vpop.xlane.xlu2 %6250 }
0x1301   :  { %v6287_v10 = vsub.f32 %v6201_v12, %v6251_v47 }
0x1303   :  { %v13332_v57 = vpop.eup %8813  ;;  %v6308_v59 = vmul.f32 1.442695, %v6287_v10 }
0x1304   :  { %v6342_v16 = vsel %vm299_vm2, %v13332_v57, 0.0 }
0x1305   :  { %8815 = vpow2.f32 %v6308_v59  ;;  %6343 = vadd.xlane.f32.xlu0 %v6342_v16  ;;  %6268 = vmax.xlane.f32.xlu1 %v6267_v27 }
0x1308   :  { %v6254_v61 = vpop.xlane.xlu0 %6253 }
0x1309   :  { %v6288_v52 = vsub.f32 %v6204_v43, %v6254_v61  ;;  %v6273_v43 = vsel %vm299_vm2, %v13340_v41, -inf }
0x130b   :  { %v13338_v6 = vpop.eup %8815  ;;  %v6310_v8 = vmul.f32 1.442695, %v6288_v52 }
0x130c   :  { %v6345_v12 = vsel %vm299_vm2, %v13338_v6, 0.0 }
0x130d   :  { %8817 = vpow2.f32 %v6310_v8  ;;  %6346 = vadd.xlane.f32.xlu2 %v6345_v12  ;;  %6271 = vmax.xlane.f32.xlu0 %v6270_v51 }
0x1310   :  { %v6257_v53 = vpop.xlane.xlu2 %6256 }
0x1311   :  { %v6289_v14 = vsub.f32 %v13294_v21, %v6257_v53 }
0x1313   :  { %v13347_v7 = vpop.eup %8817  ;;  %v6312_v39 = vmul.f32 1.442695, %v6289_v14 }
0x1314   :  { %v6348_v4 = vsel %vm299_vm2, %v13347_v7, 0.0 }
0x1315   :  { %8819 = vpow2.f32 %v6312_v39  ;;  %6349 = vadd.xlane.f32.xlu1 %v6348_v4  ;;  %6274 = vmax.xlane.f32.xlu2 %v6273_v43 }
0x131b   :  { %v13355_v33 = vpop.eup %8819 }
0x131c   :  { %v6351_v21 = vsel %vm299_vm2, %v13355_v33, 0.0 }
0x131d   :  { %6352 = vadd.xlane.f32.xlu0 %v6351_v21  ;;  %6277 = vmax.xlane.f32.xlu1 %v6276_v23 }
0x1325   :  { %6280 = vmax.xlane.f32.xlu1 %v6279_v46 }
0x1358   :  { %v6332_v19 = vpop.xlane.xlu1 %6331 }
0x1359   :  { %8821 = vrcp.f32 %v6332_v19  ;;  %v6389_v37 = vand.u32 2147483648, %v6332_v19  ;;  %v6387_v32 = vand.u32 2147483647, %v6332_v19  ;;  %vm6383_vm8 = vweird.f32 %v6332_v19 }
0x135b   :  { %v6390_v60 = vor.u32 1.1754944e-38, %v6389_v37  ;;  %vm6388_vm7 = vcmp.eq.f32.partialorder %v6387_v32, 8.507059e+37 }
0x135f   :  { %v8822_v13 = vpop.eup %8821 }
0x1360   :  { %v6379_v22 = vmul.f32 %v8822_v13, %v6332_v19  ;;  %v6335_v1 = vpop.xlane.xlu0 %6334  ;;  %v6260_v3 = vpop.xlane.xlu1 %6259  ;;  %vm6384_vm9 = vweird.f32 %v8822_v13 }
0x1361   :  { %8823 = vrcp.f32 %v6335_v1  ;;  %v6290_v44 = vsub.f32 %v13298_v50, %v6260_v3  ;;  %vm6385_vm15 = vmor %vm6383_vm8, %vm6384_vm9  ;;  %v6402_v52 = vand.u32 2147483647, %v6335_v1  ;;  %v6404_v51 = vand.u32 2147483648, %v6335_v1 }
0x1362   :  { %v6380_v55 = vsub.f32 1.0, %v6379_v22  ;;  %vm6398_vm4 = vweird.f32 %v6335_v1 }
0x1363   :  { %v6314_v54 = vmul.f32 1.442695, %v6290_v44  ;;  %vm6403_vm3 = vcmp.eq.f32.partialorder %v6402_v52, 8.507059e+37 }
0x1364   :  { %v6381_v15 = vmul.f32 %v8822_v13, %v6380_v55 }
0x1365   :  { %8825 = vpow2.f32 %v6314_v54 }
0x1366   :  { %v6382_v63 = vadd.f32 %v8822_v13, %v6381_v15 }
0x1367   :  { %v8824_v45 = vpop.eup %8823 }
0x1368   :  { %v6386_v29 = vsel %vm6385_vm15, %v8822_v13, %v6382_v63  ;;  %v6394_v47 = vmul.f32 %v8824_v45, %v6335_v1  ;;  %v6338_v10 = vpop.xlane.xlu2 %6337  ;;  %v6263_v27 = vpop.xlane.xlu0 %6262  ;;  %vm6399_vm12 = vweird.f32 %v8824_v45 }
0x1369   :  { %v6391_v59 = vsel %vm6388_vm7, %v6390_v60, %v6386_v29  ;;  %8827 = vrcp.f32 %v6338_v10  ;;  %v6291_v61 = vsub.f32 %v13302_v20, %v6263_v27  ;;  %vm6400_vm1 = vmor %vm6398_vm4, %vm6399_vm12  ;;  %v6405_v20 = vor.u32 1.1754944e-38, %v6404_v51 }
0x136a   :  { %v13365_v50 = vmul.f32 %v13300_v9, %v6391_v59  ;;  %v6395_v16 = vsub.f32 1.0, %v6394_v47  ;;  %v6417_v55 = vand.u32 2147483647, %v6338_v10  ;;  %v6419_v1 = vand.u32 2147483648, %v6338_v10 }
0x136b   :  { %v13368_v8 = vpop.eup %8825  ;;  %v6316_v53 = vmul.f32 1.442695, %v6291_v61  ;;  %vm6413_vm6 = vweird.f32 %v6338_v10 }
0x136c   :  { %v6396_v12 = vmul.f32 %v8824_v45, %v6395_v16  ;;  %v6618_v14 = vsel %vm299_vm2, %v13365_v50, -inf  ;;  %v6354_v43 = vsel %vm299_vm2, %v13368_v8, 0.0  ;;  %vm6418_vm14 = vcmp.eq.f32.partialorder %v6417_v55, 8.507059e+37 }
0x136d   :  { %6619 = vmax.xlane.f32.xlu2 %v6618_v14  ;;  %8829 = vpow2.f32 %v6316_v53  ;;  %6355 = vadd.xlane.f32.xlu0 %v6354_v43 }
0x136e   :  { %v6397_v39 = vadd.f32 %v8824_v45, %v6396_v12 }
0x136f   :  { %v8828_v9 = vpop.eup %8827 }
0x1370   :  { %v6401_v4 = vsel %vm6400_vm1, %v8824_v45, %v6397_v39  ;;  %v6409_v23 = vmul.f32 %v8828_v9, %v6338_v10  ;;  %v6341_v21 = vpop.xlane.xlu1 %6340  ;;  %v6266_v46 = vpop.xlane.xlu2 %6265  ;;  %vm6414_vm13 = vweird.f32 %v8828_v9 }
0x1371   :  { %v6406_v19 = vsel %vm6403_vm3, %v6405_v20, %v6401_v4  ;;  %8831 = vrcp.f32 %v6341_v21  ;;  %v6292_v3 = vsub.f32 %v13312_v49, %v6266_v46  ;;  %vm6415_vm10 = vmor %vm6413_vm6, %vm6414_vm13  ;;  %v6420_v49 = vor.u32 1.1754944e-38, %v6419_v1 }
0x1372   :  { %v13375_v13 = vmul.f32 %v13308_v5, %v6406_v19  ;;  %v6410_v22 = vsub.f32 1.0, %v6409_v23  ;;  %v6432_v52 = vand.u32 2147483647, %v6341_v21  ;;  %v6434_v10 = vand.u32 2147483648, %v6341_v21 }
0x1373   :  { %v13378_v44 = vpop.eup %8829  ;;  %v6318_v15 = vmul.f32 1.442695, %v6292_v3  ;;  %vm6428_vm0 = vweird.f32 %v6341_v21 }
0x1374   :  { %v6411_v37 = vmul.f32 %v8828_v9, %v6410_v22  ;;  %v6621_v32 = vsel %vm299_vm2, %v13375_v13, -inf  ;;  %v6357_v54 = vsel %vm299_vm2, %v13378_v44, 0.0  ;;  %vm6433_vm8 = vcmp.eq.f32.partialorder %v6432_v52, 8.507059e+37 }
0x1375   :  { %6622 = vmax.xlane.f32.xlu2 %v6621_v32  ;;  %8833 = vpow2.f32 %v6318_v15  ;;  %6358 = vadd.xlane.f32.xlu0 %v6357_v54 }
0x1376   :  { %v6412_v63 = vadd.f32 %v8828_v9, %v6411_v37 }
0x1377   :  { %v8832_v5 = vpop.eup %8831 }
0x1378   :  { %v6416_v45 = vsel %vm6415_vm10, %v8828_v9, %v6412_v63  ;;  %v6424_v60 = vmul.f32 %v8832_v5, %v6341_v21  ;;  %v6344_v29 = vpop.xlane.xlu0 %6343  ;;  %v6269_v47 = vpop.xlane.xlu1 %6268  ;;  %vm6429_vm5 = vweird.f32 %v8832_v5 }
0x1379   :  { %v6421_v27 = vsel %vm6418_vm14, %v6420_v49, %v6416_v45  ;;  %8835 = vrcp.f32 %v6344_v29  ;;  %v6293_v61 = vsub.f32 %v13320_v11, %v6269_v47  ;;  %vm6430_vm9 = vmor %vm6428_vm0, %vm6429_vm5  ;;  %v6435_v11 = vor.u32 1.1754944e-38, %v6434_v10 }
0x137a   :  { %v13385_v59 = vmul.f32 %v13316_v48, %v6421_v27  ;;  %v6425_v16 = vsub.f32 1.0, %v6424_v60  ;;  %v6447_v55 = vand.u32 2147483647, %v6344_v29  ;;  %v6449_v21 = vand.u32 2147483648, %v6344_v29 }
0x137b   :  { %v13388_v51 = vpop.eup %8833  ;;  %v6320_v53 = vmul.f32 1.442695, %v6293_v61  ;;  %vm6443_vm7 = vweird.f32 %v6344_v29 }
0x137c   :  { %v6426_v12 = vmul.f32 %v8832_v5, %v6425_v16  ;;  %v6624_v14 = vsel %vm299_vm2, %v13385_v59, -inf  ;;  %v6360_v43 = vsel %vm299_vm2, %v13388_v51, 0.0  ;;  %vm6448_vm4 = vcmp.eq.f32.partialorder %v6447_v55, 8.507059e+37 }
0x137d   :  { %6625 = vmax.xlane.f32.xlu1 %v6624_v14  ;;  %8837 = vpow2.f32 %v6320_v53  ;;  %6361 = vadd.xlane.f32.xlu2 %v6360_v43 }
0x137e   :  { %v6427_v39 = vadd.f32 %v8832_v5, %v6426_v12 }
0x137f   :  { %v8836_v48 = vpop.eup %8835 }
0x1380   :  { %v6431_v9 = vsel %vm6430_vm9, %v8832_v5, %v6427_v39  ;;  %v6439_v20 = vmul.f32 %v8836_v48, %v6344_v29  ;;  %v6347_v4 = vpop.xlane.xlu2 %6346  ;;  %v6272_v23 = vpop.xlane.xlu0 %6271  ;;  %vm6444_vm15 = vweird.f32 %v8836_v48 }
0x1381   :  { %v6436_v46 = vsel %vm6433_vm8, %v6435_v11, %v6431_v9  ;;  %8839 = vrcp.f32 %v6347_v4  ;;  %v6294_v3 = vsub.f32 %v13328_v26, %v6272_v23  ;;  %vm6445_vm12 = vmor %vm6443_vm7, %vm6444_vm15  ;;  %v6450_v26 = vor.u32 1.1754944e-38, %v6449_v21 }
0x1382   :  { %v13395_v19 = vmul.f32 %v13324_v25, %v6436_v46  ;;  %v6440_v22 = vsub.f32 1.0, %v6439_v20  ;;  %v6462_v52 = vand.u32 2147483647, %v6347_v4  ;;  %v6464_v29 = vand.u32 2147483648, %v6347_v4 }
0x1383   :  { %v13398_v1 = vpop.eup %8837  ;;  %v6322_v15 = vmul.f32 1.442695, %v6294_v3  ;;  %vm6458_vm3 = vweird.f32 %v6347_v4 }
0x1384   :  { %v6441_v37 = vmul.f32 %v8836_v48, %v6440_v22  ;;  %v6627_v32 = vsel %vm299_vm2, %v13395_v19, -inf  ;;  %v6363_v54 = vsel %vm299_vm2, %v13398_v1, 0.0  ;;  %vm6463_vm6 = vcmp.eq.f32.partialorder %v6462_v52, 8.507059e+37 }
0x1385   :  { %6628 = vmax.xlane.f32.xlu0 %v6627_v32  ;;  %8841 = vpow2.f32 %v6322_v15  ;;  %6364 = vadd.xlane.f32.xlu1 %v6363_v54 }
0x1386   :  { %v6442_v63 = vadd.f32 %v8836_v48, %v6441_v37 }
0x1387   :  { %v8840_v25 = vpop.eup %8839 }
0x1388   :  { %v6446_v5 = vsel %vm6445_vm12, %v8836_v48, %v6442_v63  ;;  %v6454_v49 = vmul.f32 %v8840_v25, %v6347_v4  ;;  %v6350_v45 = vpop.xlane.xlu1 %6349  ;;  %v6275_v60 = vpop.xlane.xlu2 %6274  ;;  %vm6459_vm1 = vweird.f32 %v8840_v25 }
0x1389   :  { %v6451_v47 = vsel %vm6448_vm4, %v6450_v26, %v6446_v5  ;;  %8843 = vrcp.f32 %v6350_v45  ;;  %v6295_v61 = vsub.f32 %v13340_v41, %v6275_v60  ;;  %vm6460_vm13 = vmor %vm6458_vm3, %vm6459_vm1  ;;  %v6465_v41 = vor.u32 1.1754944e-38, %v6464_v29 }
0x138a   :  { %v13405_v27 = vmul.f32 %v13332_v57, %v6451_v47  ;;  %v6455_v16 = vsub.f32 1.0, %v6454_v49  ;;  %v6477_v55 = vand.u32 2147483647, %v6350_v45  ;;  %v6479_v4 = vand.u32 2147483648, %v6350_v45 }
0x138b   :  { %v13408_v10 = vpop.eup %8841  ;;  %v6324_v53 = vmul.f32 1.442695, %v6295_v61  ;;  %vm6473_vm14 = vweird.f32 %v6350_v45 }
0x138c   :  { %v6456_v12 = vmul.f32 %v8840_v25, %v6455_v16  ;;  %v6630_v14 = vsel %vm299_vm2, %v13405_v27, -inf  ;;  %v6366_v43 = vsel %vm299_vm2, %v13408_v10, 0.0  ;;  %vm6478_vm0 = vcmp.eq.f32.partialorder %v6477_v55, 8.507059e+37 }
0x138d   :  { %6631 = vmax.xlane.f32.xlu2 %v6630_v14  ;;  %8845 = vpow2.f32 %v6324_v53  ;;  %6367 = vadd.xlane.f32.xlu0 %v6366_v43 }
0x138e   :  { %v6457_v39 = vadd.f32 %v8840_v25, %v6456_v12 }
0x138f   :  { %v8844_v57 = vpop.eup %8843 }
0x1390   :  { %v6461_v48 = vsel %vm6460_vm13, %v8840_v25, %v6457_v39  ;;  %v6469_v11 = vmul.f32 %v8844_v57, %v6350_v45  ;;  %v6353_v9 = vpop.xlane.xlu0 %6352  ;;  %v6278_v20 = vpop.xlane.xlu1 %6277  ;;  %vm6474_vm10 = vweird.f32 %v8844_v57 }
0x1391   :  { %v6466_v23 = vsel %vm6463_vm6, %v6465_v41, %v6461_v48  ;;  %8847 = vrcp.f32 %v6353_v9  ;;  %v6296_v3 = vsub.f32 %v13351_v0, %v6278_v20  ;;  %vm6475_vm5 = vmor %vm6473_vm14, %vm6474_vm10  ;;  %v6480_v0 = vor.u32 1.1754944e-38, %v6479_v4 }
0x1392   :  { %v13415_v46 = vmul.f32 %v13338_v6, %v6466_v23  ;;  %v6470_v22 = vsub.f32 1.0, %v6469_v11  ;;  %v6494_v61 = vand.u32 2147483648, %v6353_v9  ;;  %v6492_v12 = vand.u32 2147483647, %v6353_v9 }
0x1393   :  { %v13418_v21 = vpop.eup %8845  ;;  %v6326_v15 = vmul.f32 1.442695, %v6296_v3  ;;  %vm6488_vm8 = vweird.f32 %v6353_v9 }
0x1394   :  { %v6471_v37 = vmul.f32 %v8844_v57, %v6470_v22  ;;  %v6633_v32 = vsel %vm299_vm2, %v13415_v46, -inf  ;;  %v6369_v54 = vsel %vm299_vm2, %v13418_v21, 0.0  ;;  %vm6493_vm7 = vcmp.eq.f32.partialorder %v6492_v12, 8.507059e+37 }
0x1395   :  { %6634 = vmax.xlane.f32.xlu1 %v6633_v32  ;;  %8849 = vpow2.f32 %v6326_v15  ;;  %6370 = vadd.xlane.f32.xlu2 %v6369_v54 }
0x1396   :  { %v6472_v63 = vadd.f32 %v8844_v57, %v6471_v37 }
0x1397   :  { %v8848_v6 = vpop.eup %8847 }
0x1398   :  { %v6476_v25 = vsel %vm6475_vm5, %v8844_v57, %v6472_v63  ;;  %v6484_v26 = vmul.f32 %v8848_v6, %v6353_v9  ;;  %v6281_v5 = vpop.xlane.xlu1 %6280  ;;  %vm6489_vm9 = vweird.f32 %v8848_v6 }
0x1399   :  { %v6481_v49 = vsel %vm6478_vm0, %v6480_v0, %v6476_v25  ;;  %v6297_v60 = vsub.f32 %v13359_v30, %v6281_v5  ;;  %vm6490_vm15 = vmor %vm6488_vm8, %vm6489_vm9 }
0x139a   :  { %v13426_v47 = vmul.f32 %v13347_v7, %v6481_v49  ;;  %v6485_v16 = vsub.f32 1.0, %v6484_v26  ;;  %v6495_v7 = vor.u32 1.1754944e-38, %v6494_v61 }
0x139b   :  { %v6328_v52 = vmul.f32 1.442695, %v6297_v60  ;;  %v13428_v29 = vpop.eup %8849 }
0x139c   :  { %v6486_v45 = vmul.f32 %v8848_v6, %v6485_v16  ;;  %v6636_v53 = vsel %vm299_vm2, %v13426_v47, -inf  ;;  %v6372_v14 = vsel %vm299_vm2, %v13428_v29, 0.0 }
0x139d   :  { %8851 = vpow2.f32 %v6328_v52  ;;  %6637 = vmax.xlane.f32.xlu1 %v6636_v53  ;;  %6373 = vadd.xlane.f32.xlu2 %v6372_v14 }
0x139e   :  { %v6487_v30 = vadd.f32 %v8848_v6, %v6486_v45 }
0x13a0   :  { %v6491_v43 = vsel %vm6490_vm15, %v8848_v6, %v6487_v30 }
0x13a1   :  { %v6496_v39 = vsel %vm6493_vm7, %v6495_v7, %v6491_v43 }
0x13a2   :  { %v13435_v57 = vmul.f32 %v13355_v33, %v6496_v39 }
0x13a3   :  { %v13437_v41 = vpop.eup %8851 }
0x13a4   :  { %v6639_v48 = vsel %vm299_vm2, %v13435_v57, -inf  ;;  %v6375_v11 = vsel %vm299_vm2, %v13437_v41, 0.0 }
0x13a5   :  { %6640 = vmax.xlane.f32.xlu1 %v6639_v48  ;;  %6376 = vadd.xlane.f32.xlu2 %v6375_v11 }
0x13e0   :  { %v6620_v9 = vpop.xlane.xlu2 %6619  ;;  %v6356_v20 = vpop.xlane.xlu0 %6355 }
0x13e1   :  { %vm6666_vm12 = vcmp.ge.f32.partialorder %v13365_v50, %v6620_v9  ;;  %8853 = vrcp.f32 %v6356_v20  ;;  %v6509_v63 = vand.u32 2147483648, %v6356_v20  ;;  %v6507_v25 = vand.u32 2147483647, %v6356_v20 }
0x13e2   :  { %v6682_v23 = vsel %vm6666_vm12, %v9327_v40, 4  ;;  %vm6503_vm3 = vweird.f32 %v6356_v20 }
0x13e3   :  { %v13446_v33 = vsel %vm299_vm2, %v6682_v23, 2147483647  ;;  %v6510_v16 = vor.u32 1.1754944e-38, %v6509_v63  ;;  %vm6508_vm6 = vcmp.eq.f32.partialorder %v6507_v25, 8.507059e+37 }
0x13e4   :  { %v6700_v22 = vshra.s32 %v13446_v33, 16 }
0x13e6   :  { %v13449_v3 = vcvt.s32.f32 %v6700_v22 }
0x13e7   :  { %v8854_v55 = vpop.eup %8853 }
0x13e8   :  { %v6623_v4 = vpop.xlane.xlu2 %6622  ;;  %v6499_v37 = vmul.f32 %v8854_v55, %v6356_v20  ;;  %v6359_v15 = vpop.xlane.xlu0 %6358  ;;  %6703 = vmin.xlane.f32.xlu0 %v13449_v3  ;;  %vm6504_vm1 = vweird.f32 %v8854_v55 }
0x13e9   :  { %vm6667_vm4 = vcmp.ge.f32.partialorder %v13375_v13, %v6623_v4  ;;  %8855 = vrcp.f32 %v6359_v15  ;;  %vm6505_vm13 = vmor %vm6503_vm3, %vm6504_vm1  ;;  %v6524_v43 = vand.u32 2147483648, %v6359_v15  ;;  %v6522_v11 = vand.u32 2147483647, %v6359_v15 }
0x13ea   :  { %v6500_v32 = vsub.f32 1.0, %v6499_v37  ;;  %v6683_v54 = vsel %vm6667_vm4, %v9327_v40, 4  ;;  %vm6518_vm5 = vweird.f32 %v6359_v15 }
0x13eb   :  { %v13455_v6 = vsel %vm299_vm2, %v6683_v54, 2147483647  ;;  %vm6523_vm9 = vcmp.eq.f32.partialorder %v6522_v11, 8.507059e+37 }
0x13ec   :  { %v6501_v0 = vmul.f32 %v8854_v55, %v6500_v32  ;;  %v6715_v26 = vshra.s32 %v13455_v6, 16 }
0x13ee   :  { %v6502_v5 = vadd.f32 %v8854_v55, %v6501_v0  ;;  %v13458_v49 = vcvt.s32.f32 %v6715_v26 }
0x13ef   :  { %v8856_v60 = vpop.eup %8855 }
0x13f0   :  { %v6626_v61 = vpop.xlane.xlu1 %6625  ;;  %v6506_v52 = vsel %vm6505_vm13, %v8854_v55, %v6502_v5  ;;  %v6514_v45 = vmul.f32 %v8856_v60, %v6359_v15  ;;  %6718 = vmin.xlane.f32.xlu0 %v13458_v49  ;;  %v6362_v12 = vpop.xlane.xlu2 %6361  ;;  %vm6519_vm14 = vweird.f32 %v8856_v60  ;;  %v6525_v55 = vor.u32 1.1754944e-38, %v6524_v43 }
0x13f1   :  { %vm6668_vm10 = vcmp.ge.f32.partialorder %v13385_v59, %v6626_v61  ;;  %v6511_v53 = vsel %vm6508_vm6, %v6510_v16, %v6506_v52  ;;  %8857 = vrcp.f32 %v6362_v12  ;;  %vm6520_vm0 = vmor %vm6518_vm5, %vm6519_vm14  ;;  %v6539_v5 = vand.u32 2147483648, %v6362_v12 }
0x13f2   :  { %v13463_v14 = vmul.f32 %v13368_v8, %v6511_v53  ;;  %v6515_v30 = vsub.f32 1.0, %v6514_v45  ;;  %v6684_v7 = vsel %vm6668_vm10, %v9327_v40, 4  ;;  %v6537_v61 = vand.u32 2147483647, %v6362_v12 }
0x13f3   :  { %v13467_v39 = vsel %vm299_vm2, %v6684_v7, 2147483647  ;;  %vm6533_vm7 = vweird.f32 %v6362_v12 }
0x13f4   :  { %v6516_v48 = vmul.f32 %v8856_v60, %v6515_v30  ;;  %v6730_v9 = vshra.s32 %v13467_v39, 16  ;;  %v6642_v20 = vsel %vm299_vm2, %v13463_v14, -inf  ;;  %v6540_v30 = vor.u32 1.1754944e-38, %v6539_v5 }
0x13f5   :  { %6643 = vmax.xlane.f32.xlu1 %v6642_v20  ;;  %vm6538_vm4 = vcmp.eq.f32.partialorder %v6537_v61, 8.507059e+37 }
0x13f6   :  { %v6517_v23 = vadd.f32 %v8856_v60, %v6516_v48  ;;  %v13472_v8 = vcvt.s32.f32 %v6730_v9 }
0x13f7   :  { %v8858_v22 = vpop.eup %8857 }
0x13f8   :  { %v6629_v4 = vpop.xlane.xlu0 %6628  ;;  %v6521_v37 = vsel %vm6520_vm0, %v8856_v60, %v6517_v23  ;;  %v6529_v32 = vmul.f32 %v8858_v22, %v6362_v12  ;;  %6733 = vmin.xlane.f32.xlu0 %v13472_v8  ;;  %v6365_v54 = vpop.xlane.xlu1 %6364  ;;  %vm6534_vm15 = vweird.f32 %v8858_v22 }
0x13f9   :  { %vm6669_vm8 = vcmp.ge.f32.partialorder %v13395_v19, %v6629_v4  ;;  %v6526_v63 = vsel %vm6523_vm9, %v6525_v55, %v6521_v37  ;;  %8859 = vrcp.f32 %v6365_v54  ;;  %vm6535_vm12 = vmor %vm6533_vm7, %vm6534_vm15  ;;  %v6554_v55 = vand.u32 2147483648, %v6365_v54 }
0x13fa   :  { %v6685_v0 = vsel %vm6669_vm8, %v9327_v40, 4  ;;  %v6530_v15 = vsub.f32 1.0, %v6529_v32  ;;  %v13481_v26 = vmul.f32 %v13378_v44, %v6526_v63  ;;  %vm6548_vm13 = vweird.f32 %v6365_v54 }
0x13fb   :  { %v13478_v25 = vsel %vm299_vm2, %v6685_v0, 2147483647  ;;  %v6555_v5 = vor.u32 1.1754944e-38, %v6554_v55 }
0x13fc   :  { %v6745_v60 = vshra.s32 %v13478_v25, 16  ;;  %v6531_v16 = vmul.f32 %v8858_v22, %v6530_v15  ;;  %v6645_v44 = vsel %vm299_vm2, %v13481_v26, -inf }
0x13fe   :  { %v13484_v52 = vcvt.s32.f32 %v6745_v60  ;;  %v6532_v45 = vadd.f32 %v8858_v22, %v6531_v16 }
0x13ff   :  { %v8860_v53 = vpop.eup %8859 }
0x1400   :  { %v6632_v7 = vpop.xlane.xlu2 %6631  ;;  %6748 = vmin.xlane.f32.xlu2 %v13484_v52  ;;  %v6536_v43 = vsel %vm6535_vm12, %v8858_v22, %v6532_v45  ;;  %v6544_v48 = vmul.f32 %v8860_v53, %v6365_v54  ;;  %v6368_v11 = vpop.xlane.xlu0 %6367  ;;  %6646 = vmax.xlane.f32.xlu0 %v6645_v44  ;;  %vm6549_vm3 = vweird.f32 %v8860_v53  ;;  %v6552_v22 = vand.u32 2147483647, %v6365_v54 }
0x1401   :  { %vm6670_vm1 = vcmp.ge.f32.partialorder %v13405_v27, %v6632_v7  ;;  %v6541_v9 = vsel %vm6538_vm4, %v6540_v30, %v6536_v43  ;;  %8861 = vrcp.f32 %v6368_v11  ;;  %vm6550_vm6 = vmor %vm6548_vm13, %vm6549_vm3  ;;  %v6569_v43 = vand.u32 2147483648, %v6368_v11 }
0x1402   :  { %v13491_v12 = vmul.f32 %v13388_v51, %v6541_v9  ;;  %v6545_v20 = vsub.f32 1.0, %v6544_v48  ;;  %v6686_v23 = vsel %vm6670_vm1, %v9327_v40, 4  ;;  %vm6553_vm10 = vcmp.eq.f32.partialorder %v6552_v22, 8.507059e+37 }
0x1403   :  { %v13495_v4 = vsel %vm299_vm2, %v6686_v23, 2147483647  ;;  %v6567_v9 = vand.u32 2147483647, %v6368_v11  ;;  %vm6563_vm0 = vweird.f32 %v6368_v11  ;;  %v6570_v22 = vor.u32 1.1754944e-38, %v6569_v43 }
0x1404   :  { %v6546_v37 = vmul.f32 %v8860_v53, %v6545_v20  ;;  %v6760_v32 = vshra.s32 %v13495_v4, 16  ;;  %v6648_v51 = vsel %vm299_vm2, %v13491_v12, -inf }
0x1405   :  { %vm6568_vm8 = vcmp.eq.f32.partialorder %v6567_v9, 8.507059e+37 }
0x1406   :  { %v6547_v63 = vadd.f32 %v8860_v53, %v6546_v37  ;;  %v13498_v0 = vcvt.s32.f32 %v6760_v32 }
0x1407   :  { %v8862_v15 = vpop.eup %8861 }
0x1408   :  { %6649 = vmax.xlane.f32.xlu2 %v6648_v51  ;;  %v6635_v60 = vpop.xlane.xlu1 %6634  ;;  %v6551_v16 = vsel %vm6550_vm6, %v8860_v53, %v6547_v63  ;;  %v6559_v61 = vmul.f32 %v8862_v15, %v6368_v11  ;;  %v6371_v45 = vpop.xlane.xlu2 %6370  ;;  %6763 = vmin.xlane.f32.xlu1 %v13498_v0  ;;  %vm6564_vm5 = vweird.f32 %v8862_v15 }
0x1409   :  { %vm6671_vm14 = vcmp.ge.f32.partialorder %v13415_v46, %v6635_v60  ;;  %v6556_v30 = vsel %vm6553_vm10, %v6555_v5, %v6551_v16  ;;  %8863 = vrcp.f32 %v6371_v45  ;;  %vm6565_vm9 = vmor %vm6563_vm0, %vm6564_vm5  ;;  %vm6578_vm12 = vweird.f32 %v6371_v45 }
0x140a   :  { %v6560_v54 = vsub.f32 1.0, %v6559_v61  ;;  %v6687_v7 = vsel %vm6671_vm14, %v9327_v40, 4  ;;  %v13506_v44 = vmul.f32 %v13398_v1, %v6556_v30  ;;  %v6584_v30 = vand.u32 2147483648, %v6371_v45 }
0x140b   :  { %v13509_v48 = vsel %vm299_vm2, %v6687_v7, 2147483647  ;;  %v6582_v7 = vand.u32 2147483647, %v6371_v45 }
0x140c   :  { %v6561_v53 = vmul.f32 %v8862_v15, %v6560_v54  ;;  %v6775_v20 = vshra.s32 %v13509_v48, 16  ;;  %v6651_v1 = vsel %vm299_vm2, %v13506_v44, -inf }
0x140d   :  { %vm6583_vm1 = vcmp.eq.f32.partialorder %v6582_v7, 8.507059e+37 }
0x140e   :  { %v6562_v23 = vadd.f32 %v8862_v15, %v6561_v53  ;;  %v13512_v55 = vcvt.s32.f32 %v6775_v20 }
0x140f   :  { %v8864_v37 = vpop.eup %8863 }
0x1410   :  { %v6638_v32 = vpop.xlane.xlu1 %6637  ;;  %v6566_v63 = vsel %vm6565_vm9, %v8862_v15, %v6562_v23  ;;  %v6574_v51 = vmul.f32 %v8864_v37, %v6371_v45  ;;  %v6374_v5 = vpop.xlane.xlu2 %6373  ;;  %6652 = vmax.xlane.f32.xlu1 %v6651_v1  ;;  %6778 = vmin.xlane.f32.xlu0 %v13512_v55  ;;  %vm6579_vm7 = vweird.f32 %v8864_v37  ;;  %v6585_v23 = vor.u32 1.1754944e-38, %v6584_v30 }
0x1411   :  { %vm6672_vm15 = vcmp.ge.f32.partialorder %v13426_v47, %v6638_v32  ;;  %v6571_v60 = vsel %vm6568_vm8, %v6570_v22, %v6566_v63  ;;  %8865 = vrcp.f32 %v6374_v5  ;;  %vm6580_vm4 = vmor %vm6578_vm12, %vm6579_vm7  ;;  %vm6593_vm6 = vweird.f32 %v6374_v5 }
0x1412   :  { %v6575_v11 = vsub.f32 1.0, %v6574_v51  ;;  %v6688_v16 = vsel %vm6672_vm15, %v9327_v40, 4  ;;  %v13520_v61 = vmul.f32 %v13408_v10, %v6571_v60 }
0x1413   :  { %v13523_v54 = vsel %vm299_vm2, %v6688_v16, 2147483647  ;;  %v6599_v16 = vand.u32 2147483648, %v6374_v5 }
0x1414   :  { %v6576_v15 = vmul.f32 %v8864_v37, %v6575_v11  ;;  %v6790_v43 = vshra.s32 %v13523_v54, 16  ;;  %v6654_v10 = vsel %vm299_vm2, %v13520_v61, -inf }
0x1416   :  { %v6577_v53 = vadd.f32 %v8864_v37, %v6576_v15  ;;  %v13526_v9 = vcvt.s32.f32 %v6790_v43  ;;  %v6597_v15 = vand.u32 2147483647, %v6374_v5 }
0x1417   :  { %v8866_v20 = vpop.eup %8865 }
0x1418   :  { %v6641_v22 = vpop.xlane.xlu1 %6640  ;;  %v6581_v1 = vsel %vm6580_vm4, %v8864_v37, %v6577_v53  ;;  %v6589_v32 = vmul.f32 %v8866_v20, %v6374_v5  ;;  %v6377_v63 = vpop.xlane.xlu2 %6376  ;;  %6655 = vmax.xlane.f32.xlu1 %v6654_v10  ;;  %6793 = vmin.xlane.f32.xlu0 %v13526_v9  ;;  %vm6594_vm13 = vweird.f32 %v8866_v20  ;;  %v6600_v10 = vor.u32 1.1754944e-38, %v6599_v16 }
0x1419   :  { %vm6673_vm3 = vcmp.ge.f32.partialorder %v13435_v57, %v6641_v22  ;;  %v6586_v51 = vsel %vm6583_vm1, %v6585_v23, %v6581_v1  ;;  %8867 = vrcp.f32 %v6377_v63  ;;  %vm6595_vm10 = vmor %vm6593_vm6, %vm6594_vm13  ;;  %vm6598_vm14 = vcmp.eq.f32.partialorder %v6597_v15, 8.507059e+37 }
0x141a   :  { %v6590_v45 = vsub.f32 1.0, %v6589_v32  ;;  %v6689_v60 = vsel %vm6673_vm3, %v9327_v40, 4  ;;  %v13534_v11 = vmul.f32 %v13418_v21, %v6586_v51  ;;  %v6614_v5 = vand.u32 2147483648, %v6377_v63 }
0x141b   :  { %v13537_v30 = vsel %vm299_vm2, %v6689_v60, 2147483647  ;;  %vm6608_vm0 = vweird.f32 %v6377_v63 }
0x141c   :  { %v6591_v37 = vmul.f32 %v8866_v20, %v6590_v45  ;;  %v6805_v7 = vshra.s32 %v13537_v30, 16  ;;  %v6657_v21 = vsel %vm299_vm2, %v13534_v11, -inf  ;;  %v6615_v16 = vor.u32 1.1754944e-38, %v6614_v5 }
0x141e   :  { %v6592_v43 = vadd.f32 %v8866_v20, %v6591_v37  ;;  %v13540_v53 = vcvt.s32.f32 %v6805_v7  ;;  %v6612_v37 = vand.u32 2147483647, %v6377_v63 }
0x141f   :  { %v8868_v23 = vpop.eup %8867 }
0x1420   :  { %v6596_v22 = vsel %vm6595_vm10, %v8866_v20, %v6592_v43  ;;  %v6604_v1 = vmul.f32 %v8868_v23, %v6377_v63  ;;  %6658 = vmax.xlane.f32.xlu1 %v6657_v21  ;;  %6808 = vmin.xlane.f32.xlu0 %v13540_v53  ;;  %vm6609_vm5 = vweird.f32 %v8868_v23  ;;  %vm6613_vm8 = vcmp.eq.f32.partialorder %v6612_v37, 8.507059e+37 }
0x1421   :  { %v6601_v32 = vsel %vm6598_vm14, %v6600_v10, %v6596_v22  ;;  %vm6610_vm9 = vmor %vm6608_vm0, %vm6609_vm5  ;;  %v6699_v21 = vand.u32 65535, %v13446_v33  ;;  %v6729_v33 = vand.u32 65535, %v13467_v39 }
0x1422   :  { %v6605_v51 = vsub.f32 1.0, %v6604_v1  ;;  %v13546_v45 = vmul.f32 %v13428_v29, %v6601_v32 }
0x1423   :  { %v6701_v63 = vcvt.s32.f32 %v6699_v21  ;;  %v6731_v37 = vcvt.s32.f32 %v6729_v33 }
0x1424   :  { %14898 = vst [vmem:[#allocation2_spill] sm:$0xff] %v13546_v45  ;;  %v6606_v60 = vmul.f32 %v8868_v23, %v6605_v51  ;;  %v6660_v20 = vsel %vm299_vm2, %v13546_v45, -inf }
0x1426   :  { %v6607_v7 = vadd.f32 %v8868_v23, %v6606_v60 }
0x1428   :  { %v6611_v15 = vsel %vm6610_vm9, %v8868_v23, %v6607_v7  ;;  %6661 = vmax.xlane.f32.xlu1 %v6660_v20  ;;  %v6714_v23 = vand.u32 65535, %v13455_v6 }
0x1429   :  { %v6616_v43 = vsel %vm6613_vm8, %v6615_v16, %v6611_v15  ;;  %v6744_v16 = vand.u32 65535, %v13478_v25  ;;  %v6759_v25 = vand.u32 65535, %v13495_v4 }
0x142a   :  { %v13551_v10 = vmul.f32 %v13437_v41, %v6616_v43  ;;  %v6716_v41 = vcvt.s32.f32 %v6714_v23 }
0x142b   :  { %v6746_v15 = vcvt.s32.f32 %v6744_v16 }
0x142c   :  { %14899 = vst [vmem:[#allocation5_spill] sm:$0xff] %v13551_v10  ;;  %v6663_v29 = vsel %vm299_vm2, %v13551_v10, -inf }
0x1430   :  { %6664 = vmax.xlane.f32.xlu1 %v6663_v29 }
0x145b   :  { %v13556_v22 = vpop.xlane.xlu0 %6703 }
0x145c   :  { %vm6705_vm15 = vcmp.eq.f32.partialorder %v13449_v3, %v13556_v22 }
0x145d   :  { %v6706_v1 = vsel %vm6705_vm15, %v6701_v63, inf }
0x145e   :  { %6707 = vmin.xlane.f32.xlu2 %v6706_v1 }
0x1463   :  { %v13561_v32 = vpop.xlane.xlu0 %6718 }
0x1464   :  { %vm6720_vm7 = vcmp.eq.f32.partialorder %v13458_v49, %v13561_v32 }
0x1465   :  { %v6721_v51 = vsel %vm6720_vm7, %v6716_v41, inf  ;;  %v6761_v41 = vcvt.s32.f32 %v6759_v25 }
0x1466   :  { %6722 = vmin.xlane.f32.xlu2 %v6721_v51 }
0x1468   :  { %v6644_v5 = vpop.xlane.xlu1 %6643 }
0x1469   :  { %vm6674_vm12 = vcmp.ge.f32.partialorder %v13463_v14, %v6644_v5 }
0x146a   :  { %v6690_v60 = vsel %vm6674_vm12, %v9327_v40, 4 }
0x146b   :  { %v13568_v3 = vpop.xlane.xlu0 %6733  ;;  %v13571_v6 = vsel %vm299_vm2, %v6690_v60, 2147483647  ;;  %v6774_v60 = vand.u32 65535, %v13509_v48  ;;  %v6789_v48 = vand.u32 65535, %v13523_v54 }
0x146c   :  { %vm6735_vm4 = vcmp.eq.f32.partialorder %v13472_v8, %v13568_v3  ;;  %v6820_v49 = vshra.s32 %v13571_v6, 16 }
0x146d   :  { %v6736_v7 = vsel %vm6735_vm4, %v6731_v37, inf  ;;  %v6776_v16 = vcvt.s32.f32 %v6774_v60 }
0x146e   :  { %6737 = vmin.xlane.f32.xlu2 %v6736_v7  ;;  %v13577_v39 = vcvt.s32.f32 %v6820_v49 }
0x1470   :  { %6823 = vmin.xlane.f32.xlu0 %v13577_v39 }
0x1473   :  { %v13580_v20 = vpop.xlane.xlu2 %6748  ;;  %v6647_v43 = vpop.xlane.xlu0 %6646 }
0x1474   :  { %vm6750_vm1 = vcmp.eq.f32.partialorder %v13484_v52, %v13580_v20  ;;  %vm6675_vm3 = vcmp.ge.f32.partialorder %v13481_v26, %v6647_v43  ;;  %v6755_v35 = vcvt.f32.s32 %v13580_v20 }
0x1475   :  { %v6751_v8 = vsel %vm6750_vm1, %v6746_v15, inf  ;;  %v6691_v29 = vsel %vm6675_vm3, %v9327_v40, 4 }
0x1476   :  { %v13587_v21 = vsel %vm299_vm2, %v6691_v29, 2147483647  ;;  %6752 = vmin.xlane.f32.xlu2 %v6751_v8 }
0x1477   :  { %v6835_v63 = vshra.s32 %v13587_v21, 16 }
0x1479   :  { %v13591_v1 = vcvt.s32.f32 %v6835_v63  ;;  %v6791_v63 = vcvt.s32.f32 %v6789_v48 }
0x147b   :  { %v6650_v23 = vpop.xlane.xlu2 %6649  ;;  %6838 = vmin.xlane.f32.xlu0 %v13591_v1  ;;  %v13595_v52 = vpop.xlane.xlu1 %6763 }
0x147c   :  { %vm6676_vm13 = vcmp.ge.f32.partialorder %v13491_v12, %v6650_v23  ;;  %vm6765_vm6 = vcmp.eq.f32.partialorder %v13498_v0, %v13595_v52 }
0x147d   :  { %v6692_v51 = vsel %vm6676_vm13, %v9327_v40, 4  ;;  %v6766_v4 = vsel %vm6765_vm6, %v6761_v41, inf }
0x147e   :  { %v13601_v33 = vsel %vm299_vm2, %v6692_v51, 2147483647  ;;  %6767 = vmin.xlane.f32.xlu2 %v6766_v4  ;;  %v6804_v51 = vand.u32 65535, %v13537_v30 }
0x147f   :  { %v6850_v5 = vshra.s32 %v13601_v33, 16 }
0x1481   :  { %v13605_v37 = vcvt.s32.f32 %v6850_v5 }
0x1483   :  { %v13607_v49 = vpop.xlane.xlu0 %6778  ;;  %6853 = vmin.xlane.f32.xlu0 %v13605_v37  ;;  %v6653_v7 = vpop.xlane.xlu1 %6652 }
0x1484   :  { %vm6780_vm10 = vcmp.eq.f32.partialorder %v13512_v55, %v13607_v49  ;;  %vm6677_vm14 = vcmp.ge.f32.partialorder %v13506_v44, %v6653_v7  ;;  %v6806_v7 = vcvt.s32.f32 %v6804_v51 }
0x1485   :  { %v6693_v0 = vsel %vm6677_vm14, %v9327_v40, 4  ;;  %v6781_v15 = vsel %vm6780_vm10, %v6776_v16, inf }
0x1486   :  { %v13615_v43 = vsel %vm299_vm2, %v6693_v0, 2147483647  ;;  %6782 = vmin.xlane.f32.xlu1 %v6781_v15 }
0x1487   :  { %v6865_v8 = vshra.s32 %v13615_v43, 16 }
0x1489   :  { %v13619_v29 = vcvt.s32.f32 %v6865_v8 }
0x148b   :  { %v13621_v25 = vpop.xlane.xlu0 %6793  ;;  %6868 = vmin.xlane.f32.xlu2 %v13619_v29  ;;  %v6656_v55 = vpop.xlane.xlu1 %6655 }
0x148c   :  { %vm6795_vm5 = vcmp.eq.f32.partialorder %v13526_v9, %v13621_v25  ;;  %vm6678_vm0 = vcmp.ge.f32.partialorder %v13520_v61, %v6656_v55 }
0x148d   :  { %v6694_v23 = vsel %vm6678_vm0, %v9327_v40, 4  ;;  %v6796_v41 = vsel %vm6795_vm5, %v6791_v63, inf }
0x148e   :  { %v13629_v54 = vsel %vm299_vm2, %v6694_v23, 2147483647  ;;  %6797 = vmin.xlane.f32.xlu1 %v6796_v41 }
0x148f   :  { %v6880_v4 = vshra.s32 %v13629_v54, 16 }
0x1491   :  { %v13633_v5 = vcvt.s32.f32 %v6880_v4 }
0x1493   :  { %v13635_v60 = vpop.xlane.xlu0 %6808  ;;  %6883 = vmin.xlane.f32.xlu2 %v13633_v5  ;;  %v6659_v9 = vpop.xlane.xlu1 %6658 }
0x1494   :  { %vm6810_vm9 = vcmp.eq.f32.partialorder %v13540_v53, %v13635_v60  ;;  %vm6679_vm8 = vcmp.ge.f32.partialorder %v13534_v11, %v6659_v9 }
0x1495   :  { %v6695_v16 = vsel %vm6679_vm8, %v9327_v40, 4  ;;  %v6811_v0 = vsel %vm6810_vm9, %v6806_v7, inf }
0x1496   :  { %v13643_v30 = vsel %vm299_vm2, %v6695_v16, 2147483647  ;;  %6812 = vmin.xlane.f32.xlu1 %v6811_v0  ;;  %v6710_v16 = vcvt.f32.s32 %v13556_v22 }
0x1497   :  { %v6895_v15 = vshra.s32 %v13643_v30, 16 }
0x1499   :  { %v13646_v48 = vcvt.s32.f32 %v6895_v15  ;;  %v6711_v15 = vshll.u32 %v6710_v16, 16 }
0x149b   :  { %6898 = vmin.xlane.f32.xlu2 %v13646_v48  ;;  %v6662_v8 = vpop.xlane.xlu1 %6661 }
0x149c   :  { %vm6680_vm15 = vcmp.ge.f32.partialorder %v13546_v45, %v6662_v8 }
0x149d   :  { %v6696_v53 = vsel %vm6680_vm15, %v9327_v40, 4 }
0x149e   :  { %v13652_v55 = vsel %vm299_vm2, %v6696_v53, 2147483647 }
0x149f   :  { %v6910_v63 = vshra.s32 %v13652_v55, 16 }
0x14a1   :  { %v13655_v23 = vcvt.s32.f32 %v6910_v63  ;;  %v6725_v63 = vcvt.f32.s32 %v13561_v32  ;;  %v6740_v32 = vcvt.f32.s32 %v13568_v3 }
0x14a3   :  { %6913 = vmin.xlane.f32.xlu2 %v13655_v23  ;;  %v6665_v41 = vpop.xlane.xlu1 %6664 }
0x14a4   :  { %vm6681_vm7 = vcmp.ge.f32.partialorder %v13551_v10, %v6665_v41 }
0x14a5   :  { %v6697_v51 = vsel %vm6681_vm7, %v9327_v40, 4 }
0x14a6   :  { %v13661_v4 = vsel %vm299_vm2, %v6697_v51, 2147483647 }
0x14a7   :  { %v6925_v9 = vshra.s32 %v13661_v4, 16 }
0x14a9   :  { %v13664_v7 = vcvt.s32.f32 %v6925_v9  ;;  %v6726_v9 = vshll.u32 %v6725_v63, 16 }
0x14ab   :  { %6928 = vmin.xlane.f32.xlu2 %v13664_v7 }
0x14d1   :  { %v6708_v0 = vpop.xlane.xlu2 %6707 }
0x14d2   :  { %v6709_v8 = vcvt.f32.s32 %v6708_v0 }
0x14d4   :  { %v13668_v53 = vadd.s32 %v6711_v15, %v6709_v8  ;;  %v6819_v8 = vand.u32 65535, %v13571_v6 }
0x14d6   :  { %vm6938_vm12 = vcmp.eq.s32.totalorder %v9327_v40, %v13668_v53  ;;  %v6821_v24 = vcvt.s32.f32 %v6819_v8 }
0x14d7   :  { %v13677_v41 = vsel %vm6938_vm12, -inf, %v13365_v50 }
0x14d8   :  { %v7002_v51 = vsel %vm299_vm2, %v13677_v41, -inf }
0x14d9   :  { %v6723_v22 = vpop.xlane.xlu2 %6722  ;;  %7003 = vmax.xlane.f32.xlu0 %v7002_v51 }
0x14da   :  { %v6724_v16 = vcvt.f32.s32 %v6723_v22  ;;  %v6741_v22 = vshll.u32 %v6740_v32, 16 }
0x14dc   :  { %v13681_v0 = vadd.s32 %v6726_v9, %v6724_v16 }
0x14de   :  { %vm6939_vm4 = vcmp.eq.s32.totalorder %v9327_v40, %v13681_v0 }
0x14df   :  { %v13690_v15 = vsel %vm6939_vm4, -inf, %v13375_v13 }
0x14e0   :  { %v7005_v51 = vsel %vm299_vm2, %v13690_v15, -inf }
0x14e1   :  { %v6738_v63 = vpop.xlane.xlu2 %6737  ;;  %7006 = vmax.xlane.f32.xlu0 %v7005_v51  ;;  %v6756_v51 = vshll.u32 %v6755_v35, 16 }
0x14e2   :  { %v6739_v9 = vcvt.f32.s32 %v6738_v63  ;;  %v6770_v63 = vcvt.f32.s32 %v13595_v52 }
0x14e3   :  { %v13697_v3 = vpop.xlane.xlu0 %6823 }
0x14e4   :  { %v13695_v16 = vadd.s32 %v6741_v22, %v6739_v9  ;;  %vm6825_vm1 = vcmp.eq.f32.partialorder %v13577_v39, %v13697_v3  ;;  %v6834_v39 = vand.u32 65535, %v13587_v21 }
0x14e5   :  { %v6826_v42 = vsel %vm6825_vm1, %v6821_v24, inf }
0x14e6   :  { %vm6940_vm3 = vcmp.eq.s32.totalorder %v9327_v40, %v13695_v16  ;;  %6827 = vmin.xlane.f32.xlu1 %v6826_v42  ;;  %v6836_v22 = vcvt.s32.f32 %v6834_v39 }
0x14e7   :  { %v13708_v6 = vsel %vm6940_vm3, -inf, %v13385_v59 }
0x14e8   :  { %v7008_v32 = vsel %vm299_vm2, %v13708_v6, -inf }
0x14e9   :  { %v6753_v8 = vpop.xlane.xlu2 %6752  ;;  %7009 = vmax.xlane.f32.xlu0 %v7008_v32  ;;  %v6849_v32 = vand.u32 65535, %v13601_v33 }
0x14ea   :  { %v6754_v20 = vcvt.f32.s32 %v6753_v8  ;;  %v6771_v8 = vshll.u32 %v6770_v63, 16 }
0x14eb   :  { %v6851_v38 = vcvt.s32.f32 %v6849_v32 }
0x14ec   :  { %v13713_v24 = vadd.s32 %v6756_v51, %v6754_v20 }
0x14ee   :  { %v13716_v42 = vpop.xlane.xlu0 %6838  ;;  %vm6941_vm13 = vcmp.eq.s32.totalorder %v9327_v40, %v13713_v24 }
0x14ef   :  { %vm6840_vm6 = vcmp.eq.f32.partialorder %v13591_v1, %v13716_v42  ;;  %v13726_v35 = vsel %vm6941_vm13, -inf, %v13395_v19  ;;  %v6785_v1 = vcvt.f32.s32 %v13607_v49 }
0x14f0   :  { %v7011_v21 = vsel %vm299_vm2, %v13726_v35, -inf  ;;  %v6841_v9 = vsel %vm6840_vm6, %v6836_v22, inf }
0x14f1   :  { %7012 = vmax.xlane.f32.xlu0 %v7011_v21  ;;  %6842 = vmin.xlane.f32.xlu1 %v6841_v9  ;;  %v6768_v52 = vpop.xlane.xlu2 %6767  ;;  %v6786_v21 = vshll.u32 %v6785_v1, 16  ;;  %v6864_v9 = vand.u32 65535, %v13615_v43 }
0x14f2   :  { %v6769_v51 = vcvt.f32.s32 %v6768_v52 }
0x14f4   :  { %v13731_v39 = vadd.s32 %v6771_v8, %v6769_v51  ;;  %v6866_v51 = vcvt.s32.f32 %v6864_v9 }
0x14f6   :  { %v13734_v20 = vpop.xlane.xlu0 %6853  ;;  %vm6942_vm10 = vcmp.eq.s32.totalorder %v9327_v40, %v13731_v39 }
0x14f7   :  { %vm6855_vm14 = vcmp.eq.f32.partialorder %v13605_v37, %v13734_v20  ;;  %v13744_v33 = vsel %vm6942_vm10, -inf, %v13405_v27  ;;  %v6800_v37 = vcvt.f32.s32 %v13621_v25 }
0x14f8   :  { %v6856_v63 = vsel %vm6855_vm14, %v6851_v38, inf  ;;  %v7014_v22 = vsel %vm299_vm2, %v13744_v33, -inf }
0x14f9   :  { %6857 = vmin.xlane.f32.xlu1 %v6856_v63  ;;  %7015 = vmax.xlane.f32.xlu0 %v7014_v22  ;;  %v6783_v49 = vpop.xlane.xlu1 %6782  ;;  %v6801_v63 = vshll.u32 %v6800_v37, 16  ;;  %v6879_v22 = vand.u32 65535, %v13629_v54 }
0x14fa   :  { %v6784_v52 = vcvt.f32.s32 %v6783_v49 }
0x14fc   :  { %v13749_v32 = vadd.s32 %v6786_v21, %v6784_v52  ;;  %v6881_v52 = vcvt.s32.f32 %v6879_v22 }
0x14fe   :  { %v13752_v8 = vpop.xlane.xlu2 %6868  ;;  %vm6943_vm5 = vcmp.eq.s32.totalorder %v9327_v40, %v13749_v32 }
0x14ff   :  { %vm6870_vm0 = vcmp.eq.f32.partialorder %v13619_v29, %v13752_v8  ;;  %v13762_v38 = vsel %vm6943_vm5, -inf, %v13415_v46  ;;  %v6815_v29 = vcvt.f32.s32 %v13635_v60  ;;  %v6875_v62 = vcvt.f32.s32 %v13752_v8 }
0x1500   :  { %v6871_v43 = vsel %vm6870_vm0, %v6866_v51, inf  ;;  %v7017_v1 = vsel %vm299_vm2, %v13762_v38, -inf }
0x1501   :  { %6872 = vmin.xlane.f32.xlu0 %v6871_v43  ;;  %7018 = vmax.xlane.f32.xlu2 %v7017_v1  ;;  %v6798_v25 = vpop.xlane.xlu1 %6797  ;;  %v6816_v43 = vshll.u32 %v6815_v29, 16  ;;  %v6894_v1 = vand.u32 65535, %v13643_v30  ;;  %v6876_v8 = vshll.u32 %v6875_v62, 16 }
0x1502   :  { %v6799_v49 = vcvt.f32.s32 %v6798_v25 }
0x1503   :  { %v6896_v22 = vcvt.s32.f32 %v6894_v1 }
0x1504   :  { %v13767_v21 = vadd.s32 %v6801_v63, %v6799_v49 }
0x1506   :  { %v13770_v9 = vpop.xlane.xlu2 %6883  ;;  %vm6944_vm9 = vcmp.eq.s32.totalorder %v9327_v40, %v13767_v21 }
0x1507   :  { %vm6885_vm8 = vcmp.eq.f32.partialorder %v13633_v5, %v13770_v9  ;;  %v13780_v37 = vsel %vm6944_vm9, -inf, %v13426_v47  ;;  %v6890_v58 = vcvt.f32.s32 %v13770_v9 }
0x1508   :  { %v6886_v54 = vsel %vm6885_vm8, %v6881_v52, inf  ;;  %v7020_v51 = vsel %vm299_vm2, %v13780_v37, -inf  ;;  %v6909_v52 = vand.u32 65535, %v13652_v55 }
0x1509   :  { %6887 = vmin.xlane.f32.xlu0 %v6886_v54  ;;  %7021 = vmax.xlane.f32.xlu2 %v7020_v51  ;;  %v6813_v60 = vpop.xlane.xlu1 %6812  ;;  %v6891_v9 = vshll.u32 %v6890_v58, 16 }
0x150a   :  { %v6814_v25 = vcvt.f32.s32 %v6813_v60  ;;  %v6911_v51 = vcvt.s32.f32 %v6909_v52  ;;  %v6924_v60 = vand.u32 65535, %v13661_v4  ;;  %v6830_v52 = vcvt.f32.s32 %v13697_v3 }
0x150c   :  { %v13785_v63 = vadd.s32 %v6816_v43, %v6814_v25  ;;  %v6926_v1 = vcvt.s32.f32 %v6924_v60 }
0x150e   :  { %v13787_v5 = vpop.xlane.xlu2 %6898  ;;  %vm6945_vm15 = vcmp.eq.s32.totalorder %v9327_v40, %v13785_v63 }
0x150f   :  { %vm6900_vm7 = vcmp.eq.f32.partialorder %v13646_v48, %v13787_v5  ;;  %v13797_v49 = vsel %vm6945_vm15, -inf, %v13435_v57  ;;  %v6905_v36 = vcvt.f32.s32 %v13787_v5 }
0x1510   :  { %v6901_v29 = vsel %vm6900_vm7, %v6896_v22, inf  ;;  %v7023_v30 = vsel %vm299_vm2, %v13797_v49, -inf }
0x1511   :  { %6902 = vmin.xlane.f32.xlu0 %v6901_v29  ;;  %7024 = vmax.xlane.f32.xlu2 %v7023_v30  ;;  %v6906_v5 = vshll.u32 %v6905_v36, 16 }
0x1516   :  { %v13802_v54 = vpop.xlane.xlu2 %6913 }
0x1517   :  { %vm6915_vm1 = vcmp.eq.f32.partialorder %v13655_v23, %v13802_v54  ;;  %v6920_v56 = vcvt.f32.s32 %v13802_v54 }
0x1518   :  { %v6916_v48 = vsel %vm6915_vm1, %v6911_v51, inf }
0x1519   :  { %6917 = vmin.xlane.f32.xlu0 %v6916_v48 }
0x151e   :  { %v13807_v43 = vpop.xlane.xlu2 %6928 }
0x151f   :  { %vm6930_vm6 = vcmp.eq.f32.partialorder %v13664_v7, %v13807_v43 }
0x1520   :  { %v6931_v25 = vsel %vm6930_vm6, %v6926_v1, inf  ;;  %v6831_v1 = vshll.u32 %v6830_v52, 16 }
0x1521   :  { %6932 = vmin.xlane.f32.xlu0 %v6931_v25 }
0x154c   :  { %v7004_v22 = vpop.xlane.xlu0 %7003 }
0x154d   :  { %vm7050_vm14 = vcmp.ge.f32.partialorder %v13677_v41, %v7004_v22 }
0x154e   :  { %v7066_v55 = vsel %vm7050_vm14, %v9327_v40, 4 }
0x154f   :  { %v13814_v29 = vsel %vm299_vm2, %v7066_v55, 2147483647 }
0x1550   :  { %v7084_v23 = vshra.s32 %v13814_v29, 16 }
0x1552   :  { %v13817_v30 = vcvt.s32.f32 %v7084_v23 }
0x1554   :  { %v7007_v4 = vpop.xlane.xlu0 %7006  ;;  %7087 = vmin.xlane.f32.xlu1 %v13817_v30 }
0x1555   :  { %vm7051_vm0 = vcmp.ge.f32.partialorder %v13690_v15, %v7007_v4 }
0x1556   :  { %v7067_v7 = vsel %vm7051_vm0, %v9327_v40, 4 }
0x1557   :  { %v13824_v41 = vsel %vm299_vm2, %v7067_v7, 2147483647  ;;  %v6845_v7 = vcvt.f32.s32 %v13716_v42 }
0x1558   :  { %v7099_v51 = vshra.s32 %v13824_v41, 16 }
0x1559   :  { %v6828_v48 = vpop.xlane.xlu1 %6827 }
0x155a   :  { %v13827_v60 = vcvt.s32.f32 %v7099_v51  ;;  %v6829_v25 = vcvt.f32.s32 %v6828_v48 }
0x155c   :  { %v7010_v22 = vpop.xlane.xlu0 %7009  ;;  %7102 = vmin.xlane.f32.xlu1 %v13827_v60  ;;  %v13830_v55 = vadd.s32 %v6831_v1, %v6829_v25  ;;  %v6846_v1 = vshll.u32 %v6845_v7, 16 }
0x155d   :  { %vm7052_vm8 = vcmp.ge.f32.partialorder %v13708_v6, %v7010_v22 }
0x155e   :  { %v7068_v15 = vsel %vm7052_vm8, %v9327_v40, 4  ;;  %vm6946_vm7 = vcmp.eq.s32.totalorder %v9327_v40, %v13830_v55 }
0x155f   :  { %v13835_v3 = vsel %vm299_vm2, %v7068_v15, 2147483647  ;;  %v13844_v4 = vsel %vm6946_vm7, -inf, %v13463_v14 }
0x1560   :  { %v7114_v23 = vshra.s32 %v13835_v3, 16  ;;  %v7026_v6 = vsel %vm299_vm2, %v13844_v4, -inf }
0x1561   :  { %7027 = vmax.xlane.f32.xlu2 %v7026_v6 }
0x1562   :  { %v13849_v52 = vcvt.s32.f32 %v7114_v23  ;;  %v6860_v23 = vcvt.f32.s32 %v13734_v20 }
0x1564   :  { %v7013_v51 = vpop.xlane.xlu0 %7012  ;;  %7117 = vmin.xlane.f32.xlu1 %v13849_v52  ;;  %v6843_v48 = vpop.xlane.xlu1 %6842  ;;  %v6861_v20 = vshll.u32 %v6860_v23, 16 }
0x1565   :  { %vm7053_vm1 = vcmp.ge.f32.partialorder %v13726_v35, %v7013_v51  ;;  %v6844_v25 = vcvt.f32.s32 %v6843_v48 }
0x1566   :  { %v7069_v22 = vsel %vm7053_vm1, %v9327_v40, 4 }
0x1567   :  { %v13855_v15 = vsel %vm299_vm2, %v7069_v22, 2147483647  ;;  %v13857_v42 = vadd.s32 %v6846_v1, %v6844_v25 }
0x1568   :  { %v7129_v28 = vshra.s32 %v13855_v15, 16 }
0x1569   :  { %vm6947_vm6 = vcmp.eq.s32.totalorder %v9327_v40, %v13857_v42 }
0x156a   :  { %v13863_v6 = vcvt.s32.f32 %v7129_v28  ;;  %v13869_v35 = vsel %vm6947_vm6, -inf, %v13481_v26 }
0x156b   :  { %v7029_v7 = vsel %vm299_vm2, %v13869_v35, -inf }
0x156c   :  { %7132 = vmin.xlane.f32.xlu1 %v13863_v6  ;;  %v7016_v51 = vpop.xlane.xlu0 %7015  ;;  %7030 = vmax.xlane.f32.xlu2 %v7029_v7  ;;  %v6858_v48 = vpop.xlane.xlu1 %6857 }
0x156d   :  { %vm7054_vm14 = vcmp.ge.f32.partialorder %v13744_v33, %v7016_v51  ;;  %v6859_v1 = vcvt.f32.s32 %v6858_v48 }
0x156e   :  { %v7070_v28 = vsel %vm7054_vm14, %v9327_v40, 4 }
0x156f   :  { %v13877_v25 = vsel %vm299_vm2, %v7070_v28, 2147483647  ;;  %v13879_v22 = vadd.s32 %v6861_v20, %v6859_v1 }
0x1570   :  { %v7144_v2 = vshra.s32 %v13877_v25, 16 }
0x1571   :  { %vm6948_vm0 = vcmp.eq.s32.totalorder %v9327_v40, %v13879_v22 }
0x1572   :  { %v13885_v7 = vcvt.s32.f32 %v7144_v2  ;;  %v13891_v33 = vsel %vm6948_vm0, -inf, %v13491_v12 }
0x1573   :  { %v7032_v23 = vsel %vm299_vm2, %v13891_v33, -inf }
0x1574   :  { %7147 = vmin.xlane.f32.xlu1 %v13885_v7  ;;  %v6873_v51 = vpop.xlane.xlu0 %6872  ;;  %v7019_v48 = vpop.xlane.xlu2 %7018  ;;  %7033 = vmax.xlane.f32.xlu2 %v7032_v23 }
0x1575   :  { %v6874_v20 = vcvt.f32.s32 %v6873_v51  ;;  %vm7055_vm8 = vcmp.ge.f32.partialorder %v13762_v38, %v7019_v48 }
0x1576   :  { %v7071_v2 = vsel %vm7055_vm8, %v9327_v40, 4 }
0x1577   :  { %v13898_v1 = vadd.s32 %v6876_v8, %v6874_v20  ;;  %v13901_v28 = vsel %vm299_vm2, %v7071_v2, 2147483647 }
0x1578   :  { %v7159_v17 = vshra.s32 %v13901_v28, 16 }
0x1579   :  { %vm14647_vm1 = vcmp.eq.s32.totalorder %v9327_v40, %v13898_v1 }
0x157a   :  { %v13911_v62 = vsel %vm14647_vm1, -inf, %v13506_v44  ;;  %v13913_v38 = vcvt.s32.f32 %v7159_v17 }
0x157b   :  { %v7035_v23 = vsel %vm299_vm2, %v13911_v62, -inf }
0x157c   :  { %7036 = vmax.xlane.f32.xlu1 %v7035_v23  ;;  %v6888_v51 = vpop.xlane.xlu0 %6887  ;;  %7162 = vmin.xlane.f32.xlu0 %v13913_v38  ;;  %v7022_v48 = vpop.xlane.xlu2 %7021 }
0x157d   :  { %v6889_v8 = vcvt.f32.s32 %v6888_v51  ;;  %vm7056_vm14 = vcmp.ge.f32.partialorder %v13780_v37, %v7022_v48 }
0x157e   :  { %v7072_v20 = vsel %vm7056_vm14, %v9327_v40, 4 }
0x157f   :  { %v13920_v2 = vadd.s32 %v6891_v9, %v6889_v8  ;;  %v13923_v34 = vsel %vm299_vm2, %v7072_v20, 2147483647 }
0x1580   :  { %v7174_v17 = vshra.s32 %v13923_v34, 16 }
0x1581   :  { %vm14640_vm8 = vcmp.eq.s32.totalorder %v9327_v40, %v13920_v2 }
0x1582   :  { %v13933_v58 = vsel %vm14640_vm8, -inf, %v13520_v61  ;;  %v13935_v37 = vcvt.s32.f32 %v7174_v17 }
0x1583   :  { %v7038_v23 = vsel %vm299_vm2, %v13933_v58, -inf }
0x1584   :  { %7039 = vmax.xlane.f32.xlu1 %v7038_v23  ;;  %v6903_v51 = vpop.xlane.xlu0 %6902  ;;  %7177 = vmin.xlane.f32.xlu0 %v13935_v37  ;;  %v7025_v48 = vpop.xlane.xlu2 %7024 }
0x1585   :  { %v6904_v9 = vcvt.f32.s32 %v6903_v51  ;;  %vm7057_vm14 = vcmp.ge.f32.partialorder %v13797_v49, %v7025_v48  ;;  %v6921_v48 = vshll.u32 %v6920_v56, 16 }
0x1586   :  { %v7073_v8 = vsel %vm7057_vm14, %v9327_v40, 4 }
0x1587   :  { %v13942_v20 = vadd.s32 %v6906_v5, %v6904_v9  ;;  %v13945_v31 = vsel %vm299_vm2, %v7073_v8, 2147483647  ;;  %v6935_v9 = vcvt.f32.s32 %v13807_v43 }
0x1588   :  { %v7189_v17 = vshra.s32 %v13945_v31, 16 }
0x1589   :  { %vm14641_vm8 = vcmp.eq.s32.totalorder %v9327_v40, %v13942_v20  ;;  %v6936_v56 = vshll.u32 %v6935_v9, 16 }
0x158a   :  { %v13955_v36 = vsel %vm14641_vm8, -inf, %v13534_v11  ;;  %v13957_v49 = vcvt.s32.f32 %v7189_v17 }
0x158b   :  { %v7041_v23 = vsel %vm299_vm2, %v13955_v36, -inf }
0x158c   :  { %7042 = vmax.xlane.f32.xlu1 %v7041_v23  ;;  %v6918_v51 = vpop.xlane.xlu0 %6917  ;;  %7192 = vmin.xlane.f32.xlu0 %v13957_v49 }
0x158d   :  { %v6919_v54 = vcvt.f32.s32 %v6918_v51 }
0x158f   :  { %v13962_v5 = vadd.s32 %v6921_v48, %v6919_v54 }
0x1591   :  { %14900 = vst [vmem:[#allocation3_spill] sm:$0xff] %v13962_v5  ;;  %vm14642_vm14 = vcmp.eq.s32.totalorder %v9327_v40, %v13962_v5 }
0x1592   :  { %v13971_v8 = vsel %vm14642_vm14, -inf, %v13546_v45 }
0x1593   :  { %v7044_v17 = vsel %vm299_vm2, %v13971_v8, -inf }
0x1594   :  { %7045 = vmax.xlane.f32.xlu1 %v7044_v17  ;;  %v6933_v23 = vpop.xlane.xlu0 %6932  ;;  %v7083_v17 = vand.u32 65535, %v13814_v29  ;;  %v7113_v29 = vand.u32 65535, %v13835_v3 }
0x1595   :  { %v6934_v51 = vcvt.f32.s32 %v6933_v23 }
0x1596   :  { %v7085_v9 = vcvt.s32.f32 %v7083_v17 }
0x1597   :  { %v13975_v48 = vadd.s32 %v6936_v56, %v6934_v51  ;;  %v7098_v56 = vand.u32 65535, %v13824_v41 }
0x1599   :  { %14901 = vst [vmem:[#allocation6_spill] sm:$0xff] %v13975_v48  ;;  %vm14644_vm8 = vcmp.eq.s32.totalorder %v9327_v40, %v13975_v48  ;;  %v7100_v48 = vcvt.s32.f32 %v7098_v56 }
0x159a   :  { %v13983_v43 = vsel %vm14644_vm8, -inf, %v13551_v10 }
0x159b   :  { %v7047_v54 = vsel %vm299_vm2, %v13983_v43, -inf }
0x159c   :  { %7048 = vmax.xlane.f32.xlu1 %v7047_v54 }
0x15c7   :  { %v13988_v18 = vpop.xlane.xlu1 %7087 }
0x15c8   :  { %vm7089_vm14 = vcmp.eq.f32.partialorder %v13817_v30, %v13988_v18 }
0x15c9   :  { %v7090_v23 = vsel %vm7089_vm14, %v7085_v9, inf  ;;  %v7115_v9 = vcvt.s32.f32 %v7113_v29 }
0x15ca   :  { %7091 = vmin.xlane.f32.xlu2 %v7090_v23 }
0x15cf   :  { %v13993_v51 = vpop.xlane.xlu1 %7102 }
0x15d0   :  { %vm7104_vm8 = vcmp.eq.f32.partialorder %v13827_v60, %v13993_v51 }
0x15d1   :  { %v7105_v10 = vsel %vm7104_vm8, %v7100_v48, inf }
0x15d2   :  { %7106 = vmin.xlane.f32.xlu2 %v7105_v10  ;;  %v7128_v10 = vand.u32 65535, %v13855_v15  ;;  %v7143_v15 = vand.u32 65535, %v13877_v25 }
0x15d4   :  { %v7028_v54 = vpop.xlane.xlu2 %7027  ;;  %v7130_v56 = vcvt.s32.f32 %v7128_v10 }
0x15d5   :  { %vm7058_vm1 = vcmp.ge.f32.partialorder %v13844_v4, %v7028_v54 }
0x15d6   :  { %v7074_v17 = vsel %vm7058_vm1, %v9327_v40, 4 }
0x15d7   :  { %v14000_v30 = vpop.xlane.xlu1 %7117  ;;  %v14003_v41 = vsel %vm299_vm2, %v7074_v17, 2147483647 }
0x15d8   :  { %vm7119_vm14 = vcmp.eq.f32.partialorder %v13849_v52, %v14000_v30  ;;  %v7204_v60 = vshra.s32 %v14003_v41, 16 }
0x15d9   :  { %v7120_v48 = vsel %vm7119_vm14, %v7115_v9, inf }
0x15da   :  { %7121 = vmin.xlane.f32.xlu2 %v7120_v48  ;;  %v14009_v3 = vcvt.s32.f32 %v7204_v60  ;;  %v7145_v48 = vcvt.s32.f32 %v7143_v15 }
0x15dc   :  { %7207 = vmin.xlane.f32.xlu0 %v14009_v3 }
0x15df   :  { %v7031_v4 = vpop.xlane.xlu2 %7030  ;;  %v14012_v23 = vpop.xlane.xlu1 %7132 }
0x15e0   :  { %vm7059_vm1 = vcmp.ge.f32.partialorder %v13869_v35, %v7031_v4  ;;  %vm7134_vm8 = vcmp.eq.f32.partialorder %v13863_v6, %v14012_v23  ;;  %v7158_v4 = vand.u32 65535, %v13901_v28 }
0x15e1   :  { %v7075_v52 = vsel %vm7059_vm1, %v9327_v40, 4  ;;  %v7135_v29 = vsel %vm7134_vm8, %v7130_v56, inf }
0x15e2   :  { %v14019_v54 = vsel %vm299_vm2, %v7075_v52, 2147483647  ;;  %7136 = vmin.xlane.f32.xlu2 %v7135_v29  ;;  %v7160_v15 = vcvt.s32.f32 %v7158_v4 }
0x15e3   :  { %v7219_v17 = vshra.s32 %v14019_v54, 16 }
0x15e5   :  { %v14023_v9 = vcvt.s32.f32 %v7219_v17 }
0x15e7   :  { %7222 = vmin.xlane.f32.xlu0 %v14023_v9  ;;  %v7034_v60 = vpop.xlane.xlu2 %7033  ;;  %v14026_v35 = vpop.xlane.xlu1 %7147 }
0x15e8   :  { %vm7060_vm14 = vcmp.ge.f32.partialorder %v13891_v33, %v7034_v60  ;;  %vm7149_vm1 = vcmp.eq.f32.partialorder %v13885_v7, %v14026_v35  ;;  %v7173_v60 = vand.u32 65535, %v13923_v34  ;;  %v7154_v16 = vcvt.f32.s32 %v14026_v35 }
0x15e9   :  { %v7076_v6 = vsel %vm7060_vm14, %v9327_v40, 4  ;;  %v7150_v10 = vsel %vm7149_vm1, %v7145_v48, inf }
0x15ea   :  { %v14033_v25 = vsel %vm299_vm2, %v7076_v6, 2147483647  ;;  %7151 = vmin.xlane.f32.xlu2 %v7150_v10  ;;  %v7175_v4 = vcvt.s32.f32 %v7173_v60 }
0x15eb   :  { %v7234_v56 = vshra.s32 %v14033_v25, 16 }
0x15ed   :  { %v14037_v52 = vcvt.s32.f32 %v7234_v56 }
0x15ef   :  { %v14039_v29 = vpop.xlane.xlu0 %7162  ;;  %7237 = vmin.xlane.f32.xlu0 %v14037_v52  ;;  %v7037_v33 = vpop.xlane.xlu1 %7036 }
0x15f0   :  { %vm7164_vm8 = vcmp.eq.f32.partialorder %v13913_v38, %v14039_v29  ;;  %vm7061_vm14 = vcmp.ge.f32.partialorder %v13911_v62, %v7037_v33  ;;  %v7188_v33 = vand.u32 65535, %v13945_v31  ;;  %v7169_v24 = vcvt.f32.s32 %v14039_v29 }
0x15f1   :  { %v7077_v7 = vsel %vm7061_vm14, %v9327_v40, 4  ;;  %v7165_v17 = vsel %vm7164_vm8, %v7160_v15, inf }
0x15f2   :  { %v14047_v28 = vsel %vm299_vm2, %v7077_v7, 2147483647  ;;  %7166 = vmin.xlane.f32.xlu1 %v7165_v17  ;;  %v7190_v60 = vcvt.s32.f32 %v7188_v33  ;;  %v7170_v29 = vshll.u32 %v7169_v24, 16 }
0x15f3   :  { %v7249_v48 = vshra.s32 %v14047_v28, 16 }
0x15f5   :  { %v14051_v6 = vcvt.s32.f32 %v7249_v48 }
0x15f7   :  { %v14053_v10 = vpop.xlane.xlu0 %7177  ;;  %7252 = vmin.xlane.f32.xlu2 %v14051_v6  ;;  %v7040_v38 = vpop.xlane.xlu1 %7039 }
0x15f8   :  { %vm7179_vm1 = vcmp.eq.f32.partialorder %v13935_v37, %v14053_v10  ;;  %vm7062_vm8 = vcmp.ge.f32.partialorder %v13933_v58, %v7040_v38 }
0x15f9   :  { %v7078_v62 = vsel %vm7062_vm8, %v9327_v40, 4  ;;  %v7180_v56 = vsel %vm7179_vm1, %v7175_v4, inf }
0x15fa   :  { %v14061_v34 = vsel %vm299_vm2, %v7078_v62, 2147483647  ;;  %7181 = vmin.xlane.f32.xlu0 %v7180_v56 }
0x15fb   :  { %v7264_v15 = vshra.s32 %v14061_v34, 16 }
0x15fd   :  { %v14065_v7 = vcvt.s32.f32 %v7264_v15  ;;  %v14090_v15 = vpop.f32.mrf.mxu1 }
0x15fe   :  { %14902 = vst [vmem:[#allocation38_spill] sm:$0xff] %v14090_v15 }
0x15ff   :  { %v14067_v17 = vpop.xlane.xlu0 %7192  ;;  %7267 = vmin.xlane.f32.xlu1 %v14065_v7  ;;  %v7043_v37 = vpop.xlane.xlu1 %7042 }
0x1600   :  { %vm7194_vm14 = vcmp.eq.f32.partialorder %v13957_v49, %v14067_v17  ;;  %vm7063_vm1 = vcmp.ge.f32.partialorder %v13955_v36, %v7043_v37 }
0x1601   :  { %v7079_v58 = vsel %vm7063_vm1, %v9327_v40, 4  ;;  %v7195_v48 = vsel %vm7194_vm14, %v7190_v60, inf  ;;  %v7094_v60 = vcvt.f32.s32 %v13988_v18 }
0x1602   :  { %v14075_v31 = vsel %vm299_vm2, %v7079_v58, 2147483647  ;;  %7196 = vmin.xlane.f32.xlu2 %v7195_v48 }
0x1603   :  { %v7279_v38 = vshra.s32 %v14075_v31, 16  ;;  %v7095_v48 = vshll.u32 %v7094_v60, 16 }
0x1605   :  { %v14078_v4 = vcvt.s32.f32 %v7279_v38  ;;  %v14092_v37 = vpop.f32.mrf.mxu1 }
0x1606   :  { %14903 = vst [vmem:[#allocation39_spill] sm:$0xff] %v14092_v37 }
0x1607   :  { %7282 = vmin.xlane.f32.xlu0 %v14078_v4  ;;  %v7046_v62 = vpop.xlane.xlu1 %7045 }
0x1608   :  { %vm7064_vm8 = vcmp.ge.f32.partialorder %v13971_v8, %v7046_v62 }
0x1609   :  { %v7080_v49 = vsel %vm7064_vm8, %v9327_v40, 4 }
0x160a   :  { %v14084_v36 = vsel %vm299_vm2, %v7080_v49, 2147483647  ;;  %v7109_v49 = vcvt.f32.s32 %v13993_v51 }
0x160b   :  { %v7294_v56 = vshra.s32 %v14084_v36, 16 }
0x160c   :  { %v7110_v18 = vshll.u32 %v7109_v49, 16 }
0x160d   :  { %v14087_v33 = vcvt.s32.f32 %v7294_v56  ;;  %v14095_v38 = vpop.f32.mrf.mxu1  ;;  %v6954_v56 = vsel %vm6938_vm12, %v13365_v50, 0.0 }
0x160f   :  { %7297 = vmin.xlane.f32.xlu2 %v14087_v33  ;;  %v7049_v51 = vpop.xlane.xlu1 %7048 }
0x1610   :  { %vm7065_vm12 = vcmp.ge.f32.partialorder %v13983_v43, %v7049_v51 }
0x163d   :  { %v7092_v58 = vpop.xlane.xlu2 %7091 }
0x163e   :  { %v7093_v8 = vcvt.f32.s32 %v7092_v58  ;;  %v14106_v58 = vpop.f32.mrf.mxu1 }
0x1640   :  { %v7096_v62 = vadd.s32 %v7095_v48, %v7093_v8  ;;  %v7124_v48 = vcvt.f32.s32 %v14000_v30  ;;  %v7081_v30 = vsel %vm7065_vm12, %v9327_v40, 4 }
0x1641   :  { %v14126_v43 = vsel %vm299_vm2, %v7081_v30, 2147483647 }
0x1642   :  { %vm7322_vm14 = vcmp.eq.s32.totalorder %v9327_v40, %v7096_v62 }
0x1643   :  { %v7338_v15 = vsel %vm7322_vm14, %v13365_v50, 0.0  ;;  %v6955_v50 = vsel %vm6939_vm4, %v13375_v13, 0.0 }
0x1644   :  { %v7354_v37 = vadd.f32 %v7338_v15, %v6954_v56 }
0x1645   :  { %v7107_v5 = vpop.xlane.xlu2 %7106 }
0x1646   :  { %v7108_v45 = vcvt.f32.s32 %v7107_v5  ;;  %8445 = vmatmul.msk.f32.vlgmr.msra.gmra.mxu1 %vm299_vm2, %v7354_v37  ;;  %8462 = vmatmul.msk.f32.vlgmr.msra.gmra.mxu2 %vm299_vm2, %v7354_v37  ;;  %v7203_v5 = vand.u32 65535, %v14003_v41  ;;  %v7125_v37 = vshll.u32 %v7124_v48, 16  ;;  %v14129_v56 = vpop.f32.mrf.mxu1  ;;  %v7218_v48 = vand.u32 65535, %v14019_v54 }
0x1647   :  { %v6957_v54 = vsel %vm6941_vm13, %v13395_v19, 0.0 }
0x1648   :  { %v7111_v60 = vadd.s32 %v7110_v18, %v7108_v45  ;;  %v7205_v0 = vcvt.s32.f32 %v7203_v5  ;;  %v6956_v18 = vsel %vm6940_vm3, %v13385_v59, 0.0 }
0x164a   :  { %vm7323_vm1 = vcmp.eq.s32.totalorder %v9327_v40, %v7111_v60 }
0x164b   :  { %v7339_v53 = vsel %vm7323_vm1, %v13375_v13, 0.0  ;;  %v7139_v13 = vcvt.f32.s32 %v14012_v23 }
0x164c   :  { %v7355_v15 = vadd.f32 %v7339_v53, %v6955_v50 }
0x164d   :  { %v7122_v45 = vpop.xlane.xlu2 %7121  ;;  %v7140_v50 = vshll.u32 %v7139_v13, 16  ;;  %v7155_v13 = vshll.u32 %v7154_v16, 16 }
0x164e   :  { %v7123_v8 = vcvt.f32.s32 %v7122_v45  ;;  %8446 = vmatmul.msk.f32.gmra.mxu1 %vm299_vm2, %v7355_v15  ;;  %8463 = vmatmul.msk.f32.gmra.mxu2 %vm299_vm2, %v7355_v15  ;;  %v7220_v45 = vcvt.s32.f32 %v7218_v48  ;;  %v14154_v35 = vpop.f32.mrf.mxu1  ;;  %v7248_v48 = vand.u32 65535, %v14047_v28  ;;  %v6959_v28 = vsel %vm6943_vm5, %v13415_v46, 0.0 }
0x164f   :  { %v14120_v49 = vpop.xlane.xlu0 %7207 }
0x1650   :  { %v7126_v62 = vadd.s32 %v7125_v37, %v7123_v8  ;;  %vm7209_vm4 = vcmp.eq.f32.partialorder %v14009_v3, %v14120_v49  ;;  %v7309_v3 = vshra.s32 %v14126_v43, 16 }
0x1651   :  { %v7210_v41 = vsel %vm7209_vm4, %v7205_v0, inf  ;;  %v7233_v0 = vand.u32 65535, %v14033_v25 }
0x1652   :  { %vm7324_vm8 = vcmp.eq.s32.totalorder %v9327_v40, %v7126_v62  ;;  %7211 = vmin.xlane.f32.xlu1 %v7210_v41  ;;  %v14140_v15 = vcvt.s32.f32 %v7309_v3 }
0x1653   :  { %v7340_v60 = vsel %vm7324_vm8, %v13385_v59, 0.0 }
0x1654   :  { %v7356_v51 = vadd.f32 %v7340_v60, %v6956_v18  ;;  %v7235_v18 = vcvt.s32.f32 %v7233_v0  ;;  %v6958_v60 = vsel %vm6942_vm10, %v13405_v27, 0.0 }
0x1655   :  { %v7137_v23 = vpop.xlane.xlu2 %7136 }
0x1656   :  { %v7138_v53 = vcvt.f32.s32 %v7137_v23  ;;  %8447 = vmatmul.msk.f32.gmra.mxu1 %vm299_vm2, %v7356_v51  ;;  %8464 = vmatmul.msk.f32.gmra.mxu2 %vm299_vm2, %v7356_v51 }
0x1658   :  { %v7141_v5 = vadd.s32 %v7140_v50, %v7138_v53  ;;  %v14173_v53 = vpop.f32.mrf.mxu1 }
0x165a   :  { %vm7325_vm3 = vcmp.eq.s32.totalorder %v9327_v40, %v7141_v5  ;;  %v14144_v59 = vpop.xlane.xlu0 %7222  ;;  %7312 = vmin.xlane.f32.xlu1 %v14140_v15  ;;  %v7250_v5 = vcvt.s32.f32 %v7248_v48 }
0x165b   :  { %v7341_v37 = vsel %vm7325_vm3, %v13395_v19, 0.0  ;;  %vm7224_vm14 = vcmp.eq.f32.partialorder %v14023_v9, %v14144_v59 }
0x165c   :  { %v7357_v8 = vadd.f32 %v7341_v37, %v6957_v54  ;;  %v7225_v30 = vsel %vm7224_vm14, %v7220_v45, inf }
0x165d   :  { %v7152_v62 = vpop.xlane.xlu2 %7151  ;;  %7226 = vmin.xlane.f32.xlu0 %v7225_v30 }
0x165e   :  { %v7153_v41 = vcvt.f32.s32 %v7152_v62  ;;  %8448 = vmatmul.msk.f32.gmra.mxu1 %vm299_vm2, %v7357_v8  ;;  %8465 = vmatmul.msk.f32.gmra.mxu2 %vm299_vm2, %v7357_v8  ;;  %v7263_v8 = vand.u32 65535, %v14061_v34  ;;  %v6960_v34 = vsel %vm6944_vm9, %v13426_v47, 0.0 }
0x1660   :  { %v7156_v19 = vadd.s32 %v7155_v13, %v7153_v41  ;;  %v14189_v32 = vpop.f32.mrf.mxu1  ;;  %v7265_v0 = vcvt.s32.f32 %v7263_v8 }
0x1662   :  { %vm7326_vm13 = vcmp.eq.s32.totalorder %v9327_v40, %v7156_v19  ;;  %v14161_v9 = vpop.xlane.xlu0 %7237 }
0x1663   :  { %v7342_v25 = vsel %vm7326_vm13, %v13405_v27, 0.0  ;;  %vm7239_vm1 = vcmp.eq.f32.partialorder %v14037_v52, %v14161_v9  ;;  %v7184_v27 = vcvt.f32.s32 %v14053_v10  ;;  %vm14904_vm13 = vcmp.eq.s32.totalorder %v9327_v40, %v13898_v1 }
0x1664   :  { %v7358_v51 = vadd.f32 %v7342_v25, %v6958_v60  ;;  %v7240_v3 = vsel %vm7239_vm1, %v7235_v18, inf  ;;  %v7278_v18 = vand.u32 65535, %v14075_v31 }
0x1665   :  { %7241 = vmin.xlane.f32.xlu2 %v7240_v3  ;;  %v7167_v23 = vpop.xlane.xlu1 %7166  ;;  %v7185_v10 = vshll.u32 %v7184_v27, 16 }
0x1666   :  { %v7168_v50 = vcvt.f32.s32 %v7167_v23  ;;  %8449 = vmatmul.msk.f32.gmra.mxu1 %vm299_vm2, %v7358_v51  ;;  %8466 = vmatmul.msk.f32.gmra.mxu2 %vm299_vm2, %v7358_v51  ;;  %v6961_v51 = vsel %vm6945_vm15, %v13435_v57, 0.0 }
0x1668   :  { %v7171_v39 = vadd.s32 %v7170_v29, %v7168_v50  ;;  %v14205_v21 = vpop.f32.mrf.mxu1  ;;  %v7293_v29 = vand.u32 65535, %v14084_v36 }
0x166a   :  { %vm7327_vm10 = vcmp.eq.s32.totalorder %v9327_v40, %v7171_v39  ;;  %v14177_v52 = vpop.xlane.xlu2 %7252  ;;  %v7295_v63 = vcvt.s32.f32 %v7293_v29  ;;  %v7387_v39 = vpop.f32.mrf.mxu0 }
0x166b   :  { %v7343_v16 = vsel %vm7327_vm10, %v13415_v46, 0.0  ;;  %vm7254_vm12 = vcmp.eq.f32.partialorder %v14051_v6, %v14177_v52  ;;  %v7199_v46 = vcvt.f32.s32 %v14067_v17  ;;  %vm14905_vm10 = vcmp.eq.s32.totalorder %v9327_v40, %v13920_v2 }
0x166c   :  { %v7359_v45 = vadd.f32 %v7343_v16, %v6959_v28  ;;  %v7255_v54 = vsel %vm7254_vm12, %v7250_v5, inf  ;;  %v14233_v5 = vld [vmem:[%s14593_s5] ss:$0 sm:$0xff] }
0x166d   :  { %v7182_v37 = vpop.xlane.xlu0 %7181  ;;  %7256 = vmin.xlane.f32.xlu0 %v7255_v54  ;;  %v7200_v17 = vshll.u32 %v7199_v46, 16  ;;  %v7388_v28 = vadd.f32 %v14233_v5, %v7387_v39 }
0x166e   :  { %v7183_v30 = vcvt.f32.s32 %v7182_v37  ;;  %8450 = vmatmul.msk.f32.gmra.mxu1 %vm299_vm2, %v7359_v45  ;;  %8467 = vmatmul.msk.f32.gmra.mxu2 %vm299_vm2, %v7359_v45 }
0x166f   :  { %v7435_v16 = vmul.f32 %v7388_v28, %v7388_v28 }
0x1670   :  { %v7186_v62 = vadd.s32 %v7185_v10, %v7183_v30  ;;  %v14220_v48 = vpop.f32.mrf.mxu1 }
0x1672   :  { %vm7328_vm5 = vcmp.eq.s32.totalorder %v9327_v40, %v7186_v62  ;;  %v14193_v6 = vpop.xlane.xlu1 %7267  ;;  %v7390_v36 = vpop.f32.mrf.mxu0 }
0x1673   :  { %v7344_v13 = vsel %vm7328_vm5, %v13426_v47, 0.0  ;;  %vm7269_vm4 = vcmp.eq.f32.partialorder %v14065_v7, %v14193_v6  ;;  %v7280_v7 = vcvt.s32.f32 %v7278_v18  ;;  %v7391_v37 = vadd.f32 %v14233_v5, %v7390_v36 }
0x1674   :  { %v7360_v41 = vadd.f32 %v7344_v13, %v6960_v34  ;;  %v7270_v19 = vsel %vm7269_vm4, %v7265_v0, inf  ;;  %vm14906_vm5 = vcmp.eq.s32.totalorder %v9327_v40, %v13942_v20  ;;  %v14907_v20 = vld [vmem:[#allocation2_spill] sm:$0xff] }
0x1675   :  { %v7197_v24 = vpop.xlane.xlu2 %7196  ;;  %7271 = vmin.xlane.f32.xlu1 %v7270_v19  ;;  %v7436_v10 = vmul.f32 %v7391_v37, %v7391_v37 }
0x1676   :  { %v7198_v60 = vcvt.f32.s32 %v7197_v24  ;;  %8451 = vmatmul.msk.f32.gmra.mxu1 %vm299_vm2, %v7360_v41  ;;  %8468 = vmatmul.msk.f32.gmra.mxu2 %vm299_vm2, %v7360_v41 }
0x1677   :  { %v7452_v62 = vmul.f32 %v7436_v10, %v7391_v37 }
0x1678   :  { %v7201_v25 = vadd.s32 %v7200_v17, %v7198_v60 }
0x1679   :  { %v7468_v19 = vmul.f32 0.044715, %v7452_v62 }
0x167a   :  { %vm7329_vm9 = vcmp.eq.s32.totalorder %v9327_v40, %v7201_v25  ;;  %v14208_v47 = vpop.xlane.xlu0 %7282  ;;  %v7393_v54 = vpop.f32.mrf.mxu0 }
0x167b   :  { %v7345_v31 = vsel %vm7329_vm9, %v13435_v57, 0.0  ;;  %vm7284_vm8 = vcmp.eq.f32.partialorder %v14078_v4, %v14208_v47  ;;  %v14226_v4 = vpop.f32.mrf.mxu1  ;;  %v14242_v46 = vadd.f32 %v14233_v5, %v7393_v54  ;;  %v7484_v18 = vadd.f32 %v7468_v19, %v7391_v37 }
0x167c   :  { %v7361_v3 = vadd.f32 %v7345_v31, %v6961_v51  ;;  %v7285_v23 = vsel %vm7284_vm8, %v7280_v7, inf  ;;  %v7214_v19 = vcvt.f32.s32 %v14120_v49 }
0x167d   :  { %7286 = vmin.xlane.f32.xlu2 %v7285_v23  ;;  %v7437_v13 = vmul.f32 %v14242_v46, %v14242_v46  ;;  %v7500_v51 = vmul.f32 0.7978846, %v7484_v18 }
0x167e   :  { %8452 = vmatmul.msk.f32.gmra.mxu1 %vm299_vm2, %v7361_v3  ;;  %8469 = vmatmul.msk.f32.gmra.mxu2 %vm299_vm2, %v7361_v3 }
0x167f   :  { %v7453_v24 = vmul.f32 %v7437_v13, %v14242_v46 }
0x1681   :  { %v7469_v31 = vmul.f32 0.044715, %v7453_v24 }
0x1682   :  { %v14222_v50 = vpop.xlane.xlu2 %7297  ;;  %v7396_v34 = vpop.f32.mrf.mxu0 }
0x1683   :  { %vm7299_vm15 = vcmp.eq.f32.partialorder %v14087_v33, %v14222_v50  ;;  %v14228_v27 = vpop.f32.mrf.mxu1  ;;  %v7451_v33 = vmul.f32 %v7435_v16, %v7388_v28  ;;  %v14248_v17 = vadd.f32 %v14233_v5, %v7396_v34 }
0x1684   :  { %v7300_v57 = vsel %vm7299_vm15, %v7295_v63, inf  ;;  %v7485_v63 = vadd.f32 %v7469_v31, %v14242_v46 }
0x1685   :  { %7301 = vmin.xlane.f32.xlu0 %v7300_v57  ;;  %v7467_v8 = vmul.f32 0.044715, %v7451_v33  ;;  %v7438_v7 = vmul.f32 %v14248_v17, %v14248_v17 }
0x1686   :  { %v7501_v54 = vmul.f32 0.7978846, %v7485_v63 }
0x1687   :  { %v7483_v0 = vadd.f32 %v7467_v8, %v7388_v28  ;;  %v7454_v29 = vmul.f32 %v7438_v7, %v14248_v17 }
0x1689   :  { %v7499_v41 = vmul.f32 0.7978846, %v7483_v0  ;;  %v7470_v33 = vmul.f32 0.044715, %v7454_v29 }
0x168a   :  { %v7399_v25 = vpop.f32.mrf.mxu0 }
0x168b   :  { %v14236_v45 = vpop.f32.mrf.mxu1  ;;  %8869 = vtanh.f32 %v7499_v41  ;;  %v14255_v23 = vadd.f32 %v14233_v5, %v7399_v25  ;;  %v7486_v34 = vadd.f32 %v7470_v33, %v14248_v17  ;;  %v7308_v33 = vand.u32 65535, %v14126_v43 }
0x168c   :  { %8871 = vtanh.f32 %v7500_v51  ;;  %v7229_v43 = vcvt.f32.s32 %v14144_v59 }
0x168d   :  { %v7439_v39 = vmul.f32 %v14255_v23, %v14255_v23  ;;  %8873 = vtanh.f32 %v7501_v54  ;;  %v7502_v51 = vmul.f32 0.7978846, %v7486_v34 }
0x168f   :  { %v7455_v62 = vmul.f32 %v7439_v39, %v14255_v23  ;;  %8875 = vtanh.f32 %v7502_v51  ;;  %v7310_v51 = vcvt.s32.f32 %v7308_v33 }
0x1691   :  { %v8870_v3 = vpop.eup %8869  ;;  %v7471_v18 = vmul.f32 0.044715, %v7455_v62 }
0x1692   :  { %v7531_v57 = vadd.f32 1.0, %v8870_v3  ;;  %v7402_v16 = vpop.f32.mrf.mxu0  ;;  %v8872_v8 = vpop.eup %8871 }
0x1693   :  { %v14239_v30 = vpop.f32.mrf.mxu1  ;;  %v14265_v0 = vadd.f32 %v14233_v5, %v7402_v16  ;;  %v7532_v41 = vadd.f32 1.0, %v8872_v8  ;;  %v8874_v63 = vpop.eup %8873 }
0x1694   :  { %v7547_v10 = vmul.f32 0.5, %v7531_v57  ;;  %v7215_v57 = vshll.u32 %v7214_v19, 16  ;;  %v7533_v8 = vadd.f32 1.0, %v8874_v63 }
0x1695   :  { %v7440_v25 = vmul.f32 %v14265_v0, %v14265_v0  ;;  %v7548_v29 = vmul.f32 0.5, %v7532_v41 }
0x1696   :  { %v7563_v13 = vmul.f32 %v7547_v10, %v7388_v28  ;;  %v7487_v28 = vadd.f32 %v7471_v18, %v14255_v23 }
0x1697   :  { %v7456_v16 = vmul.f32 %v7440_v25, %v14265_v0  ;;  %v7564_v10 = vmul.f32 %v7548_v29, %v7391_v37 }
0x1698   :  { %v7503_v34 = vmul.f32 0.7978846, %v7487_v28 }
0x169a   :  { %v7405_v31 = vpop.f32.mrf.mxu0  ;;  %8877 = vtanh.f32 %v7503_v34 }
0x169b   :  { %v14250_v60 = vpop.f32.mrf.mxu1  ;;  %v14275_v49 = vadd.f32 %v14233_v5, %v7405_v31  ;;  %v7549_v31 = vmul.f32 0.5, %v7533_v8 }
0x169d   :  { %v7441_v18 = vmul.f32 %v14275_v49, %v14275_v49  ;;  %v7565_v28 = vmul.f32 %v7549_v31, %v14242_v46 }
0x169f   :  { %v7457_v29 = vmul.f32 %v7441_v18, %v14275_v49 }
0x16a1   :  { %v7473_v34 = vmul.f32 0.044715, %v7457_v29 }
0x16a2   :  { %v7408_v25 = vpop.f32.mrf.mxu0 }
0x16a3   :  { %v14261_v36 = vpop.f32.mrf.mxu1  ;;  %v14297_v63 = vadd.f32 %v14233_v5, %v7408_v25  ;;  %v7489_v25 = vadd.f32 %v7473_v34, %v14275_v49 }
0x16a5   :  { %v7442_v8 = vmul.f32 %v14297_v63, %v14297_v63 }
0x16c3   :  { %v7644_v24 = vpop.f32.mrf.mxu1 }
0x16c4   :  { %v7692_v7 = vmul.f32 %v7644_v24, %v7563_v13  ;;  %v6962_v13 = vsel %vm6946_vm7, %v13463_v14, 0.0  ;;  %v7472_v24 = vmul.f32 0.044715, %v7456_v16 }
0x16c5   :  { %v7212_v3 = vpop.xlane.xlu1 %7211 }
0x16c6   :  { %8478 = vmatmul.msk.f32.vlgmr.msra.gmra.mxu3 %vm1860_vm11, %v7692_v7  ;;  %v7213_v39 = vcvt.f32.s32 %v7212_v3  ;;  %v8876_v3 = vpop.eup %8875  ;;  %v7488_v59 = vadd.f32 %v7472_v24, %v14265_v0 }
0x16c8   :  { %v7216_v54 = vadd.s32 %v7215_v57, %v7213_v39  ;;  %v7230_v57 = vshll.u32 %v7229_v43, 16  ;;  %v7458_v43 = vmul.f32 %v7442_v8, %v14297_v63 }
0x16ca   :  { %vm7330_vm3 = vcmp.eq.s32.totalorder %v9327_v40, %v7216_v54 }
0x16cb   :  { %v7647_v62 = vpop.f32.mrf.mxu1  ;;  %v7346_v41 = vsel %vm7330_vm3, %v13463_v14, 0.0  ;;  %vm14913_vm3 = vcmask 64512  }
0x16cc   :  { %v7693_v19 = vmul.f32 %v7647_v62, %v7564_v10  ;;  %v7362_v37 = vadd.f32 %v7346_v41, %v6962_v13  ;;  %v7504_v10 = vmul.f32 0.7978846, %v7488_v59  ;;  %v7244_v62 = vcvt.f32.s32 %v14161_v9  ;;  %v8878_v13 = vpop.eup %8877 }
0x16cd   :  { %v14287_v7 = vpop.xlane.xlu1 %7312  ;;  %v6963_v41 = vsel %vm6947_vm6, %v13481_v26, 0.0  ;;  %v7474_v59 = vmul.f32 0.044715, %v7458_v43 }
0x16ce   :  { %8479 = vmatmul.msk.f32.gmra.mxu3 %vm1860_vm11, %v7693_v19  ;;  %vm7314_vm7 = vcmp.eq.f32.partialorder %v14140_v15, %v14287_v7  ;;  %8453 = vmatmul.msk.f32.gmra.mxu1 %vm299_vm2, %v7362_v37  ;;  %v7534_v15 = vadd.f32 1.0, %v8876_v3  ;;  %8879 = vtanh.f32 %v7504_v10  ;;  %v7245_v9 = vshll.u32 %v7244_v62, 16 }
0x16cf   :  { %8470 = vmatmul.msk.f32.gmra.mxu2 %vm299_vm2, %v7362_v37  ;;  %v7315_v55 = vsel %vm7314_vm7, %v7310_v51, inf  ;;  %v7535_v51 = vadd.f32 1.0, %v8878_v13  ;;  %v7274_v62 = vcvt.f32.s32 %v14193_v6  ;;  %v6965_v13 = vsel %vm14904_vm13, %v13506_v44, 0.0 }
0x16d0   :  { %v7227_v14 = vpop.xlane.xlu0 %7226  ;;  %7316 = vmin.xlane.f32.xlu1 %v7315_v55  ;;  %v7550_v19 = vmul.f32 0.5, %v7534_v15  ;;  %v7505_v55 = vmul.f32 0.7978846, %v7489_v25 }
0x16d1   :  { %v7228_v39 = vcvt.f32.s32 %v7227_v14  ;;  %v7259_v14 = vcvt.f32.s32 %v14177_v52  ;;  %v7490_v52 = vadd.f32 %v7474_v59, %v14297_v63 }
0x16d2   :  { %v7566_v42 = vmul.f32 %v7550_v19, %v14248_v17  ;;  %v7551_v17 = vmul.f32 0.5, %v7535_v51  ;;  %8881 = vtanh.f32 %v7505_v55 }
0x16d3   :  { %v7231_v16 = vadd.s32 %v7230_v57, %v7228_v39  ;;  %v7650_v54 = vpop.f32.mrf.mxu1  ;;  %v6964_v57 = vsel %vm6948_vm0, %v13491_v12, 0.0  ;;  %v7506_v34 = vmul.f32 0.7978846, %v7490_v52 }
0x16d4   :  { %v7694_v33 = vmul.f32 %v7650_v54, %v7565_v28  ;;  %v8880_v29 = vpop.eup %8879 }
0x16d5   :  { %vm7331_vm14 = vcmp.eq.s32.totalorder %v9327_v40, %v7231_v16  ;;  %v7260_v16 = vshll.u32 %v7259_v14, 16  ;;  %v7536_v22 = vadd.f32 1.0, %v8880_v29  ;;  %8883 = vtanh.f32 %v7506_v34 }
0x16d6   :  { %v7347_v46 = vsel %vm7331_vm14, %v13481_v26, 0.0  ;;  %8480 = vmatmul.msk.f32.gmra.mxu3 %vm1860_vm11, %v7694_v33  ;;  %v7567_v33 = vmul.f32 %v7551_v17, %v14255_v23 }
0x16d7   :  { %v7363_v24 = vadd.f32 %v7347_v46, %v6963_v41  ;;  %v7552_v46 = vmul.f32 0.5, %v7536_v22 }
0x16d8   :  { %v7242_v18 = vpop.xlane.xlu2 %7241  ;;  %v8882_v23 = vpop.eup %8881 }
0x16d9   :  { %v7243_v37 = vcvt.f32.s32 %v7242_v18  ;;  %8454 = vmatmul.msk.f32.gmra.mxu1 %vm299_vm2, %v7363_v24  ;;  %8471 = vmatmul.msk.f32.gmra.mxu2 %vm299_vm2, %v7363_v24  ;;  %v7275_v18 = vshll.u32 %v7274_v62, 16  ;;  %v7568_v6 = vmul.f32 %v7552_v46, %v14265_v0 }
0x16db   :  { %v7246_v26 = vadd.s32 %v7245_v9, %v7243_v37  ;;  %v7653_v31 = vpop.f32.mrf.mxu1  ;;  %v7537_v9 = vadd.f32 1.0, %v8882_v23 }
0x16dc   :  { %v7695_v3 = vmul.f32 %v7653_v31, %v7566_v42  ;;  %v6966_v42 = vsel %vm14905_vm10, %v13520_v61, 0.0  ;;  %v8884_v31 = vpop.eup %8883  ;;  %vm14925_vm10 = vcmask 261120  }
0x16dd   :  { %vm7332_vm6 = vcmp.eq.s32.totalorder %v9327_v40, %v7246_v26  ;;  %v7553_v26 = vmul.f32 0.5, %v7537_v9  ;;  %v7538_v59 = vadd.f32 1.0, %v8884_v31 }
0x16de   :  { %v7348_v39 = vsel %vm7332_vm6, %v13491_v12, 0.0  ;;  %8481 = vmatmul.msk.f32.gmra.mxu3 %vm1860_vm11, %v7695_v3 }
0x16df   :  { %v7364_v28 = vadd.f32 %v7348_v39, %v6964_v57  ;;  %v6967_v39 = vsel %vm14906_vm5, %v13534_v11, 0.0 }
0x16e0   :  { %v7257_v15 = vpop.xlane.xlu0 %7256 }
0x16e1   :  { %v7258_v54 = vcvt.f32.s32 %v7257_v15  ;;  %8455 = vmatmul.msk.f32.gmra.mxu1 %vm299_vm2, %v7364_v28  ;;  %8472 = vmatmul.msk.f32.gmra.mxu2 %vm299_vm2, %v7364_v28  ;;  %v7554_v28 = vmul.f32 0.5, %v7538_v59  ;;  %v7319_v59 = vcvt.f32.s32 %v14287_v7 }
0x16e3   :  { %v7261_v10 = vadd.s32 %v7260_v16, %v7258_v54  ;;  %v7656_v8 = vpop.f32.mrf.mxu1 }
0x16e4   :  { %v7696_v12 = vmul.f32 %v7656_v8, %v7567_v33 }
0x16e5   :  { %vm7333_vm0 = vcmp.eq.s32.totalorder %v9327_v40, %v7261_v10 }
0x16e6   :  { %v7349_v41 = vsel %vm7333_vm0, %v13506_v44, 0.0  ;;  %8482 = vmatmul.msk.f32.gmra.mxu3 %vm1860_vm11, %v7696_v12  ;;  %v7289_v44 = vcvt.f32.s32 %v14208_v47  ;;  %v7569_v47 = vmul.f32 %v7553_v26, %v14275_v49 }
0x16e7   :  { %v7365_v19 = vadd.f32 %v7349_v41, %v6965_v13 }
0x16e8   :  { %v7272_v24 = vpop.xlane.xlu1 %7271  ;;  %v7290_v14 = vshll.u32 %v7289_v44, 16 }
0x16e9   :  { %v7273_v43 = vcvt.f32.s32 %v7272_v24  ;;  %8456 = vmatmul.msk.f32.gmra.mxu1 %vm299_vm2, %v7365_v19  ;;  %8473 = vmatmul.msk.f32.gmra.mxu2 %vm299_vm2, %v7365_v19  ;;  %v8494_v19 = vld [vmem:[%s14597_s8 + $0x18] sm:$0xff] }
0x16ea   :  { %7951 = vmatpush.msra.mxu0 %v8494_v19 }
0x16eb   :  { %v7276_v1 = vadd.s32 %v7275_v18, %v7273_v43  ;;  %v7659_v37 = vpop.f32.mrf.mxu1 }
0x16ec   :  { %v7697_v25 = vmul.f32 %v7659_v37, %v7568_v6 }
0x16ed   :  { %vm7334_vm1 = vcmp.eq.s32.totalorder %v9327_v40, %v7276_v1 }
0x16ee   :  { %v7350_v51 = vsel %vm7334_vm1, %v13520_v61, 0.0  ;;  %8483 = vmatmul.msk.f32.gmra.mxu3 %vm1860_vm11, %v7697_v25  ;;  %v7304_v61 = vcvt.f32.s32 %v14222_v50  ;;  %v7570_v50 = vmul.f32 %v7554_v28, %v14297_v63  ;;  %v7411_v63 = vpop.f32.mrf.mxu0 }
0x16ef   :  { %v7366_v0 = vadd.f32 %v7350_v51, %v6966_v42  ;;  %v7412_v34 = vadd.f32 %v14233_v5, %v7411_v63  ;;  %v7725_v42 = vpop.f32.mrf.mxu2 }
0x16f0   :  { %v7287_v3 = vpop.xlane.xlu2 %7286  ;;  %v7305_v16 = vshll.u32 %v7304_v61, 16 }
0x16f1   :  { %v7288_v55 = vcvt.f32.s32 %v7287_v3  ;;  %8457 = vmatmul.msk.f32.gmra.mxu1 %vm299_vm2, %v7366_v0  ;;  %8474 = vmatmul.msk.f32.gmra.mxu2 %vm299_vm2, %v7366_v0  ;;  %v7443_v13 = vmul.f32 %v7412_v34, %v7412_v34 }
0x16f3   :  { %v7291_v29 = vadd.s32 %v7290_v14, %v7288_v55  ;;  %v7662_v2 = vpop.f32.mrf.mxu1  ;;  %v7459_v46 = vmul.f32 %v7443_v13, %v7412_v34 }
0x16f4   :  { %v7698_v57 = vmul.f32 %v7662_v2, %v7569_v47 }
0x16f5   :  { %vm7335_vm12 = vcmp.eq.s32.totalorder %v9327_v40, %v7291_v29  ;;  %v7475_v24 = vmul.f32 0.044715, %v7459_v46 }
0x16f6   :  { %v7351_v17 = vsel %vm7335_vm12, %v13534_v11, 0.0  ;;  %8484 = vmatmul.msk.f32.gmra.mxu3 %vm1860_vm11, %v7698_v57  ;;  %v14908_v11 = vld [vmem:[#allocation3_spill] sm:$0xff]  ;;  %v7414_v62 = vpop.f32.mrf.mxu0  ;;  %vm14929_vm12 = vmmov %vm14925_vm10 }
0x16f7   :  { %v7367_v15 = vadd.f32 %v7351_v17, %v6967_v39  ;;  %vm14909_vm9 = vcmp.eq.s32.totalorder %v9327_v40, %v14908_v11  ;;  %v14371_v23 = vadd.f32 %v14233_v5, %v7414_v62  ;;  %v7491_v43 = vadd.f32 %v7475_v24, %v7412_v34  ;;  %v7728_v28 = vpop.f32.mrf.mxu2  ;;  %v14911_v11 = vld [vmem:[#allocation6_spill] sm:$0xff] }
0x16f8   :  { %v7302_v49 = vpop.xlane.xlu0 %7301  ;;  %v6968_v10 = vsel %vm14909_vm9, %v14907_v20, 0.0  ;;  %v7320_v17 = vshll.u32 %v7319_v59, 16  ;;  %vm14912_vm15 = vcmp.eq.s32.totalorder %v9327_v40, %v14911_v11  ;;  %vm14937_vm9 = vmmov %vm14925_vm10 }
0x16f9   :  { %v7303_v54 = vcvt.f32.s32 %v7302_v49  ;;  %8458 = vmatmul.msk.f32.gmra.mxu1 %vm299_vm2, %v7367_v15  ;;  %8475 = vmatmul.msk.f32.gmra.mxu2 %vm299_vm2, %v7367_v15  ;;  %v7444_v18 = vmul.f32 %v14371_v23, %v14371_v23  ;;  %v7507_v37 = vmul.f32 0.7978846, %v7491_v43 }
0x16fb   :  { %v7306_v52 = vadd.s32 %v7305_v16, %v7303_v54  ;;  %v7665_v33 = vpop.f32.mrf.mxu1  ;;  %v7460_v9 = vmul.f32 %v7444_v18, %v14371_v23  ;;  %8885 = vtanh.f32 %v7507_v37 }
0x16fc   :  { %v7699_v22 = vmul.f32 %v7665_v33, %v7570_v50 }
0x16fd   :  { %vm7336_vm4 = vcmp.eq.s32.totalorder %v9327_v40, %v7306_v52  ;;  %v7476_v25 = vmul.f32 0.044715, %v7460_v9 }
0x16fe   :  { %v7352_v8 = vsel %vm7336_vm4, %v14907_v20, 0.0  ;;  %8485 = vmatmul.msk.f32.gmra.mxu3 %vm1860_vm11, %v7699_v22  ;;  %v7417_v41 = vpop.f32.mrf.mxu0  ;;  %v14910_v20 = vld [vmem:[#allocation5_spill] sm:$0xff] }
0x16ff   :  { %v7368_v12 = vadd.f32 %v7352_v8, %v6968_v10  ;;  %v14380_v1 = vadd.f32 %v14233_v5, %v7417_v41  ;;  %v7492_v31 = vadd.f32 %v7476_v25, %v14371_v23  ;;  %v6969_v10 = vsel %vm14912_vm15, %v14910_v20, 0.0  ;;  %v7731_v18 = vpop.f32.mrf.mxu2  ;;  %vm14941_vm15 = vmmov %vm14937_vm9 }
0x1701   :  { %8459 = vmatmul.msk.f32.gmra.mxu1 %vm299_vm2, %v7368_v12  ;;  %8476 = vmatmul.msk.f32.gmra.mxu2 %vm299_vm2, %v7368_v12  ;;  %v7445_v44 = vmul.f32 %v14380_v1, %v14380_v1  ;;  %v8886_v3 = vpop.eup %8885  ;;  %v7508_v47 = vmul.f32 0.7978846, %v7492_v31 }
0x1702   :  { %v7539_v29 = vadd.f32 1.0, %v8886_v3 }
0x1703   :  { %v7461_v51 = vmul.f32 %v7445_v44, %v14380_v1  ;;  %8887 = vtanh.f32 %v7508_v47 }
0x1704   :  { %v7555_v54 = vmul.f32 0.5, %v7539_v29 }
0x1705   :  { %v7477_v14 = vmul.f32 0.044715, %v7461_v51 }
0x1706   :  { %v7420_v6 = vpop.f32.mrf.mxu0  ;;  %v7571_v62 = vmul.f32 %v7555_v54, %v7412_v34 }
0x1707   :  { %v14386_v26 = vadd.f32 %v14233_v5, %v7420_v6  ;;  %v7493_v39 = vadd.f32 %v7477_v14, %v14380_v1 }
0x1709   :  { %v7446_v55 = vmul.f32 %v14386_v26, %v14386_v26  ;;  %v7509_v52 = vmul.f32 0.7978846, %v7493_v39  ;;  %v8888_v22 = vpop.eup %8887 }
0x170b   :  { %v7462_v2 = vmul.f32 %v7446_v55, %v14386_v26  ;;  %8889 = vtanh.f32 %v7509_v52 }
0x170d   :  { %v7478_v50 = vmul.f32 0.044715, %v7462_v2 }
0x170e   :  { %v7423_v0 = vpop.f32.mrf.mxu0 }
0x170f   :  { %v14394_v57 = vadd.f32 %v14233_v5, %v7423_v0  ;;  %v7494_v19 = vadd.f32 %v7478_v50, %v14386_v26 }
0x1711   :  { %v7447_v7 = vmul.f32 %v14394_v57, %v14394_v57  ;;  %v7510_v6 = vmul.f32 0.7978846, %v7494_v19  ;;  %v8890_v44 = vpop.eup %8889 }
0x1712   :  { %v7541_v14 = vadd.f32 1.0, %v8890_v44 }
0x1713   :  { %v7463_v13 = vmul.f32 %v7447_v7, %v14394_v57  ;;  %8891 = vtanh.f32 %v7510_v6 }
0x1715   :  { %v7479_v34 = vmul.f32 0.044715, %v7463_v13 }
0x1716   :  { %v7426_v49 = vpop.f32.mrf.mxu0 }
0x1717   :  { %v14407_v41 = vadd.f32 %v14233_v5, %v7426_v49  ;;  %v7495_v0 = vadd.f32 %v7479_v34, %v14394_v57 }
0x1719   :  { %v7448_v43 = vmul.f32 %v14407_v41, %v14407_v41  ;;  %v7511_v2 = vmul.f32 0.7978846, %v7495_v0 }
0x171b   :  { %v7464_v51 = vmul.f32 %v7448_v43, %v14407_v41  ;;  %8893 = vtanh.f32 %v7511_v2 }
0x171d   :  { %v7480_v59 = vmul.f32 0.044715, %v7464_v51 }
0x171e   :  { %v7429_v9 = vpop.f32.mrf.mxu0 }
0x171f   :  { %v14418_v31 = vadd.f32 %v14233_v5, %v7429_v9 }
0x1721   :  { %v7449_v29 = vmul.f32 %v14418_v31, %v14418_v31 }
0x1723   :  { %v7465_v49 = vmul.f32 %v7449_v29, %v14418_v31 }
0x1725   :  { %v7481_v52 = vmul.f32 0.044715, %v7465_v49 }
0x1743   :  { %v7317_v61 = vpop.xlane.xlu1 %7316 }
0x1744   :  { %v7318_v15 = vcvt.f32.s32 %v7317_v61  ;;  %v7734_v61 = vpop.f32.mrf.mxu2 }
0x1746   :  { %v7321_v16 = vadd.s32 %v7320_v17, %v7318_v15  ;;  %v7557_v17 = vmul.f32 0.5, %v7541_v14 }
0x1748   :  { %vm7337_vm8 = vcmp.eq.s32.totalorder %v9327_v40, %v7321_v16  ;;  %v7540_v40 = vadd.f32 1.0, %v8888_v22  ;;  %v7573_v16 = vmul.f32 %v7557_v17, %v14380_v1 }
0x1749   :  { %v7838_v33 = vpop.f32.mrf.mxu3  ;;  %v7353_v8 = vsel %vm7337_vm8, %v14910_v20, 0.0 }
0x174a   :  { %v7839_v12 = vadd.f32 %v7838_v33, %v7725_v42  ;;  %v7369_v63 = vadd.f32 %v7353_v8, %v6969_v10  ;;  %v7556_v25 = vmul.f32 0.5, %v7540_v40 }
0x174b   :  { %v7668_v46 = vpop.f32.mrf.mxu1 }
0x174c   :  { %8495 = vmatmul.msk.f32.vlgmr.msra.gmra.mxu0 %vm14913_vm3, %v7839_v12  ;;  %v7700_v24 = vmul.f32 %v7668_v46, %v7571_v62  ;;  %8460 = vmatmul.msk.f32.gmra.mxu1 %vm299_vm2, %v7369_v63  ;;  %v7572_v3 = vmul.f32 %v7556_v25, %v14371_v23  ;;  %v7496_v23 = vadd.f32 %v7480_v59, %v14407_v41  ;;  %v7737_v8 = vpop.f32.mrf.mxu2 }
0x174d   :  { %8477 = vmatmul.msk.f32.gmra.mxu2 %vm299_vm2, %v7369_v63  ;;  %vm14914_vm2 = vmmov %vm14913_vm3  ;;  %v7497_v12 = vadd.f32 %v7481_v52, %v14418_v31 }
0x174e   :  { %8486 = vmatmul.msk.f32.gmra.mxu3 %vm1860_vm11, %v7700_v24  ;;  %vm14915_vm7 = vmmov %vm14914_vm2  ;;  %v7512_v33 = vmul.f32 0.7978846, %v7496_v23 }
0x174f   :  { %vm14916_vm14 = vmmov %vm14914_vm2  ;;  %v7513_v46 = vmul.f32 0.7978846, %v7497_v12 }
0x1750   :  { %8895 = vtanh.f32 %v7512_v33  ;;  %vm14917_vm6 = vmmov %vm14914_vm2  ;;  %v14921_v33 = vld [vmem:[#allocation8_spill] sm:$0xff] }
0x1751   :  { %v7841_v37 = vpop.f32.mrf.mxu3  ;;  %8897 = vtanh.f32 %v7513_v46  ;;  %vm14918_vm0 = vmmov %vm14914_vm2 }
0x1752   :  { %v7842_v42 = vadd.f32 %v7841_v37, %v7728_v28  ;;  %v8892_v28 = vpop.eup %8891  ;;  %vm14919_vm13 = vmmov %vm14918_vm0 }
0x1753   :  { %v7542_v54 = vadd.f32 1.0, %v8892_v28  ;;  %v8894_v11 = vpop.eup %8893  ;;  %vm14920_vm1 = vmmov %vm14918_vm0  ;;  %v7432_v28 = vpop.f32.mrf.mxu0 }
0x1754   :  { %8496 = vmatmul.msk.f32.gmra.mxu0 %vm14914_vm2, %v7842_v42  ;;  %v7543_v1 = vadd.f32 1.0, %v8894_v11  ;;  %v7740_v34 = vpop.f32.mrf.mxu2  ;;  %v14922_v11 = vld [vmem:[#allocation22_spill] sm:$0xff]  ;;  %vm14930_vm5 = vmmov %vm14918_vm0 }
0x1755   :  { %v7558_v20 = vmul.f32 0.5, %v7542_v54  ;;  %vm14935_vm4 = vmmov %vm14918_vm0 }
0x1756   :  { %v7671_v55 = vpop.f32.mrf.mxu1  ;;  %v7559_v24 = vmul.f32 0.5, %v7543_v1  ;;  %v8896_v40 = vpop.eup %8895  ;;  %vm14939_vm8 = vmmov %vm14918_vm0 }
0x1757   :  { %v7701_v47 = vmul.f32 %v7671_v55, %v7572_v3  ;;  %v7574_v63 = vmul.f32 %v7558_v20, %v14386_v26  ;;  %v7544_v6 = vadd.f32 1.0, %v8896_v40  ;;  %v8898_v44 = vpop.eup %8897  ;;  %v14926_v40 = vld [vmem:[#allocation23_spill] sm:$0xff]  ;;  %vm14943_vm3 = vmmov %vm14918_vm0 }
0x1758   :  { %v7575_v43 = vmul.f32 %v7559_v24, %v14394_v57  ;;  %v7545_v0 = vadd.f32 1.0, %v8898_v44  ;;  %v14928_v44 = vld [vmem:[#allocation7_spill] sm:$0xff]  ;;  %vm14945_vm2 = vmmov %vm14937_vm9 }
0x1759   :  { %v7844_v39 = vpop.f32.mrf.mxu3  ;;  %8487 = vmatmul.msk.f32.gmra.mxu3 %vm1860_vm11, %v7701_v47  ;;  %v7560_v25 = vmul.f32 0.5, %v7544_v6 }
0x175a   :  { %v7845_v15 = vadd.f32 %v7844_v39, %v7731_v18  ;;  %v7561_v57 = vmul.f32 0.5, %v7545_v0 }
0x175b   :  { %v7576_v51 = vmul.f32 %v7560_v25, %v14407_v41 }
0x175c   :  { %8497 = vmatmul.msk.f32.gmra.mxu0 %vm14915_vm7, %v7845_v15  ;;  %v7743_v14 = vpop.f32.mrf.mxu2  ;;  %v7577_v29 = vmul.f32 %v7561_v57, %v14418_v31  ;;  %v7433_v15 = vadd.f32 %v14233_v5, %v7432_v28  ;;  %v14449_v31 = vld [vmem:[%s14598_s9] ss:$0 sm:$0xff]  ;;  %vm14947_vm7 = vmmov %vm14918_vm0 }
0x175d   :  { %v14923_v5 = vld [vmem:[#allocation38_spill] sm:$0xff] }
0x175e   :  { %v7674_v50 = vpop.f32.mrf.mxu1  ;;  %v7450_v49 = vmul.f32 %v7433_v15, %v7433_v15  ;;  %v14936_v28 = vld [vmem:[#allocation10_spill] sm:$0xff] }
0x175f   :  { %v7702_v7 = vmul.f32 %v7674_v50, %v7573_v16 }
0x1760   :  { %v7466_v23 = vmul.f32 %v7450_v49, %v7433_v15 }
0x1761   :  { %v7847_v22 = vpop.f32.mrf.mxu3  ;;  %8488 = vmatmul.msk.f32.gmra.mxu3 %vm1860_vm11, %v7702_v7 }
0x1762   :  { %v7848_v10 = vadd.f32 %v7847_v22, %v7734_v61  ;;  %v7482_v16 = vmul.f32 0.044715, %v7466_v23  ;;  %v2088_v22 = vadd.f32 %v14449_v31, %v14921_v33  ;;  %v14940_v33 = vld [vmem:[#allocation11_spill] sm:$0xff] }
0x1764   :  { %8498 = vmatmul.msk.f32.gmra.mxu0 %vm14916_vm14, %v7848_v10  ;;  %v7746_v39 = vpop.f32.mrf.mxu2  ;;  %v7498_v54 = vadd.f32 %v7482_v16, %v7433_v15  ;;  %v4059_v10 = vadd.f32 %v14922_v11, %v2088_v22  ;;  %v14938_v16 = vld [vmem:[#allocation26_spill] sm:$0xff]  ;;  %v2093_v22 = vadd.f32 %v14449_v31, %v14940_v33  ;;  %vm14949_vm14 = vmmov %vm14945_vm2  ;;  %v14962_v33 = vld [vmem:[#allocation17_spill] sm:$0xff] }
0x1766   :  { %v7677_v62 = vpop.f32.mrf.mxu1  ;;  %v7514_v50 = vmul.f32 0.7978846, %v7498_v54 }
0x1767   :  { %v7703_v13 = vmul.f32 %v7677_v62, %v7574_v63 }
0x1768   :  { %8899 = vtanh.f32 %v7514_v50 }
0x1769   :  { %v7850_v19 = vpop.f32.mrf.mxu3  ;;  %8489 = vmatmul.msk.f32.gmra.mxu3 %vm1860_vm11, %v7703_v13 }
0x176a   :  { %v7851_v18 = vadd.f32 %v7850_v19, %v7737_v8  ;;  %v6030_v8 = vadd.f32 %v14923_v5, %v4059_v10  ;;  %v14924_v19 = vld [vmem:[#allocation4_spill] sm:$0xff]  ;;  %v14942_v10 = vld [vmem:[#allocation27_spill] sm:$0xff] }
0x176b   :  { %v2089_v24 = vadd.f32 %v14449_v31, %v14924_v19  ;;  %v4064_v5 = vadd.f32 %v14942_v10, %v2093_v22  ;;  %v14946_v19 = vld [vmem:[#allocation28_spill] sm:$0xff]  ;;  %v2099_v22 = vadd.f32 %v14449_v31, %v14962_v33 }
0x176c   :  { %8499 = vmatmul.msk.f32.gmra.mxu0 %vm14917_vm6, %v7851_v18  ;;  %v7749_v1 = vpop.f32.mrf.mxu2  ;;  %vm14951_vm6 = vmmov %vm14918_vm0 }
0x176d   :  { %v4060_v18 = vadd.f32 %v14926_v40, %v2089_v24 }
0x176e   :  { %v7680_v9 = vpop.f32.mrf.mxu1  ;;  %v8900_v7 = vpop.eup %8899 }
0x176f   :  { %v7704_v37 = vmul.f32 %v7680_v9, %v7575_v43  ;;  %v7546_v52 = vadd.f32 1.0, %v8900_v7 }
0x1771   :  { %v7853_v26 = vpop.f32.mrf.mxu3  ;;  %8490 = vmatmul.msk.f32.gmra.mxu3 %vm1860_vm11, %v7704_v37  ;;  %v7562_v20 = vmul.f32 0.5, %v7546_v52 }
0x1772   :  { %v7854_v42 = vadd.f32 %v7853_v26, %v7740_v34  ;;  %v14927_v34 = vld [vmem:[#allocation39_spill] sm:$0xff] }
0x1773   :  { %v7578_v12 = vmul.f32 %v7562_v20, %v7433_v15  ;;  %v6031_v43 = vadd.f32 %v14927_v34, %v4060_v18  ;;  %v2092_v15 = vadd.f32 %v14449_v31, %v14936_v28 }
0x1774   :  { %8500 = vmatmul.msk.f32.gmra.mxu0 %vm14918_vm0, %v7854_v42  ;;  %v7752_v9 = vpop.f32.mrf.mxu2  ;;  %v2090_v42 = vadd.f32 %v14449_v31, %v14928_v44  ;;  %vm14952_vm0 = vmmov %vm14945_vm2 }
0x1775   :  { %v4063_v54 = vadd.f32 %v14938_v16, %v2092_v15 }
0x1776   :  { %v7683_v3 = vpop.f32.mrf.mxu1 }
0x1777   :  { %v7705_v55 = vmul.f32 %v7683_v3, %v7576_v51  ;;  %v14931_v51 = vld [vmem:[#allocation24_spill] sm:$0xff]  ;;  %v6034_v7 = vadd.f32 %v14129_v56, %v4063_v54 }
0x1778   :  { %v4061_v0 = vadd.f32 %v14931_v51, %v2090_v42  ;;  %v14961_v54 = vld [vmem:[#allocation32_spill] sm:$0xff] }
0x1779   :  { %v7856_v47 = vpop.f32.mrf.mxu3  ;;  %8491 = vmatmul.msk.f32.gmra.mxu3 %vm1860_vm11, %v7705_v55 }
0x177a   :  { %v7857_v59 = vadd.f32 %v7856_v47, %v7743_v14  ;;  %v6032_v3 = vadd.f32 %v14095_v38, %v4061_v0  ;;  %v14932_v47 = vld [vmem:[#allocation9_spill] sm:$0xff] }
0x177b   :  { %v2091_v57 = vadd.f32 %v14449_v31, %v14932_v47  ;;  %v14955_v47 = vld [vmem:[#allocation30_spill] sm:$0xff] }
0x177c   :  { %8501 = vmatmul.msk.f32.gmra.mxu0 %vm14919_vm13, %v7857_v59  ;;  %v7755_v59 = vpop.f32.mrf.mxu2  ;;  %vm14953_vm13 = vmmov %vm14920_vm1 }
0x177e   :  { %v7686_v2 = vpop.f32.mrf.mxu1 }
0x177f   :  { %v7706_v61 = vmul.f32 %v7686_v2, %v7577_v29 }
0x1781   :  { %v7859_v17 = vpop.f32.mrf.mxu3  ;;  %8492 = vmatmul.msk.f32.gmra.mxu3 %vm1860_vm11, %v7706_v61  ;;  %v14934_v61 = vld [vmem:[#allocation25_spill] sm:$0xff] }
0x1782   :  { %v7860_v41 = vadd.f32 %v7859_v17, %v7746_v39  ;;  %v4062_v39 = vadd.f32 %v14934_v61, %v2091_v57 }
0x1784   :  { %8502 = vmatmul.msk.f32.gmra.mxu0 %vm14920_vm1, %v7860_v41  ;;  %v6033_v17 = vadd.f32 %v14106_v58, %v4062_v39  ;;  %v7758_v50 = vpop.f32.mrf.mxu2 }
0x17c9   :  { %v7953_v63 = vpop.f32.mrf.mxu0  ;;  %v7689_v62 = vpop.f32.mrf.mxu1 }
0x17ca   :  { %v8001_v13 = vadd.f32 %v7953_v63, %v6030_v8  ;;  %v7707_v46 = vmul.f32 %v7689_v62, %v7578_v12  ;;  %v6035_v8 = vadd.f32 %v14154_v35, %v4064_v5  ;;  %v7761_v12 = vpop.f32.mrf.mxu2 }
0x17cc   :  { %8017 = vst.msk [vmem:[%s14599_s11] sm:$0xff] %vm14925_vm10, %v8001_v13  ;;  %8493 = vmatmul.msk.f32.gmra.mxu3 %vm1860_vm11, %v7707_v46  ;;  %vm14933_vm11 = vmmov %vm14925_vm10 }
0x17cd   :  { %vm14956_vm10 = vmmov %vm14952_vm0 }
0x17d1   :  { %v7956_v6 = vpop.f32.mrf.mxu0  ;;  %v7862_v37 = vpop.f32.mrf.mxu3 }
0x17d2   :  { %v8002_v26 = vadd.f32 %v7956_v6, %v6031_v43  ;;  %v7863_v25 = vadd.f32 %v7862_v37, %v7749_v1  ;;  %v14944_v1 = vld [vmem:[#allocation12_spill] sm:$0xff]  ;;  %v7764_v18 = vpop.f32.mrf.mxu2  ;;  %v14948_v43 = vld [vmem:[#allocation13_spill] sm:$0xff] }
0x17d3   :  { %v2094_v62 = vadd.f32 %v14449_v31, %v14944_v1  ;;  %v2095_v6 = vadd.f32 %v14449_v31, %v14948_v43 }
0x17d4   :  { %8018 = vst.msk [vmem:[%s14599_s11 + $0x8] sm:$0xff] %vm14929_vm12, %v8002_v26  ;;  %8503 = vmatmul.msk.f32.gmra.mxu0 %vm14930_vm5, %v7863_v25  ;;  %v14950_v26 = vld [vmem:[#allocation29_spill] sm:$0xff]  ;;  %vm14960_vm12 = vmmov %vm14952_vm0 }
0x17d5   :  { %v4065_v24 = vadd.f32 %v14946_v19, %v2094_v62  ;;  %v4066_v25 = vadd.f32 %v14950_v26, %v2095_v6  ;;  %vm14963_vm5 = vmmov %vm14952_vm0 }
0x17d7   :  { %v6036_v40 = vadd.f32 %v14173_v53, %v4065_v24  ;;  %v6037_v44 = vadd.f32 %v14189_v32, %v4066_v25  ;;  %v14976_v25 = vld [vmem:[#allocation37_spill] sm:$0xff] }
0x17d9   :  { %v7959_v14 = vpop.f32.mrf.mxu0 }
0x17da   :  { %v8003_v55 = vadd.f32 %v7959_v14, %v6032_v3  ;;  %v7767_v51 = vpop.f32.mrf.mxu2  ;;  %v14954_v14 = vld [vmem:[#allocation14_spill] sm:$0xff] }
0x17dc   :  { %8019 = vst.msk [vmem:[%s14599_s11 + $0x10] sm:$0xff] %vm14933_vm11, %v8003_v55  ;;  %v7865_v29 = vpop.f32.mrf.mxu3  ;;  %v2096_v55 = vadd.f32 %v14449_v31, %v14954_v14  ;;  %vm14966_vm11 = vmmov %vm14952_vm0 }
0x17dd   :  { %v7866_v2 = vadd.f32 %v7865_v29, %v7752_v9 }
0x17de   :  { %v4067_v57 = vadd.f32 %v14955_v47, %v2096_v55 }
0x17df   :  { %8504 = vmatmul.msk.f32.gmra.mxu0 %vm14935_vm4, %v7866_v2  ;;  %vm14969_vm4 = vmmov %vm14952_vm0 }
0x17e0   :  { %v6038_v32 = vadd.f32 %v14205_v21, %v4067_v57  ;;  %v14959_v21 = vld [vmem:[#allocation16_spill] sm:$0xff] }
0x17e1   :  { %v7962_v38 = vpop.f32.mrf.mxu0  ;;  %v2098_v16 = vadd.f32 %v14449_v31, %v14959_v21 }
0x17e2   :  { %v8004_v41 = vadd.f32 %v7962_v38, %v6033_v17  ;;  %v14957_v17 = vld [vmem:[#allocation15_spill] sm:$0xff] }
0x17e3   :  { %v2097_v38 = vadd.f32 %v14449_v31, %v14957_v17 }
0x17e4   :  { %8020 = vst.msk [vmem:[%s14599_s11 + $0x18] sm:$0xff] %vm14937_vm9, %v8004_v41  ;;  %v7868_v49 = vpop.f32.mrf.mxu3  ;;  %v14958_v41 = vld [vmem:[#allocation31_spill] sm:$0xff]  ;;  %vm14972_vm9 = vmmov %vm14952_vm0 }
0x17e5   :  { %v7869_v23 = vadd.f32 %v7868_v49, %v7755_v59  ;;  %v7770_v59 = vpop.f32.mrf.mxu2  ;;  %v4068_v28 = vadd.f32 %v14958_v41, %v2097_v38 }
0x17e7   :  { %8505 = vmatmul.msk.f32.gmra.mxu0 %vm14939_vm8, %v7869_v23  ;;  %v6039_v15 = vadd.f32 %v14220_v48, %v4068_v28  ;;  %v14964_v48 = vld [vmem:[#allocation33_spill] sm:$0xff]  ;;  %vm14974_vm8 = vmmov %vm14952_vm0 }
0x17e9   :  { %v7965_v58 = vpop.f32.mrf.mxu0 }
0x17ea   :  { %v8005_v52 = vadd.f32 %v7965_v58, %v6034_v7 }
0x17ec   :  { %8021 = vst.msk [vmem:[%s14599_s11 + $0x20] sm:$0xff] %vm14941_vm15, %v8005_v52  ;;  %v7871_v20 = vpop.f32.mrf.mxu3  ;;  %vm14977_vm15 = vmmov %vm14952_vm0 }
0x17ed   :  { %v7872_v11 = vadd.f32 %v7871_v20, %v7758_v50  ;;  %v4069_v50 = vadd.f32 %v14961_v54, %v2098_v16  ;;  %v4070_v20 = vadd.f32 %v14964_v48, %v2099_v22 }
0x17ef   :  { %8506 = vmatmul.msk.f32.gmra.mxu0 %vm14943_vm3, %v7872_v11  ;;  %v6040_v7 = vadd.f32 %v14226_v4, %v4069_v50  ;;  %v6041_v11 = vadd.f32 %v14228_v27, %v4070_v20  ;;  %v14967_v4 = vld [vmem:[#allocation34_spill] sm:$0xff]  ;;  %v14970_v27 = vld [vmem:[#allocation35_spill] sm:$0xff] }
0x17f1   :  { %v7968_v56 = vpop.f32.mrf.mxu0 }
0x17f2   :  { %v8006_v63 = vadd.f32 %v7968_v56, %v6035_v8  ;;  %v14965_v8 = vld [vmem:[#allocation18_spill] sm:$0xff] }
0x17f4   :  { %8022 = vst.msk [vmem:[%s14599_s11 + $0x28] sm:$0xff] %vm14945_vm2, %v8006_v63  ;;  %v7874_v13 = vpop.f32.mrf.mxu3 }
0x17f5   :  { %v7875_v46 = vadd.f32 %v7874_v13, %v7761_v12  ;;  %v2100_v12 = vadd.f32 %v14449_v31, %v14965_v8  ;;  %v14968_v13 = vld [vmem:[#allocation19_spill] sm:$0xff] }
0x17f7   :  { %8507 = vmatmul.msk.f32.gmra.mxu0 %vm14947_vm7, %v7875_v46  ;;  %v4071_v56 = vadd.f32 %v14967_v4, %v2100_v12  ;;  %v2101_v46 = vadd.f32 %v14449_v31, %v14968_v13 }
0x17f9   :  { %v7971_v35 = vpop.f32.mrf.mxu0  ;;  %v6042_v63 = vadd.f32 %v14236_v45, %v4071_v56  ;;  %v4072_v19 = vadd.f32 %v14970_v27, %v2101_v46  ;;  %v14973_v45 = vld [vmem:[#allocation36_spill] sm:$0xff] }
0x17fa   :  { %v8007_v34 = vadd.f32 %v7971_v35, %v6036_v40 }
0x17fb   :  { %v6043_v24 = vadd.f32 %v14239_v30, %v4072_v19  ;;  %v14975_v30 = vld [vmem:[#allocation21_spill] sm:$0xff] }
0x17fc   :  { %8023 = vst.msk [vmem:[%s14599_s11 + $0x30] sm:$0xff] %vm14949_vm14, %v8007_v34  ;;  %v7877_v9 = vpop.f32.mrf.mxu3  ;;  %v2103_v26 = vadd.f32 %v14449_v31, %v14975_v30 }
0x17fd   :  { %v7878_v37 = vadd.f32 %v7877_v9, %v7764_v18  ;;  %v14971_v18 = vld [vmem:[#allocation20_spill] sm:$0xff] }
0x17fe   :  { %v2102_v34 = vadd.f32 %v14449_v31, %v14971_v18 }
0x17ff   :  { %8508 = vmatmul.msk.f32.gmra.mxu0 %vm14951_vm6, %v7878_v37 }
0x1800   :  { %v4073_v43 = vadd.f32 %v14973_v45, %v2102_v34 }
0x1801   :  { %v7974_v53 = vpop.f32.mrf.mxu0 }
0x1802   :  { %v8008_v42 = vadd.f32 %v7974_v53, %v6037_v44  ;;  %v6044_v6 = vadd.f32 %v14250_v60, %v4073_v43  ;;  %v4074_v44 = vadd.f32 %v14976_v25, %v2103_v26 }
0x1804   :  { %8024 = vst.msk [vmem:[%s14599_s11 + $0x38] sm:$0xff] %vm14952_vm0, %v8008_v42  ;;  %v7880_v0 = vpop.f32.mrf.mxu3  ;;  %v6045_v53 = vadd.f32 %v14261_v36, %v4074_v44 }
0x1805   :  { %v7881_v3 = vadd.f32 %v7880_v0, %v7767_v51 }
0x1807   :  { %8509 = vmatmul.msk.f32.gmra.mxu0 %vm14953_vm13, %v7881_v3 }
0x184f   :  { %v7883_v29 = vpop.f32.mrf.mxu3 }
0x1850   :  { %v7884_v2 = vadd.f32 %v7883_v29, %v7770_v59 }
0x1851   :  { %v7977_v61 = vpop.f32.mrf.mxu0 }
0x1852   :  { %v8009_v39 = vadd.f32 %v7977_v61, %v6038_v32  ;;  %8510 = vmatmul.msk.f32.gmra.mxu0 %vm14920_vm1, %v7884_v2 }
0x1854   :  { %8025 = vst.msk [vmem:[%s14599_s11 + $0x40] sm:$0xff] %vm14956_vm10, %v8009_v39 }
0x185c   :  { %v7980_v49 = vpop.f32.mrf.mxu0 }
0x185d   :  { %v8010_v23 = vadd.f32 %v7980_v49, %v6039_v15 }
0x185f   :  { %8026 = vst.msk [vmem:[%s14599_s11 + $0x48] sm:$0xff] %vm14960_vm12, %v8010_v23 }
0x1864   :  { %v7983_v58 = vpop.f32.mrf.mxu0 }
0x1865   :  { %v8011_v52 = vadd.f32 %v7983_v58, %v6040_v7 }
0x1867   :  { %8027 = vst.msk [vmem:[%s14599_s11 + $0x50] sm:$0xff] %vm14963_vm5, %v8011_v52 }
0x186c   :  { %v7986_v10 = vpop.f32.mrf.mxu0 }
0x186d   :  { %v8012_v5 = vadd.f32 %v7986_v10, %v6041_v11 }
0x186f   :  { %8028 = vst.msk [vmem:[%s14599_s11 + $0x58] sm:$0xff] %vm14966_vm11, %v8012_v5 }
0x1874   :  { %v7989_v1 = vpop.f32.mrf.mxu0 }
0x1875   :  { %v8013_v62 = vadd.f32 %v7989_v1, %v6042_v63 }
0x1877   :  { %8029 = vst.msk [vmem:[%s14599_s11 + $0x60] sm:$0xff] %vm14969_vm4, %v8013_v62 }
0x187c   :  { %v7992_v40 = vpop.f32.mrf.mxu0 }
0x187d   :  { %v8014_v35 = vadd.f32 %v7992_v40, %v6043_v24 }
0x187f   :  { %8030 = vst.msk [vmem:[%s14599_s11 + $0x68] sm:$0xff] %vm14972_vm9, %v8014_v35 }
0x1884   :  { %v7995_v9 = vpop.f32.mrf.mxu0 }
0x1885   :  { %v8015_v37 = vadd.f32 %v7995_v9, %v6044_v6 }
0x1887   :  { %8031 = vst.msk [vmem:[%s14599_s11 + $0x70] sm:$0xff] %vm14974_vm8, %v8015_v37 }
0x18cf   :  { %v7998_v42 = vpop.f32.mrf.mxu0 }
0x18d0   :  { %v8016_v51 = vadd.f32 %v7998_v42, %v6045_v53 }
0x18d2   :  { %8032 = vst.msk [vmem:[%s14599_s11 + $0x78] sm:$0xff] %vm14977_vm15, %v8016_v51 }

</bundles_post_ra>
